<compile_context>
chip_gen: v6e
topology: v6e:2x2x1
jax: 0.10.0
libtpu: 0.0.40
codegen_flags: <defaults>
</compile_context>

<pallas_src>
import functools

import jax
import jax.numpy as jnp
from jax.experimental import pallas as pl
from jax.experimental.pallas import tpu as pltpu

# --- ImpNet config (matches the PyTorch module: input_dim=2, hidden=32,
#     hidden_n_layers=3 -> 5 SineLayers with a mid skip, 6 encoding functions) -
D = 2                   # input_dim (spatial coords)
NF = 6                  # input_n_encoding_functions
H = 32                  # hidden_dim
OUT = 3                 # output_dim
IN_OMEGA = 30.0         # input_omega_0
HID_OMEGA = 30.0        # hidden_omega_0
ENC_DIM = 2 * NF * D + D        # 26 (sin, cos, append_coords)
SKIP_DIM = H + ENC_DIM          # 58 (mid-skip concat width)

N = 256                 # demo point count

# --- packed parameter slab layout -------------------------------------------
# One f32 (136, 128) array. Layer l's weight (out_l, in_l), already scaled by
# its omega, lives at rows [ROW_OFF[l], ROW_OFF[l]+out_l), lanes [0, in_l);
# its (omega-scaled) bias is a column at lane BIAS_LANE of the same rows.
ROW_OFF = (0, 32, 64, 96, 128)
SLAB_ROWS = 136                 # 128 + 8 (last layer's 3 rows padded to a sublane tile)
SLAB_LANES = 128
BIAS_LANE = SLAB_LANES - 1

MAX_TILE = 4096   # >=2k points/tile already near HBM roofline; keeps VMEM tiny on v7x


def impnet_kernel(coords_ref, slab_ref, out_ref):
    f32 = jnp.float32
    dot = functools.partial(jnp.dot, preferred_element_type=f32)
    r0, r1, r2, r3, r4 = ROW_OFF

    # InputEncoding: x = (coords + 1)/2 + 1 ; pre[d*NF+f] = 2^f * x[d]
    xs = (coords_ref[...] + 1.0) * 0.5 + 1.0                       # (D, T)
    pre_rows = [xs[d:d + 1, :] * float(2.0 ** f)                   # VPU scalar muls,
                for d in range(D) for f in range(NF)]              # no K=2 MXU pass
    pre = jnp.concatenate(pre_rows, axis=0)                        # (D*NF, T)
    enc = jnp.concatenate([jnp.sin(pre), jnp.cos(pre), xs], axis=0)  # (ENC_DIM, T)

    # Omegas are folded into the packed weights/biases: sin(om*(Wx+b)) == sin((om W)x + om b)
    # layer 0 (first sine layer)
    w0 = slab_ref[r0:r0 + H, 0:ENC_DIM]
    b0 = slab_ref[r0:r0 + H, BIAS_LANE:BIAS_LANE + 1]
    h = jnp.sin(dot(w0, enc) + b0)                                 # (H, T)

    # layer 1
    w1 = slab_ref[r1:r1 + H, 0:H]
    b1 = slab_ref[r1:r1 + H, BIAS_LANE:BIAS_LANE + 1]
    h = jnp.sin(dot(w1, h) + b1)

    # layer 2 (mid skip: concat([h, enc]) along the feature/sublane axis)
    hskip = jnp.concatenate([h, enc], axis=0)                      # (SKIP_DIM, T)
    w2 = slab_ref[r2:r2 + H, 0:SKIP_DIM]
    b2 = slab_ref[r2:r2 + H, BIAS_LANE:BIAS_LANE + 1]
    h = jnp.sin(dot(w2, hskip) + b2)

    # layer 3
    w3 = slab_ref[r3:r3 + H, 0:H]
    b3 = slab_ref[r3:r3 + H, BIAS_LANE:BIAS_LANE + 1]
    h = jnp.sin(dot(w3, h) + b3)

    # layer 4 (is_last_linear=False -> final SineLayer), lane-dense (OUT, T) store
    w4 = slab_ref[r4:r4 + OUT, 0:H]
    b4 = slab_ref[r4:r4 + OUT, BIAS_LANE:BIAS_LANE + 1]
    out_ref[...] = jnp.sin(dot(w4, h) + b4)


# --- grid / tiling selection per TPU generation ------------------------------
def _num_tensorcores():
    try:
        kind = jax.devices()[0].device_kind.lower()
    except Exception:
        return 1
    # v7x has 2 TensorCores per chip; v5e/v6e have 1 (single grid step is best).
    return 2 if ("v7" in kind or "7x" in kind) else 1


def _round_up(x, m):
    return ((x + m - 1) // m) * m


def _choose_tiling(n, n_cores):
    per_core = -(-n // n_cores)
    tile = min(_round_up(per_core, 128), MAX_TILE)   # lane-width multiple, VMEM-safe cap
    npad = _round_up(n, tile)
    return npad, tile


def impnet_pallas(coords, slab):
    n, d = coords.shape
    assert d == D
    n_cores = _num_tensorcores()
    npad, tile = _choose_tiling(n, n_cores)
    if npad != n:   # no silent tail drop: pad then slice back
        coords = jnp.concatenate(
            [coords, jnp.zeros((npad - n, D), coords.dtype)], axis=0)
    coords_t = coords.T                                      # (D, npad): points on lanes
    grid = (npad // tile,)

    out_t = pl.pallas_call(
        impnet_kernel,
        out_shape=jax.ShapeDtypeStruct((OUT, npad), jnp.float32),
        grid=grid,
        in_specs=[
            pl.BlockSpec((D, tile), lambda i: (0, i)),               # coords tile
            pl.BlockSpec((SLAB_ROWS, SLAB_LANES), lambda i: (0, 0)),  # params, resident
        ],
        out_specs=pl.BlockSpec((OUT, tile), lambda i: (0, i)),
        compiler_params=pltpu.CompilerParams(
            dimension_semantics=("parallel",)),
    )(coords_t, slab)
    return out_t[:, :n].T                                    # back to (n, OUT)


def impnet_forward(coords, slab):
    # clone=True path of the torch module returns (x, coords).
    # TODO(synk): coords.clone().detach().requires_grad_(True) is autograd
    # bookkeeping with no forward-pass equivalent; coords is returned as-is.
    return impnet_pallas(coords, slab), coords


# --- deterministic parameter construction (mirrors the torch __init__) -------
def make_params(key):
    freqs = 2.0 ** jnp.arange(NF, dtype=jnp.float32)   # base_omega_0 = 1.0

    def uniform(k, shape, lo, hi):
        return jax.random.uniform(k, shape, jnp.float32, lo, hi)

    def sine_layer(k, in_dim, out_dim, is_first, omega):
        kw, kb = jax.random.split(k)
        bound = (1.0 / in_dim) if is_first else ((6.0 / in_dim) ** 0.5 / omega)
        w = uniform(kw, (in_dim, out_dim), -bound, bound)   # stored (in, out)
        bb = 1.0 / (in_dim ** 0.5)                          # torch Linear bias init
        b = uniform(kb, (out_dim,), -bb, bb)
        return w, b

    ks = jax.random.split(key, 5)
    l0 = sine_layer(ks[0], ENC_DIM, H, True, IN_OMEGA)
    l1 = sine_layer(ks[1], H, H, False, HID_OMEGA)
    l2 = sine_layer(ks[2], SKIP_DIM, H, False, HID_OMEGA)   # skip layer
    l3 = sine_layer(ks[3], H, H, False, HID_OMEGA)
    l4 = sine_layer(ks[4], H, OUT, False, HID_OMEGA)        # last SineLayer
    return (l0, l1, l2, l3, l4), freqs


def pack_params(params):
    """Pack (in,out)-layout weights + biases into one (136,128) slab.

    Weights are transposed to (out, in) and pre-scaled by their omega
    (sin(om*(Wx+b)) == sin((om*W)x + om*b)); biases go to the BIAS_LANE column.
    """
    (w0, b0), (w1, b1), (w2, b2), (w3, b3), (w4, b4) = params
    layers = ((w0, b0, IN_OMEGA), (w1, b1, HID_OMEGA), (w2, b2, HID_OMEGA),
              (w3, b3, HID_OMEGA), (w4, b4, HID_OMEGA))
    slab = jnp.zeros((SLAB_ROWS, SLAB_LANES), jnp.float32)
    for (w, b, om), r in zip(layers, ROW_OFF):
        wt = (om * w).T                     # (out, in)
        o, i = wt.shape
        slab = slab.at[r:r + o, 0:i].set(wt)
        slab = slab.at[r:r + o, BIAS_LANE].set(om * b)
    return slab


# --- pure-JAX reference (mirrors torch forward exactly) -----------------------
def impnet_ref(coords, params, freqs):
    (w0, b0), (w1, b1), (w2, b2), (w3, b3), (w4, b4) = params
    xs = (coords + 1.0) / 2.0 + 1.0
    pre = (xs[..., None] * freqs).reshape(xs.shape[0], -1)
    enc = jnp.concatenate([jnp.sin(pre), jnp.cos(pre), xs], axis=-1)
    h = jnp.sin(IN_OMEGA * (enc @ w0 + b0))
    h = jnp.sin(HID_OMEGA * (h @ w1 + b1))
    h = jnp.sin(HID_OMEGA * (jnp.concatenate([h, enc], axis=-1) @ w2 + b2))
    h = jnp.sin(HID_OMEGA * (h @ w3 + b3))
    return jnp.sin(HID_OMEGA * (h @ w4 + b4))


if __name__ == "__main__":
    key = jax.random.PRNGKey(0)
    kp, kx = jax.random.split(key)
    params, freqs = make_params(kp)
    slab = pack_params(params)
    coords = jax.random.uniform(kx, (N, D), jnp.float32, -1.0, 1.0)

    out, coords_out = impnet_forward(coords, slab)
    out = jax.block_until_ready(out)
    assert out.shape == (N, OUT) and out.dtype == jnp.float32
    assert coords_out.shape == (N, D)

    ref = jax.block_until_ready(impnet_ref(coords, params, freqs))
    max_err = float(jnp.max(jnp.abs(out - ref)))
    # 10x tighter than before. Residual error is f32 reassociation (MXU
    # accumulation order + omega folded into packed weights) amplified by
    # omega=30 inside sin across 5 layers; 5e-3 sits well above that floor.
    assert max_err < 5e-3, f"mismatch vs reference: {max_err}"

    print("KERNEL_OK")
</pallas_src>

<mosaic_0001>
module attributes {stable_mosaic.version = 11 : i64} {
  func.func @impnet_kernel(%arg0: i32, %arg1: memref<2x256xf32, #tpu.memory_space<vmem>>, %arg2: memref<136x128xf32, #tpu.memory_space<vmem>>, %arg3: memref<3x256xf32, #tpu.memory_space<vmem>>) attributes {dimension_semantics = [#tpu.dimension_semantics<parallel>], iteration_bounds = array<i64: 1>, scalar_prefetch = 0 : i64, scratch_operands = 0 : i64, tpu.core_type = #tpu.core_type<tc>, window_params = [{transform_indices = @transform_0, window_bounds = array<i64: 2, 256>}, {pipeline_mode = #tpu.pipeline_mode<synchronous>, transform_indices = @transform_1, window_bounds = array<i64: 136, 128>}, {transform_indices = @transform_2, window_bounds = array<i64: 3, 256>}]} {
    %c0 = arith.constant 0 : index
    %c0_0 = arith.constant 0 : index
    %0 = vector.load %arg1[%c0, %c0_0] : memref<2x256xf32, #tpu.memory_space<vmem>>, vector<2x256xf32>
    %cst = arith.constant 1.000000e+00 : f32
    %1 = vector.broadcast %cst : f32 to vector<2x256xf32>
    %2 = arith.addf %0, %1 : vector<2x256xf32>
    %cst_1 = arith.constant 5.000000e-01 : f32
    %3 = vector.broadcast %cst_1 : f32 to vector<2x256xf32>
    %4 = arith.mulf %2, %3 : vector<2x256xf32>
    %cst_2 = arith.constant 1.000000e+00 : f32
    %5 = vector.broadcast %cst_2 : f32 to vector<2x256xf32>
    %6 = arith.addf %4, %5 : vector<2x256xf32>
    %7 = vector.extract_strided_slice %6 {offsets = [0, 0], sizes = [1, 256], strides = [1, 1]} : vector<2x256xf32> to vector<1x256xf32>
    %cst_3 = arith.constant 1.000000e+00 : f32
    %8 = vector.broadcast %cst_3 : f32 to vector<1x256xf32>
    %9 = arith.mulf %7, %8 : vector<1x256xf32>
    %10 = vector.extract_strided_slice %6 {offsets = [0, 0], sizes = [1, 256], strides = [1, 1]} : vector<2x256xf32> to vector<1x256xf32>
    %cst_4 = arith.constant 2.000000e+00 : f32
    %11 = vector.broadcast %cst_4 : f32 to vector<1x256xf32>
    %12 = arith.mulf %10, %11 : vector<1x256xf32>
    %13 = vector.extract_strided_slice %6 {offsets = [0, 0], sizes = [1, 256], strides = [1, 1]} : vector<2x256xf32> to vector<1x256xf32>
    %cst_5 = arith.constant 4.000000e+00 : f32
    %14 = vector.broadcast %cst_5 : f32 to vector<1x256xf32>
    %15 = arith.mulf %13, %14 : vector<1x256xf32>
    %16 = vector.extract_strided_slice %6 {offsets = [0, 0], sizes = [1, 256], strides = [1, 1]} : vector<2x256xf32> to vector<1x256xf32>
    %cst_6 = arith.constant 8.000000e+00 : f32
    %17 = vector.broadcast %cst_6 : f32 to vector<1x256xf32>
    %18 = arith.mulf %16, %17 : vector<1x256xf32>
    %19 = vector.extract_strided_slice %6 {offsets = [0, 0], sizes = [1, 256], strides = [1, 1]} : vector<2x256xf32> to vector<1x256xf32>
    %cst_7 = arith.constant 1.600000e+01 : f32
    %20 = vector.broadcast %cst_7 : f32 to vector<1x256xf32>
    %21 = arith.mulf %19, %20 : vector<1x256xf32>
    %22 = vector.extract_strided_slice %6 {offsets = [0, 0], sizes = [1, 256], strides = [1, 1]} : vector<2x256xf32> to vector<1x256xf32>
    %cst_8 = arith.constant 3.200000e+01 : f32
    %23 = vector.broadcast %cst_8 : f32 to vector<1x256xf32>
    %24 = arith.mulf %22, %23 : vector<1x256xf32>
    %25 = vector.extract_strided_slice %6 {offsets = [1, 0], sizes = [1, 256], strides = [1, 1]} : vector<2x256xf32> to vector<1x256xf32>
    %cst_9 = arith.constant 1.000000e+00 : f32
    %26 = vector.broadcast %cst_9 : f32 to vector<1x256xf32>
    %27 = arith.mulf %25, %26 : vector<1x256xf32>
    %28 = vector.extract_strided_slice %6 {offsets = [1, 0], sizes = [1, 256], strides = [1, 1]} : vector<2x256xf32> to vector<1x256xf32>
    %cst_10 = arith.constant 2.000000e+00 : f32
    %29 = vector.broadcast %cst_10 : f32 to vector<1x256xf32>
    %30 = arith.mulf %28, %29 : vector<1x256xf32>
    %31 = vector.extract_strided_slice %6 {offsets = [1, 0], sizes = [1, 256], strides = [1, 1]} : vector<2x256xf32> to vector<1x256xf32>
    %cst_11 = arith.constant 4.000000e+00 : f32
    %32 = vector.broadcast %cst_11 : f32 to vector<1x256xf32>
    %33 = arith.mulf %31, %32 : vector<1x256xf32>
    %34 = vector.extract_strided_slice %6 {offsets = [1, 0], sizes = [1, 256], strides = [1, 1]} : vector<2x256xf32> to vector<1x256xf32>
    %cst_12 = arith.constant 8.000000e+00 : f32
    %35 = vector.broadcast %cst_12 : f32 to vector<1x256xf32>
    %36 = arith.mulf %34, %35 : vector<1x256xf32>
    %37 = vector.extract_strided_slice %6 {offsets = [1, 0], sizes = [1, 256], strides = [1, 1]} : vector<2x256xf32> to vector<1x256xf32>
    %cst_13 = arith.constant 1.600000e+01 : f32
    %38 = vector.broadcast %cst_13 : f32 to vector<1x256xf32>
    %39 = arith.mulf %37, %38 : vector<1x256xf32>
    %40 = vector.extract_strided_slice %6 {offsets = [1, 0], sizes = [1, 256], strides = [1, 1]} : vector<2x256xf32> to vector<1x256xf32>
    %cst_14 = arith.constant 3.200000e+01 : f32
    %41 = vector.broadcast %cst_14 : f32 to vector<1x256xf32>
    %42 = arith.mulf %40, %41 : vector<1x256xf32>
    %43 = tpu.concatenate %9, %12, %15, %18, %21, %24, %27, %30, %33, %36, %39, %42 in 0 : vector<1x256xf32>, vector<1x256xf32>, vector<1x256xf32>, vector<1x256xf32>, vector<1x256xf32>, vector<1x256xf32>, vector<1x256xf32>, vector<1x256xf32>, vector<1x256xf32>, vector<1x256xf32>, vector<1x256xf32>, vector<1x256xf32> -> vector<12x256xf32>
    %44 = math.sin %43 : vector<12x256xf32>
    %45 = math.cos %43 : vector<12x256xf32>
    %46 = tpu.concatenate %44, %45, %6 in 0 : vector<12x256xf32>, vector<12x256xf32>, vector<2x256xf32> -> vector<26x256xf32>
    %c0_15 = arith.constant 0 : index
    %c0_16 = arith.constant 0 : index
    %47 = vector.load %arg2[%c0_15, %c0_16] : memref<136x128xf32, #tpu.memory_space<vmem>>, vector<32x26xf32>
    %c0_17 = arith.constant 0 : index
    %c127 = arith.constant 127 : index
    %48 = vector.load %arg2[%c0_17, %c127] : memref<136x128xf32, #tpu.memory_space<vmem>>, vector<32x1xf32>
    %cst_18 = arith.constant dense<0.000000e+00> : vector<32x256xf32>
    %49 = tpu.matmul %47, %46, %cst_18 {dimension_numbers = #tpu.dot_dimension_numbers<[1], [0], [0], [1], [0, 0, 1, 1], [], []>} : vector<32x26xf32>, vector<26x256xf32>, vector<32x256xf32> -> vector<32x256xf32>
    %50 = vector.broadcast %48 : vector<32x1xf32> to vector<32x256xf32>
    %51 = arith.addf %49, %50 : vector<32x256xf32>
    %52 = math.sin %51 : vector<32x256xf32>
    %c32 = arith.constant 32 : index
    %c0_19 = arith.constant 0 : index
    %53 = vector.load %arg2[%c32, %c0_19] : memref<136x128xf32, #tpu.memory_space<vmem>>, vector<32x32xf32>
    %c32_20 = arith.constant 32 : index
    %c127_21 = arith.constant 127 : index
    %54 = vector.load %arg2[%c32_20, %c127_21] : memref<136x128xf32, #tpu.memory_space<vmem>>, vector<32x1xf32>
    %cst_22 = arith.constant dense<0.000000e+00> : vector<32x256xf32>
    %55 = tpu.matmul %53, %52, %cst_22 {dimension_numbers = #tpu.dot_dimension_numbers<[1], [0], [0], [1], [0, 0, 1, 1], [], []>} : vector<32x32xf32>, vector<32x256xf32>, vector<32x256xf32> -> vector<32x256xf32>
    %56 = vector.broadcast %54 : vector<32x1xf32> to vector<32x256xf32>
    %57 = arith.addf %55, %56 : vector<32x256xf32>
    %58 = math.sin %57 : vector<32x256xf32>
    %59 = tpu.concatenate %58, %46 in 0 : vector<32x256xf32>, vector<26x256xf32> -> vector<58x256xf32>
    %c64 = arith.constant 64 : index
    %c0_23 = arith.constant 0 : index
    %60 = vector.load %arg2[%c64, %c0_23] : memref<136x128xf32, #tpu.memory_space<vmem>>, vector<32x58xf32>
    %c64_24 = arith.constant 64 : index
    %c127_25 = arith.constant 127 : index
    %61 = vector.load %arg2[%c64_24, %c127_25] : memref<136x128xf32, #tpu.memory_space<vmem>>, vector<32x1xf32>
    %cst_26 = arith.constant dense<0.000000e+00> : vector<32x256xf32>
    %62 = tpu.matmul %60, %59, %cst_26 {dimension_numbers = #tpu.dot_dimension_numbers<[1], [0], [0], [1], [0, 0, 1, 1], [], []>} : vector<32x58xf32>, vector<58x256xf32>, vector<32x256xf32> -> vector<32x256xf32>
    %63 = vector.broadcast %61 : vector<32x1xf32> to vector<32x256xf32>
    %64 = arith.addf %62, %63 : vector<32x256xf32>
    %65 = math.sin %64 : vector<32x256xf32>
    %c96 = arith.constant 96 : index
    %c0_27 = arith.constant 0 : index
    %66 = vector.load %arg2[%c96, %c0_27] : memref<136x128xf32, #tpu.memory_space<vmem>>, vector<32x32xf32>
    %c96_28 = arith.constant 96 : index
    %c127_29 = arith.constant 127 : index
    %67 = vector.load %arg2[%c96_28, %c127_29] : memref<136x128xf32, #tpu.memory_space<vmem>>, vector<32x1xf32>
    %cst_30 = arith.constant dense<0.000000e+00> : vector<32x256xf32>
    %68 = tpu.matmul %66, %65, %cst_30 {dimension_numbers = #tpu.dot_dimension_numbers<[1], [0], [0], [1], [0, 0, 1, 1], [], []>} : vector<32x32xf32>, vector<32x256xf32>, vector<32x256xf32> -> vector<32x256xf32>
    %69 = vector.broadcast %67 : vector<32x1xf32> to vector<32x256xf32>
    %70 = arith.addf %68, %69 : vector<32x256xf32>
    %71 = math.sin %70 : vector<32x256xf32>
    %c128 = arith.constant 128 : index
    %c0_31 = arith.constant 0 : index
    %72 = vector.load %arg2[%c128, %c0_31] : memref<136x128xf32, #tpu.memory_space<vmem>>, vector<3x32xf32>
    %c128_32 = arith.constant 128 : index
    %c127_33 = arith.constant 127 : index
    %73 = vector.load %arg2[%c128_32, %c127_33] : memref<136x128xf32, #tpu.memory_space<vmem>>, vector<3x1xf32>
    %cst_34 = arith.constant dense<0.000000e+00> : vector<3x256xf32>
    %74 = tpu.matmul %72, %71, %cst_34 {dimension_numbers = #tpu.dot_dimension_numbers<[1], [0], [0], [1], [0, 0, 1, 1], [], []>} : vector<3x32xf32>, vector<32x256xf32>, vector<3x256xf32> -> vector<3x256xf32>
    %75 = vector.broadcast %73 : vector<3x1xf32> to vector<3x256xf32>
    %76 = arith.addf %74, %75 : vector<3x256xf32>
    %77 = math.sin %76 : vector<3x256xf32>
    %c0_35 = arith.constant 0 : index
    %c0_36 = arith.constant 0 : index
    %78 = vector.load %arg3[%c0_35, %c0_36] : memref<3x256xf32, #tpu.memory_space<vmem>>, vector<3x256xf32>
    tpu.vector_store %arg3[%c0_35, %c0_36], %77 {strides = array<i32>} : memref<3x256xf32, #tpu.memory_space<vmem>>, vector<3x256xf32>,
    return
  }
  func.func @transform_0(%arg0: i32) -> (i32, i32) {
    %c0_i32 = arith.constant 0 : i32
    %c0_i32_0 = arith.constant 0 : i32
    return %c0_i32, %arg0 : i32, i32
  }
  func.func @transform_1(%arg0: i32) -> (i32, i32) {
    %c0_i32 = arith.constant 0 : i32
    %c0_i32_0 = arith.constant 0 : i32
    %c0_i32_1 = arith.constant 0 : i32
    return %c0_i32, %c0_i32_0 : i32, i32
  }
  func.func @transform_2(%arg0: i32) -> (i32, i32) {
    %c0_i32 = arith.constant 0 : i32
    %c0_i32_0 = arith.constant 0 : i32
    return %c0_i32, %arg0 : i32, i32
  }
}

</mosaic_0001>

<bundles_post_ra>
// kernel: tpu_custom_call.1
= control target key start
LH: loop header
LB: loop body
LE: loop exit
PB: predicated region body
PF: predicated region fallthrough
CT: control target
= control target key end

     0   :  { %7 = vsyncpa [#allocation3], 0  ;;  %s9588_s0 = inlined_call_operand.hbm [shape: f32[2,256], index: 0, kind: input, shape index: {}]   ;;  %s9589_s1 = inlined_call_operand.hbm [shape: f32[136,128], index: 1, kind: input, shape index: {}]   ;;  %s9590_s2 = inlined_call_operand.hbm [shape: f32[3,256], index: 2, kind: output, shape index: {}]  }
   0x1   :  { %8 = vsyncpa [#allocation6], 0 }
   0x2   :  { %9 = vsyncpa [#allocation4], 0  ;;  %s5767_s9 = smov [#allocation2]   ;;  %s5768_s11 = smov [#allocation5]  }
   0x3   :  { %s16_s10 = sshll.u32 %s5767_s9, 4  ;;  %s25_s12 = sshll.u32 %s5768_s11, 4  ;;  %s17_s10 = int_to_ptr.vmem [resolvable:$true] %s16_s10  ;;  %s26_s12 = int_to_ptr.vmem [resolvable:$true] %s25_s12 }
   0x4   :  { %s5709_s13 = scalar_lea.vmem %s17_s10, 64  ;;  %p5714_p1 = scmp.lt.s32.totalorder %s17_s10, %s17_s10 }
   0x5   :  { %p5710_p0 = scmp.ne.s32.totalorder %s17_s10, %s5709_s13  ;;  %p5715_p2 = scmp.lt.s32.totalorder %s5709_s13, %s5709_s13 }
   0x7   :  { %p5716_p3 = por %p5715_p2, %p5714_p1 }
   0x9   :  { %p5717_p4 = pnand %p5716_p3, %p5710_p0 }
   0xb   :  { %5720 = shalt.err (!%p5717_p4)
}
   0xc   :  { %19 = dma.hbm_to_vmem [thread:$0]  %s9588_s0, 64, %s17_s10, [#allocation3]  }
   0xd   :  { %s5729_s16 = scalar_lea.vmem %s26_s12, 2176  ;;  %p5734_p6 = scmp.lt.s32.totalorder %s26_s12, %s26_s12 }
   0xe   :  { %p5730_p5 = scmp.ne.s32.totalorder %s26_s12, %s5729_s16  ;;  %p5735_p7 = scmp.lt.s32.totalorder %s5729_s16, %s5729_s16 }
  0x10   :  { %p5736_p8 = por %p5735_p7, %p5734_p6 }
  0x12   :  { %p5737_p9 = pnand %p5736_p8, %p5730_p5 }
  0x14   :  { %5740 = shalt.err (!%p5737_p9)
}
  0x15   :  { %s5769_s17 = smov 128   ;;  %s5770_s18 = smov 8  }
  0x16   :  { %31 = dma.hbm_to_vmem [thread:$0]  %s9589_s1, 2176, %s26_s12, [#allocation6], %s5769_s17, %s5769_s17, %s5770_s18  }
  0x17   :  { %5761 = dma.done.wait [#allocation3], 64  }
  0x18   :  { %5762 = vsyncadd [#allocation3], 4294967232 }
  0x19   :  { %5763 = dma.done.wait [#allocation6], 2176  }
  0x1a   :  { %5764 = vsyncadd [#allocation6], 4294965120  ;;  %v5771_v0 = vmov 1983009808   ;;  %v48_v2 = vlaneseq  ;;  %v38_v4 = vld [vmem:[#allocation2] sm:$0xf] }
  0x1b   :  { %v1043_v1 = vunpack.c.l.s4 %v5771_v0  ;;  %v39_v6 = vadd.f32 1.0, %v38_v4  ;;  %vm176_vm0 = vcmask 1041408   ;;  %vm173_vm1 = vcmask 1040384   ;;  %s5780_s0 = smov [#allocation7]  }
  0x1c   :  { %v49_v5 = vshrl.u32 %v48_v2, 7  ;;  %vm179_vm2 = vcmask 1042432   ;;  %vm182_vm3 = vcmask 1043456   ;;  %vm185_vm4 = vcmask 1044480   ;;  %s5169_s1 = sshll.u32 %s5780_s0, 4  ;;  %s5170_s1 = int_to_ptr.vmem [resolvable:$true] %s5169_s1 }
  0x1d   :  { %v1044_v3 = vunpack.c.0.s8 %v1043_v1  ;;  %v40_v7 = vmul.f32 0.5, %v39_v6  ;;  %vm188_vm5 = vcmask 1045504   ;;  %vm191_vm6 = vcmask 1046528   ;;  %s5741_s21 = scalar_lea.vmem %s5170_s1, 128  ;;  %p5746_p11 = scmp.lt.s32.totalorder %s5170_s1, %s5170_s1 }
  0x1e   :  { %v5802_v9 = vsub.s32 0, %v49_v5  ;;  %v54_v11 = vsub.s32 2, %v49_v5  ;;  %v5806_v12 = vsub.s32 1, %v49_v5  ;;  %v119_v17 = vsub.s32 3, %v49_v5  ;;  %p5742_p10 = scmp.ne.s32.totalorder %s5170_s1, %s5741_s21  ;;  %p5747_p12 = scmp.lt.s32.totalorder %s5741_s21, %s5741_s21 }
  0x1f   :  { %v1047_v8 = vsub.s32 %v1044_v3, %v49_v5  ;;  %v5804_v10 = vadd.f32 1.0, %v40_v7 }
  0x20   :  { %p5748_p13 = por %p5747_p12, %p5746_p11 }
  0x21   :  { %v5809_v13 = vrot.slane %v5804_v10, %v1047_v8  ;;  %v42_v14 = vmul.f32 2.0, %v5804_v10  ;;  %v5813_v15 = vmul.f32 4.0, %v5804_v10  ;;  %v5816_v16 = vmul.f32 8.0, %v5804_v10 }
  0x22   :  { %v5819_v18 = vmul.f32 16.0, %v5804_v10  ;;  %v5822_v19 = vmul.f32 32.0, %v5804_v10  ;;  %v51_v20 = vrot.slane %v5804_v10, %v5802_v9  ;;  %v55_v22 = vrot.slane %v5804_v10, %v54_v11  ;;  %p5749_p0 = pnand %p5748_p13, %p5742_p10 }
  0x23   :  { %v5828_v21 = vcombine.high %v5809_v13, %v5809_v13  ;;  %v62_v23 = vrot.slane %v42_v14, %v5802_v9  ;;  %v66_v24 = vrot.slane %v42_v14, %v54_v11  ;;  %v73_v25 = vrot.slane %v5813_v15, %v5802_v9 }
  0x24   :  { %v77_v26 = vrot.slane %v5813_v15, %v54_v11  ;;  %v84_v27 = vrot.slane %v5816_v16, %v5802_v9  ;;  %v88_v28 = vrot.slane %v5816_v16, %v54_v11  ;;  %v95_v29 = vrot.slane %v5819_v18, %v5802_v9 }
  0x25   :  { %5211 = vmatprep.subr.msk.mxu0 %vm176_vm0, %v5828_v21  ;;  %v99_v30 = vrot.slane %v5819_v18, %v54_v11  ;;  %v140_v31 = vrot.slane %v5813_v15, %v119_v17  ;;  %v150_v32 = vrot.slane %v5816_v16, %v119_v17  ;;  %v160_v33 = vrot.slane %v5819_v18, %v119_v17 }
  0x26   :  { %5212 = vmatpush1.msk.msra.mxu0 %vm176_vm0, %v5809_v13  ;;  %v170_v34 = vrot.slane %v5822_v19, %v119_v17  ;;  %v110_v35 = vrot.slane %v5822_v19, %v54_v11  ;;  %v174_v36 = vsel %vm173_vm1, %v51_v20, %v62_v23  ;;  %v175_v37 = vsel %vm173_vm1, %v55_v22, %v66_v24 }
  0x27   :  { %v116_v38 = vrot.slane %v5804_v10, %v5806_v12  ;;  %v120_v39 = vrot.slane %v5804_v10, %v119_v17  ;;  %v177_v40 = vsel %vm176_vm0, %v174_v36, %v73_v25  ;;  %v178_v41 = vsel %vm176_vm0, %v175_v37, %v77_v26 }
  0x28   :  { %v195_v42 = vsel %vm173_vm1, %v140_v31, %v150_v32  ;;  %v130_v43 = vrot.slane %v42_v14, %v119_v17  ;;  %v180_v44 = vsel %vm179_vm2, %v177_v40, %v84_v27  ;;  %v181_v45 = vsel %vm179_vm2, %v178_v41, %v88_v28 }
  0x29   :  { %v197_v46 = vsel %vm176_vm0, %v195_v42, %v160_v33  ;;  %v184_v47 = vsel %vm182_vm3, %v181_v45, %v99_v30  ;;  %v106_v52 = vrot.slane %v5822_v19, %v5802_v9  ;;  %v183_v53 = vsel %vm182_vm3, %v180_v44, %v95_v29 }
  0x2a   :  { %v5863_v48 = vsel %vm179_vm2, %v197_v46, %v170_v34  ;;  %v187_v49 = vsel %vm185_vm4, %v184_v47, %v110_v35  ;;  %v126_v57 = vrot.slane %v42_v14, %v5806_v12  ;;  %v136_v3 = vrot.slane %v5813_v15, %v5806_v12 }
  0x2b   :  { %v512_v50 = vand.u32 2147483647, %v5863_v48  ;;  %v515_v51 = vand.u32 2139095040, %v5863_v48  ;;  %v190_v54 = vsel %vm188_vm5, %v187_v49, %v120_v39  ;;  %v186_v62 = vsel %vm185_vm4, %v183_v53, %v106_v52 }
  0x2c   :  { %v5873_v55 = vsel %vm191_vm6, %v190_v54, %v130_v43  ;;  %v189_v1 = vsel %vm188_vm5, %v186_v62, %v116_v38  ;;  %v146_v4 = vrot.slane %v5816_v16, %v5806_v12  ;;  %v156_v17 = vrot.slane %v5819_v18, %v5806_v12 }
  0x2d   :  { %v516_v56 = vshrl.u32 %v515_v51, 23  ;;  %v304_v58 = vand.u32 2147483647, %v5873_v55  ;;  %v307_v59 = vand.u32 2139095040, %v5873_v55  ;;  %v519_v60 = vand.u32 8388607, %v512_v50 }
  0x2e   :  { %v5889_v5 = vsel %vm191_vm6, %v189_v1, %v126_v57  ;;  %v166_v15 = vrot.slane %v5822_v19, %v5806_v12  ;;  %v5899_v16 = vsel %vm173_vm1, %v136_v3, %v146_v4  ;;  %v9606_v26 = vmov 683565275  }
  0x2f   :  { %v5191_v61 = vadd.s32 4294967169, %v516_v56  ;;  %v308_v63 = vshrl.u32 %v307_v59, 23  ;;  %v311_v0 = vand.u32 8388607, %v304_v58  ;;  %v520_v8 = vor.u32 8388608, %v519_v60 }
  0x30   :  { %v203_v9 = vand.u32 2139095040, %v5889_v5  ;;  %v9610_v31 = vmov 2475754826   ;;  %v9599_v33 = vmov 2131351028  }
  0x31   :  { %v522_v2 = vadd.s32 1, %v5191_v61  ;;  %v5183_v6 = vadd.s32 4294967169, %v308_v63  ;;  %v312_v7 = vor.u32 8388608, %v311_v0  ;;  %v5905_v23 = vshll.u32 %v520_v8, 8 }
  0x32   :  { %v5910_v28 = vshrl.u32 %v203_v9, 23  ;;  %v9614_v38 = vmov 2102212464   ;;  %v9604_v45 = vmov 920167782  }
  0x33   :  { %vm523_vm7 = vcmp.gt.s32.totalorder %v522_v2, 0  ;;  %v314_v10 = vadd.s32 1, %v5183_v6  ;;  %v5901_v20 = vshll.u32 %v312_v7, 8  ;;  %v9602_v56 = vmov 1326507024  }
  0x34   :  { %v524_v11 = vsel %vm523_vm7, %v522_v2, 0 }
  0x35   :  { %v5892_v14 = vand.u32 31, %v524_v11  ;;  %vm315_vm8 = vcmp.gt.s32.totalorder %v314_v10, 0  ;;  %v5903_v22 = vshrl.u32 %v524_v11, 5 }
  0x36   :  { %v316_v24 = vsel %vm315_vm8, %v314_v10, 0 }
  0x37   :  { %v527_v25 = vsub.s32 32, %v5892_v14  ;;  %v529_v27 = vshll.u32 %v9606_v26, %v5892_v14  ;;  %v317_v29 = vshrl.u32 %v316_v24, 5  ;;  %v318_v30 = vand.u32 31, %v316_v24 }
  0x38   :  { %v532_v32 = vshll.u32 %v9610_v31, %v5892_v14  ;;  %v535_v34 = vshll.u32 %v9599_v33, %v5892_v14  ;;  %v538_v39 = vshll.u32 %v9614_v38, %v5892_v14  ;;  %vm544_vm13 = vcmp.lt.s32.totalorder %v5903_v22, 1 }
  0x39   :  { %v528_v35 = vshrl.u32 %v9606_v26, %v527_v25  ;;  %v530_v36 = vshrl.u32 %v9610_v31, %v527_v25  ;;  %v533_v37 = vshrl.u32 %v9599_v33, %v527_v25  ;;  %v319_v40 = vsub.s32 32, %v318_v30 }
  0x3a   :  { %v321_v41 = vshll.u32 %v9606_v26, %v318_v30  ;;  %v324_v42 = vshll.u32 %v9610_v31, %v318_v30  ;;  %v327_v43 = vshll.u32 %v9599_v33, %v318_v30  ;;  %v330_v44 = vshll.u32 %v9614_v38, %v318_v30 }
  0x3b   :  { %v333_v46 = vshll.u32 %v9604_v45, %v318_v30  ;;  %vm336_vm9 = vcmp.lt.s32.totalorder %v317_v29, 1  ;;  %v536_v47 = vshrl.u32 %v9614_v38, %v527_v25  ;;  %v320_v49 = vshrl.u32 %v9606_v26, %v319_v40 }
  0x3c   :  { %v322_v51 = vshrl.u32 %v9610_v31, %v319_v40  ;;  %v325_v52 = vshrl.u32 %v9599_v33, %v319_v40  ;;  %v328_v53 = vshrl.u32 %v9614_v38, %v319_v40  ;;  %v331_v54 = vshrl.u32 %v9604_v45, %v319_v40 }
  0x3d   :  { %v334_v57 = vshrl.u32 %v9602_v56, %v319_v40  ;;  %vm337_vm10 = vcmp.lt.s32.totalorder %v317_v29, 2  ;;  %vm338_vm11 = vcmp.lt.s32.totalorder %v317_v29, 3  ;;  %vm339_vm12 = vcmp.lt.s32.totalorder %v317_v29, 4 }
  0x3e   :  { %v323_v59 = vor.u32 %v322_v51, %v321_v41  ;;  %v326_v60 = vor.u32 %v325_v52, %v324_v42  ;;  %v329_v61 = vor.u32 %v328_v53, %v327_v43  ;;  %v332_v62 = vor.u32 %v331_v54, %v330_v44 }
  0x3f   :  { %v335_v63 = vor.u32 %v334_v57, %v333_v46  ;;  %v531_v0 = vor.u32 %v530_v36, %v529_v27  ;;  %v534_v1 = vor.u32 %v533_v37, %v532_v32  ;;  %v539_v10 = vshrl.u32 %v9604_v45, %v527_v25 }
  0x40   :  { %v340_v2 = vsel %vm336_vm9, %v320_v49, %v323_v59  ;;  %v341_v3 = vsel %vm339_vm12, %v329_v61, 2102212464  ;;  %v344_v4 = vsel %vm336_vm9, %v323_v59, %v326_v60  ;;  %v348_v6 = vsel %vm336_vm9, %v326_v60, %v329_v61 }
  0x41   :  { %v342_v7 = vsel %vm338_vm11, %v326_v60, %v341_v3  ;;  %v345_v8 = vsel %vm339_vm12, %v332_v62, 920167782  ;;  %v349_v9 = vsel %vm339_vm12, %v335_v63, 1326507024  ;;  %v537_v30 = vor.u32 %v536_v47, %v535_v34 }
  0x42   :  { %v343_v11 = vsel %vm337_vm10, %v340_v2, %v342_v7  ;;  %v346_v24 = vsel %vm338_vm11, %v329_v61, %v345_v8  ;;  %v350_v27 = vsel %vm338_vm11, %v332_v62, %v349_v9  ;;  %v540_v37 = vor.u32 %v539_v10, %v538_v39 }
  0x43   :  { %v347_v32 = vsel %vm337_vm10, %v344_v4, %v346_v24  ;;  %v351_v36 = vsel %vm337_vm10, %v348_v6, %v350_v27  ;;  %v541_v40 = vshll.u32 %v9604_v45, %v5892_v14  ;;  %v359_v46 = vmul.u32 %v5901_v20, %v343_v11 }
  0x44   :  { %v5946_v41 = vmul.u32.u64.low %v5901_v20, %v351_v36  ;;  %v5947_v42 = vmul.u32.u64.high %v5901_v20, %v351_v36, %v5946_v41  ;;  %v5950_v43 = vmul.u32.u64.low %v5901_v20, %v347_v32  ;;  %v5951_v44 = vmul.u32.u64.high %v5901_v20, %v347_v32, %v5950_v43 }
  0x45   :  { %v542_v34 = vshrl.u32 %v9602_v56, %v527_v25  ;;  %vm545_vm14 = vcmp.lt.s32.totalorder %v5903_v22, 2  ;;  %vm546_vm15 = vcmp.lt.s32.totalorder %v5903_v22, 3  ;;  %vm547_vm1 = vcmp.lt.s32.totalorder %v5903_v22, 4 }
  0x46   :  { %v548_v14 = vsel %vm544_vm13, %v528_v35, %v531_v0  ;;  %v552_v29 = vsel %vm544_vm13, %v531_v0, %v534_v1  ;;  %v549_v47 = vsel %vm547_vm1, %v537_v30, 2102212464  ;;  %v553_v49 = vsel %vm547_vm1, %v540_v37, 920167782 }
  0x47   :  { %v543_v39 = vor.u32 %v542_v34, %v541_v40  ;;  %v556_v51 = vsel %vm544_vm13, %v534_v1, %v537_v30  ;;  %vm361_vm4 = vc.u32 %v5947_v42, %v5950_v43  ;;  %v362_v20 = vadd.s32 1, %v5951_v44 }
  0x48   :  { %v550_v25 = vsel %vm546_vm15, %v534_v1, %v549_v47  ;;  %v5179_v52 = vadd.s32 4294967169, %v5910_v28  ;;  %v554_v53 = vsel %vm546_vm15, %v537_v30, %v553_v49  ;;  %v196_v35 = vsel %vm176_vm0, %v5899_v16, %v156_v17 }
  0x49   :  { %v557_v54 = vsel %vm547_vm1, %v543_v39, 1326507024  ;;  %v200_v57 = vand.u32 2147483647, %v5889_v5  ;;  %v363_v59 = vsel %vm361_vm4, %v362_v20, %v5951_v44  ;;  %v551_v60 = vsel %vm545_vm14, %v548_v14, %v550_v25 }
  0x4a   :  { %v555_v28 = vsel %vm545_vm14, %v552_v29, %v554_v53  ;;  %v558_v61 = vsel %vm546_vm15, %v540_v37, %v557_v54  ;;  %v364_v62 = vadd.s32 %v363_v59, %v359_v46  ;;  %v210_v1 = vadd.s32 1, %v5179_v52 }
  0x4b   :  { %v559_v18 = vsel %vm545_vm14, %v556_v51, %v558_v61  ;;  %v5984_v63 = vmul.u32.u64.low %v5905_v23, %v555_v28  ;;  %v5985_v17 = vmul.u32.u64.high %v5905_v23, %v555_v28, %v5984_v63  ;;  %v5995_v3 = vsel %vm179_vm2, %v196_v35, %v166_v15 }
  0x4c   :  { %v5988_v16 = vmul.u32.u64.low %v5905_v23, %v559_v18  ;;  %v5989_v0 = vmul.u32.u64.high %v5905_v23, %v559_v18, %v5988_v16  ;;  %v365_v2 = vadd.s32 536870912, %v364_v62  ;;  %v567_v4 = vmul.u32 %v5905_v23, %v551_v60 }
  0x4d   :  { %vm211_vm5 = vcmp.gt.s32.totalorder %v210_v1, 0  ;;  %v570_v6 = vadd.s32 1, %v5985_v17  ;;  %v207_v7 = vand.u32 8388607, %v200_v57  ;;  %v9591_v9 = vmov 0.0  }
  0x4e   :  { %v5998_v22 = vshrl.u32 %v365_v2, 30  ;;  %v212_v8 = vsel %vm211_vm5, %v210_v1, 0  ;;  %1153 = vmatprep.mubr.f32.mxu0 %v9591_v9  ;;  %2107 = vmatprep.mubr.f32.mxu1 %v9591_v9  ;;  %vm569_vm6 = vc.u32 %v5989_v0, %v5984_v63  ;;  %v411_v19 = vand.u32 2139095040, %v5995_v3 }
  0x4f   :  { %v214_v12 = vand.u32 31, %v212_v8  ;;  %v571_v23 = vsel %vm569_vm6, %v570_v6, %v5985_v17  ;;  %v208_v27 = vor.u32 8388608, %v207_v7  ;;  %v408_v30 = vand.u32 2147483647, %v5995_v3 }
  0x50   :  { %v367_v15 = vshll.u32 %v5998_v22, 30  ;;  %v572_v10 = vadd.s32 %v571_v23, %v567_v4  ;;  %v412_v40 = vshrl.u32 %v411_v19, 23  ;;  %vm306_vm2 = vcmp.lt.s32.totalorder %v5873_v55, 0 }
  0x51   :  { %v215_v11 = vsub.s32 32, %v214_v12  ;;  %v217_v36 = vshll.u32 %v9606_v26, %v214_v12  ;;  %v220_v37 = vshll.u32 %v9610_v31, %v214_v12  ;;  %v223_v46 = vshll.u32 %v9599_v33, %v214_v12 }
  0x52   :  { %v6009_v24 = vsub.s32 %v364_v62, %v367_v15  ;;  %v573_v32 = vadd.s32 536870912, %v572_v10  ;;  %v226_v34 = vshll.u32 %v9614_v38, %v214_v12  ;;  %v360_v49 = vadd.s32 %v5950_v43, %v5947_v42 }
  0x53   :  { %v218_v44 = vshrl.u32 %v9610_v31, %v215_v11  ;;  %v221_v29 = vshrl.u32 %v9599_v33, %v215_v11  ;;  %v224_v39 = vshrl.u32 %v9614_v38, %v215_v11  ;;  %v227_v47 = vshrl.u32 %v9604_v45, %v215_v11 }
  0x54   :  { %v370_v41 = vsub.s32 0, %v6009_v24  ;;  %v6019_v14 = vshrl.u32 %v573_v32, 30  ;;  %v213_v20 = vshrl.u32 %v212_v8, 5  ;;  %v6027_v25 = vshll.u32 %v208_v27, 8 }
  0x55   :  { %v6030_v52 = vadd.s32 %v5984_v63, %v5989_v0  ;;  %v229_v54 = vshll.u32 %v9604_v45, %v214_v12  ;;  %v5187_v35 = vadd.s32 4294967169, %v412_v40  ;;  %v216_v60 = vshrl.u32 %v9606_v26, %v215_v11 }
  0x56   :  { %v5184_v51 = vmin.u32 %v370_v41, %v6009_v24  ;;  %v575_v53 = vshll.u32 %v6019_v14, 30  ;;  %v228_v28 = vor.u32 %v227_v47, %v226_v34  ;;  %v230_v61 = vshrl.u32 %v9602_v56, %v215_v11 }
  0x57   :  { %v219_v43 = vor.u32 %v218_v44, %v217_v36  ;;  %v222_v62 = vor.u32 %v221_v29, %v220_v37  ;;  %v225_v18 = vor.u32 %v224_v39, %v223_v46  ;;  %v390_v63 = vsub.s32 4, %v5998_v22 }
  0x58   :  { %v372_v59 = vclz %v5184_v51  ;;  %v6036_v42 = vsub.s32 %v572_v10, %v575_v53  ;;  %vm232_vm7 = vcmp.lt.s32.totalorder %v213_v20, 1  ;;  %vm235_vm8 = vcmp.lt.s32.totalorder %v213_v20, 4 }
  0x59   :  { %v231_v0 = vor.u32 %v230_v61, %v229_v54  ;;  %vm234_vm9 = vcmp.lt.s32.totalorder %v213_v20, 3  ;;  %v237_v1 = vsel %vm235_vm8, %v225_v18, 2102212464  ;;  %v236_v2 = vsel %vm232_vm7, %v216_v60, %v219_v43 }
  0x5a   :  { %v5185_v17 = vadd.s32 4294967294, %v372_v59  ;;  %v578_v16 = vsub.s32 0, %v6036_v42  ;;  %v238_v4 = vsel %vm234_vm9, %v222_v62, %v237_v1  ;;  %v241_v6 = vsel %vm235_vm8, %v228_v28, 920167782 }
  0x5b   :  { %vm514_vm11 = vcmp.lt.s32.totalorder %v5863_v48, 0  ;;  %vm233_vm12 = vcmp.lt.s32.totalorder %v213_v20, 2  ;;  %v240_v12 = vsel %vm232_vm7, %v219_v43, %v222_v62  ;;  %v391_v10 = vsel %vm306_vm2, %v390_v63, %v5998_v22 }
  0x5c   :  { %vm5186_vm10 = vcmp.lt.s32.totalorder %v5185_v17, 0  ;;  %v5192_v8 = vmin.u32 %v578_v16, %v6036_v42  ;;  %v239_v27 = vsel %vm233_vm12, %v236_v2, %v238_v4  ;;  %v242_v32 = vsel %vm234_vm9, %v225_v18, %v241_v6 }
  0x5d   :  { %v375_v7 = vsel %vm5186_vm10, 0, %v5185_v17  ;;  %v244_v36 = vsel %vm232_vm7, %v222_v62, %v225_v18  ;;  %vm6056_vm13 = vcmp.le.f32.partialorder %v512_v50, 0.7853982  ;;  %v245_v44 = vsel %vm235_vm8, %v231_v0, 1326507024 }
  0x5e   :  { %v376_v19 = vsub.s32 32, %v375_v7  ;;  %v377_v15 = vshll.u32 %v6009_v24, %v375_v7  ;;  %v380_v23 = vsub.s32 4294967266, %v375_v7  ;;  %v580_v11 = vclz %v5192_v8 }
  0x5f   :  { %v243_v24 = vsel %vm233_vm12, %v240_v12, %v242_v32  ;;  %v246_v46 = vsel %vm234_vm9, %v228_v28, %v245_v44  ;;  %v418_v54 = vadd.s32 1, %v5187_v35  ;;  %v255_v61 = vmul.u32 %v6027_v25, %v239_v27 }
  0x60   :  { %v378_v37 = vshrl.u32 %v360_v49, %v376_v19  ;;  %v381_v40 = vadd.s32 127, %v380_v23  ;;  %v5193_v22 = vadd.s32 4294967294, %v580_v11  ;;  %v598_v49 = vsub.s32 4, %v6019_v14 }
  0x61   :  { %v6064_v34 = vmul.u32.u64.low %v6027_v25, %v243_v24  ;;  %v6065_v29 = vmul.u32.u64.high %v6027_v25, %v243_v24, %v6064_v34  ;;  %v247_v50 = vsel %vm233_vm12, %v244_v36, %v246_v46  ;;  %v415_v16 = vand.u32 8388607, %v408_v30 }
  0x62   :  { %v379_v39 = vor.u32 %v378_v37, %v377_v15  ;;  %v382_v47 = vshll.u32 %v381_v40, 23  ;;  %vm5194_vm14 = vcmp.lt.s32.totalorder %v5193_v22, 0  ;;  %v599_v20 = vsel %vm514_vm11, %v598_v49, %v6019_v14 }
  0x63   :  { %v6071_v51 = vmul.u32.u64.low %v6027_v25, %v247_v50  ;;  %v6072_v53 = vmul.u32.u64.high %v6027_v25, %v247_v50, %v6071_v51  ;;  %v583_v28 = vsel %vm5194_vm14, 0, %v5193_v22  ;;  %v258_v17 = vadd.s32 1, %v6065_v29 }
  0x64   :  { %v383_v59 = vor.u32 4788187, %v382_v47  ;;  %v386_v60 = vcvt.s32.f32 %v379_v39  ;;  %v584_v43 = vsub.s32 32, %v583_v28  ;;  %v585_v62 = vshll.u32 %v6036_v42, %v583_v28 }
  0x65   :  { %v588_v18 = vsub.s32 4294967266, %v583_v28  ;;  %vm419_vm15 = vcmp.gt.s32.totalorder %v418_v54, 0  ;;  %vm6084_vm1 = vcmp.le.f32.partialorder %v304_v58, 0.7853982  ;;  %vm257_vm4 = vc.u32 %v6072_v53, %v6064_v34 }
  0x66   :  { %v384_v63 = vand.u32 2147483647, %v383_v59  ;;  %v586_v25 = vshrl.u32 %v6030_v52, %v584_v43  ;;  %v6093_v14 = vsel %vm6084_vm1, 0, %v391_v10  ;;  %v259_v1 = vsel %vm257_vm4, %v258_v17, %v6065_v29 }
  0x67   :  { %v589_v42 = vadd.s32 127, %v588_v18  ;;  %v420_v2 = vsel %vm419_vm15, %v418_v54, 0  ;;  %v601_v58 = vsel %vm6056_vm13, 0, %v599_v20  ;;  %v260_v7 = vadd.s32 %v259_v1, %v255_v61 }
  0x68   :  { %v387_v0 = vmul.f32 %v386_v60, %v384_v63  ;;  %v587_v4 = vor.u32 %v586_v25, %v585_v62  ;;  %v416_v52 = vor.u32 8388608, %v415_v16  ;;  %v422_v12 = vand.u32 31, %v420_v2 }
  0x69   :  { %v590_v6 = vshll.u32 %v589_v42, 23  ;;  %v6099_v23 = vand.u32 3, %v6093_v14  ;;  %v261_v11 = vadd.s32 536870912, %v260_v7  ;;  %v6103_v27 = vand.u32 3, %v601_v58 }
  0x6a   :  { %v388_v8 = vxor.u32 2147483648, %v387_v0  ;;  %v594_v15 = vcvt.s32.f32 %v587_v4  ;;  %v421_v32 = vshrl.u32 %v420_v2, 5  ;;  %v423_v36 = vsub.s32 32, %v422_v12 }
  0x6b   :  { %v591_v19 = vor.u32 4788187, %v590_v6  ;;  %v6108_v24 = vshrl.u32 %v261_v11, 30  ;;  %v425_v44 = vshll.u32 %v9606_v26, %v422_v12  ;;  %v428_v46 = vshll.u32 %v9610_v31, %v422_v12 }
  0x6c   :  { %v389_v10 = vsel %vm306_vm2, %v388_v8, %v387_v0  ;;  %v426_v22 = vshrl.u32 %v9610_v31, %v423_v36  ;;  %v429_v29 = vshrl.u32 %v9599_v33, %v423_v36  ;;  %v431_v49 = vshll.u32 %v9599_v33, %v422_v12 }
  0x6d   :  { %v392_v37 = vsel %vm6084_vm1, %v5873_v55, %v389_v10  ;;  %v592_v40 = vand.u32 2147483647, %v591_v19  ;;  %v263_v47 = vshll.u32 %v6108_v24, 30  ;;  %v432_v50 = vshrl.u32 %v9614_v38, %v423_v36 }
  0x6e   :  { %5536 = vcosq.f32 %v392_v37  ;;  %v434_v51 = vshll.u32 %v9614_v38, %v422_v12  ;;  %vm440_vm5 = vcmp.lt.s32.totalorder %v421_v32, 1  ;;  %v6118_v54 = vshll.u32 %v416_v52, 8 }
  0x6f   :  { %5538 = vsinq.f32 %v392_v37  ;;  %v595_v39 = vmul.f32 %v594_v15, %v592_v40  ;;  %v6120_v60 = vsub.s32 %v260_v7, %v263_v47  ;;  %v424_v28 = vshrl.u32 %v9606_v26, %v423_v36 }
  0x70   :  { %v435_v61 = vshrl.u32 %v9604_v45, %v423_v36  ;;  %v427_v43 = vor.u32 %v426_v22, %v425_v44  ;;  %v430_v62 = vor.u32 %v429_v29, %v428_v46  ;;  %v437_v18 = vshll.u32 %v9604_v45, %v422_v12 }
  0x71   :  { %v596_v59 = vxor.u32 2147483648, %v595_v39  ;;  %v438_v17 = vshrl.u32 %v9602_v56, %v423_v36  ;;  %v266_v20 = vsub.s32 0, %v6120_v60  ;;  %v433_v16 = vor.u32 %v432_v50, %v431_v49 }
  0x72   :  { %v436_v35 = vor.u32 %v435_v61, %v434_v51  ;;  %vm442_vm6 = vcmp.lt.s32.totalorder %v421_v32, 3  ;;  %vm443_vm2 = vcmp.lt.s32.totalorder %v421_v32, 4  ;;  %vm813_vm7 = vcmp.lt.s32.totalorder %v6099_v23, 2 }
  0x73   :  { %v597_v63 = vsel %vm514_vm11, %v596_v59, %v595_v39  ;;  %v439_v42 = vor.u32 %v438_v17, %v437_v18  ;;  %v5180_v0 = vmin.u32 %v266_v20, %v6120_v60  ;;  %vm441_vm8 = vcmp.lt.s32.totalorder %v421_v32, 2 }
  0x74   :  { %v600_v25 = vsel %vm6056_vm13, %v5863_v48, %v597_v63  ;;  %v445_v1 = vsel %vm443_vm2, %v433_v16, 2102212464  ;;  %v444_v2 = vsel %vm440_vm5, %v424_v28, %v427_v43  ;;  %v448_v4 = vsel %vm440_vm5, %v427_v43, %v430_v62 }
  0x75   :  { %5540 = vcosq.f32 %v600_v25  ;;  %v449_v6 = vsel %vm443_vm2, %v436_v35, 920167782  ;;  %v268_v41 = vclz %v5180_v0  ;;  %v446_v7 = vsel %vm442_vm6, %v430_v62, %v445_v1 }
  0x76   :  { %5542 = vsinq.f32 %v600_v25  ;;  %v450_v8 = vsel %vm442_vm6, %v433_v16, %v449_v6  ;;  %v452_v52 = vsel %vm440_vm5, %v430_v62, %v433_v16  ;;  %vm396_vm9 = vweird.f32 %v5873_v55 }
  0x77   :  { %v451_v12 = vsel %vm441_vm8, %v448_v4, %v450_v8  ;;  %v453_v19 = vsel %vm443_vm2, %v439_v42, 1326507024  ;;  %v605_v15 = vadd.s32 3, %v601_v58  ;;  %v397_v11 = vadd.s32 3, %v6093_v14 }
  0x78   :  { %v5181_v10 = vadd.s32 4294967294, %v268_v41  ;;  %v454_v36 = vsel %vm442_vm6, %v436_v35, %v453_v19  ;;  %v6147_v37 = vmul.u32.u64.low %v6118_v54, %v451_v12  ;;  %v6148_v40 = vmul.u32.u64.high %v6118_v54, %v451_v12, %v6147_v37 }
  0x79   :  { %vm814_vm10 = vcmp.eq.s32.totalorder %v6099_v23, 0  ;;  %vm817_vm11 = vcmp.eq.s32.totalorder %v6099_v23, 2  ;;  %v447_v44 = vsel %vm441_vm8, %v444_v2, %v446_v7  ;;  %v455_v22 = vsel %vm441_vm8, %v452_v52, %v454_v36 }
  0x7a   :  { %vm1020_vm12 = vcmp.eq.s32.totalorder %v6103_v27, 0  ;;  %v256_v14 = vadd.s32 %v6064_v34, %v6072_v53  ;;  %vm5182_vm13 = vcmp.lt.s32.totalorder %v5181_v10, 0  ;;  %vm1019_vm14 = vcmp.lt.s32.totalorder %v6103_v27, 2 }
  0x7b   :  { %v5537_v46 = vpop.eup %5536  ;;  %v6159_v58 = vmul.u32.u64.low %v6118_v54, %v455_v22  ;;  %v6160_v29 = vmul.u32.u64.high %v6118_v54, %v455_v22, %v6159_v58  ;;  %v271_v49 = vsel %vm5182_vm13, 0, %v5181_v10  ;;  %v606_v50 = vand.u32 3, %v605_v15 }
  0x7c   :  { %v5539_v39 = vpop.eup %5538  ;;  %v404_v47 = vxor.u32 2147483648, %v5537_v46  ;;  %v398_v51 = vand.u32 3, %v397_v11  ;;  %v272_v59 = vsub.s32 32, %v271_v49  ;;  %v276_v28 = vsub.s32 4294967266, %v271_v49 }
  0x7d   :  { %v401_v32 = vxor.u32 2147483648, %v5539_v39  ;;  %v463_v61 = vmul.u32 %v6118_v54, %v447_v44  ;;  %v273_v53 = vshll.u32 %v6120_v60, %v271_v49  ;;  %v466_v43 = vadd.s32 1, %v6148_v40 }
  0x7e   :  { %v819_v34 = vsel %vm817_vm11, %v404_v47, %v5539_v39  ;;  %vm400_vm15 = vcmp.eq.s32.totalorder %v398_v51, 0  ;;  %v274_v18 = vshrl.u32 %v256_v14, %v272_v59  ;;  %v277_v17 = vadd.s32 127, %v276_v28  ;;  %v6197_v14 = vld [vmem:[#allocation5 + $0x18] sm:$0xff]  ;;  %v6210_v59 = vld [vmem:[#allocation5 + $0x10] sm:$0xff] }
  0x7f   :  { %v816_v62 = vsel %vm814_vm10, %v5537_v46, %v401_v32  ;;  %vm399_vm1 = vcmp.lt.s32.totalorder %v398_v51, 2  ;;  %vm465_vm4 = vc.u32 %v6160_v29, %v6147_v37  ;;  %v402_v54 = vsel %vm400_vm15, %v5537_v46, %v401_v32  ;;  %v6208_v32 = vld [vmem:[#allocation5] sm:$0xff] }
  0x80   :  { %v820_v63 = vsel %vm813_vm7, %v816_v62, %v819_v34  ;;  %vm403_vm5 = vcmp.eq.s32.totalorder %v398_v51, 2  ;;  %vm1023_vm6 = vcmp.eq.s32.totalorder %v6103_v27, 2  ;;  %v278_v60 = vshll.u32 %v277_v17, 23  ;;  %v2012_v34 = vld [vmem:[#allocation5 + $0x30] sm:$0xff]  ;;  %v2010_v17 = vld [vmem:[#allocation5 + $0x20] sm:$0xff] }
  0x81   :  { %v467_v20 = vsel %vm465_vm4, %v466_v43, %v6148_v40  ;;  %vm607_vm2 = vcmp.lt.s32.totalorder %v606_v50, 2  ;;  %vm608_vm8 = vcmp.eq.s32.totalorder %v606_v50, 0  ;;  %vm611_vm10 = vcmp.eq.s32.totalorder %v606_v50, 2  ;;  %v6194_v40 = vld [vmem:[#allocation5 + $0x8] sm:$0xff] }
  0x82   :  { %v5541_v16 = vpop.eup %5540  ;;  %v468_v35 = vadd.s32 %v467_v20, %v463_v61  ;;  %v405_v25 = vsel %vm403_vm5, %v404_v47, %v5539_v39  ;;  %v821_v23 = vsel %vm396_vm9, nan, %v820_v63  ;;  %v275_v1 = vor.u32 %v274_v18, %v273_v53  ;;  %v2013_v61 = vld [vmem:[#allocation5 + $0x38] sm:$0xff]  ;;  %v2011_v18 = vld [vmem:[#allocation5 + $0x28] sm:$0xff] }
  0x83   :  { %v5543_v42 = vpop.eup %5542  ;;  %v612_v0 = vxor.u32 2147483648, %v5541_v16  ;;  %v406_v2 = vsel %vm399_vm1, %v402_v54, %v405_v25  ;;  %v279_v6 = vor.u32 4788187, %v278_v60  ;;  %vm604_vm7 = vweird.f32 %v5863_v48 }
  0x84   :  { %v609_v4 = vxor.u32 2147483648, %v5543_v42  ;;  %v469_v41 = vadd.s32 536870912, %v468_v35  ;;  %v6181_v7 = vsel %vm396_vm9, nan, %v406_v2  ;;  %v1033_v19 = vrot.slane %v821_v23, 4 }
  0x85   :  { %v1025_v8 = vsel %vm1023_vm6, %v612_v0, %v5543_v42  ;;  %v613_v52 = vsel %vm611_vm10, %v612_v0, %v5543_v42  ;;  %v282_v55 = vcvt.s32.f32 %v275_v1  ;;  %v280_v44 = vand.u32 2147483647, %v279_v6  ;;  %v2967_v42 = vld [vmem:[#allocation5 + $0x58] sm:$0xff]  ;;  %v2966_v0 = vld [vmem:[#allocation5 + $0x50] sm:$0xff] }
  0x86   :  { %v1022_v12 = vsel %vm1020_vm12, %v5541_v16, %v609_v4  ;;  %v6188_v15 = vshrl.u32 %v469_v41, 30  ;;  %v610_v11 = vsel %vm608_vm8, %v5541_v16, %v609_v4  ;;  %v5779_v58 = vmov 127   ;;  %v2964_v4 = vld [vmem:[#allocation5 + $0x40] sm:$0xff] }
  0x87   :  { %v1026_v10 = vsel %vm1019_vm14, %v1022_v12, %v1025_v8  ;;  %v614_v36 = vsel %vm607_vm2, %v610_v11, %v613_v52  ;;  %5534 = vset.pattern.permute.xlu0 %v5779_v58  ;;  %5535 = vset.pattern.permute.xlu1 %v5779_v58  ;;  %v283_v50 = vmul.f32 %v282_v55, %v280_v44  ;;  %vm202_vm9 = vcmp.lt.s32.totalorder %v5889_v5, 0  ;;  %v3921_v12 = vld [vmem:[#allocation5 + $0x78] sm:$0xff]  ;;  %v3918_v44 = vld [vmem:[#allocation5 + $0x60] sm:$0xff] }
  0x88   :  { %v1027_v48 = vsel %vm604_vm7, nan, %v1026_v10  ;;  %v471_v22 = vshll.u32 %v6188_v15, 30  ;;  %v615_v46 = vsel %vm604_vm7, nan, %v614_v36  ;;  %1073 = vperm.xlu0 %5534, %v6197_v14   ;;  %1063 = vperm.xlu1 %5535, %v6194_v40   ;;  %vm6217_vm11 = vcmp.le.f32.partialorder %v200_v57, 0.7853982 }
  0x89   :  { %v1036_v39 = vrot.slane %v1027_v48, 4  ;;  %v6200_v47 = vsel %vm182_vm3, %v615_v46, %v1033_v19  ;;  %v284_v53 = vxor.u32 2147483648, %v283_v50  ;;  %v464_v60 = vadd.s32 %v6147_v37, %v6160_v29  ;;  %v2965_v29 = vld [vmem:[#allocation5 + $0x48] sm:$0xff] }
  0x8a   :  { %v472_v27 = vsub.s32 %v468_v35, %v471_v22  ;;  %v286_v8 = vsub.s32 4, %v6108_v24  ;;  %vm410_vm13 = vcmp.lt.s32.totalorder %v5995_v3, 0  ;;  %vm6235_vm14 = vcmp.le.f32.partialorder %v408_v30, 0.7853982  ;;  %v3919_v48 = vld [vmem:[#allocation5 + $0x68] sm:$0xff] }
  0x8b   :  { %v6205_v49 = vsel %vm182_vm3, %v1033_v19, %v1036_v39  ;;  %v285_v54 = vsel %vm202_vm9, %v284_v53, %v283_v50  ;;  %v3920_v19 = vld [vmem:[#allocation5 + $0x70] sm:$0xff]  ;;  %v494_v22 = vsub.s32 4, %v6188_v15  ;;  %v4871_v30 = vld [vmem:[#allocation5 + $0x80] sm:$0x7]  ;;  %vm292_vm5 = vweird.f32 %v5889_v5 }
  0x8c   :  { %1115 = vmatprep.subr.mxu0 %v6205_v49  ;;  %v474_v51 = vsub.s32 0, %v472_v27  ;;  %1068 = vperm.xlu0 %5534, %v6210_v59   ;;  %v288_v57 = vsel %vm6217_vm11, %v5889_v5, %v285_v54  ;;  %v287_v10 = vsel %vm202_vm9, %v286_v8, %v6108_v24 }
  0x8d   :  { %1058 = vperm.xlu1 %5535, %v6208_v32   ;;  %5544 = vcosq.f32 %v288_v57  ;;  %v289_v58 = vsel %vm6217_vm11, 0, %v287_v10 }
  0x8e   :  { %v5188_v28 = vmin.u32 %v474_v51, %v472_v27  ;;  %5546 = vsinq.f32 %v288_v57  ;;  %v709_v51 = vand.u32 3, %v289_v58 }
  0x90   :  { %v476_v43 = vclz %v5188_v28  ;;  %2031 = vperm.xlu0 %5534, %v2013_v61   ;;  %v293_v61 = vadd.s32 3, %v289_v58  ;;  %vm711_vm15 = vcmp.eq.s32.totalorder %v709_v51, 0  ;;  %vm714_vm1 = vcmp.eq.s32.totalorder %v709_v51, 2 }
  0x91   :  { %2026 = vperm.xlu1 %5535, %v2012_v34   ;;  %vm710_vm4 = vcmp.lt.s32.totalorder %v709_v51, 2 }
  0x92   :  { %v5189_v62 = vadd.s32 4294967294, %v476_v43 }
  0x94   :  { %vm5190_vm12 = vcmp.lt.s32.totalorder %v5189_v62, 0  ;;  %2021 = vperm.xlu0 %5534, %v2011_v18  }
  0x95   :  { %v479_v20 = vsel %vm5190_vm12, 0, %v5189_v62  ;;  %2016 = vperm.xlu1 %5535, %v2010_v17   ;;  %v294_v62 = vand.u32 3, %v293_v61 }
  0x96   :  { %v480_v16 = vsub.s32 32, %v479_v20  ;;  %v481_v35 = vshll.u32 %v472_v27, %v479_v20  ;;  %v484_v25 = vsub.s32 4294967266, %v479_v20  ;;  %v495_v27 = vsel %vm410_vm13, %v494_v22, %v6188_v15 }
  0x97   :  { %v497_v28 = vsel %vm6235_vm14, 0, %v495_v27  ;;  %vm296_vm8 = vcmp.eq.s32.totalorder %v294_v62, 0  ;;  %vm299_vm9 = vcmp.eq.s32.totalorder %v294_v62, 2 }
  0x98   :  { %v482_v23 = vshrl.u32 %v464_v60, %v480_v16  ;;  %v485_v1 = vadd.s32 127, %v484_v25  ;;  %2985 = vperm.xlu0 %5534, %v2967_v42   ;;  %v501_v43 = vadd.s32 3, %v497_v28  ;;  %v915_v63 = vand.u32 3, %v497_v28 }
  0x99   :  { %2980 = vperm.xlu1 %5535, %v2966_v0  }
  0x9a   :  { %v483_v2 = vor.u32 %v482_v23, %v481_v35  ;;  %v486_v37 = vshll.u32 %v485_v1, 23  ;;  %v5545_v39 = vpop.eup %5544  ;;  %v502_v54 = vand.u32 3, %v501_v43  ;;  %vm920_vm6 = vcmp.eq.s32.totalorder %v915_v63, 2 }
  0x9b   :  { %v5547_v50 = vpop.eup %5546  ;;  %v300_v53 = vxor.u32 2147483648, %v5545_v39  ;;  %vm917_vm10 = vcmp.eq.s32.totalorder %v915_v63, 0  ;;  %vm916_vm11 = vcmp.lt.s32.totalorder %v915_v63, 2 }
  0x9c   :  { %v487_v6 = vor.u32 4788187, %v486_v37  ;;  %v490_v41 = vcvt.s32.f32 %v483_v2  ;;  %2975 = vperm.xlu0 %5534, %v2965_v29   ;;  %v297_v34 = vxor.u32 2147483648, %v5547_v50  ;;  %vm507_vm2 = vcmp.eq.s32.totalorder %v502_v54, 2 }
  0x9d   :  { %2970 = vperm.xlu1 %5535, %v2964_v4   ;;  %v716_v17 = vsel %vm714_vm1, %v300_v53, %v5547_v50  ;;  %vm504_vm7 = vcmp.eq.s32.totalorder %v502_v54, 0  ;;  %vm503_vm12 = vcmp.lt.s32.totalorder %v502_v54, 2  ;;  %v301_v1 = vsel %vm299_vm9, %v300_v53, %v5547_v50 }
  0x9e   :  { %v488_v52 = vand.u32 2147483647, %v487_v6  ;;  %v713_v18 = vsel %vm711_vm15, %v5545_v39, %v297_v34  ;;  %v298_v4 = vsel %vm296_vm8, %v5545_v39, %v297_v34  ;;  %vm1076_vm15 = vcmask 211968  }
  0x9f   :  { %v717_v15 = vsel %vm710_vm4, %v713_v18, %v716_v17 }
  0xa0   :  { %v491_v11 = vmul.f32 %v490_v41, %v488_v52  ;;  %3939 = vperm.xlu0 %5534, %v3921_v12   ;;  %v718_v25 = vsel %vm292_vm5, nan, %v717_v15 }
  0xa1   :  { %3934 = vperm.xlu1 %5535, %v3920_v19   ;;  %v1032_v37 = vrot.slane %v718_v25, 4 }
  0xa2   :  { %v492_v36 = vxor.u32 2147483648, %v491_v11 }
  0xa4   :  { %v493_v46 = vsel %vm410_vm13, %v492_v36, %v491_v11  ;;  %3929 = vperm.xlu0 %5534, %v3919_v48   ;;  %vm500_vm13 = vweird.f32 %v5995_v3 }
  0xa5   :  { %v496_v24 = vsel %vm6235_vm14, %v5995_v3, %v493_v46  ;;  %3924 = vperm.xlu1 %5535, %v3918_v44   ;;  %vm295_vm14 = vcmp.lt.s32.totalorder %v294_v62, 2 }
  0xa6   :  { %5548 = vcosq.f32 %v496_v24  ;;  %v302_v52 = vsel %vm295_vm14, %v298_v4, %v301_v1 }
  0xa7   :  { %5550 = vsinq.f32 %v496_v24  ;;  %v303_v3 = vsel %vm292_vm5, nan, %v302_v52 }
  0xa8   :  { %4874 = vperm.xlu0 %5534, %v4871_v30  }
  0xb3   :  { %v5549_v60 = vpop.eup %5548 }
  0xb4   :  { %v5551_v20 = vpop.eup %5550  ;;  %v508_v16 = vxor.u32 2147483648, %v5549_v60 }
  0xb5   :  { %v505_v35 = vxor.u32 2147483648, %v5551_v20 }
  0xb6   :  { %v922_v42 = vsel %vm920_vm6, %v508_v16, %v5551_v20  ;;  %v509_v0 = vsel %vm507_vm2, %v508_v16, %v5551_v20 }
  0xb7   :  { %v919_v57 = vsel %vm917_vm10, %v5549_v60, %v505_v35  ;;  %v506_v23 = vsel %vm504_vm7, %v5549_v60, %v505_v35 }
  0xb8   :  { %v923_v2 = vsel %vm916_vm11, %v919_v57, %v922_v42  ;;  %v510_v29 = vsel %vm503_vm12, %v506_v23, %v509_v0 }
  0xb9   :  { %v924_v6 = vsel %vm500_vm13, nan, %v923_v2  ;;  %v511_v41 = vsel %vm500_vm13, nan, %v510_v29 }
  0xba   :  { %v1034_v8 = vrot.slane %v924_v6, 4  ;;  %v1050_v19 = vsel %vm182_vm3, %v511_v41, %v1032_v37 }
  0xbc   :  { %v1035_v12 = vsel %vm182_vm3, %v1032_v37, %v1034_v8 }
  0xbd   :  { %1116 = vmatpush1.msra.mxu0 %v1035_v12 }
  0xbe   :  { %1117 = vmatprep.subr.mxu0 %v6200_v47 }
  0xbf   :  { %1118 = vmatpush1.msra.mxu0 %v1050_v19 }
  0xc0   :  { %1119 = vmatprep.subr.mxu0 %v6181_v7 }
  0xc1   :  { %1120 = vmatpush1.msra.mxu0 %v303_v3 }
  0xc2   :  { %5213 = vmatmul.mubr.msk.f32.vlgmr.msra.gmra.mxu0 %vm1076_vm15, %v6208_v32  ;;  %5285 = vmatprep.subr.msk.mxu0 %vm176_vm0, %v5828_v21 }
  0xc3   :  { %1159 = vmatprep.mubr.f32.mxu0 %v9591_v9  ;;  %5286 = vmatpush1.msk.msra.mxu0 %vm176_vm0, %v5809_v13 }
  0xc4   :  { %3015 = vmatprep.subr.mxu0 %v6205_v49 }
  0xc5   :  { %3016 = vmatpush1.msra.mxu0 %v1035_v12 }
  0xc6   :  { %5214 = vmatmul.mubr.msk.f32.gmra.mxu0 %vm1076_vm15, %v6194_v40  ;;  %3017 = vmatprep.subr.mxu0 %v6200_v47 }
  0xc7   :  { %1165 = vmatprep.mubr.f32.mxu0 %v9591_v9  ;;  %3018 = vmatpush1.msra.mxu0 %v1050_v19 }
  0xc8   :  { %3019 = vmatprep.subr.mxu0 %v6181_v7 }
  0xc9   :  { %3020 = vmatpush1.msra.mxu0 %v303_v3 }
  0xca   :  { %5215 = vmatmul.mubr.msk.f32.gmra.mxu0 %vm1076_vm15, %v6210_v59 }
  0xcb   :  { %1171 = vmatprep.mubr.f32.mxu0 %v9591_v9 }
  0xce   :  { %5216 = vmatmul.mubr.msk.f32.gmra.mxu0 %vm1076_vm15, %v6197_v14 }
  0xcf   :  { %3061 = vmatprep.mubr.f32.mxu0 %v9591_v9 }
 0x103   :  { %v6282_v13 = vpop.permute.xlu1 %1063 }
 0x108   :  { %v1059_v21 = vpop.permute.xlu1 %1058 }
 0x182   :  { %v1155_v5 = vpop.f32.mrf.mxu0 }
 0x183   :  { %v6284_v40 = vadd.f32 %v1155_v5, %v1059_v21 }
 0x184   :  { %v1157_v47 = vpop.f32.mrf.mxu0 }
 0x185   :  { %v1181_v7 = vand.u32 2139095040, %v6284_v40  ;;  %v6287_v49 = vadd.f32 %v1157_v47, %v1059_v21  ;;  %v9593_v48 = vand.u32 2147483647, %v6284_v40 }
 0x186   :  { %v1161_v55 = vpop.f32.mrf.mxu0 }
 0x187   :  { %v1182_v32 = vshrl.u32 %v1181_v7, 23  ;;  %v1285_v59 = vand.u32 2139095040, %v6287_v49  ;;  %v6292_v44 = vadd.f32 %v1161_v55, %v6282_v13  ;;  %v1185_v24 = vand.u32 8388607, %v9593_v48 }
 0x189   :  { %v5217_v11 = vadd.s32 4294967169, %v1182_v32  ;;  %v1286_v10 = vshrl.u32 %v1285_v59, 23  ;;  %v1389_v39 = vand.u32 2139095040, %v6292_v44  ;;  %v1186_v35 = vor.u32 8388608, %v1185_v24  ;;  %v1163_v24 = vpop.f32.mrf.mxu0 }
 0x18a   :  { %v9594_v32 = vand.u32 2147483647, %v6287_v49 }
 0x18b   :  { %v1188_v14 = vadd.s32 1, %v5217_v11  ;;  %v5221_v36 = vadd.s32 4294967169, %v1286_v10  ;;  %v1390_v42 = vshrl.u32 %v1389_v39, 23  ;;  %v1226_v6 = vshll.u32 %v1186_v35, 8 }
 0x18d   :  { %vm1189_vm0 = vcmp.gt.s32.totalorder %v1188_v14, 0  ;;  %v1292_v46 = vadd.s32 1, %v5221_v36  ;;  %v5225_v41 = vadd.s32 4294967169, %v1390_v42 }
 0x18e   :  { %v1190_v22 = vsel %vm1189_vm0, %v1188_v14, 0 }
 0x18f   :  { %v1192_v58 = vand.u32 31, %v1190_v22  ;;  %v6297_v27 = vshrl.u32 %v1190_v22, 5  ;;  %vm1293_vm3 = vcmp.gt.s32.totalorder %v1292_v46, 0  ;;  %v1396_v5 = vadd.s32 1, %v5225_v41 }
 0x190   :  { %v1294_v16 = vsel %vm1293_vm3, %v1292_v46, 0 }
 0x191   :  { %v1193_v30 = vsub.s32 32, %v1192_v58  ;;  %v1195_v50 = vshll.u32 %v9606_v26, %v1192_v58  ;;  %v1198_v51 = vshll.u32 %v9610_v31, %v1192_v58  ;;  %v1201_v34 = vshll.u32 %v9599_v33, %v1192_v58 }
 0x192   :  { %v1204_v43 = vshll.u32 %v9614_v38, %v1192_v58  ;;  %v1207_v18 = vshll.u32 %v9604_v45, %v1192_v58  ;;  %vm1210_vm1 = vcmp.lt.s32.totalorder %v6297_v27, 1  ;;  %vm1213_vm4 = vcmp.lt.s32.totalorder %v6297_v27, 4 }
 0x193   :  { %v1196_v28 = vshrl.u32 %v9610_v31, %v1193_v30  ;;  %v1199_v61 = vshrl.u32 %v9599_v33, %v1193_v30  ;;  %v1202_v53 = vshrl.u32 %v9614_v38, %v1193_v30  ;;  %v1205_v62 = vshrl.u32 %v9604_v45, %v1193_v30 }
 0x194   :  { %v1208_v17 = vshrl.u32 %v9602_v56, %v1193_v30  ;;  %vm1212_vm5 = vcmp.lt.s32.totalorder %v6297_v27, 3  ;;  %vm1211_vm6 = vcmp.lt.s32.totalorder %v6297_v27, 2  ;;  %v1296_v37 = vand.u32 31, %v1294_v16 }
 0x195   :  { %v1197_v63 = vor.u32 %v1196_v28, %v1195_v50  ;;  %v1200_v54 = vor.u32 %v1199_v61, %v1198_v51  ;;  %v1203_v15 = vor.u32 %v1202_v53, %v1201_v34  ;;  %v1206_v60 = vor.u32 %v1205_v62, %v1204_v43 }
 0x196   :  { %v1209_v20 = vor.u32 %v1208_v17, %v1207_v18  ;;  %v6333_v12 = vsub.s32 32, %v1296_v37  ;;  %v1194_v47 = vshrl.u32 %v9606_v26, %v1193_v30  ;;  %v6344_v59 = vshrl.u32 %v1294_v16, 5 }
 0x197   :  { %v1218_v25 = vsel %vm1210_vm1, %v1197_v63, %v1200_v54  ;;  %v1219_v0 = vsel %vm1213_vm4, %v1206_v60, 920167782  ;;  %v1222_v57 = vsel %vm1210_vm1, %v1200_v54, %v1203_v15  ;;  %v1215_v21 = vsel %vm1213_vm4, %v1203_v15, 2102212464 }
 0x198   :  { %v1223_v23 = vsel %vm1213_vm4, %v1209_v20, 1326507024  ;;  %v1220_v1 = vsel %vm1212_vm5, %v1203_v15, %v1219_v0  ;;  %v1309_v7 = vshrl.u32 %v9604_v45, %v6333_v12  ;;  %v1312_v11 = vshrl.u32 %v9602_v56, %v6333_v12 }
 0x199   :  { %v1224_v2 = vsel %vm1212_vm5, %v1206_v60, %v1223_v23  ;;  %v1221_v29 = vsel %vm1211_vm6, %v1218_v25, %v1220_v1  ;;  %v1214_v10 = vsel %vm1210_vm1, %v1194_v47, %v1197_v63  ;;  %v1216_v55 = vsel %vm1212_vm5, %v1200_v54, %v1215_v21 }
 0x19a   :  { %v1225_v4 = vsel %vm1211_vm6, %v1222_v57, %v1224_v2  ;;  %v6329_v8 = vmul.u32.u64.low %v1226_v6, %v1221_v29  ;;  %v6330_v52 = vmul.u32.u64.high %v1226_v6, %v1221_v29, %v6329_v8  ;;  %v1300_v14 = vshrl.u32 %v9610_v31, %v6333_v12 }
 0x19b   :  { %v6335_v19 = vmul.u32.u64.low %v1226_v6, %v1225_v4  ;;  %v6336_v3 = vmul.u32.u64.high %v1226_v6, %v1225_v4, %v6335_v19  ;;  %v1308_v36 = vshll.u32 %v9614_v38, %v1296_v37  ;;  %v1303_v22 = vshrl.u32 %v9599_v33, %v6333_v12 }
 0x19c   :  { %v1306_v46 = vshrl.u32 %v9614_v38, %v6333_v12  ;;  %v1311_v58 = vshll.u32 %v9604_v45, %v1296_v37  ;;  %vm1397_vm2 = vcmp.gt.s32.totalorder %v1396_v5, 0  ;;  %v1236_v30 = vadd.s32 1, %v6330_v52 }
 0x19d   :  { %v1299_v39 = vshll.u32 %v9606_v26, %v1296_v37  ;;  %v1310_v50 = vor.u32 %v1309_v7, %v1308_v36  ;;  %vm1235_vm8 = vc.u32 %v6336_v3, %v6329_v8  ;;  %v1302_v51 = vshll.u32 %v9610_v31, %v1296_v37 }
 0x19e   :  { %v1305_v28 = vshll.u32 %v9599_v33, %v1296_v37  ;;  %v1313_v61 = vor.u32 %v1312_v11, %v1311_v58  ;;  %v1217_v34 = vsel %vm1211_vm6, %v1214_v10, %v1216_v55  ;;  %v1289_v53 = vand.u32 8388607, %v9594_v32  ;;  %v6416_v55 = vpop.permute.xlu0 %1073 }
 0x19f   :  { %v1398_v43 = vsel %vm1397_vm2, %v1396_v5, 0  ;;  %v6371_v62 = vadd.f32 %v1163_v24, %v6282_v13  ;;  %v1301_v18 = vor.u32 %v1300_v14, %v1299_v39  ;;  %v1304_v17 = vor.u32 %v1303_v22, %v1302_v51 }
 0x1a0   :  { %v1307_v63 = vor.u32 %v1306_v46, %v1305_v28  ;;  %vm1317_vm10 = vcmp.lt.s32.totalorder %v6344_v59, 4  ;;  %v1237_v54 = vsel %vm1235_vm8, %v1236_v30, %v6330_v52  ;;  %v1233_v60 = vmul.u32 %v1226_v6, %v1217_v34 }
 0x1a1   :  { %v1323_v15 = vsel %vm1317_vm10, %v1310_v50, 920167782  ;;  %v1327_v27 = vsel %vm1317_vm10, %v1313_v61, 1326507024  ;;  %v1400_v20 = vand.u32 31, %v1398_v43  ;;  %vm1314_vm7 = vcmp.lt.s32.totalorder %v6344_v59, 1 }
 0x1a2   :  { %vm1316_vm9 = vcmp.lt.s32.totalorder %v6344_v59, 3  ;;  %v1493_v13 = vand.u32 2139095040, %v6371_v62  ;;  %v1238_v16 = vadd.s32 %v1237_v54, %v1233_v60  ;;  %v1290_v35 = vor.u32 8388608, %v1289_v53 }
 0x1a3   :  { %v1322_v25 = vsel %vm1314_vm7, %v1301_v18, %v1304_v17  ;;  %v1324_v42 = vsel %vm1316_vm9, %v1307_v63, %v1323_v15  ;;  %v1326_v0 = vsel %vm1314_vm7, %v1304_v17, %v1307_v63  ;;  %v1328_v57 = vsel %vm1316_vm9, %v1310_v50, %v1327_v27  ;;  %v1167_v27 = vpop.f32.mrf.mxu0 }
 0x1a4   :  { %vm1315_vm11 = vcmp.lt.s32.totalorder %v6344_v59, 2  ;;  %v9595_v23 = vand.u32 2147483647, %v6292_v44  ;;  %v6392_v1 = vsub.s32 32, %v1400_v20  ;;  %v1494_v37 = vshrl.u32 %v1493_v13, 23 }
 0x1a5   :  { %v1325_v2 = vsel %vm1315_vm11, %v1322_v25, %v1324_v42  ;;  %v1239_v29 = vadd.s32 536870912, %v1238_v16  ;;  %v1329_v4 = vsel %vm1315_vm11, %v1326_v0, %v1328_v57  ;;  %v6398_v6 = vshll.u32 %v1290_v35, 8 }
 0x1a6   :  { %v9596_v41 = vand.u32 2147483647, %v6371_v62  ;;  %v1393_v21 = vand.u32 8388607, %v9595_v23  ;;  %v1413_v5 = vshrl.u32 %v9604_v45, %v6392_v1  ;;  %v1416_v11 = vshrl.u32 %v9602_v56, %v6392_v1 }
 0x1a7   :  { %v6402_v52 = vmul.u32.u64.low %v6398_v6, %v1325_v2  ;;  %v6403_v19 = vmul.u32.u64.high %v6398_v6, %v1325_v2, %v6402_v52  ;;  %v6411_v47 = vmul.u32.u64.low %v6398_v6, %v1329_v4  ;;  %v6412_v7 = vmul.u32.u64.high %v6398_v6, %v1329_v4, %v6411_v47 }
 0x1a8   :  { %v5229_v10 = vadd.s32 4294967169, %v1494_v37  ;;  %v6418_v14 = vshrl.u32 %v1239_v29, 30  ;;  %v1319_v36 = vsel %vm1317_vm10, %v1307_v63, 2102212464  ;;  %v1404_v22 = vshrl.u32 %v9610_v31, %v6392_v1 }
 0x1a9   :  { %v1412_v46 = vshll.u32 %v9614_v38, %v1400_v20  ;;  %v6425_v58 = vshrl.u32 %v1398_v43, 5  ;;  %v1407_v24 = vshrl.u32 %v9599_v33, %v6392_v1  ;;  %v1410_v30 = vshrl.u32 %v9614_v38, %v6392_v1 }
 0x1aa   :  { %9684 = vst [vmem:[#allocation11_spill] sm:$0xff] %v6418_v14  ;;  %v1415_v39 = vshll.u32 %v9604_v45, %v1400_v20  ;;  %v1298_v50 = vshrl.u32 %v9606_v26, %v6333_v12  ;;  %v1403_v51 = vshll.u32 %v9606_v26, %v1400_v20  ;;  %v1497_v61 = vand.u32 8388607, %v9596_v41 }
 0x1ab   :  { %v1414_v28 = vor.u32 %v1413_v5, %v1412_v46  ;;  %v1406_v34 = vshll.u32 %v9610_v31, %v1400_v20  ;;  %v1409_v53 = vshll.u32 %v9599_v33, %v1400_v20  ;;  %v1500_v63 = vadd.s32 1, %v5229_v10  ;;  %v6449_v20 = vpop.permute.xlu0 %1068 }
 0x1ac   :  { %v1417_v43 = vor.u32 %v1416_v11, %v1415_v39  ;;  %v1241_v54 = vshll.u32 %v6418_v14, 30  ;;  %v1318_v15 = vsel %vm1314_vm7, %v1298_v50, %v1301_v18  ;;  %v1320_v12 = vsel %vm1316_vm9, %v1304_v17, %v1319_v36 }
 0x1ad   :  { %v6444_v60 = vor.u32 %v1404_v22, %v1403_v51  ;;  %v6446_v13 = vor.u32 %v1407_v24, %v1406_v34  ;;  %v1411_v35 = vor.u32 %v1410_v30, %v1409_v53  ;;  %vm1421_vm12 = vcmp.lt.s32.totalorder %v6425_v58, 4 }
 0x1ae   :  { %vm1501_vm13 = vcmp.gt.s32.totalorder %v1500_v63, 0  ;;  %v1340_v25 = vadd.s32 1, %v6403_v19  ;;  %v1394_v42 = vor.u32 8388608, %v1393_v21  ;;  %v1427_v18 = vsel %vm1421_vm12, %v1414_v28, 920167782 }
 0x1af   :  { %v1502_v0 = vsel %vm1501_vm13, %v1500_v63, 0  ;;  %vm1339_vm14 = vc.u32 %v6412_v7, %v6402_v52  ;;  %v1431_v17 = vsel %vm1421_vm12, %v1417_v43, 1326507024  ;;  %v6459_v2 = vadd.f32 %v1167_v27, %v6449_v20 }
 0x1b0   :  { %v1504_v57 = vand.u32 31, %v1502_v0  ;;  %v6461_v37 = vsub.s32 %v1238_v16, %v1241_v54  ;;  %v1321_v29 = vsel %vm1315_vm11, %v1318_v15, %v1320_v12  ;;  %vm1418_vm15 = vcmp.lt.s32.totalorder %v6425_v58, 1 }
 0x1b1   :  { %vm1420_vm0 = vcmp.lt.s32.totalorder %v6425_v58, 3  ;;  %v1426_v4 = vsel %vm1418_vm15, %v6444_v60, %v6446_v13  ;;  %v1341_v16 = vsel %vm1339_vm14, %v1340_v25, %v6403_v19  ;;  %v1430_v59 = vsel %vm1418_vm15, %v6446_v13, %v1411_v35 }
 0x1b2   :  { %v1428_v21 = vsel %vm1420_vm0, %v1411_v35, %v1427_v18  ;;  %v6473_v5 = vsub.s32 32, %v1504_v57  ;;  %v1432_v47 = vsel %vm1420_vm0, %v1414_v28, %v1431_v17  ;;  %v1337_v11 = vmul.u32 %v6398_v6, %v1321_v29 }
 0x1b3   :  { %vm1419_vm3 = vcmp.lt.s32.totalorder %v6425_v58, 2  ;;  %v6483_v10 = vshll.u32 %v1394_v42, 8  ;;  %v1498_v36 = vor.u32 8388608, %v1497_v61  ;;  %v1244_v22 = vsub.s32 0, %v6461_v37 }
 0x1b4   :  { %v1429_v46 = vsel %vm1419_vm3, %v1426_v4, %v1428_v21  ;;  %v1508_v19 = vshrl.u32 %v9610_v31, %v6473_v5  ;;  %v1597_v24 = vand.u32 2139095040, %v6459_v2  ;;  %v6491_v30 = vadd.s32 %v1341_v16, %v1337_v11 }
 0x1b5   :  { %v1433_v6 = vsel %vm1419_vm3, %v1430_v59, %v1432_v47  ;;  %v1511_v39 = vshrl.u32 %v9599_v33, %v6473_v5  ;;  %v1514_v50 = vshrl.u32 %v9614_v38, %v6473_v5  ;;  %v1507_v51 = vshll.u32 %v9606_v26, %v1504_v57 }
 0x1b6   :  { %v1510_v28 = vshll.u32 %v9610_v31, %v1504_v57  ;;  %v1516_v61 = vshll.u32 %v9614_v38, %v1504_v57  ;;  %v1517_v34 = vshrl.u32 %v9604_v45, %v6473_v5  ;;  %v6509_v63 = vshrl.u32 %v1502_v0, 5 }
 0x1b7   :  { %v6505_v53 = vmul.u32.u64.low %v6483_v10, %v1429_v46  ;;  %v6506_v43 = vmul.u32.u64.high %v6483_v10, %v1429_v46, %v6505_v53  ;;  %v1513_v54 = vshll.u32 %v9599_v33, %v1504_v57  ;;  %v1509_v15 = vor.u32 %v1508_v19, %v1507_v51 }
 0x1b8   :  { %v1512_v12 = vor.u32 %v1511_v39, %v1510_v28  ;;  %v1518_v27 = vor.u32 %v1517_v34, %v1516_v61  ;;  %v1598_v25 = vshrl.u32 %v1597_v24, 23  ;;  %v1519_v18 = vshll.u32 %v9604_v45, %v1504_v57 }
 0x1b9   :  { %v1515_v42 = vor.u32 %v1514_v50, %v1513_v54  ;;  %v1520_v17 = vshrl.u32 %v9602_v56, %v6473_v5  ;;  %v5218_v29 = vmin.u32 %v1244_v22, %v6461_v37  ;;  %v6520_v0 = vshll.u32 %v1498_v36, 8 }
 0x1ba   :  { %v6517_v4 = vmul.u32.u64.low %v6483_v10, %v1433_v6  ;;  %v6518_v21 = vmul.u32.u64.high %v6483_v10, %v1433_v6, %v6517_v4  ;;  %v1343_v16 = vadd.s32 536870912, %v6491_v30  ;;  %vm1522_vm1 = vcmp.lt.s32.totalorder %v6509_v63, 1 }
 0x1bb   :  { %v1521_v59 = vor.u32 %v1520_v17, %v1519_v18  ;;  %vm1525_vm4 = vcmp.lt.s32.totalorder %v6509_v63, 4  ;;  %vm1524_vm5 = vcmp.lt.s32.totalorder %v6509_v63, 3  ;;  %v1530_v57 = vsel %vm1522_vm1, %v1509_v15, %v1512_v12 }
 0x1bc   :  { %v1531_v47 = vsel %vm1525_vm4, %v1518_v27, 920167782  ;;  %v5233_v11 = vadd.s32 4294967169, %v1598_v25  ;;  %v1423_v36 = vsel %vm1421_vm12, %v1411_v35, 2102212464  ;;  %vm1523_vm6 = vcmp.lt.s32.totalorder %v6509_v63, 2 }
 0x1bd   :  { %v1532_v22 = vsel %vm1524_vm5, %v1515_v42, %v1531_v47  ;;  %v1534_v46 = vsel %vm1522_vm1, %v1512_v12, %v1515_v42  ;;  %v1402_v19 = vshrl.u32 %v9606_v26, %v6392_v1  ;;  %v1535_v6 = vsel %vm1525_vm4, %v1521_v59, 1326507024 }
 0x1be   :  { %v1533_v24 = vsel %vm1523_vm6, %v1530_v57, %v1532_v22  ;;  %v6543_v39 = vshrl.u32 %v1343_v16, 30  ;;  %v1536_v35 = vsel %vm1524_vm5, %v1518_v27, %v1535_v6  ;;  %v1424_v28 = vsel %vm1420_vm0, %v6446_v13, %v1423_v36  ;;  %v1169_v57 = vpop.f32.mrf.mxu0 }
 0x1bf   :  { %v6548_v50 = vmul.u32.u64.low %v6520_v0, %v1533_v24  ;;  %v6549_v51 = vmul.u32.u64.high %v6520_v0, %v1533_v24, %v6548_v50  ;;  %v1422_v1 = vsel %vm1418_vm15, %v1402_v19, %v6444_v60  ;;  %v1537_v61 = vsel %vm1523_vm6, %v1534_v46, %v1536_v35 }
 0x1c0   :  { %9685 = vst [vmem:[#allocation12_spill] sm:$0xff] %v6543_v39  ;;  %v1604_v34 = vadd.s32 1, %v5233_v11  ;;  %v1246_v54 = vclz %v5218_v29  ;;  %v1444_v27 = vadd.s32 1, %v6506_v43  ;;  %vm1443_vm2 = vc.u32 %v6518_v21, %v6505_v53 }
 0x1c1   :  { %v6562_v25 = vmul.u32.u64.low %v6520_v0, %v1537_v61  ;;  %v6563_v18 = vmul.u32.u64.high %v6520_v0, %v1537_v61, %v6562_v25  ;;  %v1527_v60 = vsel %vm1525_vm4, %v1515_v42, 2102212464  ;;  %v9597_v17 = vand.u32 2147483647, %v6459_v2 }
 0x1c2   :  { %vm1605_vm8 = vcmp.gt.s32.totalorder %v1604_v34, 0  ;;  %v1345_v13 = vshll.u32 %v6543_v39, 30  ;;  %v1425_v29 = vsel %vm1419_vm3, %v1422_v1, %v1424_v28  ;;  %v1506_v4 = vshrl.u32 %v9606_v26, %v6473_v5 }
 0x1c3   :  { %v1606_v16 = vsel %vm1605_vm8, %v1604_v34, 0  ;;  %v5219_v47 = vadd.s32 4294967294, %v1246_v54  ;;  %v1445_v11 = vsel %vm1443_vm2, %v1444_v27, %v6506_v43  ;;  %v1528_v36 = vsel %vm1524_vm5, %v1512_v12, %v1527_v60 }
 0x1c4   :  { %v1608_v59 = vand.u32 31, %v1606_v16  ;;  %v1526_v42 = vsel %vm1522_vm1, %v1506_v4, %v1509_v15  ;;  %v1441_v22 = vmul.u32 %v6483_v10, %v1425_v29  ;;  %v1548_v58 = vadd.s32 1, %v6549_v51 }
 0x1c5   :  { %v6583_v19 = vsub.s32 %v6491_v30, %v1345_v13  ;;  %vm1547_vm10 = vc.u32 %v6563_v18, %v6548_v50  ;;  %v1601_v5 = vand.u32 8388607, %v9597_v17  ;;  %v6590_v43 = vadd.f32 %v1169_v57, %v6449_v20 }
 0x1c6   :  { %v1609_v46 = vsub.s32 32, %v1608_v59  ;;  %v6592_v15 = vadd.s32 %v1445_v11, %v1441_v22  ;;  %v1529_v10 = vsel %vm1523_vm6, %v1526_v42, %v1528_v36  ;;  %vm5220_vm7 = vcmp.lt.s32.totalorder %v5219_v47, 0 }
 0x1c7   :  { %v1611_v30 = vshll.u32 %v9606_v26, %v1608_v59  ;;  %v1614_v6 = vshll.u32 %v9610_v31, %v1608_v59  ;;  %v1617_v35 = vshll.u32 %v9599_v33, %v1608_v59  ;;  %v1549_v20 = vsel %vm1547_vm10, %v1548_v58, %v6549_v51 }
 0x1c8   :  { %v1612_v12 = vshrl.u32 %v9610_v31, %v1609_v46  ;;  %v1615_v24 = vshrl.u32 %v9599_v33, %v1609_v46  ;;  %v1618_v1 = vshrl.u32 %v9614_v38, %v1609_v46  ;;  %v1607_v28 = vshrl.u32 %v1606_v16, 5 }
 0x1c9   :  { %v1620_v61 = vshll.u32 %v9614_v38, %v1608_v59  ;;  %v1621_v63 = vshrl.u32 %v9604_v45, %v1609_v46  ;;  %v1545_v34 = vmul.u32 %v6520_v0, %v1529_v10  ;;  %v1602_v60 = vor.u32 8388608, %v1601_v5 }
 0x1ca   :  { %v1613_v54 = vor.u32 %v1612_v12, %v1611_v30  ;;  %v1616_v27 = vor.u32 %v1615_v24, %v1614_v6  ;;  %v1619_v25 = vor.u32 %v1618_v1, %v1617_v35  ;;  %v1623_v29 = vshll.u32 %v9604_v45, %v1608_v59 }
 0x1cb   :  { %v1622_v13 = vor.u32 %v1621_v63, %v1620_v61  ;;  %v1624_v4 = vshrl.u32 %v9602_v56, %v1609_v46  ;;  %v1348_v57 = vsub.s32 0, %v6583_v19  ;;  %v1447_v51 = vadd.s32 536870912, %v6592_v15  ;;  %v1173_v61 = vpop.f32.mrf.mxu0 }
 0x1cc   :  { %v1550_v16 = vadd.s32 %v1549_v20, %v1545_v34  ;;  %v1701_v11 = vand.u32 2139095040, %v6590_v43  ;;  %v1610_v42 = vshrl.u32 %v9606_v26, %v1609_v46  ;;  %vm1626_vm9 = vcmp.lt.s32.totalorder %v1607_v28, 1 }
 0x1cd   :  { %v1625_v36 = vor.u32 %v1624_v4, %v1623_v29  ;;  %vm1629_vm11 = vcmp.lt.s32.totalorder %v1607_v28, 4  ;;  %vm1628_vm12 = vcmp.lt.s32.totalorder %v1607_v28, 3  ;;  %v1634_v22 = vsel %vm1626_vm9, %v1613_v54, %v1616_v27 }
 0x1ce   :  { %v1631_v0 = vsel %vm1629_vm11, %v1619_v25, 2102212464  ;;  %v1635_v58 = vsel %vm1629_vm11, %v1622_v13, 920167782  ;;  %vm1627_vm13 = vcmp.lt.s32.totalorder %v1607_v28, 2  ;;  %v1638_v5 = vsel %vm1626_vm9, %v1616_v27, %v1619_v25 }
 0x1cf   :  { %v1636_v59 = vsel %vm1628_vm12, %v1619_v25, %v1635_v58  ;;  %v1642_v10 = vshll.u32 %v1602_v60, 8  ;;  %v1551_v12 = vadd.s32 536870912, %v1550_v16  ;;  %v1630_v24 = vsel %vm1626_vm9, %v1610_v42, %v1613_v54 }
 0x1d0   :  { %v1637_v30 = vsel %vm1627_vm13, %v1634_v22, %v1636_v59  ;;  %v1639_v6 = vsel %vm1629_vm11, %v1625_v36, 1326507024  ;;  %v1632_v35 = vsel %vm1628_vm12, %v1616_v27, %v1631_v0  ;;  %v5222_v63 = vmin.u32 %v1348_v57, %v6583_v19  ;;  %v1175_v0 = vpop.f32.mrf.mxu0 }
 0x1d1   :  { %v1640_v1 = vsel %vm1628_vm12, %v1622_v13, %v1639_v6  ;;  %v6613_v20 = vmul.u32.u64.low %v1642_v10, %v1637_v30  ;;  %v6614_v46 = vmul.u32.u64.high %v1642_v10, %v1637_v30, %v6613_v20  ;;  %v1702_v29 = vshrl.u32 %v1701_v11, 23 }
 0x1d2   :  { %v1641_v34 = vsel %vm1627_vm13, %v1638_v5, %v1640_v1  ;;  %v6620_v25 = vsel %vm5220_vm7, 0, %v5219_v47  ;;  %v6622_v60 = vshrl.u32 %v1447_v51, 30  ;;  %v6627_v27 = vshrl.u32 %v1551_v12, 30 }
 0x1d3   :  { %v6624_v54 = vmul.u32.u64.low %v1642_v10, %v1641_v34  ;;  %v6625_v4 = vmul.u32.u64.high %v1642_v10, %v1641_v34, %v6624_v54  ;;  %v1633_v13 = vsel %vm1627_vm13, %v1630_v24, %v1632_v35  ;;  %v5237_v42 = vadd.s32 4294967169, %v1702_v29 }
 0x1d4   :  { %9686 = vst [vmem:[#allocation13_spill] sm:$0xff] %v6622_v60  ;;  %9687 = vst [vmem:[#allocation14_spill] sm:$0xff] %v6627_v27  ;;  %v1652_v36 = vadd.s32 1, %v6614_v46  ;;  %v6632_v57 = vadd.f32 %v1173_v61, %v6416_v55  ;;  %v1254_v11 = vsub.s32 4294967266, %v6620_v25  ;;  %v1350_v47 = vclz %v5222_v63 }
 0x1d5   :  { %v1708_v22 = vadd.s32 1, %v5237_v42  ;;  %v1449_v51 = vshll.u32 %v6622_v60, 30  ;;  %v1649_v58 = vmul.u32 %v1642_v10, %v1633_v13  ;;  %vm1651_vm14 = vc.u32 %v6625_v4, %v6613_v20 }
 0x1d6   :  { %v9598_v28 = vand.u32 2147483647, %v6590_v43  ;;  %v1553_v59 = vshll.u32 %v6627_v27, 30  ;;  %v1653_v5 = vsel %vm1651_vm14, %v1652_v36, %v6614_v46  ;;  %v6642_v12 = vadd.f32 %v1175_v0, %v6416_v55 }
 0x1d7   :  { %vm1709_vm15 = vcmp.gt.s32.totalorder %v1708_v22, 0  ;;  %v1654_v24 = vadd.s32 %v1653_v5, %v1649_v58  ;;  %v1805_v6 = vand.u32 2139095040, %v6632_v57  ;;  %v1234_v10 = vadd.s32 %v6329_v8, %v6336_v3 }
 0x1d8   :  { %v1710_v30 = vsel %vm1709_vm15, %v1708_v22, 0  ;;  %v1250_v35 = vsub.s32 32, %v6620_v25  ;;  %v6648_v61 = vadd.s32 127, %v1254_v11  ;;  %v5223_v63 = vadd.s32 4294967294, %v1350_v47 }
 0x1d9   :  { %v1712_v1 = vand.u32 31, %v1710_v30  ;;  %v6651_v34 = vsub.s32 %v6592_v15, %v1449_v51  ;;  %v1655_v46 = vadd.s32 536870912, %v1654_v24  ;;  %v6653_v29 = vsub.s32 %v1550_v16, %v1553_v59 }
 0x1da   :  { %v1705_v55 = vand.u32 8388607, %v9598_v28  ;;  %v1909_v13 = vand.u32 2139095040, %v6642_v12  ;;  %v1806_v36 = vshrl.u32 %v1805_v6, 23  ;;  %v1711_v22 = vshrl.u32 %v1710_v30, 5 }
 0x1db   :  { %v1713_v54 = vsub.s32 32, %v1712_v1  ;;  %v6658_v42 = vshrl.u32 %v1655_v46, 30  ;;  %v1715_v8 = vshll.u32 %v9606_v26, %v1712_v1  ;;  %v1718_v3 = vshll.u32 %v9610_v31, %v1712_v1 }
 0x1dc   :  { %v1721_v16 = vshll.u32 %v9599_v33, %v1712_v1  ;;  %v1724_v51 = vshll.u32 %v9614_v38, %v1712_v1  ;;  %vm5224_vm0 = vcmp.lt.s32.totalorder %v5223_v63, 0  ;;  %v1452_v6 = vsub.s32 0, %v6651_v34 }
 0x1dd   :  { %v1716_v0 = vshrl.u32 %v9610_v31, %v1713_v54  ;;  %v1719_v15 = vshrl.u32 %v9599_v33, %v1713_v54  ;;  %v1722_v11 = vshrl.u32 %v9614_v38, %v1713_v54  ;;  %v1657_v47 = vshll.u32 %v6658_v42, 30 }
 0x1de   :  { %v1725_v58 = vshrl.u32 %v9604_v45, %v1713_v54  ;;  %v1556_v9 = vsub.s32 0, %v6653_v29  ;;  %v1706_v48 = vor.u32 8388608, %v1705_v55  ;;  %v1727_v23 = vshll.u32 %v9604_v45, %v1712_v1 }
 0x1df   :  { %v1717_v59 = vor.u32 %v1716_v0, %v1715_v8  ;;  %v1720_v5 = vor.u32 %v1719_v15, %v1718_v3  ;;  %v1723_v46 = vor.u32 %v1722_v11, %v1721_v16  ;;  %v1728_v41 = vshrl.u32 %v9602_v56, %v1713_v54 }
 0x1e0   :  { %v1726_v32 = vor.u32 %v1725_v58, %v1724_v51  ;;  %v5241_v17 = vadd.s32 4294967169, %v1806_v36  ;;  %v1910_v30 = vshrl.u32 %v1909_v13, 23  ;;  %v6673_v28 = vsub.s32 %v1654_v24, %v1657_v47 }
 0x1e1   :  { %vm1730_vm3 = vcmp.lt.s32.totalorder %v1711_v22, 1  ;;  %vm1732_vm1 = vcmp.lt.s32.totalorder %v1711_v22, 3  ;;  %vm1733_vm4 = vcmp.lt.s32.totalorder %v1711_v22, 4  ;;  %v1729_v8 = vor.u32 %v1728_v41, %v1727_v23 }
 0x1e2   :  { %v1735_v3 = vsel %vm1733_vm4, %v1723_v46, 2102212464  ;;  %v1738_v0 = vsel %vm1730_vm3, %v1717_v59, %v1720_v5  ;;  %v1739_v15 = vsel %vm1733_vm4, %v1726_v32, 920167782  ;;  %v1714_v16 = vshrl.u32 %v9606_v26, %v1713_v54 }
 0x1e3   :  { %vm1731_vm5 = vcmp.lt.s32.totalorder %v1711_v22, 2  ;;  %v1740_v55 = vsel %vm1732_vm1, %v1723_v46, %v1739_v15  ;;  %v1746_v1 = vshll.u32 %v1706_v48, 8  ;;  %v1742_v13 = vsel %vm1730_vm3, %v1720_v5, %v1723_v46 }
 0x1e4   :  { %v1741_v11 = vsel %vm1731_vm5, %v1738_v0, %v1740_v55  ;;  %v1743_v24 = vsel %vm1733_vm4, %v1729_v8, 1326507024  ;;  %v5245_v36 = vadd.s32 4294967169, %v1910_v30  ;;  %v1660_v47 = vsub.s32 0, %v6673_v28 }
 0x1e5   :  { %v1734_v23 = vsel %vm1730_vm3, %v1714_v16, %v1717_v59  ;;  %v1736_v41 = vsel %vm1732_vm1, %v1720_v5, %v1735_v3  ;;  %v1744_v51 = vsel %vm1732_vm1, %v1726_v32, %v1743_v24  ;;  %v1812_v48 = vadd.s32 1, %v5241_v17 }
 0x1e6   :  { %v1745_v54 = vsel %vm1731_vm5, %v1742_v13, %v1744_v51  ;;  %v6685_v58 = vmul.u32.u64.low %v1746_v1, %v1741_v11  ;;  %v6686_v33 = vmul.u32.u64.high %v1746_v1, %v1741_v11, %v6685_v58  ;;  %v1256_v0 = vshll.u32 %v6648_v61, 23 }
 0x1e7   :  { %v6690_v46 = vmul.u32.u64.low %v1746_v1, %v1745_v54  ;;  %v6691_v8 = vmul.u32.u64.high %v1746_v1, %v1745_v54, %v6690_v46  ;;  %v1252_v30 = vshrl.u32 %v1234_v10, %v1250_v35  ;;  %v6694_v15 = vsel %vm5224_vm0, 0, %v5223_v63 }
 0x1e8   :  { %v5226_v59 = vmin.u32 %v1452_v6, %v6651_v34  ;;  %vm1813_vm6 = vcmp.gt.s32.totalorder %v1812_v48, 0  ;;  %v5230_v32 = vmin.u32 %v1556_v9, %v6653_v29  ;;  %v5234_v5 = vmin.u32 %v1660_v47, %v6673_v28 }
 0x1e9   :  { %v1737_v3 = vsel %vm1731_vm5, %v1734_v23, %v1736_v41  ;;  %v1814_v16 = vsel %vm1813_vm6, %v1812_v48, 0  ;;  %v1756_v17 = vadd.s32 1, %v6686_v33  ;;  %v1916_v55 = vadd.s32 1, %v5245_v36 }
 0x1ea   :  { %v6701_v61 = vand.u32 31, %v1814_v16  ;;  %v1251_v10 = vshll.u32 %v6461_v37, %v6620_v25  ;;  %v6705_v35 = vor.u32 4788187, %v1256_v0  ;;  %v6709_v63 = vadd.s32 %v6402_v52, %v6412_v7 }
 0x1eb   :  { %v9601_v9 = vand.u32 2147483647, %v6642_v12  ;;  %v1358_v22 = vsub.s32 4294967266, %v6694_v15  ;;  %v1454_v6 = vclz %v5226_v59  ;;  %v1753_v11 = vmul.u32 %v1746_v1, %v1737_v3 }
 0x1ec   :  { %vm1755_vm2 = vc.u32 %v6691_v8, %v6685_v58  ;;  %v6715_v13 = vor.u32 %v1252_v30, %v1251_v10  ;;  %v1558_v24 = vclz %v5230_v32  ;;  %v1662_v36 = vclz %v5234_v5 }
 0x1ed   :  { %v1757_v37 = vsel %vm1755_vm2, %v1756_v17, %v6686_v33  ;;  %v6720_v25 = vadd.s32 %v6505_v53, %v6518_v21  ;;  %v6723_v7 = vsub.s32 32, %v6701_v61  ;;  %vm1917_vm8 = vcmp.gt.s32.totalorder %v1916_v55, 0 }
 0x1ee   :  { %v1758_v52 = vadd.s32 %v1757_v37, %v1753_v11  ;;  %v1918_v23 = vsel %vm1917_vm8, %v1916_v55, 0  ;;  %v1913_v41 = vand.u32 8388607, %v9601_v9  ;;  %v6731_v51 = vadd.s32 127, %v1358_v22 }
 0x1ef   :  { %v6733_v53 = vadd.s32 4294967294, %v1454_v6  ;;  %v6735_v54 = vadd.s32 4294967294, %v1558_v24  ;;  %v6737_v48 = vadd.s32 4294967294, %v1662_v36  ;;  %v1920_v0 = vand.u32 31, %v1918_v23 }
 0x1f0   :  { %v1759_v21 = vadd.s32 536870912, %v1758_v52  ;;  %v6742_v59 = vshrl.u32 %v1814_v16, 5  ;;  %v1828_v32 = vshll.u32 %v9614_v38, %v6701_v61  ;;  %v1829_v5 = vshrl.u32 %v9604_v45, %v6723_v7 }
 0x1f1   :  { %v6750_v3 = vshrl.u32 %v9602_v56, %v6723_v7  ;;  %v1919_v17 = vshrl.u32 %v1918_v23, 5  ;;  %v1921_v55 = vsub.s32 32, %v1920_v0  ;;  %v1914_v10 = vor.u32 8388608, %v1913_v41 }
 0x1f2   :  { %v6740_v30 = vshrl.u32 %v1759_v21, 30  ;;  %v1932_v6 = vshll.u32 %v9614_v38, %v1920_v0  ;;  %v1935_v16 = vshll.u32 %v9604_v45, %v1920_v0  ;;  %v1923_v11 = vshll.u32 %v9606_v26, %v1920_v0 }
 0x1f3   :  { %v1933_v24 = vshrl.u32 %v9604_v45, %v1921_v55  ;;  %v1936_v36 = vshrl.u32 %v9602_v56, %v1921_v55  ;;  %v1926_v37 = vshll.u32 %v9610_v31, %v1920_v0  ;;  %v9688_v21 = vmov 2131351028  }
 0x1f4   :  { %v1761_v22 = vshll.u32 %v6740_v30, 30  ;;  %v1929_v9 = vshll.u32 %v9688_v21, %v1920_v0  ;;  %v1924_v23 = vshrl.u32 %v9610_v31, %v1921_v55  ;;  %v1927_v41 = vshrl.u32 %v9688_v21, %v1921_v55 }
 0x1f5   :  { %v1930_v33 = vshrl.u32 %v9614_v38, %v1921_v55  ;;  %vm5228_vm10 = vcmp.lt.s32.totalorder %v6733_v53, 0  ;;  %vm5236_vm7 = vcmp.lt.s32.totalorder %v6737_v48, 0  ;;  %v1934_v47 = vor.u32 %v1933_v24, %v1932_v6 }
 0x1f6   :  { %v6760_v1 = vsub.s32 %v1758_v52, %v1761_v22  ;;  %v1937_v46 = vor.u32 %v1936_v36, %v1935_v16  ;;  %vm1941_vm9 = vcmp.lt.s32.totalorder %v1919_v17, 4  ;;  %v1954_v56 = vshll.u32 %v1914_v10, 8 }
 0x1f7   :  { %v1925_v26 = vor.u32 %v1924_v23, %v1923_v11  ;;  %v1928_v0 = vor.u32 %v1927_v41, %v1926_v37  ;;  %v1931_v52 = vor.u32 %v1930_v33, %v1929_v9  ;;  %v1947_v22 = vsel %vm1941_vm9, %v1934_v47, 920167782 }
 0x1f8   :  { %v1764_v45 = vsub.s32 0, %v6760_v1  ;;  %v1951_v14 = vsel %vm1941_vm9, %v1937_v46, 1326507024  ;;  %v9689_v31 = vmov 683565275   ;;  %vm1938_vm11 = vcmp.lt.s32.totalorder %v1919_v17, 1 }
 0x1f9   :  { %v1922_v39 = vshrl.u32 %v9689_v31, %v1921_v55  ;;  %vm1939_vm12 = vcmp.lt.s32.totalorder %v1919_v17, 2  ;;  %vm1940_vm13 = vcmp.lt.s32.totalorder %v1919_v17, 3  ;;  %v1943_v60 = vsel %vm1941_vm9, %v1931_v52, 2102212464 }
 0x1fa   :  { %v5238_v38 = vmin.u32 %v1764_v45, %v6760_v1  ;;  %v1946_v6 = vsel %vm1938_vm11, %v1925_v26, %v1928_v0  ;;  %v1948_v16 = vsel %vm1940_vm13, %v1931_v52, %v1947_v22  ;;  %v1950_v24 = vsel %vm1938_vm11, %v1928_v0, %v1931_v52 }
 0x1fb   :  { %v1942_v27 = vsel %vm1938_vm11, %v1922_v39, %v1925_v26  ;;  %v1944_v36 = vsel %vm1940_vm13, %v1928_v0, %v1943_v60  ;;  %v1949_v11 = vsel %vm1939_vm12, %v1946_v6, %v1948_v16  ;;  %v1952_v37 = vsel %vm1940_vm13, %v1934_v47, %v1951_v14 }
 0x1fc   :  { %v1766_v10 = vclz %v5238_v38  ;;  %v9690_v9 = vmov 920167782   ;;  %v1953_v46 = vsel %vm1939_vm12, %v1950_v24, %v1952_v37  ;;  %v1830_v41 = vor.u32 %v1829_v5, %v1828_v32 }
 0x1fd   :  { %v1831_v33 = vshll.u32 %v9690_v9, %v6701_v61  ;;  %v6774_v55 = vmul.u32.u64.low %v1954_v56, %v1949_v11  ;;  %v6775_v23 = vmul.u32.u64.high %v1954_v56, %v1949_v11, %v6774_v55  ;;  %v1945_v60 = vsel %vm1939_vm12, %v1942_v27, %v1944_v36 }
 0x1fe   :  { %v5239_v45 = vadd.s32 4294967294, %v1766_v10  ;;  %v6778_v39 = vmul.u32.u64.low %v1954_v56, %v1953_v46  ;;  %v6779_v26 = vmul.u32.u64.high %v1954_v56, %v1953_v46, %v6778_v39  ;;  %v9691_v14 = vand.u32 2147483647, %v6632_v57 }
 0x1ff   :  { %v1833_v38 = vor.u32 %v6750_v3, %v1831_v33  ;;  %v9692_v0 = vmov 2475754826   ;;  %v1819_v22 = vshll.u32 %v9689_v31, %v6701_v61  ;;  %v1823_v5 = vshrl.u32 %v9688_v21, %v6723_v7 }
 0x200   :  { %v1809_v47 = vand.u32 8388607, %v9691_v14  ;;  %v1820_v52 = vshrl.u32 %v9692_v0, %v6723_v7  ;;  %vm5240_vm14 = vcmp.lt.s32.totalorder %v5239_v45, 0  ;;  %v1822_v32 = vshll.u32 %v9692_v0, %v6701_v61 }
 0x201   :  { %v6793_v6 = vsel %vm5240_vm14, 0, %v5239_v45  ;;  %v1964_v27 = vadd.s32 1, %v6775_v23  ;;  %v1825_v3 = vshll.u32 %v9688_v21, %v6701_v61  ;;  %v9693_v17 = vmov 2102212464  }
 0x202   :  { %v1826_v16 = vshrl.u32 %v9693_v17, %v6723_v7  ;;  %v6803_v24 = vsel %vm5228_vm10, 0, %v6733_v53  ;;  %v6808_v10 = vsel %vm5236_vm7, 0, %v6737_v48  ;;  %vm1837_vm15 = vcmp.lt.s32.totalorder %v6742_v59, 4 }
 0x203   :  { %v1821_v36 = vor.u32 %v1820_v52, %v1819_v22  ;;  %v1961_v11 = vmul.u32 %v1954_v56, %v1945_v60  ;;  %vm1963_vm0 = vc.u32 %v6779_v26, %v6774_v55  ;;  %v1824_v61 = vor.u32 %v1823_v5, %v1822_v32 }
 0x204   :  { %v1827_v37 = vor.u32 %v1826_v16, %v1825_v3  ;;  %vm5232_vm3 = vcmp.lt.s32.totalorder %v6735_v54, 0  ;;  %v1774_v33 = vsub.s32 4294967266, %v6793_v6  ;;  %v1843_v53 = vsel %vm1837_vm15, %v1830_v41, 920167782 }
 0x205   :  { %v1965_v46 = vsel %vm1963_vm0, %v1964_v27, %v6775_v23  ;;  %v1847_v48 = vsel %vm1837_vm15, %v1833_v38, 1326507024  ;;  %v1810_v39 = vor.u32 8388608, %v1809_v47  ;;  %vm1834_vm1 = vcmp.lt.s32.totalorder %v6742_v59, 1 }
 0x206   :  { %v1966_v45 = vadd.s32 %v1965_v46, %v1961_v11  ;;  %v1462_v56 = vsub.s32 4294967266, %v6803_v24  ;;  %v1670_v60 = vsub.s32 4294967266, %v6808_v10  ;;  %vm1836_vm4 = vcmp.lt.s32.totalorder %v6742_v59, 3 }
 0x207   :  { %v1842_v14 = vsel %vm1834_vm1, %v1821_v36, %v1824_v61  ;;  %v6827_v52 = vsel %vm5232_vm3, 0, %v6735_v54  ;;  %v1844_v38 = vsel %vm1836_vm4, %v1827_v37, %v1843_v53  ;;  %v1846_v47 = vsel %vm1834_vm1, %v1824_v61, %v1827_v37 }
 0x208   :  { %v1967_v23 = vadd.s32 536870912, %v1966_v45  ;;  %v1775_v22 = vadd.s32 127, %v1774_v33  ;;  %vm1835_vm5 = vcmp.lt.s32.totalorder %v6742_v59, 2  ;;  %v1839_v32 = vsel %vm1837_vm15, %v1827_v37, 2102212464 }
 0x209   :  { %v1848_v5 = vsel %vm1836_vm4, %v1830_v41, %v1847_v48  ;;  %v1845_v54 = vsel %vm1835_vm5, %v1842_v14, %v1844_v38  ;;  %v1850_v16 = vshll.u32 %v1810_v39, 8  ;;  %v1566_v11 = vsub.s32 4294967266, %v6827_v52 }
 0x20a   :  { %v6838_v27 = vshrl.u32 %v1967_v23, 30  ;;  %v1849_v3 = vsel %vm1835_vm5, %v1846_v47, %v1848_v5  ;;  %v1666_v33 = vsub.s32 32, %v6808_v10  ;;  %v1671_v53 = vadd.s32 127, %v1670_v60 }
 0x20b   :  { %v1818_v37 = vshrl.u32 %v9689_v31, %v6723_v7  ;;  %v1770_v46 = vsub.s32 32, %v6793_v6  ;;  %v6850_v48 = vmul.u32.u64.low %v1850_v16, %v1849_v3  ;;  %v6851_v23 = vmul.u32.u64.high %v1850_v16, %v1849_v3, %v6850_v48 }
 0x20c   :  { %v1969_v41 = vshll.u32 %v6838_v27, 30  ;;  %v1840_v39 = vsel %vm1836_vm4, %v1824_v61, %v1839_v32  ;;  %v6857_v38 = vmul.u32.u64.low %v1850_v16, %v1845_v54  ;;  %v6858_v47 = vmul.u32.u64.high %v1850_v16, %v1845_v54, %v6857_v38 }
 0x20d   :  { %v1838_v14 = vsel %vm1834_vm1, %v1818_v37, %v1821_v36  ;;  %v1463_v60 = vadd.s32 127, %v1462_v56  ;;  %v1754_v7 = vadd.s32 %v6685_v58, %v6691_v8  ;;  %v1776_v5 = vshll.u32 %v1775_v22, 23 }
 0x20e   :  { %v6863_v9 = vsub.s32 %v1966_v45, %v1969_v41  ;;  %v9694_v3 = vsub.s32 32, %v6694_v15  ;;  %v1360_v36 = vshll.u32 %v6731_v51, 23  ;;  %v1650_v61 = vadd.s32 %v6613_v20, %v6625_v4 }
 0x20f   :  { %v1672_v32 = vshll.u32 %v1671_v53, 23  ;;  %v1772_v54 = vshrl.u32 %v1754_v7, %v1770_v46  ;;  %v1841_v56 = vsel %vm1835_vm5, %v1838_v14, %v1840_v39  ;;  %vm1859_vm6 = vc.u32 %v6851_v23, %v6857_v38 }
 0x210   :  { %v1356_v48 = vshrl.u32 %v6709_v63, %v9694_v3  ;;  %v1972_v37 = vsub.s32 0, %v6863_v9  ;;  %v1458_v58 = vsub.s32 32, %v6803_v24  ;;  %v1567_v8 = vadd.s32 127, %v1566_v11 }
 0x211   :  { %v1668_v45 = vshrl.u32 %v1650_v61, %v1666_v33  ;;  %v1860_v63 = vadd.s32 1, %v6858_v47  ;;  %v1464_v51 = vshll.u32 %v1463_v60, 23  ;;  %v1771_v20 = vshll.u32 %v6760_v1, %v6793_v6 }
 0x212   :  { %v1777_v4 = vor.u32 4788187, %v1776_v5  ;;  %v5246_v22 = vmin.u32 %v1972_v37, %v6863_v9  ;;  %v1562_v53 = vsub.s32 32, %v6827_v52  ;;  %v1667_v59 = vshll.u32 %v6673_v28, %v6808_v10 }
 0x213   :  { %v1857_v46 = vmul.u32 %v1850_v16, %v1841_v56  ;;  %v1861_v41 = vsel %vm1859_vm6, %v1860_v63, %v6858_v47  ;;  %v9695_v11 = vshll.u32 %v6583_v19, %v6694_v15  ;;  %v1673_v14 = vor.u32 4788187, %v1672_v32 }
 0x214   :  { %v1773_v39 = vor.u32 %v1772_v54, %v1771_v20  ;;  %v1974_v60 = vclz %v5246_v22  ;;  %v1546_v1 = vadd.s32 %v6548_v50, %v6563_v18  ;;  %v1568_v6 = vshll.u32 %v1567_v8, 23 }
 0x215   :  { %v1357_v33 = vor.u32 %v1356_v48, %v9695_v11  ;;  %v1669_v7 = vor.u32 %v1668_v45, %v1667_v59  ;;  %v1862_v5 = vadd.s32 %v1861_v41, %v1857_v46  ;;  %v1361_v3 = vor.u32 4788187, %v1360_v36 }
 0x216   :  { %v1459_v28 = vshll.u32 %v6651_v34, %v6803_v24  ;;  %v1778_v10 = vand.u32 2147483647, %v1777_v4  ;;  %v5247_v16 = vadd.s32 4294967294, %v1974_v60  ;;  %v1460_v47 = vshrl.u32 %v6720_v25, %v1458_v58 }
 0x217   :  { %v1465_v61 = vor.u32 4788187, %v1464_v51  ;;  %v1564_v19 = vshrl.u32 %v1546_v1, %v1562_v53  ;;  %v1863_v15 = vadd.s32 536870912, %v1862_v5  ;;  %v1563_v48 = vshll.u32 %v6653_v29, %v6827_v52 }
 0x218   :  { %v1674_v32 = vand.u32 2147483647, %v1673_v14  ;;  %v1780_v54 = vcvt.s32.f32 %v1773_v39  ;;  %vm5248_vm2 = vcmp.lt.s32.totalorder %v5247_v16, 0  ;;  %v1569_v50 = vor.u32 4788187, %v1568_v6 }
 0x219   :  { %v1676_v18 = vcvt.s32.f32 %v1669_v7  ;;  %v1977_v37 = vsel %vm5248_vm2, 0, %v5247_v16  ;;  %v6895_v36 = vshrl.u32 %v1863_v15, 30  ;;  %v1962_v34 = vadd.s32 %v6774_v55, %v6779_v26 }
 0x21a   :  { %v1781_v56 = vmul.f32 %v1780_v54, %v1778_v10  ;;  %v1978_v24 = vsub.s32 32, %v1977_v37  ;;  %v1982_v25 = vsub.s32 4294967266, %v1977_v37  ;;  %v1362_v58 = vand.u32 2147483647, %v1361_v3 }
 0x21b   :  { %v1461_v8 = vor.u32 %v1460_v47, %v1459_v28  ;;  %v1565_v45 = vor.u32 %v1564_v19, %v1563_v48  ;;  %v1865_v63 = vshll.u32 %v6895_v36, 30  ;;  %v1677_v29 = vmul.f32 %v1676_v18, %v1674_v32 }
 0x21c   :  { %v1979_v52 = vshll.u32 %v6863_v9, %v1977_v37  ;;  %v1980_v51 = vshrl.u32 %v1962_v34, %v1978_v24  ;;  %v1983_v20 = vadd.s32 127, %v1982_v25  ;;  %v1260_v4 = vcvt.s32.f32 %v6715_v13 }
 0x21d   :  { %v1364_v22 = vcvt.s32.f32 %v1357_v33  ;;  %v1466_v53 = vand.u32 2147483647, %v1465_v61  ;;  %v6902_v59 = vsub.s32 %v1862_v5, %v1865_v63  ;;  %v1570_v46 = vand.u32 2147483647, %v1569_v50 }
 0x21e   :  { %v1782_v55 = vxor.u32 2147483648, %v1781_v56  ;;  %v1981_v26 = vor.u32 %v1980_v51, %v1979_v52  ;;  %v1984_v41 = vshll.u32 %v1983_v20, 23  ;;  %v9696_v11 = vand.u32 2147483647, %v6705_v35 }
 0x21f   :  { %v1468_v39 = vcvt.s32.f32 %v1461_v8  ;;  %v1868_v60 = vsub.s32 0, %v6902_v59  ;;  %v1365_v9 = vmul.f32 %v1364_v22, %v1362_v58  ;;  %v1572_v1 = vcvt.s32.f32 %v1565_v45 }
 0x220   :  { %v6906_v14 = vmul.f32 %v1260_v4, %v9696_v11  ;;  %v1678_v6 = vxor.u32 2147483648, %v1677_v29  ;;  %v1985_v7 = vor.u32 4788187, %v1984_v41  ;;  %vm1492_vm8 = vcmp.lt.s32.totalorder %v6371_v62, 0 }
 0x221   :  { %v1469_v13 = vmul.f32 %v1468_v39, %v1466_v53  ;;  %vm1596_vm10 = vcmp.lt.s32.totalorder %v6459_v2, 0  ;;  %vm1700_vm7 = vcmp.lt.s32.totalorder %v6590_v43, 0  ;;  %v5242_v33 = vmin.u32 %v1868_v60, %v6902_v59 }
 0x222   :  { %v1573_v5 = vmul.f32 %v1572_v1, %v1570_v46  ;;  %v1783_v35 = vsel %vm1700_vm7, %v1782_v55, %v1781_v56  ;;  %v1986_v3 = vand.u32 2147483647, %v1985_v7  ;;  %v1988_v28 = vcvt.s32.f32 %v1981_v26 }
 0x223   :  { %v1262_v10 = vxor.u32 2147483648, %v6906_v14  ;;  %vm1388_vm9 = vcmp.lt.s32.totalorder %v6292_v44, 0  ;;  %v1992_v16 = vsub.s32 4, %v6838_v27  ;;  %v1870_v47 = vclz %v5242_v33 }
 0x224   :  { %v1784_v61 = vsub.s32 4, %v6740_v30  ;;  %v1366_v19 = vxor.u32 2147483648, %v1365_v9  ;;  %v1679_v15 = vsel %vm1596_vm10, %v1678_v6, %v1677_v29  ;;  %v1989_v48 = vmul.f32 %v1988_v28, %v1986_v3 }
 0x225   :  { %v9697_v32 = vand.u32 2147483647, %v6590_v43  ;;  %vm1180_vm12 = vcmp.lt.s32.totalorder %v6284_v40, 0  ;;  %v1470_v50 = vxor.u32 2147483648, %v1469_v13  ;;  %vm1908_vm13 = vcmp.lt.s32.totalorder %v6642_v12, 0 }
 0x226   :  { %v5243_v18 = vadd.s32 4294967294, %v1870_v47  ;;  %v1574_v56 = vxor.u32 2147483648, %v1573_v5  ;;  %v9700_v34 = vand.u32 2147483647, %v6642_v12  ;;  %v1990_v25 = vxor.u32 2147483648, %v1989_v48 }
 0x227   :  { %vm6923_vm11 = vcmp.le.f32.partialorder %v9697_v32, 0.7853982  ;;  %v9703_v58 = vand.u32 2147483647, %v6459_v2  ;;  %v1993_v45 = vsel %vm1908_vm13, %v1992_v16, %v6838_v27  ;;  %v1785_v63 = vsel %vm1700_vm7, %v1784_v61, %v6740_v30 }
 0x228   :  { %v1786_v37 = vsel %vm6923_vm11, %v6590_v43, %v1783_v35  ;;  %vm6934_vm14 = vcmp.le.f32.partialorder %v9700_v34, 0.7853982  ;;  %vm5244_vm0 = vcmp.lt.s32.totalorder %v5243_v18, 0  ;;  %v1991_v52 = vsel %vm1908_vm13, %v1990_v25, %v1989_v48  ;;  %v9709_v35 = vld [vmem:[#allocation14_spill] sm:$0xff] }
 0x229   :  { %vm6940_vm15 = vcmp.le.f32.partialorder %v9703_v58, 0.7853982  ;;  %v1858_v51 = vadd.s32 %v6857_v38, %v6851_v23  ;;  %v1873_v20 = vsel %vm5244_vm0, 0, %v5243_v18  ;;  %5552 = vcosq.f32 %v1786_v37 }
 0x22a   :  { %v1682_v29 = vsel %vm6940_vm15, %v6459_v2, %v1679_v15  ;;  %v1994_v4 = vsel %vm6934_vm14, %v6642_v12, %v1991_v52  ;;  %v1874_v27 = vsub.s32 32, %v1873_v20  ;;  %v1878_v22 = vsub.s32 4294967266, %v1873_v20 }
 0x22b   :  { %5554 = vsinq.f32 %v1786_v37  ;;  %v1575_v30 = vsel %vm1492_vm8, %v1574_v56, %v1573_v5  ;;  %v1995_v53 = vsel %vm6934_vm14, 0, %v1993_v45  ;;  %v1680_v46 = vsub.s32 4, %v6658_v42 }
 0x22c   :  { %5556 = vcosq.f32 %v1994_v4  ;;  %v1875_v23 = vshll.u32 %v6902_v59, %v1873_v20  ;;  %v1876_v38 = vshrl.u32 %v1858_v51, %v1874_v27  ;;  %v1879_v55 = vadd.s32 127, %v1878_v22  ;;  %v9723_v22 = vld [vmem:[#allocation12_spill] sm:$0xff] }
 0x22d   :  { %5558 = vsinq.f32 %v1994_v4  ;;  %vm1284_vm3 = vcmp.lt.s32.totalorder %v6287_v49, 0  ;;  %v1471_v26 = vsel %vm1388_vm9, %v1470_v50, %v1469_v13  ;;  %v1787_v41 = vsel %vm6923_vm11, 0, %v1785_v63  ;;  %v9722_v63 = vld [vmem:[#allocation13_spill] sm:$0xff] }
 0x22e   :  { %5560 = vcosq.f32 %v1682_v29  ;;  %v1877_v11 = vor.u32 %v1876_v38, %v1875_v23  ;;  %v1880_v39 = vshll.u32 %v1879_v55, 23  ;;  %v9706_v60 = vand.u32 2147483647, %v6371_v62  ;;  %v9724_v38 = vld [vmem:[#allocation11_spill] sm:$0xff] }
 0x22f   :  { %5562 = vsinq.f32 %v1682_v29  ;;  %v1263_v59 = vsel %vm1180_vm12, %v1262_v10, %v6906_v14  ;;  %v1367_v6 = vsel %vm1284_vm3, %v1366_v19, %v1365_v9  ;;  %v1999_v7 = vadd.s32 3, %v1995_v53 }
 0x230   :  { %vm6969_vm1 = vcmp.le.f32.partialorder %v9706_v60, 0.7853982  ;;  %v1881_v33 = vor.u32 4788187, %v1880_v39  ;;  %v1681_v5 = vsel %vm1596_vm10, %v1680_v46, %v6658_v42  ;;  %v1576_v3 = vsub.s32 4, %v9709_v35 }
 0x231   :  { %v1578_v13 = vsel %vm6969_vm1, %v6371_v62, %v1575_v30  ;;  %v9710_v28 = vand.u32 2147483647, %v6292_v44  ;;  %vm1804_vm5 = vcmp.lt.s32.totalorder %v6632_v57, 0  ;;  %v1888_v14 = vsub.s32 4, %v6895_v36 }
 0x232   :  { %v1791_v9 = vadd.s32 3, %v1787_v41  ;;  %v1882_v47 = vand.u32 2147483647, %v1881_v33  ;;  %v1884_v61 = vcvt.s32.f32 %v1877_v11  ;;  %5564 = vcosq.f32 %v1578_v13 }
 0x233   :  { %vm6987_vm4 = vcmp.le.f32.partialorder %v9710_v28, 0.7853982  ;;  %v9713_v42 = vand.u32 2147483647, %v6287_v49  ;;  %v2000_v15 = vand.u32 3, %v1999_v7  ;;  %v1683_v48 = vsel %vm6940_vm15, 0, %v1681_v5 }
 0x234   :  { %v1474_v10 = vsel %vm6987_vm4, %v6292_v44, %v1471_v26  ;;  %5566 = vsinq.f32 %v1578_v13  ;;  %v1885_v54 = vmul.f32 %v1884_v61, %v1882_v47  ;;  %v1577_v50 = vsel %vm1492_vm8, %v1576_v3, %v9709_v35 }
 0x235   :  { %vm6998_vm6 = vcmp.le.f32.partialorder %v9713_v42, 0.7853982  ;;  %5568 = vcosq.f32 %v1474_v10  ;;  %v9716_v18 = vand.u32 2147483647, %v6284_v40  ;;  %vm1998_vm10 = vweird.f32 %v6642_v12 }
 0x236   :  { %v1370_v32 = vsel %vm6998_vm6, %v6287_v49, %v1367_v6  ;;  %v9719_v56 = vand.u32 2147483647, %v6632_v57  ;;  %v1889_v24 = vsel %vm1804_vm5, %v1888_v14, %v6895_v36  ;;  %5570 = vsinq.f32 %v1474_v10  ;;  %v5553_v58 = vpop.eup %5552 }
 0x237   :  { %vm7012_vm2 = vcmp.le.f32.partialorder %v9716_v18, 0.7853982  ;;  %v1886_v8 = vxor.u32 2147483648, %v1885_v54  ;;  %v7029_v45 = vand.u32 3, %v1791_v9  ;;  %v1472_v29 = vsub.s32 4, %v9722_v63 }
 0x238   :  { %vm7019_vm7 = vcmp.le.f32.partialorder %v9719_v56, 0.7853982  ;;  %v1266_v25 = vsel %vm7012_vm2, %v6284_v40, %v1263_v59  ;;  %5572 = vcosq.f32 %v1370_v32  ;;  %v5555_v52 = vpop.eup %5554  ;;  %vm2001_vm8 = vcmp.lt.s32.totalorder %v2000_v15, 2 }
 0x239   :  { %v1687_v51 = vadd.s32 3, %v1683_v48  ;;  %v1579_v20 = vsel %vm6969_vm1, 0, %v1577_v50  ;;  %5574 = vsinq.f32 %v1370_v32  ;;  %v5557_v36 = vpop.eup %5556  ;;  %v1887_v4 = vsel %vm1804_vm5, %v1886_v8, %v1885_v54 }
 0x23a   :  { %v1891_v27 = vsel %vm7019_vm7, 0, %v1889_v24  ;;  %v1368_v30 = vsub.s32 4, %v9723_v22  ;;  %5576 = vcosq.f32 %v1266_v25  ;;  %v5559_v53 = vpop.eup %5558  ;;  %v2006_v46 = vxor.u32 2147483648, %v5557_v36 }
 0x23b   :  { %v1890_v23 = vsel %vm7019_vm7, %v6632_v57, %v1887_v4  ;;  %v1264_v55 = vsub.s32 4, %v9724_v38  ;;  %5578 = vsinq.f32 %v1266_v25  ;;  %v5561_v26 = vpop.eup %5560  ;;  %v2003_v41 = vxor.u32 2147483648, %v5559_v53 }
 0x23c   :  { %vm2005_vm11 = vcmp.eq.s32.totalorder %v2000_v15, 2  ;;  %5580 = vcosq.f32 %v1890_v23  ;;  %v1473_v11 = vsel %vm1388_vm9, %v1472_v29, %v9722_v63  ;;  %v5563_v39 = vpop.eup %5562  ;;  %vm2002_vm13 = vcmp.eq.s32.totalorder %v2000_v15, 0 }
 0x23d   :  { %v2007_v60 = vsel %vm2005_vm11, %v2006_v46, %v5559_v53  ;;  %5582 = vsinq.f32 %v1890_v23  ;;  %v1688_v1 = vand.u32 3, %v1687_v51  ;;  %v2004_v59 = vsel %vm2002_vm13, %v5557_v36, %v2003_v41 }
 0x23e   :  { %v1895_v6 = vadd.s32 3, %v1891_v27  ;;  %v1798_v7 = vxor.u32 2147483648, %v5553_v58  ;;  %v1583_v13 = vadd.s32 3, %v1579_v20  ;;  %v2008_v33 = vsel %vm2001_vm8, %v2004_v59, %v2007_v60 }
 0x23f   :  { %v1475_v5 = vsel %vm6987_vm4, 0, %v1473_v11  ;;  %v1369_v35 = vsel %vm1284_vm3, %v1368_v30, %v9723_v22  ;;  %v1265_v3 = vsel %vm1180_vm12, %v1264_v55, %v9724_v38  ;;  %v2009_v28 = vsel %vm1998_vm10, nan, %v2008_v33  ;;  %v5565_v47 = vpop.eup %5564 }
 0x240   :  { %v1795_v14 = vxor.u32 2147483648, %v5555_v52  ;;  %v1691_v9 = vxor.u32 2147483648, %v5563_v39  ;;  %v1694_v10 = vxor.u32 2147483648, %v5561_v26  ;;  %2067 = vmatprep.subr.mxu1 %v2009_v28  ;;  %vm1793_vm9 = vcmp.lt.s32.totalorder %v7029_v45, 2 }
 0x241   :  { %vm1794_vm14 = vcmp.eq.s32.totalorder %v7029_v45, 0  ;;  %v5567_v16 = vpop.eup %5566  ;;  %v1584_v61 = vand.u32 3, %v1583_v13  ;;  %v1479_v42 = vadd.s32 3, %v1475_v5  ;;  %v1371_v15 = vsel %vm6998_vm6, 0, %v1369_v35 }
 0x242   :  { %v1267_v48 = vsel %vm7012_vm2, 0, %v1265_v3  ;;  %v5569_v12 = vpop.eup %5568  ;;  %v1896_v32 = vand.u32 3, %v1895_v6  ;;  %vm1797_vm12 = vcmp.eq.s32.totalorder %v7029_v45, 2  ;;  %vm1690_vm15 = vcmp.eq.s32.totalorder %v1688_v1, 0 }
 0x243   :  { %vm1693_vm0 = vcmp.eq.s32.totalorder %v1688_v1, 2  ;;  %v5571_v54 = vpop.eup %5570  ;;  %v1796_v50 = vsel %vm1794_vm14, %v5553_v58, %v1795_v14  ;;  %v1799_v18 = vsel %vm1797_vm12, %v1798_v7, %v5555_v52  ;;  %v1692_v56 = vsel %vm1690_vm15, %v5561_v26, %v1691_v9 }
 0x244   :  { %v1695_v34 = vsel %vm1693_vm0, %v1694_v10, %v5563_v39  ;;  %v1587_v25 = vxor.u32 2147483648, %v5567_v16  ;;  %v1590_v8 = vxor.u32 2147483648, %v5565_v47  ;;  %v1375_v63 = vadd.s32 3, %v1371_v15 }
 0x245   :  { %v5573_v24 = vpop.eup %5572  ;;  %v1271_v19 = vadd.s32 3, %v1267_v48  ;;  %vm1894_vm3 = vweird.f32 %v6632_v57  ;;  %vm1689_vm1 = vcmp.lt.s32.totalorder %v1688_v1, 2  ;;  %vm1585_vm4 = vcmp.lt.s32.totalorder %v1584_v61, 2 }
 0x246   :  { %v5575_v29 = vpop.eup %5574  ;;  %vm1586_vm5 = vcmp.eq.s32.totalorder %v1584_v61, 0  ;;  %v1480_v37 = vand.u32 3, %v1479_v42  ;;  %vm1897_vm6 = vcmp.lt.s32.totalorder %v1896_v32, 2  ;;  %vm1898_vm2 = vcmp.eq.s32.totalorder %v1896_v32, 0  ;;  %v5689_v42 = vld [vmem:[#allocation5 + $0x28] sm:$0xff] }
 0x247   :  { %v5577_v51 = vpop.eup %5576  ;;  %vm1901_vm10 = vcmp.eq.s32.totalorder %v1896_v32, 2  ;;  %vm1790_vm7 = vweird.f32 %v6590_v43  ;;  %vm1589_vm8 = vcmp.eq.s32.totalorder %v1584_v61, 2  ;;  %v1800_v52 = vsel %vm1793_vm9, %v1796_v50, %v1799_v18 }
 0x248   :  { %v5579_v58 = vpop.eup %5578  ;;  %v1696_v20 = vsel %vm1689_vm1, %v1692_v56, %v1695_v34  ;;  %v1483_v36 = vxor.u32 2147483648, %v5571_v54  ;;  %v1486_v4 = vxor.u32 2147483648, %v5569_v12  ;;  %v1588_v22 = vsel %vm1586_vm5, %v5565_v47, %v1587_v25 }
 0x249   :  { %v5581_v27 = vpop.eup %5580  ;;  %v1591_v30 = vsel %vm1589_vm8, %v1590_v8, %v5567_v16  ;;  %v1376_v53 = vand.u32 3, %v1375_v63  ;;  %v1272_v46 = vand.u32 3, %v1271_v19  ;;  %vm1482_vm11 = vcmp.eq.s32.totalorder %v1480_v37, 0 }
 0x24a   :  { %v5583_v23 = vpop.eup %5582  ;;  %v1902_v38 = vxor.u32 2147483648, %v5581_v27  ;;  %v1379_v55 = vxor.u32 2147483648, %v5575_v29  ;;  %v1382_v26 = vxor.u32 2147483648, %v5573_v24  ;;  %vm1485_vm13 = vcmp.eq.s32.totalorder %v1480_v37, 2 }
 0x24b   :  { %v1899_v41 = vxor.u32 2147483648, %v5583_v23  ;;  %v1275_v11 = vxor.u32 2147483648, %v5579_v58  ;;  %v1278_v39 = vxor.u32 2147483648, %v5577_v51  ;;  %v1592_v60 = vsel %vm1585_vm4, %v1588_v22, %v1591_v30 }
 0x24c   :  { %v1903_v45 = vsel %vm1901_vm10, %v1902_v38, %v5583_v23  ;;  %v1484_v1 = vsel %vm1482_vm11, %v5569_v12, %v1483_v36  ;;  %v1487_v59 = vsel %vm1485_vm13, %v1486_v4, %v5571_v54  ;;  %vm1378_vm9 = vcmp.eq.s32.totalorder %v1376_v53, 0 }
 0x24d   :  { %v1900_v6 = vsel %vm1898_vm2, %v5581_v27, %v1899_v41  ;;  %vm1381_vm14 = vcmp.eq.s32.totalorder %v1376_v53, 2  ;;  %vm1274_vm12 = vcmp.eq.s32.totalorder %v1272_v46, 0  ;;  %v1380_v13 = vsel %vm1378_vm9, %v5573_v24, %v1379_v55  ;;  %v7097_v24 = vpop.permute.xlu0 %2031 }
 0x24e   :  { %v1904_v7 = vsel %vm1897_vm6, %v1900_v6, %v1903_v45  ;;  %v1383_v33 = vsel %vm1381_vm14, %v1382_v26, %v5575_v29  ;;  %vm1277_vm15 = vcmp.eq.s32.totalorder %v1272_v46, 2  ;;  %vm1481_vm0 = vcmp.lt.s32.totalorder %v1480_v37, 2 }
 0x24f   :  { %v1905_v5 = vsel %vm1894_vm3, nan, %v1904_v7  ;;  %v1276_v35 = vsel %vm1274_vm12, %v5577_v51, %v1275_v11  ;;  %v1279_v3 = vsel %vm1277_vm15, %v1278_v39, %v5579_v58  ;;  %v1801_v28 = vsel %vm1790_vm7, nan, %v1800_v52 }
 0x250   :  { %2068 = vmatpush1.msra.mxu1 %v1905_v5  ;;  %vm1686_vm1 = vweird.f32 %v6459_v2  ;;  %v1488_v14 = vsel %vm1481_vm0, %v1484_v1, %v1487_v59  ;;  %vm1377_vm4 = vcmp.lt.s32.totalorder %v1376_v53, 2  ;;  %vm1582_vm5 = vweird.f32 %v6371_v62  ;;  %v5688_v62 = vld [vmem:[#allocation5 + $0x20] sm:$0xff] }
 0x251   :  { %2069 = vmatprep.subr.mxu1 %v1801_v28  ;;  %v1697_v9 = vsel %vm1686_vm1, nan, %v1696_v20  ;;  %v1384_v10 = vsel %vm1377_vm4, %v1380_v13, %v1383_v33  ;;  %vm1273_vm6 = vcmp.lt.s32.totalorder %v1272_v46, 2  ;;  %v1593_v57 = vsel %vm1582_vm5, nan, %v1592_v60  ;;  %v2022_v52 = vpop.permute.xlu0 %2021 }
 0x252   :  { %2070 = vmatpush1.msra.mxu1 %v1697_v9  ;;  %vm1478_vm3 = vweird.f32 %v6292_v44  ;;  %v1280_v47 = vsel %vm1273_vm6, %v1276_v35, %v1279_v3  ;;  %vm1374_vm2 = vweird.f32 %v6287_v49  ;;  %vm1270_vm10 = vweird.f32 %v6284_v40  ;;  %v5690_v44 = vld [vmem:[#allocation5 + $0x30] sm:$0xff]  ;;  %v5691_v40 = vld [vmem:[#allocation5 + $0x38] sm:$0xff]  ;;  %v7089_v49 = vpop.permute.xlu1 %2026 }
 0x253   :  { %2071 = vmatprep.subr.mxu1 %v1593_v57  ;;  %v1489_v16 = vsel %vm1478_vm3, nan, %v1488_v14  ;;  %v1385_v43 = vsel %vm1374_vm2, nan, %v1384_v10  ;;  %vm2034_vm7 = vcmask 261120   ;;  %v1281_v2 = vsel %vm1270_vm10, nan, %v1280_v47 }
 0x254   :  { %2072 = vmatpush1.msra.mxu1 %v1489_v16  ;;  %v9725_v61 = vmov 0.0   ;;  %v9726_v26 = vmov 920167782   ;;  %v9727_v39 = vmov 1326507024  }
 0x255   :  { %2073 = vmatprep.subr.mxu1 %v1385_v43 }
 0x256   :  { %2074 = vmatpush1.msra.mxu1 %v1281_v2  ;;  %v2017_v15 = vpop.permute.xlu1 %2016 }
 0x257   :  { %5249 = vmatmul.mubr.msk.f32.vlgmr.msra.gmra.mxu1 %vm2034_vm7, %v5688_v62 }
 0x258   :  { %2113 = vmatprep.mubr.f32.mxu1 %v9725_v61 }
 0x25b   :  { %5250 = vmatmul.mubr.msk.f32.gmra.mxu1 %vm2034_vm7, %v5689_v42 }
 0x25c   :  { %2119 = vmatprep.mubr.f32.mxu1 %v9725_v61 }
 0x25f   :  { %5251 = vmatmul.mubr.msk.f32.gmra.mxu1 %vm2034_vm7, %v5690_v44 }
 0x260   :  { %2125 = vmatprep.mubr.f32.mxu1 %v9725_v61 }
 0x263   :  { %5252 = vmatmul.mubr.msk.f32.gmra.mxu1 %vm2034_vm7, %v5691_v40 }
 0x264   :  { %4014 = vmatprep.mubr.f32.mxu1 %v9725_v61 }
 0x317   :  { %v2109_v48 = vpop.f32.mrf.mxu1 }
 0x318   :  { %v7091_v12 = vadd.f32 %v2109_v48, %v2017_v15 }
 0x319   :  { %v2111_v32 = vpop.f32.mrf.mxu1 }
 0x31a   :  { %v2135_v54 = vand.u32 2139095040, %v7091_v12  ;;  %v7094_v50 = vadd.f32 %v2111_v32, %v2017_v15  ;;  %v9625_v19 = vand.u32 2147483647, %v7091_v12 }
 0x31b   :  { %v2115_v51 = vpop.f32.mrf.mxu1 }
 0x31c   :  { %v2136_v18 = vshrl.u32 %v2135_v54, 23  ;;  %v2239_v56 = vand.u32 2139095040, %v7094_v50  ;;  %v2139_v20 = vand.u32 8388607, %v9625_v19  ;;  %v7102_v4 = vadd.f32 %v2115_v51, %v2022_v52 }
 0x31d   :  { %v2117_v48 = vpop.f32.mrf.mxu1  ;;  %v9620_v32 = vand.u32 2147483647, %v7094_v50 }
 0x31e   :  { %v5253_v34 = vadd.s32 4294967169, %v2136_v18  ;;  %v2240_v25 = vshrl.u32 %v2239_v56, 23  ;;  %v2140_v7 = vor.u32 8388608, %v2139_v20  ;;  %v2343_v35 = vand.u32 2139095040, %v7102_v4 }
 0x320   :  { %v2142_v8 = vadd.s32 1, %v5253_v34  ;;  %v5257_v63 = vadd.s32 4294967169, %v2240_v25  ;;  %v2180_v43 = vshll.u32 %v2140_v7, 8  ;;  %v2344_v2 = vshrl.u32 %v2343_v35, 23 }
 0x322   :  { %vm2143_vm8 = vcmp.gt.s32.totalorder %v2142_v8, 0  ;;  %v2246_v37 = vadd.s32 1, %v5257_v63  ;;  %v5261_v54 = vadd.s32 4294967169, %v2344_v2  ;;  %v7156_v63 = vadd.f32 %v2117_v48, %v2022_v52 }
 0x323   :  { %v2144_v29 = vsel %vm2143_vm8, %v2142_v8, 0  ;;  %v9623_v48 = vand.u32 2147483647, %v7102_v4 }
 0x324   :  { %v2146_v58 = vand.u32 31, %v2144_v29  ;;  %v7104_v27 = vshrl.u32 %v2144_v29, 5  ;;  %vm2247_vm11 = vcmp.gt.s32.totalorder %v2246_v37, 0 }
 0x325   :  { %v2248_v6 = vsel %vm2247_vm11, %v2246_v37, 0 }
 0x326   :  { %v2147_v36 = vsub.s32 32, %v2146_v58  ;;  %v2149_v22 = vshll.u32 %v9689_v31, %v2146_v58  ;;  %v2152_v30 = vshll.u32 %v9692_v0, %v2146_v58  ;;  %v2155_v23 = vshll.u32 %v9688_v21, %v2146_v58 }
 0x327   :  { %v2158_v55 = vshll.u32 %v9693_v17, %v2146_v58  ;;  %v2161_v11 = vshll.u32 %v9726_v26, %v2146_v58  ;;  %vm2164_vm13 = vcmp.lt.s32.totalorder %v7104_v27, 1  ;;  %vm2166_vm9 = vcmp.lt.s32.totalorder %v7104_v27, 3 }
 0x328   :  { %v2150_v53 = vshrl.u32 %v9692_v0, %v2147_v36  ;;  %v2153_v46 = vshrl.u32 %v9688_v21, %v2147_v36  ;;  %v2156_v38 = vshrl.u32 %v9693_v17, %v2147_v36  ;;  %v2159_v41 = vshrl.u32 %v9726_v26, %v2147_v36 }
 0x329   :  { %v2162_v45 = vshrl.u32 %v9727_v39, %v2147_v36  ;;  %vm2167_vm14 = vcmp.lt.s32.totalorder %v7104_v27, 4  ;;  %v2250_v9 = vand.u32 31, %v2248_v6  ;;  %vm2165_vm12 = vcmp.lt.s32.totalorder %v7104_v27, 2 }
 0x32a   :  { %v2151_v60 = vor.u32 %v2150_v53, %v2149_v22  ;;  %v2154_v1 = vor.u32 %v2153_v46, %v2152_v30  ;;  %v2157_v59 = vor.u32 %v2156_v38, %v2155_v23  ;;  %v2160_v13 = vor.u32 %v2159_v41, %v2158_v55 }
 0x32b   :  { %v2163_v33 = vor.u32 %v2162_v45, %v2161_v11  ;;  %v7137_v62 = vsub.s32 32, %v2250_v9  ;;  %v2148_v18 = vshrl.u32 %v9689_v31, %v2147_v36  ;;  %v7154_v8 = vshrl.u32 %v2248_v6, 5 }
 0x32c   :  { %v2172_v5 = vsel %vm2164_vm13, %v2151_v60, %v2154_v1  ;;  %v2173_v3 = vsel %vm2167_vm14, %v2160_v13, 920167782  ;;  %v2176_v28 = vsel %vm2164_vm13, %v2154_v1, %v2157_v59  ;;  %v2169_v56 = vsel %vm2167_vm14, %v2157_v59, 2102212464 }
 0x32d   :  { %v2177_v14 = vsel %vm2167_vm14, %v2163_v33, 1326507024  ;;  %v2174_v10 = vsel %vm2166_vm9, %v2157_v59, %v2173_v3  ;;  %v2263_v34 = vshrl.u32 %v9726_v26, %v7137_v62  ;;  %v2266_v25 = vshrl.u32 %v9727_v39, %v7137_v62 }
 0x32e   :  { %v2178_v57 = vsel %vm2166_vm9, %v2160_v13, %v2177_v14  ;;  %v2175_v47 = vsel %vm2165_vm12, %v2172_v5, %v2174_v10  ;;  %v2168_v29 = vsel %vm2164_vm13, %v2148_v18, %v2151_v60  ;;  %v2254_v37 = vshrl.u32 %v9692_v0, %v7137_v62 }
 0x32f   :  { %v2179_v16 = vsel %vm2165_vm12, %v2176_v28, %v2178_v57  ;;  %v7139_v42 = vmul.u32.u64.low %v2180_v43, %v2175_v47  ;;  %v7140_v44 = vmul.u32.u64.high %v2180_v43, %v2175_v47, %v7139_v42  ;;  %v2262_v51 = vshll.u32 %v9693_v17, %v2250_v9 }
 0x330   :  { %v7143_v40 = vmul.u32.u64.low %v2180_v43, %v2179_v16  ;;  %v7144_v15 = vmul.u32.u64.high %v2180_v43, %v2179_v16, %v7143_v40  ;;  %v2265_v58 = vshll.u32 %v9726_v26, %v2250_v9  ;;  %v2170_v20 = vsel %vm2166_vm9, %v2154_v1, %v2169_v56 }
 0x331   :  { %v2257_v36 = vshrl.u32 %v9688_v21, %v7137_v62  ;;  %v2260_v52 = vshrl.u32 %v9693_v17, %v7137_v62  ;;  %v2350_v22 = vadd.s32 1, %v5261_v54  ;;  %v2243_v30 = vand.u32 8388607, %v9620_v32 }
 0x332   :  { %v2253_v53 = vshll.u32 %v9689_v31, %v2250_v9  ;;  %v2264_v46 = vor.u32 %v2263_v34, %v2262_v51  ;;  %v2267_v23 = vor.u32 %v2266_v25, %v2265_v58  ;;  %v2190_v38 = vadd.s32 1, %v7140_v44 }
 0x333   :  { %v2256_v55 = vshll.u32 %v9692_v0, %v2250_v9  ;;  %v2259_v41 = vshll.u32 %v9688_v21, %v2250_v9  ;;  %v2447_v11 = vand.u32 2139095040, %v7156_v63  ;;  %v2171_v45 = vsel %vm2165_vm12, %v2168_v29, %v2170_v20 }
 0x334   :  { %vm2189_vm15 = vc.u32 %v7144_v15, %v7139_v42  ;;  %v2255_v60 = vor.u32 %v2254_v37, %v2253_v53  ;;  %vm2351_vm0 = vcmp.gt.s32.totalorder %v2350_v22, 0  ;;  %vm2271_vm1 = vcmp.lt.s32.totalorder %v7154_v8, 4 }
 0x335   :  { %v2258_v1 = vor.u32 %v2257_v36, %v2256_v55  ;;  %v2261_v59 = vor.u32 %v2260_v52, %v2259_v41  ;;  %v2352_v6 = vsel %vm2351_vm0, %v2350_v22, 0  ;;  %v2277_v7 = vsel %vm2271_vm1, %v2264_v46, 920167782 }
 0x336   :  { %v2281_v13 = vsel %vm2271_vm1, %v2267_v23, 1326507024  ;;  %v2354_v33 = vand.u32 31, %v2352_v6  ;;  %v2191_v27 = vsel %vm2189_vm15, %v2190_v38, %v7140_v44  ;;  %v2244_v5 = vor.u32 8388608, %v2243_v30 }
 0x337   :  { %v2187_v35 = vmul.u32 %v2180_v43, %v2171_v45  ;;  %vm2268_vm4 = vcmp.lt.s32.totalorder %v7154_v8, 1  ;;  %vm2270_vm5 = vcmp.lt.s32.totalorder %v7154_v8, 3  ;;  %v2448_v3 = vshrl.u32 %v2447_v11, 23 }
 0x338   :  { %v2276_v28 = vsel %vm2268_vm4, %v2255_v60, %v2258_v1  ;;  %v2278_v14 = vsel %vm2270_vm5, %v2261_v59, %v2277_v7  ;;  %v2280_v9 = vsel %vm2268_vm4, %v2258_v1, %v2261_v59  ;;  %v2282_v10 = vsel %vm2270_vm5, %v2264_v46, %v2281_v13 }
 0x339   :  { %v2192_v57 = vadd.s32 %v2191_v27, %v2187_v35  ;;  %v7197_v47 = vsub.s32 32, %v2354_v33  ;;  %vm2269_vm6 = vcmp.lt.s32.totalorder %v7154_v8, 2  ;;  %v2284_v2 = vshll.u32 %v2244_v5, 8 }
 0x33a   :  { %v2279_v16 = vsel %vm2269_vm6, %v2276_v28, %v2278_v14  ;;  %v2283_v43 = vsel %vm2269_vm6, %v2280_v9, %v2282_v10  ;;  %v5265_v44 = vadd.s32 4294967169, %v2448_v3  ;;  %v2252_v29 = vshrl.u32 %v9689_v31, %v7137_v62 }
 0x33b   :  { %v2193_v40 = vadd.s32 536870912, %v2192_v57  ;;  %v2367_v54 = vshrl.u32 %v9726_v26, %v7197_v47  ;;  %v7207_v18 = vmul.u32.u64.low %v2284_v2, %v2283_v43  ;;  %v7208_v56 = vmul.u32.u64.high %v2284_v2, %v2283_v43, %v7207_v18 }
 0x33c   :  { %v7210_v34 = vmul.u32.u64.low %v2284_v2, %v2279_v16  ;;  %v7211_v25 = vmul.u32.u64.high %v2284_v2, %v2279_v16, %v7210_v34  ;;  %v2358_v37 = vshrl.u32 %v9692_v0, %v7197_v47  ;;  %v2361_v51 = vshrl.u32 %v9688_v21, %v7197_v47 }
 0x33d   :  { %v2366_v58 = vshll.u32 %v9693_v17, %v2354_v33  ;;  %v7221_v20 = vshrl.u32 %v2352_v6, 5  ;;  %v2364_v36 = vshrl.u32 %v9693_v17, %v7197_v47  ;;  %v2370_v52 = vshrl.u32 %v9727_v39, %v7197_v47 }
 0x33e   :  { %v2454_v22 = vadd.s32 1, %v5265_v44  ;;  %v7227_v30 = vshrl.u32 %v2193_v40, 30  ;;  %v2357_v62 = vshll.u32 %v9689_v31, %v2354_v33  ;;  %v2360_v53 = vshll.u32 %v9692_v0, %v2354_v33 }
 0x33f   :  { %v2368_v46 = vor.u32 %v2367_v54, %v2366_v58  ;;  %v2273_v23 = vsel %vm2271_vm1, %v2261_v59, 2102212464  ;;  %v2363_v38 = vshll.u32 %v9688_v21, %v2354_v33  ;;  %v2369_v55 = vshll.u32 %v9726_v26, %v2354_v33 }
 0x340   :  { %9728 = vst [vmem:[#allocation14_spill] sm:$0xff] %v7227_v30  ;;  %v2272_v41 = vsel %vm2268_vm4, %v2252_v29, %v2255_v60  ;;  %v2347_v11 = vand.u32 8388607, %v9623_v48  ;;  %v7239_v45 = vor.u32 %v2358_v37, %v2357_v62  ;;  %v7241_v6 = vor.u32 %v2361_v51, %v2360_v53 }
 0x341   :  { %v2365_v7 = vor.u32 %v2364_v36, %v2363_v38  ;;  %v2371_v13 = vor.u32 %v2370_v52, %v2369_v55  ;;  %vm2375_vm3 = vcmp.lt.s32.totalorder %v7221_v20, 4  ;;  %vm2455_vm2 = vcmp.gt.s32.totalorder %v2454_v22, 0 }
 0x342   :  { %v2195_v59 = vshll.u32 %v7227_v30, 30  ;;  %v2274_v33 = vsel %vm2270_vm5, %v2258_v1, %v2273_v23  ;;  %v2381_v60 = vsel %vm2375_vm3, %v2368_v46, 920167782  ;;  %v2456_v27 = vsel %vm2455_vm2, %v2454_v22, 0 }
 0x343   :  { %v2294_v5 = vadd.s32 1, %v7211_v25  ;;  %v2458_v35 = vand.u32 31, %v2456_v27  ;;  %vm2293_vm10 = vc.u32 %v7208_v56, %v7210_v34  ;;  %v2348_v3 = vor.u32 8388608, %v2347_v11 }
 0x344   :  { %vm2372_vm8 = vcmp.lt.s32.totalorder %v7221_v20, 1  ;;  %vm2374_vm11 = vcmp.lt.s32.totalorder %v7221_v20, 3  ;;  %v2275_v28 = vsel %vm2269_vm6, %v2272_v41, %v2274_v33  ;;  %v2385_v9 = vsel %vm2375_vm3, %v2371_v13, 1326507024 }
 0x345   :  { %v2380_v1 = vsel %vm2372_vm8, %v7239_v45, %v7241_v6  ;;  %v2382_v14 = vsel %vm2374_vm11, %v2365_v7, %v2381_v60  ;;  %v7264_v10 = vsub.s32 %v2192_v57, %v2195_v59  ;;  %v9621_v16 = vand.u32 2147483647, %v7156_v63 }
 0x346   :  { %v2295_v43 = vsel %vm2293_vm10, %v2294_v5, %v7211_v25  ;;  %vm2373_vm13 = vcmp.lt.s32.totalorder %v7221_v20, 2  ;;  %v7269_v8 = vsub.s32 32, %v2458_v35  ;;  %v2291_v44 = vmul.u32 %v2284_v2, %v2275_v28  ;;  %v2121_v2 = vpop.f32.mrf.mxu1 }
 0x347   :  { %v2383_v40 = vsel %vm2373_vm13, %v2380_v1, %v2382_v14  ;;  %v2384_v54 = vsel %vm2372_vm8, %v7241_v6, %v2365_v7  ;;  %v2386_v57 = vsel %vm2374_vm11, %v2368_v46, %v2385_v9  ;;  %v7278_v18 = vshll.u32 %v2348_v3, 8 }
 0x348   :  { %v2198_v29 = vsub.s32 0, %v7264_v10  ;;  %v7281_v25 = vadd.s32 %v2295_v43, %v2291_v44  ;;  %v2451_v37 = vand.u32 8388607, %v9621_v16  ;;  %v2387_v51 = vsel %vm2373_vm13, %v2384_v54, %v2386_v57 }
 0x349   :  { %v7288_v58 = vmul.u32.u64.low %v7278_v18, %v2383_v40  ;;  %v7289_v36 = vmul.u32.u64.high %v7278_v18, %v2383_v40, %v7288_v58  ;;  %v2462_v52 = vshrl.u32 %v9692_v0, %v7269_v8  ;;  %v2465_v22 = vshrl.u32 %v9688_v21, %v7269_v8 }
 0x34a   :  { %v2468_v62 = vshrl.u32 %v9693_v17, %v7269_v8  ;;  %v2470_v53 = vshll.u32 %v9693_v17, %v2458_v35  ;;  %v2471_v46 = vshrl.u32 %v9726_v26, %v7269_v8  ;;  %v7301_v23 = vshrl.u32 %v2456_v27, 5 }
 0x34b   :  { %v2461_v38 = vshll.u32 %v9689_v31, %v2458_v35  ;;  %v2474_v55 = vshrl.u32 %v9727_v39, %v7269_v8  ;;  %v7307_v41 = vadd.f32 %v2121_v2, %v7089_v49  ;;  %v2464_v11 = vshll.u32 %v9692_v0, %v2458_v35 }
 0x34c   :  { %v2467_v13 = vshll.u32 %v9688_v21, %v2458_v35  ;;  %v2472_v59 = vor.u32 %v2471_v46, %v2470_v53  ;;  %v2473_v33 = vshll.u32 %v9726_v26, %v2458_v35  ;;  %v5254_v60 = vmin.u32 %v2198_v29, %v7264_v10  ;;  %v2123_v46 = vpop.f32.mrf.mxu1 }
 0x34d   :  { %v2297_v27 = vadd.s32 536870912, %v7281_v25  ;;  %v7315_v5 = vmul.u32.u64.low %v7278_v18, %v2387_v51  ;;  %v7316_v3 = vmul.u32.u64.high %v7278_v18, %v2387_v51, %v7315_v5  ;;  %v2463_v28 = vor.u32 %v2462_v52, %v2461_v38 }
 0x34e   :  { %v2466_v1 = vor.u32 %v2465_v22, %v2464_v11  ;;  %v2469_v14 = vor.u32 %v2468_v62, %v2467_v13  ;;  %v2475_v9 = vor.u32 %v2474_v55, %v2473_v33  ;;  %vm2479_vm9 = vcmp.lt.s32.totalorder %v7301_v23, 4 }
 0x34f   :  { %v2377_v43 = vsel %vm2375_vm3, %v2365_v7, 2102212464  ;;  %v2452_v44 = vor.u32 8388608, %v2451_v37  ;;  %v2485_v35 = vsel %vm2479_vm9, %v2472_v59, 920167782  ;;  %v2551_v40 = vand.u32 2139095040, %v7307_v41 }
 0x350   :  { %v2200_v54 = vclz %v5254_v60  ;;  %v2356_v57 = vshrl.u32 %v9689_v31, %v7197_v47  ;;  %vm2476_vm14 = vcmp.lt.s32.totalorder %v7301_v23, 1  ;;  %vm2478_vm12 = vcmp.lt.s32.totalorder %v7301_v23, 3 }
 0x351   :  { %v7328_v29 = vshrl.u32 %v2297_v27, 30  ;;  %v2484_v2 = vsel %vm2476_vm14, %v2463_v28, %v2466_v1  ;;  %v2486_v7 = vsel %vm2478_vm12, %v2469_v14, %v2485_v35  ;;  %v2489_v37 = vsel %vm2479_vm9, %v2475_v9, 1326507024 }
 0x352   :  { %v2376_v51 = vsel %vm2372_vm8, %v2356_v57, %v7239_v45  ;;  %v2378_v47 = vsel %vm2374_vm11, %v7241_v6, %v2377_v43  ;;  %v2488_v52 = vsel %vm2476_vm14, %v2466_v1, %v2469_v14  ;;  %v2490_v22 = vsel %vm2478_vm12, %v2472_v59, %v2489_v37 }
 0x353   :  { %9729 = vst [vmem:[#allocation13_spill] sm:$0xff] %v7328_v29  ;;  %v2398_v62 = vadd.s32 1, %v7289_v36  ;;  %vm2477_vm15 = vcmp.lt.s32.totalorder %v7301_v23, 2  ;;  %v2552_v53 = vshrl.u32 %v2551_v40, 23  ;;  %v5255_v38 = vadd.s32 4294967294, %v2200_v54 }
 0x354   :  { %vm2397_vm0 = vc.u32 %v7316_v3, %v7288_v58  ;;  %v2487_v45 = vsel %vm2477_vm15, %v2484_v2, %v2486_v7  ;;  %v2379_v6 = vsel %vm2373_vm13, %v2376_v51, %v2378_v47  ;;  %v2491_v55 = vsel %vm2477_vm15, %v2488_v52, %v2490_v22 }
 0x355   :  { %v7356_v11 = vshll.u32 %v2452_v44, 8  ;;  %v5269_v13 = vadd.s32 4294967169, %v2552_v53  ;;  %v2299_v59 = vshll.u32 %v7328_v29, 30  ;;  %v7360_v33 = vadd.f32 %v2123_v46, %v7089_v49 }
 0x356   :  { %v2399_v60 = vsel %vm2397_vm0, %v2398_v62, %v7289_v36  ;;  %vm5256_vm1 = vcmp.lt.s32.totalorder %v5255_v38, 0  ;;  %v2395_v9 = vmul.u32 %v7278_v18, %v2379_v6  ;;  %v2481_v35 = vsel %vm2479_vm9, %v2469_v14, 2102212464 }
 0x357   :  { %v7364_v27 = vmul.u32.u64.low %v7356_v11, %v2487_v45  ;;  %v7365_v5 = vmul.u32.u64.high %v7356_v11, %v2487_v45, %v7364_v27  ;;  %v2558_v20 = vadd.s32 1, %v5269_v13  ;;  %v7376_v49 = vsub.s32 %v7281_v25, %v2299_v59 }
 0x358   :  { %v7370_v43 = vmul.u32.u64.low %v7356_v11, %v2491_v55  ;;  %v7371_v44 = vmul.u32.u64.high %v7356_v11, %v2491_v55, %v7370_v43  ;;  %v7378_v36 = vadd.s32 %v2399_v60, %v2395_v9  ;;  %v2460_v40 = vshrl.u32 %v9689_v31, %v7269_v8 }
 0x359   :  { %vm2559_vm4 = vcmp.gt.s32.totalorder %v2558_v20, 0  ;;  %v2655_v54 = vand.u32 2139095040, %v7360_v33  ;;  %v7383_v57 = vsel %vm5256_vm1, 0, %v5255_v38  ;;  %v9624_v18 = vand.u32 2147483647, %v7307_v41 }
 0x35a   :  { %v2560_v2 = vsel %vm2559_vm4, %v2558_v20, 0  ;;  %v2480_v7 = vsel %vm2476_vm14, %v2460_v40, %v2463_v28  ;;  %v2482_v14 = vsel %vm2478_vm12, %v2466_v1, %v2481_v35  ;;  %v2208_v37 = vsub.s32 4294967266, %v7383_v57 }
 0x35b   :  { %v2562_v25 = vand.u32 31, %v2560_v2  ;;  %v2302_v51 = vsub.s32 0, %v7376_v49  ;;  %v2401_v8 = vadd.s32 536870912, %v7378_v36  ;;  %v2656_v47 = vshrl.u32 %v2655_v54, 23 }
 0x35c   :  { %v2483_v52 = vsel %vm2477_vm15, %v2480_v7, %v2482_v14  ;;  %v2502_v22 = vadd.s32 1, %v7365_v5  ;;  %v2555_v62 = vand.u32 8388607, %v9624_v18  ;;  %vm2501_vm5 = vc.u32 %v7371_v44, %v7364_v27 }
 0x35d   :  { %v2563_v28 = vsub.s32 32, %v2562_v25  ;;  %v2561_v1 = vshrl.u32 %v2560_v2, 5  ;;  %v2565_v53 = vshll.u32 %v9689_v31, %v2562_v25  ;;  %v2568_v46 = vshll.u32 %v9692_v0, %v2562_v25 }
 0x35e   :  { %v2571_v23 = vshll.u32 %v9688_v21, %v2562_v25  ;;  %v2574_v55 = vshll.u32 %v9693_v17, %v2562_v25  ;;  %v2577_v59 = vshll.u32 %v9726_v26, %v2562_v25  ;;  %v5273_v60 = vadd.s32 4294967169, %v2656_v47 }
 0x35f   :  { %v2566_v38 = vshrl.u32 %v9692_v0, %v2563_v28  ;;  %v2569_v45 = vshrl.u32 %v9688_v21, %v2563_v28  ;;  %v2572_v6 = vshrl.u32 %v9693_v17, %v2563_v28  ;;  %v2575_v13 = vshrl.u32 %v9726_v26, %v2563_v28 }
 0x360   :  { %v2578_v35 = vshrl.u32 %v9727_v39, %v2563_v28  ;;  %v7410_v40 = vshrl.u32 %v2401_v8, 30  ;;  %v2499_v54 = vmul.u32 %v7356_v11, %v2483_v52  ;;  %v2556_v2 = vor.u32 8388608, %v2555_v62 }
 0x361   :  { %v2567_v20 = vor.u32 %v2566_v38, %v2565_v53  ;;  %v2570_v9 = vor.u32 %v2569_v45, %v2568_v46  ;;  %v2573_v43 = vor.u32 %v2572_v6, %v2571_v23  ;;  %v2576_v7 = vor.u32 %v2575_v13, %v2574_v55 }
 0x362   :  { %v2503_v14 = vsel %vm2501_vm5, %v2502_v22, %v7365_v5  ;;  %v2579_v32 = vor.u32 %v2578_v35, %v2577_v59  ;;  %vm2580_vm6 = vcmp.lt.s32.totalorder %v2561_v1, 1  ;;  %v9622_v25 = vand.u32 2147483647, %v7360_v33 }
 0x363   :  { %vm2582_vm3 = vcmp.lt.s32.totalorder %v2561_v1, 3  ;;  %vm2583_vm2 = vcmp.lt.s32.totalorder %v2561_v1, 4  ;;  %v2588_v47 = vsel %vm2580_vm6, %v2567_v20, %v2570_v9  ;;  %v2662_v53 = vadd.s32 1, %v5273_v60 }
 0x364   :  { %v2585_v8 = vsel %vm2583_vm2, %v2573_v43, 2102212464  ;;  %v2589_v46 = vsel %vm2583_vm2, %v2576_v7, 920167782  ;;  %v2592_v11 = vsel %vm2580_vm6, %v2570_v9, %v2573_v43  ;;  %v2593_v52 = vsel %vm2583_vm2, %v2579_v32, 1326507024 }
 0x365   :  { %v7420_v62 = vadd.s32 %v2503_v14, %v2499_v54  ;;  %v2564_v38 = vshrl.u32 %v9689_v31, %v2563_v28  ;;  %vm2581_vm10 = vcmp.lt.s32.totalorder %v2561_v1, 2  ;;  %v2590_v5 = vsel %vm2582_vm3, %v2573_v43, %v2589_v46 }
 0x366   :  { %v5258_v22 = vmin.u32 %v2302_v51, %v7376_v49  ;;  %v2591_v45 = vsel %vm2581_vm10, %v2588_v47, %v2590_v5  ;;  %v2594_v23 = vsel %vm2582_vm3, %v2576_v7, %v2593_v52  ;;  %v2596_v6 = vshll.u32 %v2556_v2, 8 }
 0x367   :  { %v2584_v55 = vsel %vm2580_vm6, %v2564_v38, %v2567_v20  ;;  %v2586_v13 = vsel %vm2582_vm3, %v2570_v9, %v2585_v8  ;;  %v2595_v32 = vsel %vm2581_vm10, %v2592_v11, %v2594_v23  ;;  %vm2663_vm8 = vcmp.gt.s32.totalorder %v2662_v53, 0 }
 0x368   :  { %v2403_v59 = vshll.u32 %v7410_v40, 30  ;;  %v7431_v28 = vmul.u32.u64.low %v2596_v6, %v2595_v32  ;;  %v7432_v60 = vmul.u32.u64.high %v2596_v6, %v2595_v32, %v7431_v28  ;;  %v2664_v43 = vsel %vm2663_vm8, %v2662_v53, 0 }
 0x369   :  { %v2505_v51 = vadd.s32 536870912, %v7420_v62  ;;  %v7435_v35 = vmul.u32.u64.low %v2596_v6, %v2591_v45  ;;  %v7436_v54 = vmul.u32.u64.high %v2596_v6, %v2591_v45, %v7435_v35  ;;  %v2659_v20 = vand.u32 8388607, %v9622_v25 }
 0x36a   :  { %v2587_v9 = vsel %vm2581_vm10, %v2584_v55, %v2586_v13  ;;  %v2666_v2 = vand.u32 31, %v2664_v43  ;;  %v7444_v7 = vadd.s32 %v7139_v42, %v7144_v15  ;;  %v7447_v47 = vadd.s32 127, %v2208_v37  ;;  %v2127_v55 = vpop.f32.mrf.mxu1 }
 0x36b   :  { %v2304_v53 = vclz %v5258_v22  ;;  %v7450_v8 = vsub.s32 %v7378_v36, %v2403_v59  ;;  %vm2605_vm11 = vc.u32 %v7432_v60, %v7435_v35  ;;  %v7454_v11 = vshrl.u32 %v2505_v51, 30 }
 0x36c   :  { %v2667_v46 = vsub.s32 32, %v2666_v2  ;;  %v2603_v1 = vmul.u32 %v2596_v6, %v2587_v9  ;;  %v2606_v52 = vadd.s32 1, %v7436_v54  ;;  %v2660_v38 = vor.u32 8388608, %v2659_v20 }
 0x36d   :  { %v2665_v42 = vshrl.u32 %v2664_v43, 5  ;;  %v2669_v15 = vshll.u32 %v9689_v31, %v2666_v2  ;;  %v2672_v22 = vshll.u32 %v9692_v0, %v2666_v2  ;;  %v2675_v45 = vshll.u32 %v9688_v21, %v2666_v2 }
 0x36e   :  { %v2670_v37 = vshrl.u32 %v9692_v0, %v2667_v46  ;;  %v2673_v5 = vshrl.u32 %v9688_v21, %v2667_v46  ;;  %v2607_v36 = vsel %vm2605_vm11, %v2606_v52, %v7436_v54  ;;  %v2676_v23 = vshrl.u32 %v9693_v17, %v2667_v46 }
 0x36f   :  { %v5259_v6 = vadd.s32 4294967294, %v2304_v53  ;;  %v2406_v13 = vsub.s32 0, %v7450_v8  ;;  %v2608_v32 = vadd.s32 %v2607_v36, %v2603_v1  ;;  %v2678_v51 = vshll.u32 %v9693_v17, %v2666_v2  ;;  %v2129_v36 = vpop.f32.mrf.mxu1 }
 0x370   :  { %v2671_v59 = vor.u32 %v2670_v37, %v2669_v15  ;;  %v2674_v28 = vor.u32 %v2673_v5, %v2672_v22  ;;  %v2677_v43 = vor.u32 %v2676_v23, %v2675_v45  ;;  %v2679_v20 = vshrl.u32 %v9726_v26, %v2667_v46 }
 0x371   :  { %v2609_v9 = vadd.s32 536870912, %v2608_v32  ;;  %v2681_v54 = vshll.u32 %v9726_v26, %v2666_v2  ;;  %v2682_v52 = vshrl.u32 %v9727_v39, %v2667_v46  ;;  %v7470_v16 = vadd.f32 %v2127_v55, %v7097_v24 }
 0x372   :  { %v2507_v53 = vshll.u32 %v7454_v11, 30  ;;  %v2680_v25 = vor.u32 %v2679_v20, %v2678_v51  ;;  %vm2684_vm13 = vcmp.lt.s32.totalorder %v2665_v42, 1  ;;  %v2700_v1 = vshll.u32 %v2660_v38, 8 }
 0x373   :  { %v7473_v15 = vshrl.u32 %v2609_v9, 30  ;;  %v2668_v37 = vshrl.u32 %v9689_v31, %v2667_v46  ;;  %v2683_v5 = vor.u32 %v2682_v52, %v2681_v54  ;;  %vm2687_vm9 = vcmp.lt.s32.totalorder %v2665_v42, 4 }
 0x374   :  { %vm2686_vm14 = vcmp.lt.s32.totalorder %v2665_v42, 3  ;;  %v2689_v22 = vsel %vm2687_vm9, %v2677_v43, 2102212464  ;;  %v2692_v2 = vsel %vm2684_vm13, %v2671_v59, %v2674_v28  ;;  %v2693_v45 = vsel %vm2687_vm9, %v2680_v25, 920167782 }
 0x375   :  { %v2611_v23 = vshll.u32 %v7473_v15, 30  ;;  %vm2685_vm12 = vcmp.lt.s32.totalorder %v2665_v42, 2  ;;  %v2694_v55 = vsel %vm2686_vm14, %v2677_v43, %v2693_v45  ;;  %v2696_v48 = vsel %vm2684_vm13, %v2674_v28, %v2677_v43 }
 0x376   :  { %v2688_v18 = vsel %vm2684_vm13, %v2668_v37, %v2671_v59  ;;  %v2695_v51 = vsel %vm2685_vm12, %v2692_v2, %v2694_v55  ;;  %v2697_v38 = vsel %vm2687_vm9, %v2683_v5, 1326507024  ;;  %v7479_v20 = vadd.f32 %v2129_v36, %v7097_v24 }
 0x377   :  { %v2690_v46 = vsel %vm2686_vm14, %v2674_v28, %v2689_v22  ;;  %v2698_v9 = vsel %vm2686_vm14, %v2680_v25, %v2697_v38  ;;  %v7481_v54 = vmul.u32.u64.low %v2700_v1, %v2695_v51  ;;  %v7482_v52 = vmul.u32.u64.high %v2700_v1, %v2695_v51, %v7481_v54 }
 0x378   :  { %v7486_v19 = vsub.s32 %v7420_v62, %v2507_v53  ;;  %v7488_v14 = vsub.s32 %v2608_v32, %v2611_v23  ;;  %v2699_v43 = vsel %vm2685_vm12, %v2696_v48, %v2698_v9  ;;  %v2759_v59 = vand.u32 2139095040, %v7470_v16 }
 0x379   :  { %v7492_v37 = vmul.u32.u64.low %v2700_v1, %v2699_v43  ;;  %v7493_v5 = vmul.u32.u64.high %v2700_v1, %v2699_v43, %v7492_v37  ;;  %v9730_v24 = vsub.s32 32, %v7383_v57  ;;  %v2691_v28 = vsel %vm2685_vm12, %v2688_v18, %v2690_v46 }
 0x37a   :  { %v2760_v36 = vshrl.u32 %v2759_v59, 23  ;;  %v2863_v22 = vand.u32 2139095040, %v7479_v20  ;;  %v2205_v62 = vshll.u32 %v7264_v10, %v7383_v57  ;;  %v2210_v32 = vshll.u32 %v7447_v47, 23 }
 0x37b   :  { %v2206_v25 = vshrl.u32 %v7444_v7, %v9730_v24  ;;  %v5262_v48 = vmin.u32 %v2406_v13, %v7450_v8  ;;  %v2710_v53 = vadd.s32 1, %v7482_v52  ;;  %vm5260_vm15 = vcmp.lt.s32.totalorder %v5259_v6, 0 }
 0x37c   :  { %v2510_v2 = vsub.s32 0, %v7486_v19  ;;  %v2614_v45 = vsub.s32 0, %v7488_v14  ;;  %v5277_v7 = vadd.s32 4294967169, %v2760_v36  ;;  %v2707_v42 = vmul.u32 %v2700_v1, %v2691_v28 }
 0x37d   :  { %vm2709_vm0 = vc.u32 %v7493_v5, %v7481_v54  ;;  %v2864_v18 = vshrl.u32 %v2863_v22, 23  ;;  %v7509_v23 = vor.u32 %v2206_v25, %v2205_v62  ;;  %v7512_v47 = vor.u32 4788187, %v2210_v32 }
 0x37e   :  { %v2711_v10 = vsel %vm2709_vm0, %v2710_v53, %v7482_v52  ;;  %v2766_v57 = vadd.s32 1, %v5277_v7  ;;  %v7514_v13 = vsel %vm5260_vm15, 0, %v5259_v6  ;;  %v2408_v55 = vclz %v5262_v48 }
 0x37f   :  { %v2712_v51 = vadd.s32 %v2711_v10, %v2707_v42  ;;  %v5266_v38 = vmin.u32 %v2510_v2, %v7486_v19  ;;  %v5270_v46 = vmin.u32 %v2614_v45, %v7488_v14  ;;  %v9626_v1 = vand.u32 2147483647, %v7470_v16 }
 0x380   :  { %vm2767_vm1 = vcmp.gt.s32.totalorder %v2766_v57, 0  ;;  %v5281_v59 = vadd.s32 4294967169, %v2864_v18  ;;  %v7522_v52 = vadd.s32 %v7210_v34, %v7208_v56  ;;  %v7526_v28 = vadd.s32 4294967294, %v2408_v55 }
 0x381   :  { %v2713_v9 = vadd.s32 536870912, %v2712_v51  ;;  %v2768_v43 = vsel %vm2767_vm1, %v2766_v57, 0  ;;  %v2512_v22 = vclz %v5266_v38  ;;  %v2616_v62 = vclz %v5270_v46 }
 0x382   :  { %v2770_v6 = vand.u32 31, %v2768_v43  ;;  %v2763_v32 = vand.u32 8388607, %v9626_v1  ;;  %v2870_v2 = vadd.s32 1, %v5281_v59  ;;  %v2769_v57 = vshrl.u32 %v2768_v43, 5 }
 0x383   :  { %v7528_v36 = vshrl.u32 %v2713_v9, 30  ;;  %v5267_v46 = vadd.s32 4294967294, %v2512_v22  ;;  %v9632_v61 = vand.u32 2147483647, %v7479_v20  ;;  %v5271_v30 = vadd.s32 4294967294, %v2616_v62 }
 0x384   :  { %v2771_v48 = vsub.s32 32, %v2770_v6  ;;  %v2773_v56 = vshll.u32 %v9689_v31, %v2770_v6  ;;  %v2776_v34 = vshll.u32 %v9692_v0, %v2770_v6  ;;  %v2779_v42 = vshll.u32 %v9688_v21, %v2770_v6 }
 0x385   :  { %v2715_v53 = vshll.u32 %v7528_v36, 30  ;;  %v2782_v55 = vshll.u32 %v9693_v17, %v2770_v6  ;;  %v2764_v37 = vor.u32 8388608, %v2763_v32  ;;  %v2785_v29 = vshll.u32 %v9726_v26, %v2770_v6 }
 0x386   :  { %v2774_v45 = vshrl.u32 %v9692_v0, %v2771_v48  ;;  %v2777_v7 = vshrl.u32 %v9688_v21, %v2771_v48  ;;  %v2780_v18 = vshrl.u32 %v9693_v17, %v2771_v48  ;;  %v2783_v38 = vshrl.u32 %v9726_v26, %v2771_v48 }
 0x387   :  { %v7539_v10 = vsub.s32 %v2712_v51, %v2715_v53  ;;  %v2786_v51 = vshrl.u32 %v9727_v39, %v2771_v48  ;;  %vm2871_vm4 = vcmp.gt.s32.totalorder %v2870_v2, 0  ;;  %vm2788_vm5 = vcmp.lt.s32.totalorder %v2769_v57, 1 }
 0x388   :  { %v2775_v9 = vor.u32 %v2774_v45, %v2773_v56  ;;  %v2778_v1 = vor.u32 %v2777_v7, %v2776_v34  ;;  %v2781_v25 = vor.u32 %v2780_v18, %v2779_v42  ;;  %v2784_v24 = vor.u32 %v2783_v38, %v2782_v55 }
 0x389   :  { %v2718_v59 = vsub.s32 0, %v7539_v10  ;;  %vm2790_vm6 = vcmp.lt.s32.totalorder %v2769_v57, 3  ;;  %vm2791_vm3 = vcmp.lt.s32.totalorder %v2769_v57, 4  ;;  %v2787_v22 = vor.u32 %v2786_v51, %v2785_v29 }
 0x38a   :  { %v2793_v53 = vsel %vm2791_vm3, %v2781_v25, 2102212464  ;;  %v2796_v56 = vsel %vm2788_vm5, %v2775_v9, %v2778_v1  ;;  %v2797_v34 = vsel %vm2791_vm3, %v2784_v24, 920167782  ;;  %v2772_v45 = vshrl.u32 %v9689_v31, %v2771_v48 }
 0x38b   :  { %v5274_v43 = vmin.u32 %v2718_v59, %v7539_v10  ;;  %vm2789_vm2 = vcmp.lt.s32.totalorder %v2769_v57, 2  ;;  %v2798_v62 = vsel %vm2790_vm6, %v2781_v25, %v2797_v34  ;;  %v2800_v7 = vsel %vm2788_vm5, %v2778_v1, %v2781_v25 }
 0x38c   :  { %v2799_v6 = vsel %vm2789_vm2, %v2796_v56, %v2798_v62  ;;  %v2801_v42 = vsel %vm2791_vm3, %v2787_v22, 1326507024  ;;  %v2804_v18 = vshll.u32 %v2764_v37, 8  ;;  %vm5272_vm10 = vcmp.lt.s32.totalorder %v5271_v30, 0 }
 0x38d   :  { %v2720_v32 = vclz %v5274_v43  ;;  %v2792_v55 = vsel %vm2788_vm5, %v2772_v45, %v2775_v9  ;;  %v2794_v29 = vsel %vm2790_vm6, %v2778_v1, %v2793_v53  ;;  %v2802_v38 = vsel %vm2790_vm6, %v2784_v24, %v2801_v42 }
 0x38e   :  { %v2803_v59 = vsel %vm2789_vm2, %v2800_v7, %v2802_v38  ;;  %v7557_v51 = vmul.u32.u64.low %v2804_v18, %v2799_v6  ;;  %v7558_v48 = vmul.u32.u64.high %v2804_v18, %v2799_v6, %v7557_v51  ;;  %v2872_v43 = vsel %vm2871_vm4, %v2870_v2, 0 }
 0x38f   :  { %vm5264_vm8 = vcmp.lt.s32.totalorder %v7526_v28, 0  ;;  %v5275_v25 = vadd.s32 4294967294, %v2720_v32  ;;  %v7563_v22 = vmul.u32.u64.low %v2804_v18, %v2803_v59  ;;  %v7564_v37 = vmul.u32.u64.high %v2804_v18, %v2803_v59, %v7563_v22 }
 0x390   :  { %vm5268_vm11 = vcmp.lt.s32.totalorder %v5267_v46, 0  ;;  %v2795_v9 = vsel %vm2789_vm2, %v2792_v55, %v2794_v29  ;;  %v2867_v1 = vand.u32 8388607, %v9632_v61  ;;  %v2874_v24 = vand.u32 31, %v2872_v43 }
 0x391   :  { %v9731_v53 = vand.u32 2147483647, %v7512_v47  ;;  %v9732_v56 = vcvt.s32.f32 %v7509_v23  ;;  %v7578_v32 = vadd.s32 %v7288_v58, %v7316_v3  ;;  %v7581_v45 = vsel %vm5272_vm10, 0, %v5271_v30 }
 0x392   :  { %v9733_v57 = vsub.s32 4294967266, %v7514_v13  ;;  %v7588_v6 = vsel %vm5264_vm8, 0, %v7526_v28  ;;  %v2814_v23 = vadd.s32 1, %v7558_v48  ;;  %v2875_v47 = vsub.s32 32, %v2874_v24 }
 0x393   :  { %v7573_v34 = vmul.f32 %v9732_v56, %v9731_v53  ;;  %v7591_v7 = vsel %vm5268_vm11, 0, %v5267_v46  ;;  %vm5276_vm13 = vcmp.lt.s32.totalorder %v5275_v25, 0  ;;  %v2811_v42 = vmul.u32 %v2804_v18, %v2795_v9 }
 0x394   :  { %v7585_v62 = vadd.s32 127, %v9733_v57  ;;  %vm2813_vm9 = vc.u32 %v7564_v37, %v7557_v51  ;;  %v2624_v30 = vsub.s32 4294967266, %v7581_v45  ;;  %v2868_v3 = vor.u32 8388608, %v2867_v1 }
 0x395   :  { %v2815_v58 = vsel %vm2813_vm9, %v2814_v23, %v7558_v48  ;;  %v2878_v55 = vshrl.u32 %v9692_v0, %v2875_v47  ;;  %v2877_v28 = vshll.u32 %v9689_v31, %v2874_v24  ;;  %v2880_v38 = vshll.u32 %v9692_v0, %v2874_v24 }
 0x396   :  { %v2816_v29 = vadd.s32 %v2815_v58, %v2811_v42  ;;  %v2881_v46 = vshrl.u32 %v9688_v21, %v2875_v47  ;;  %v7601_v59 = vsel %vm5276_vm13, 0, %v5275_v25  ;;  %v2873_v18 = vshrl.u32 %v2872_v43, 5 }
 0x397   :  { %v2883_v22 = vshll.u32 %v9688_v21, %v2874_v24  ;;  %v2884_v9 = vshrl.u32 %v9693_v17, %v2875_v47  ;;  %v2879_v56 = vor.u32 %v2878_v55, %v2877_v28  ;;  %v2886_v1 = vshll.u32 %v9693_v17, %v2874_v24 }
 0x398   :  { %v2817_v53 = vadd.s32 536870912, %v2816_v29  ;;  %v2882_v48 = vor.u32 %v2881_v46, %v2880_v38  ;;  %v2887_v23 = vshrl.u32 %v9726_v26, %v2875_v47  ;;  %v2889_v42 = vshll.u32 %v9726_v26, %v2874_v24 }
 0x399   :  { %v2885_v57 = vor.u32 %v2884_v9, %v2883_v22  ;;  %v2890_v58 = vshrl.u32 %v9727_v39, %v2875_v47  ;;  %v2520_v25 = vsub.s32 4294967266, %v7591_v7  ;;  %v2604_v43 = vadd.s32 %v7435_v35, %v7432_v60 }
 0x39a   :  { %v7612_v61 = vshrl.u32 %v2817_v53, 30  ;;  %v2908_v2 = vshll.u32 %v2868_v3, 8  ;;  %v2625_v21 = vadd.s32 127, %v2624_v30  ;;  %v2728_v55 = vsub.s32 4294967266, %v7601_v59 }
 0x39b   :  { %v2888_v28 = vor.u32 %v2887_v23, %v2886_v1  ;;  %v2891_v38 = vor.u32 %v2890_v58, %v2889_v42  ;;  %v2876_v22 = vshrl.u32 %v9689_v31, %v2875_v47  ;;  %vm2892_vm14 = vcmp.lt.s32.totalorder %v2873_v18, 1 }
 0x39c   :  { %v2819_v46 = vshll.u32 %v7612_v61, 30  ;;  %vm2895_vm12 = vcmp.lt.s32.totalorder %v2873_v18, 4  ;;  %vm2894_vm15 = vcmp.lt.s32.totalorder %v2873_v18, 3  ;;  %v2900_v9 = vsel %vm2892_vm14, %v2879_v56, %v2882_v48 }
 0x39d   :  { %v2897_v24 = vsel %vm2895_vm12, %v2885_v57, 2102212464  ;;  %v2901_v39 = vsel %vm2895_vm12, %v2888_v28, 920167782  ;;  %vm2893_vm0 = vcmp.lt.s32.totalorder %v2873_v18, 2  ;;  %v2904_v35 = vsel %vm2892_vm14, %v2882_v48, %v2885_v57 }
 0x39e   :  { %v7617_v26 = vsub.s32 %v2816_v29, %v2819_v46  ;;  %v2902_v60 = vsel %vm2894_vm15, %v2885_v57, %v2901_v39  ;;  %v2620_v30 = vsub.s32 32, %v7581_v45  ;;  %v2626_v3 = vshll.u32 %v2625_v21, 23 }
 0x39f   :  { %v2903_v53 = vsel %vm2893_vm0, %v2900_v9, %v2902_v60  ;;  %v2905_v1 = vsel %vm2895_vm12, %v2891_v38, 1326507024  ;;  %v2896_v47 = vsel %vm2892_vm14, %v2876_v22, %v2879_v56  ;;  %v2898_v42 = vsel %vm2894_vm15, %v2882_v48, %v2897_v24 }
 0x3a0   :  { %v2822_v23 = vsub.s32 0, %v7617_v26  ;;  %v2906_v58 = vsel %vm2894_vm15, %v2888_v28, %v2905_v1  ;;  %v2729_v17 = vadd.s32 127, %v2728_v55  ;;  %v2416_v39 = vsub.s32 4294967266, %v7588_v6 }
 0x3a1   :  { %v2907_v0 = vsel %vm2893_vm0, %v2904_v35, %v2906_v58  ;;  %v7623_v31 = vmul.u32.u64.low %v2908_v2, %v2903_v53  ;;  %v7624_v29 = vmul.u32.u64.high %v2908_v2, %v2903_v53, %v7623_v31  ;;  %v2314_v38 = vshll.u32 %v7585_v62, 23 }
 0x3a2   :  { %v5278_v57 = vmin.u32 %v2822_v23, %v7617_v26  ;;  %v7629_v21 = vmul.u32.u64.low %v2908_v2, %v2907_v0  ;;  %v7630_v46 = vmul.u32.u64.high %v2908_v2, %v2907_v0, %v7629_v21  ;;  %v2622_v9 = vshrl.u32 %v2604_v43, %v2620_v30 }
 0x3a3   :  { %v2724_v56 = vsub.s32 32, %v7601_v59  ;;  %v2899_v48 = vsel %vm2893_vm0, %v2896_v47, %v2898_v42  ;;  %v2500_v55 = vadd.s32 %v7364_v27, %v7371_v44  ;;  %v2521_v28 = vadd.s32 127, %v2520_v25 }
 0x3a4   :  { %v2708_v22 = vadd.s32 %v7481_v54, %v7493_v5  ;;  %v2824_v24 = vclz %v5278_v57  ;;  %v2621_v60 = vshll.u32 %v7488_v14, %v7581_v45  ;;  %v2627_v0 = vor.u32 4788187, %v2626_v3 }
 0x3a5   :  { %v2730_v35 = vshll.u32 %v2729_v17, 23  ;;  %v2918_v53 = vadd.s32 1, %v7624_v29  ;;  %v2417_v43 = vadd.s32 127, %v2416_v39  ;;  %v2915_v1 = vmul.u32 %v2908_v2, %v2899_v48 }
 0x3a6   :  { %v5279_v30 = vadd.s32 4294967294, %v2824_v24  ;;  %vm2917_vm1 = vc.u32 %v7630_v46, %v7623_v31  ;;  %v2516_v27 = vsub.s32 32, %v7591_v7  ;;  %v2623_v44 = vor.u32 %v2622_v9, %v2621_v60 }
 0x3a7   :  { %v2726_v18 = vshrl.u32 %v2708_v22, %v2724_v56  ;;  %v2919_v54 = vsel %vm2917_vm1, %v2918_v53, %v7624_v29  ;;  %v2412_v5 = vsub.s32 32, %v7588_v6  ;;  %v2522_v25 = vshll.u32 %v2521_v28, 23 }
 0x3a8   :  { %vm5280_vm4 = vcmp.lt.s32.totalorder %v5279_v30, 0  ;;  %v2920_v14 = vadd.s32 %v2919_v54, %v2915_v1  ;;  %v2628_v17 = vand.u32 2147483647, %v2627_v0  ;;  %v2725_v45 = vshll.u32 %v7539_v10, %v7601_v59 }
 0x3a9   :  { %v2731_v3 = vor.u32 4788187, %v2730_v35  ;;  %v2827_v2 = vsel %vm5280_vm4, 0, %v5279_v30  ;;  %vm2134_vm5 = vcmp.lt.s32.totalorder %v7091_v12, 0  ;;  %v2418_v23 = vshll.u32 %v2417_v43, 23 }
 0x3aa   :  { %v2828_v47 = vsub.s32 32, %v2827_v2  ;;  %v2832_v42 = vsub.s32 4294967266, %v2827_v2  ;;  %v2921_v58 = vadd.s32 536870912, %v2920_v14  ;;  %v2518_v39 = vshrl.u32 %v2500_v55, %v2516_v27 }
 0x3ab   :  { %v2630_v57 = vcvt.s32.f32 %v2623_v44  ;;  %v2727_v29 = vor.u32 %v2726_v18, %v2725_v45  ;;  %v2812_v21 = vadd.s32 %v7557_v51, %v7564_v37  ;;  %v2414_v9 = vshrl.u32 %v7578_v32, %v2412_v5 }
 0x3ac   :  { %v2517_v56 = vshll.u32 %v7486_v19, %v7591_v7  ;;  %v2833_v10 = vadd.s32 127, %v2832_v42  ;;  %v7655_v59 = vshrl.u32 %v2921_v58, 30  ;;  %v2523_v48 = vor.u32 4788187, %v2522_v25 }
 0x3ad   :  { %v2631_v28 = vmul.f32 %v2630_v57, %v2628_v17  ;;  %v2732_v22 = vand.u32 2147483647, %v2731_v3  ;;  %v2830_v24 = vshrl.u32 %v2812_v21, %v2828_v47  ;;  %v2413_v55 = vshll.u32 %v7450_v8, %v7588_v6 }
 0x3ae   :  { %v2419_v60 = vor.u32 4788187, %v2418_v23  ;;  %v2834_v0 = vshll.u32 %v2833_v10, 23  ;;  %v2923_v35 = vshll.u32 %v7655_v59, 30  ;;  %v2216_v51 = vxor.u32 2147483648, %v7573_v34 }
 0x3af   :  { %v2519_v37 = vor.u32 %v2518_v39, %v2517_v56  ;;  %v2734_v32 = vcvt.s32.f32 %v2727_v29  ;;  %v2829_v19 = vshll.u32 %v7617_v26, %v2827_v2  ;;  %v9734_v7 = vsub.s32 32, %v7514_v13 }
 0x3b0   :  { %v2415_v43 = vor.u32 %v2414_v9, %v2413_v55  ;;  %v2835_v30 = vor.u32 4788187, %v2834_v0  ;;  %v7665_v1 = vsub.s32 %v2920_v14, %v2923_v35  ;;  %v2524_v27 = vand.u32 2147483647, %v2523_v48 }
 0x3b1   :  { %v2310_v53 = vshrl.u32 %v7522_v52, %v9734_v7  ;;  %v2632_v8 = vxor.u32 2147483648, %v2631_v28  ;;  %v2735_v6 = vmul.f32 %v2734_v32, %v2732_v22  ;;  %v2831_v44 = vor.u32 %v2830_v24, %v2829_v19 }
 0x3b2   :  { %v2309_v18 = vshll.u32 %v7376_v49, %v7514_v13  ;;  %v2315_v54 = vor.u32 4788187, %v2314_v38  ;;  %v2420_v5 = vand.u32 2147483647, %v2419_v60  ;;  %v2926_v26 = vsub.s32 0, %v7665_v1 }
 0x3b3   :  { %v9735_v25 = vand.u32 2147483647, %v7091_v12  ;;  %v2217_v14 = vsel %vm2134_vm5, %v2216_v51, %v7573_v34  ;;  %v2526_v17 = vcvt.s32.f32 %v2519_v37  ;;  %v2836_v45 = vand.u32 2147483647, %v2835_v30 }
 0x3b4   :  { %v2311_v3 = vor.u32 %v2310_v53, %v2309_v18  ;;  %v2422_v49 = vcvt.s32.f32 %v2415_v43  ;;  %vm2550_vm3 = vcmp.lt.s32.totalorder %v7307_v41, 0  ;;  %v5282_v13 = vmin.u32 %v2926_v26, %v7665_v1 }
 0x3b5   :  { %vm7674_vm6 = vcmp.le.f32.partialorder %v9735_v25, 0.7853982  ;;  %v2527_v62 = vmul.f32 %v2526_v17, %v2524_v27  ;;  %v2633_v38 = vsel %vm2550_vm3, %v2632_v8, %v2631_v28  ;;  %v2736_v2 = vxor.u32 2147483648, %v2735_v6 }
 0x3b6   :  { %v2838_v23 = vcvt.s32.f32 %v2831_v44  ;;  %v2220_v47 = vsel %vm7674_vm6, %v7091_v12, %v2217_v14  ;;  %v2316_v42 = vand.u32 2147483647, %v2315_v54  ;;  %v2423_v34 = vmul.f32 %v2422_v49, %v2420_v5 }
 0x3b7   :  { %v2928_v58 = vclz %v5282_v13  ;;  %vm2342_vm2 = vcmp.lt.s32.totalorder %v7102_v4, 0  ;;  %v9738_v39 = vand.u32 2147483647, %v7307_v41  ;;  %v2318_v21 = vcvt.s32.f32 %v2311_v3 }
 0x3b8   :  { %v2839_v29 = vmul.f32 %v2838_v23, %v2836_v45  ;;  %vm2654_vm8 = vcmp.lt.s32.totalorder %v7360_v33, 0  ;;  %5584 = vcosq.f32 %v2220_v47  ;;  %vm2446_vm11 = vcmp.lt.s32.totalorder %v7156_v63, 0 }
 0x3b9   :  { %vm7691_vm10 = vcmp.le.f32.partialorder %v9738_v39, 0.7853982  ;;  %v5283_v56 = vadd.s32 4294967294, %v2928_v58  ;;  %v2528_v10 = vxor.u32 2147483648, %v2527_v62  ;;  %v2737_v48 = vsel %vm2654_vm8, %v2736_v2, %v2735_v6 }
 0x3ba   :  { %v2636_v9 = vsel %vm7691_vm10, %v7307_v41, %v2633_v38  ;;  %vm2238_vm13 = vcmp.lt.s32.totalorder %v7094_v50, 0  ;;  %v2319_v28 = vmul.f32 %v2318_v21, %v2316_v42  ;;  %v9741_v22 = vand.u32 2147483647, %v7102_v4 }
 0x3bb   :  { %v2424_v55 = vxor.u32 2147483648, %v2423_v34  ;;  %vm2758_vm14 = vcmp.lt.s32.totalorder %v7470_v16, 0  ;;  %vm5284_vm12 = vcmp.lt.s32.totalorder %v5283_v56, 0  ;;  %5586 = vcosq.f32 %v2636_v9 }
 0x3bc   :  { %vm7705_vm9 = vcmp.le.f32.partialorder %v9741_v22, 0.7853982  ;;  %v2840_v60 = vxor.u32 2147483648, %v2839_v29  ;;  %v2931_v0 = vsel %vm5284_vm12, 0, %v5283_v56  ;;  %v9744_v35 = vand.u32 2147483647, %v7360_v33 }
 0x3bd   :  { %v2916_v37 = vadd.s32 %v7623_v31, %v7630_v46  ;;  %v2932_v32 = vsub.s32 32, %v2931_v0  ;;  %v2936_v19 = vsub.s32 4294967266, %v2931_v0  ;;  %v2529_v53 = vsel %vm2446_vm11, %v2528_v10, %v2527_v62 }
 0x3be   :  { %vm7712_vm15 = vcmp.le.f32.partialorder %v9744_v35, 0.7853982  ;;  %5588 = vsinq.f32 %v2636_v9  ;;  %v2842_v43 = vsub.s32 4, %v7612_v61  ;;  %v2634_v30 = vsub.s32 4, %v7473_v15 }
 0x3bf   :  { %v2740_v7 = vsel %vm7712_vm15, %v7360_v33, %v2737_v48  ;;  %v2933_v27 = vshll.u32 %v7665_v1, %v2931_v0  ;;  %v2934_v8 = vshrl.u32 %v2916_v37, %v2932_v32  ;;  %v2937_v6 = vadd.s32 127, %v2936_v19 }
 0x3c0   :  { %v2738_v31 = vsub.s32 4, %v7528_v36  ;;  %v2320_v46 = vxor.u32 2147483648, %v2319_v28  ;;  %v2425_v44 = vsel %vm2342_vm2, %v2424_v55, %v2423_v34  ;;  %v2841_v18 = vsel %vm2758_vm14, %v2840_v60, %v2839_v29 }
 0x3c1   :  { %5590 = vcosq.f32 %v2740_v7  ;;  %v2935_v54 = vor.u32 %v2934_v8, %v2933_v27  ;;  %v2938_v5 = vshll.u32 %v2937_v6, 23  ;;  %v9747_v26 = vand.u32 2147483647, %v7156_v63  ;;  %v9760_v27 = vld [vmem:[#allocation14_spill] sm:$0xff] }
 0x3c2   :  { %5592 = vsinq.f32 %v2740_v7  ;;  %v9750_v1 = vand.u32 2147483647, %v7470_v16  ;;  %v2843_v17 = vsel %vm2758_vm14, %v2842_v43, %v7612_v61  ;;  %v2739_v13 = vsel %vm2654_vm8, %v2738_v31, %v7528_v36  ;;  %v9759_v7 = vld [vmem:[#allocation13_spill] sm:$0xff] }
 0x3c3   :  { %vm7733_vm0 = vcmp.le.f32.partialorder %v9747_v26, 0.7853982  ;;  %5594 = vsinq.f32 %v2220_v47  ;;  %v2939_v49 = vor.u32 4788187, %v2938_v5  ;;  %v2635_v62 = vsel %vm2550_vm3, %v2634_v30, %v7473_v15 }
 0x3c4   :  { %vm7739_vm1 = vcmp.le.f32.partialorder %v9750_v1, 0.7853982  ;;  %v2532_v45 = vsel %vm7733_vm0, %v7156_v63, %v2529_v53  ;;  %v2321_v61 = vsel %vm2238_vm13, %v2320_v46, %v2319_v28  ;;  %v2428_v38 = vsel %vm7705_vm9, %v7102_v4, %v2425_v44 }
 0x3c5   :  { %v2844_v3 = vsel %vm7739_vm1, %v7470_v16, %v2841_v18  ;;  %vm2862_vm4 = vcmp.lt.s32.totalorder %v7479_v20, 0  ;;  %v2946_v2 = vsub.s32 4, %v7655_v59  ;;  %v2940_v23 = vand.u32 2147483647, %v2939_v49  ;;  %v7772_v58 = vpop.eup %5584 }
 0x3c6   :  { %v2942_v47 = vcvt.s32.f32 %v2935_v54  ;;  %v2845_v36 = vsel %vm7739_vm1, 0, %v2843_v17  ;;  %5596 = vcosq.f32 %v2532_v45  ;;  %v2741_v15 = vsel %vm7712_vm15, 0, %v2739_v13 }
 0x3c7   :  { %5598 = vcosq.f32 %v2844_v3  ;;  %v2637_v42 = vsel %vm7691_vm10, 0, %v2635_v62  ;;  %v2530_v34 = vsub.s32 4, %v7454_v11  ;;  %v2426_v29 = vsub.s32 4, %v7410_v40 }
 0x3c8   :  { %5600 = vsinq.f32 %v2844_v3  ;;  %v2943_v39 = vmul.f32 %v2942_v47, %v2940_v23  ;;  %v9753_v21 = vand.u32 2147483647, %v7094_v50  ;;  %v2947_v57 = vsel %vm2862_vm4, %v2946_v2, %v7655_v59  ;;  %v5587_v10 = vpop.eup %5586 }
 0x3c9   :  { %5602 = vsinq.f32 %v2428_v38  ;;  %v9756_v28 = vand.u32 2147483647, %v7479_v20  ;;  %v2849_v55 = vadd.s32 3, %v2845_v36  ;;  %v2745_v60 = vadd.s32 3, %v2741_v15 }
 0x3ca   :  { %vm7777_vm3 = vcmp.le.f32.partialorder %v9753_v21, 0.7853982  ;;  %5604 = vcosq.f32 %v2428_v38  ;;  %v2944_v48 = vxor.u32 2147483648, %v2943_v39  ;;  %v2641_v0 = vadd.s32 3, %v2637_v42 }
 0x3cb   :  { %v2324_v56 = vsel %vm7777_vm3, %v7094_v50, %v2321_v61  ;;  %vm7789_vm10 = vcmp.le.f32.partialorder %v9756_v28, 0.7853982  ;;  %v2531_v59 = vsel %vm2446_vm11, %v2530_v34, %v7454_v11  ;;  %5606 = vsinq.f32 %v2532_v45  ;;  %v5589_v35 = vpop.eup %5588 }
 0x3cc   :  { %v2945_v51 = vsel %vm2862_vm4, %v2944_v48, %v2943_v39  ;;  %v2949_v37 = vsel %vm7789_vm10, 0, %v2947_v57  ;;  %v2427_v32 = vsel %vm2342_vm2, %v2426_v29, %v7410_v40  ;;  %5608 = vcosq.f32 %v2324_v56 }
 0x3cd   :  { %v2948_v19 = vsel %vm7789_vm10, %v7479_v20, %v2945_v51  ;;  %v2322_v53 = vsub.s32 4, %v9759_v7  ;;  %5610 = vsinq.f32 %v2324_v56  ;;  %v7807_v43 = vand.u32 3, %v2849_v55 }
 0x3ce   :  { %v5591_v11 = vpop.eup %5590  ;;  %5612 = vcosq.f32 %v2948_v19  ;;  %v2533_v30 = vsel %vm7733_vm0, 0, %v2531_v59  ;;  %v2218_v8 = vsub.s32 4, %v9760_v27  ;;  %v2953_v40 = vadd.s32 3, %v2949_v37 }
 0x3cf   :  { %v5593_v6 = vpop.eup %5592  ;;  %5614 = vsinq.f32 %v2948_v19  ;;  %v2642_v31 = vand.u32 3, %v2641_v0  ;;  %v2429_v46 = vsel %vm7705_vm9, 0, %v2427_v32  ;;  %v2746_v18 = vand.u32 3, %v2745_v60 }
 0x3d0   :  { %v7814_v44 = vpop.eup %5594  ;;  %v2645_v54 = vxor.u32 2147483648, %v5589_v35  ;;  %v2648_v5 = vxor.u32 2147483648, %v5587_v10  ;;  %v2537_v26 = vadd.s32 3, %v2533_v30  ;;  %v2323_v25 = vsel %vm2238_vm13, %v2322_v53, %v9759_v7 }
 0x3d1   :  { %v2749_v1 = vxor.u32 2147483648, %v5593_v6  ;;  %v2752_v14 = vxor.u32 2147483648, %v5591_v11  ;;  %v2433_v17 = vadd.s32 3, %v2429_v46  ;;  %v2219_v45 = vsel %vm2134_vm5, %v2218_v8, %v9760_v27 }
 0x3d2   :  { %v7824_v24 = vand.u32 3, %v2953_v40  ;;  %vm2852_vm2 = vcmp.eq.s32.totalorder %v7807_v43, 0  ;;  %vm2855_vm8 = vcmp.eq.s32.totalorder %v7807_v43, 2  ;;  %vm2644_vm11 = vcmp.eq.s32.totalorder %v2642_v31, 0 }
 0x3d3   :  { %v7822_v3 = vpop.eup %5596  ;;  %vm2647_vm9 = vcmp.eq.s32.totalorder %v2642_v31, 2  ;;  %vm2747_vm14 = vcmp.lt.s32.totalorder %v2746_v18, 2  ;;  %v2646_v13 = vsel %vm2644_vm11, %v5587_v10, %v2645_v54  ;;  %v2325_v61 = vsel %vm7777_vm3, 0, %v2323_v25 }
 0x3d4   :  { %v5599_v49 = vpop.eup %5598  ;;  %v2649_v62 = vsel %vm2647_vm9, %v2648_v5, %v5589_v35  ;;  %vm2748_vm13 = vcmp.eq.s32.totalorder %v2746_v18, 0  ;;  %vm2751_vm5 = vcmp.eq.s32.totalorder %v2746_v18, 2  ;;  %v7830_v2 = vand.u32 3, %v2537_v26 }
 0x3d5   :  { %v5601_v38 = vpop.eup %5600  ;;  %v2221_v23 = vsel %vm7674_vm6, 0, %v2219_v45  ;;  %vm2851_vm12 = vcmp.lt.s32.totalorder %v7807_v43, 2  ;;  %v2750_v36 = vsel %vm2748_vm13, %v5591_v11, %v2749_v1  ;;  %v2753_v15 = vsel %vm2751_vm5, %v2752_v14, %v5593_v6 }
 0x3d6   :  { %v5603_v47 = vpop.eup %5602  ;;  %vm2643_vm15 = vcmp.lt.s32.totalorder %v2642_v31, 2  ;;  %v7835_v42 = vand.u32 3, %v2433_v17  ;;  %vm2955_vm0 = vcmp.lt.s32.totalorder %v7824_v24, 2  ;;  %v2544_v29 = vxor.u32 2147483648, %v7822_v3 }
 0x3d7   :  { %v5605_v34 = vpop.eup %5604  ;;  %v2650_v39 = vsel %vm2643_vm15, %v2646_v13, %v2649_v62  ;;  %v2329_v21 = vadd.s32 3, %v2325_v61  ;;  %vm2952_vm1 = vweird.f32 %v7479_v20  ;;  %vm2956_vm6 = vcmp.eq.s32.totalorder %v7824_v24, 0  ;;  %v5693_v62 = vld [vmem:[#allocation5 + $0x48] sm:$0xff] }
 0x3d8   :  { %v5607_v9 = vpop.eup %5606  ;;  %v2853_v52 = vxor.u32 2147483648, %v5601_v38  ;;  %v2856_v57 = vxor.u32 2147483648, %v5599_v49  ;;  %v2225_v56 = vadd.s32 3, %v2221_v23  ;;  %vm2959_vm4 = vcmp.eq.s32.totalorder %v7824_v24, 2 }
 0x3d9   :  { %v5609_v10 = vpop.eup %5608  ;;  %vm2848_vm3 = vweird.f32 %v7470_v16  ;;  %v2754_v48 = vsel %vm2747_vm14, %v2750_v36, %v2753_v15  ;;  %vm2539_vm10 = vcmp.lt.s32.totalorder %v7830_v2, 2  ;;  %v2437_v28 = vxor.u32 2147483648, %v5603_v47 }
 0x3da   :  { %v5611_v22 = vpop.eup %5610  ;;  %vm2744_vm11 = vweird.f32 %v7360_v33  ;;  %vm2540_vm9 = vcmp.eq.s32.totalorder %v7830_v2, 0  ;;  %vm2543_vm13 = vcmp.eq.s32.totalorder %v7830_v2, 2  ;;  %vm2435_vm5 = vcmp.lt.s32.totalorder %v7835_v42, 2 }
 0x3db   :  { %v2440_v55 = vxor.u32 2147483648, %v5605_v34  ;;  %v5613_v60 = vpop.eup %5612  ;;  %v2541_v0 = vxor.u32 2147483648, %v5607_v9  ;;  %v2545_v59 = vsel %vm2543_vm13, %v2544_v29, %v5607_v9  ;;  %vm2436_vm15 = vcmp.eq.s32.totalorder %v7835_v42, 0 }
 0x3dc   :  { %v2330_v35 = vand.u32 3, %v2329_v21  ;;  %v5615_v51 = vpop.eup %5614  ;;  %v2960_v37 = vxor.u32 2147483648, %v5613_v60  ;;  %v2854_v32 = vsel %vm2852_vm2, %v5599_v49, %v2853_v52  ;;  %v2857_v19 = vsel %vm2855_vm8, %v2856_v57, %v5601_v38 }
 0x3dd   :  { %v2226_v7 = vand.u32 3, %v2225_v56  ;;  %v2957_v53 = vxor.u32 2147483648, %v5615_v51  ;;  %v2438_v11 = vsel %vm2436_vm15, %v5605_v34, %v2437_v28  ;;  %v2333_v30 = vxor.u32 2147483648, %v5611_v22 }
 0x3de   :  { %v2336_v27 = vxor.u32 2147483648, %v5609_v10  ;;  %v2961_v8 = vsel %vm2959_vm4, %v2960_v37, %v5615_v51  ;;  %vm2439_vm14 = vcmp.eq.s32.totalorder %v7835_v42, 2  ;;  %v2229_v6 = vxor.u32 2147483648, %v7814_v44 }
 0x3df   :  { %v2232_v40 = vxor.u32 2147483648, %v7772_v58  ;;  %v2958_v31 = vsel %vm2956_vm6, %v5613_v60, %v2957_v53  ;;  %v2858_v46 = vsel %vm2851_vm12, %v2854_v32, %v2857_v19  ;;  %v2542_v18 = vsel %vm2540_vm9, %v7822_v3, %v2541_v0 }
 0x3e0   :  { %v2441_v54 = vsel %vm2439_vm14, %v2440_v55, %v5603_v47  ;;  %v2962_v5 = vsel %vm2955_vm0, %v2958_v31, %v2961_v8  ;;  %vm2332_vm2 = vcmp.eq.s32.totalorder %v2330_v35, 0  ;;  %vm2335_vm8 = vcmp.eq.s32.totalorder %v2330_v35, 2 }
 0x3e1   :  { %vm2228_vm4 = vcmp.eq.s32.totalorder %v2226_v7, 0  ;;  %v2963_v26 = vsel %vm2952_vm1, nan, %v2962_v5  ;;  %v2334_v25 = vsel %vm2332_vm2, %v5609_v10, %v2333_v30  ;;  %v2337_v1 = vsel %vm2335_vm8, %v2336_v27, %v5611_v22 }
 0x3e2   :  { %vm2231_vm6 = vcmp.eq.s32.totalorder %v2226_v7, 2  ;;  %3021 = vmatprep.subr.mxu0 %v2963_v26  ;;  %v2859_v43 = vsel %vm2848_vm3, nan, %v2858_v46  ;;  %v2546_v14 = vsel %vm2539_vm10, %v2542_v18, %v2545_v59  ;;  %v2230_v17 = vsel %vm2228_vm4, %v7772_v58, %v2229_v6 }
 0x3e3   :  { %v2233_v45 = vsel %vm2231_vm6, %v2232_v40, %v7814_v44  ;;  %3022 = vmatpush1.msra.mxu0 %v2859_v43  ;;  %v2755_v3 = vsel %vm2744_vm11, nan, %v2754_v48  ;;  %vm2640_vm12 = vweird.f32 %v7307_v41  ;;  %v2442_v20 = vsel %vm2435_vm5, %v2438_v11, %v2441_v54 }
 0x3e4   :  { %vm2331_vm0 = vcmp.lt.s32.totalorder %v2330_v35, 2  ;;  %3023 = vmatprep.subr.mxu0 %v2755_v3  ;;  %v2651_v16 = vsel %vm2640_vm12, nan, %v2650_v39  ;;  %vm2536_vm1 = vweird.f32 %v7156_v63  ;;  %vm2227_vm3 = vcmp.lt.s32.totalorder %v2226_v7, 2  ;;  %v5692_v63 = vld [vmem:[#allocation5 + $0x40] sm:$0xff]  ;;  %v7897_v39 = vpop.permute.xlu0 %2985 }
 0x3e5   :  { %v2338_v24 = vsel %vm2331_vm0, %v2334_v25, %v2337_v1  ;;  %3024 = vmatpush1.msra.mxu0 %v2651_v16  ;;  %v2547_v58 = vsel %vm2536_vm1, nan, %v2546_v14  ;;  %vm2432_vm10 = vweird.f32 %v7102_v4  ;;  %v2234_v44 = vsel %vm2227_vm3, %v2230_v17, %v2233_v45  ;;  %v5694_v4 = vld [vmem:[#allocation5 + $0x50] sm:$0xff] }
 0x3e6   :  { %3025 = vmatprep.subr.mxu0 %v2547_v58  ;;  %v2443_v33 = vsel %vm2432_vm10, nan, %v2442_v20  ;;  %vm2328_vm11 = vweird.f32 %v7094_v50  ;;  %vm2224_vm9 = vweird.f32 %v7091_v12  ;;  %vm2988_vm13 = vcmask 474112   ;;  %v5695_v50 = vld [vmem:[#allocation5 + $0x58] sm:$0xff]  ;;  %v7889_v12 = vpop.permute.xlu1 %2980 }
 0x3e7   :  { %3026 = vmatpush1.msra.mxu0 %v2443_v33  ;;  %v2339_v41 = vsel %vm2328_vm11, nan, %v2338_v24  ;;  %v2235_v49 = vsel %vm2224_vm9, nan, %v2234_v44  ;;  %v9761_v13 = vmov 0.0   ;;  %v9762_v59 = vmov 683565275  }
 0x3e8   :  { %3027 = vmatprep.subr.mxu0 %v2339_v41  ;;  %v2976_v28 = vpop.permute.xlu0 %2975  ;;  %v9763_v51 = vmov 2475754826   ;;  %v9764_v19 = vmov 2131351028   ;;  %v9765_v11 = vmov 2102212464  }
 0x3e9   :  { %3028 = vmatpush1.msra.mxu0 %v2235_v49  ;;  %v9766_v8 = vmov 920167782   ;;  %v9767_v31 = vmov 1326507024  }
 0x3ea   :  { %5287 = vmatmul.mubr.msk.f32.vlgmr.msra.gmra.mxu0 %vm2988_vm13, %v5692_v63  ;;  %v2971_v61 = vpop.permute.xlu1 %2970 }
 0x3eb   :  { %3067 = vmatprep.mubr.f32.mxu0 %v9761_v13 }
 0x3ee   :  { %5288 = vmatmul.mubr.msk.f32.gmra.mxu0 %vm2988_vm13, %v5693_v62 }
 0x3ef   :  { %3073 = vmatprep.mubr.f32.mxu0 %v9761_v13 }
 0x3f2   :  { %5289 = vmatmul.mubr.msk.f32.gmra.mxu0 %vm2988_vm13, %v5694_v4 }
 0x3f3   :  { %3079 = vmatprep.mubr.f32.mxu0 %v9761_v13 }
 0x3f6   :  { %5290 = vmatmul.mubr.msk.f32.gmra.mxu0 %vm2988_vm13, %v5695_v50 }
 0x3f7   :  { %4943 = vmatprep.mubr.f32.mxu0 %v9761_v13 }
 0x4aa   :  { %v3063_v38 = vpop.f32.mrf.mxu0 }
 0x4ab   :  { %v7891_v2 = vadd.f32 %v3063_v38, %v2971_v61 }
 0x4ac   :  { %v3065_v23 = vpop.f32.mrf.mxu0 }
 0x4ad   :  { %v3089_v47 = vand.u32 2139095040, %v7891_v2  ;;  %v7894_v36 = vadd.f32 %v3065_v23, %v2971_v61  ;;  %v9644_v52 = vand.u32 2147483647, %v7891_v2 }
 0x4ae   :  { %v3069_v10 = vpop.f32.mrf.mxu0 }
 0x4af   :  { %v3090_v15 = vshrl.u32 %v3089_v47, 23  ;;  %v3193_v42 = vand.u32 2139095040, %v7894_v36  ;;  %v3093_v22 = vand.u32 8388607, %v9644_v52  ;;  %v7902_v60 = vadd.f32 %v3069_v10, %v2976_v28 }
 0x4b0   :  { %v3071_v38 = vpop.f32.mrf.mxu0  ;;  %v9639_v23 = vand.u32 2147483647, %v7894_v36 }
 0x4b1   :  { %v5291_v34 = vadd.s32 4294967169, %v3090_v15  ;;  %v3194_v29 = vshrl.u32 %v3193_v42, 23  ;;  %v3094_v25 = vor.u32 8388608, %v3093_v22  ;;  %v3297_v17 = vand.u32 2139095040, %v7902_v60 }
 0x4b3   :  { %v3096_v21 = vadd.s32 1, %v5291_v34  ;;  %v5295_v9 = vadd.s32 4294967169, %v3194_v29  ;;  %v3134_v41 = vshll.u32 %v3094_v25, 8  ;;  %v3298_v49 = vshrl.u32 %v3297_v17, 23 }
 0x4b5   :  { %vm3097_vm5 = vcmp.gt.s32.totalorder %v3096_v21, 0  ;;  %v3200_v56 = vadd.s32 1, %v5295_v9  ;;  %v5299_v47 = vadd.s32 4294967169, %v3298_v49  ;;  %v7956_v9 = vadd.f32 %v3071_v38, %v2976_v28 }
 0x4b6   :  { %v3098_v57 = vsel %vm3097_vm5, %v3096_v21, 0  ;;  %v9642_v38 = vand.u32 2147483647, %v7902_v60 }
 0x4b7   :  { %v3100_v48 = vand.u32 31, %v3098_v57  ;;  %v7904_v0 = vshrl.u32 %v3098_v57, 5  ;;  %vm3201_vm15 = vcmp.gt.s32.totalorder %v3200_v56, 0 }
 0x4b8   :  { %v3202_v26 = vsel %vm3201_vm15, %v3200_v56, 0 }
 0x4b9   :  { %v3101_v55 = vsub.s32 32, %v3100_v48  ;;  %v3103_v35 = vshll.u32 %v9762_v59, %v3100_v48  ;;  %v3106_v37 = vshll.u32 %v9763_v51, %v3100_v48  ;;  %v3109_v53 = vshll.u32 %v9764_v19, %v3100_v48 }
 0x4ba   :  { %v3112_v27 = vshll.u32 %v9765_v11, %v3100_v48  ;;  %v3115_v40 = vshll.u32 %v9766_v8, %v3100_v48  ;;  %vm3118_vm14 = vcmp.lt.s32.totalorder %v7904_v0, 1  ;;  %vm3120_vm2 = vcmp.lt.s32.totalorder %v7904_v0, 3 }
 0x4bb   :  { %v3104_v32 = vshrl.u32 %v9763_v51, %v3101_v55  ;;  %v3107_v7 = vshrl.u32 %v9764_v19, %v3101_v55  ;;  %v3110_v30 = vshrl.u32 %v9765_v11, %v3101_v55  ;;  %v3113_v6 = vshrl.u32 %v9766_v8, %v3101_v55 }
 0x4bc   :  { %v3116_v46 = vshrl.u32 %v9767_v31, %v3101_v55  ;;  %vm3121_vm8 = vcmp.lt.s32.totalorder %v7904_v0, 4  ;;  %v3204_v16 = vand.u32 31, %v3202_v26  ;;  %vm3119_vm4 = vcmp.lt.s32.totalorder %v7904_v0, 2 }
 0x4bd   :  { %v3105_v18 = vor.u32 %v3104_v32, %v3103_v35  ;;  %v3108_v54 = vor.u32 %v3107_v7, %v3106_v37  ;;  %v3111_v5 = vor.u32 %v3110_v30, %v3109_v53  ;;  %v3114_v1 = vor.u32 %v3113_v6, %v3112_v27 }
 0x4be   :  { %v3117_v43 = vor.u32 %v3116_v46, %v3115_v40  ;;  %v7937_v63 = vsub.s32 32, %v3204_v16  ;;  %v3102_v15 = vshrl.u32 %v9762_v59, %v3101_v55  ;;  %v7954_v21 = vshrl.u32 %v3202_v26, 5 }
 0x4bf   :  { %v3126_v14 = vsel %vm3118_vm14, %v3105_v18, %v3108_v54  ;;  %v3127_v45 = vsel %vm3121_vm8, %v3114_v1, 920167782  ;;  %v3130_v3 = vsel %vm3118_vm14, %v3108_v54, %v3111_v5  ;;  %v3123_v42 = vsel %vm3121_vm8, %v3111_v5, 2102212464 }
 0x4c0   :  { %v3131_v20 = vsel %vm3121_vm8, %v3117_v43, 1326507024  ;;  %v3128_v24 = vsel %vm3120_vm2, %v3111_v5, %v3127_v45  ;;  %v3217_v34 = vshrl.u32 %v9766_v8, %v7937_v63  ;;  %v3220_v29 = vshrl.u32 %v9767_v31, %v7937_v63 }
 0x4c1   :  { %v3132_v58 = vsel %vm3120_vm2, %v3114_v1, %v3131_v20  ;;  %v3129_v44 = vsel %vm3119_vm4, %v3126_v14, %v3128_v24  ;;  %v3122_v57 = vsel %vm3118_vm14, %v3102_v15, %v3105_v18  ;;  %v3208_v56 = vshrl.u32 %v9763_v51, %v7937_v63 }
 0x4c2   :  { %v3133_v33 = vsel %vm3119_vm4, %v3130_v3, %v3132_v58  ;;  %v7939_v62 = vmul.u32.u64.low %v3134_v41, %v3129_v44  ;;  %v7940_v4 = vmul.u32.u64.high %v3134_v41, %v3129_v44, %v7939_v62  ;;  %v3216_v10 = vshll.u32 %v9765_v11, %v3204_v16 }
 0x4c3   :  { %v7943_v50 = vmul.u32.u64.low %v3134_v41, %v3133_v33  ;;  %v7944_v61 = vmul.u32.u64.high %v3134_v41, %v3133_v33, %v7943_v50  ;;  %v3219_v48 = vshll.u32 %v9766_v8, %v3204_v16  ;;  %v3124_v22 = vsel %vm3120_vm2, %v3108_v54, %v3123_v42 }
 0x4c4   :  { %v3211_v55 = vshrl.u32 %v9764_v19, %v7937_v63  ;;  %v3214_v28 = vshrl.u32 %v9765_v11, %v7937_v63  ;;  %v3304_v35 = vadd.s32 1, %v5299_v47  ;;  %v3197_v37 = vand.u32 8388607, %v9639_v23 }
 0x4c5   :  { %v3207_v32 = vshll.u32 %v9762_v59, %v3204_v16  ;;  %v3218_v7 = vor.u32 %v3217_v34, %v3216_v10  ;;  %v3221_v53 = vor.u32 %v3220_v29, %v3219_v48  ;;  %v3144_v30 = vadd.s32 1, %v7940_v4 }
 0x4c6   :  { %v3210_v27 = vshll.u32 %v9763_v51, %v3204_v16  ;;  %v3213_v6 = vshll.u32 %v9764_v19, %v3204_v16  ;;  %v3401_v40 = vand.u32 2139095040, %v7956_v9  ;;  %v3125_v46 = vsel %vm3119_vm4, %v3122_v57, %v3124_v22 }
 0x4c7   :  { %vm3143_vm6 = vc.u32 %v7944_v61, %v7939_v62  ;;  %v3209_v18 = vor.u32 %v3208_v56, %v3207_v32  ;;  %vm3305_vm12 = vcmp.gt.s32.totalorder %v3304_v35, 0  ;;  %vm3225_vm0 = vcmp.lt.s32.totalorder %v7954_v21, 4 }
 0x4c8   :  { %v3212_v54 = vor.u32 %v3211_v55, %v3210_v27  ;;  %v3215_v5 = vor.u32 %v3214_v28, %v3213_v6  ;;  %v3306_v26 = vsel %vm3305_vm12, %v3304_v35, 0  ;;  %v3231_v25 = vsel %vm3225_vm0, %v3218_v7, 920167782 }
 0x4c9   :  { %v3235_v1 = vsel %vm3225_vm0, %v3221_v53, 1326507024  ;;  %v3308_v43 = vand.u32 31, %v3306_v26  ;;  %v3145_v0 = vsel %vm3143_vm6, %v3144_v30, %v7940_v4  ;;  %v3198_v14 = vor.u32 8388608, %v3197_v37 }
 0x4ca   :  { %v3141_v17 = vmul.u32 %v3134_v41, %v3125_v46  ;;  %vm3222_vm1 = vcmp.lt.s32.totalorder %v7954_v21, 1  ;;  %vm3224_vm3 = vcmp.lt.s32.totalorder %v7954_v21, 3  ;;  %v3402_v45 = vshrl.u32 %v3401_v40, 23 }
 0x4cb   :  { %v3230_v3 = vsel %vm3222_vm1, %v3209_v18, %v3212_v54  ;;  %v3232_v20 = vsel %vm3224_vm3, %v3215_v5, %v3231_v25  ;;  %v3234_v16 = vsel %vm3222_vm1, %v3212_v54, %v3215_v5  ;;  %v3236_v24 = vsel %vm3224_vm3, %v3218_v7, %v3235_v1 }
 0x4cc   :  { %v3146_v58 = vadd.s32 %v3145_v0, %v3141_v17  ;;  %v7997_v44 = vsub.s32 32, %v3308_v43  ;;  %vm3223_vm10 = vcmp.lt.s32.totalorder %v7954_v21, 2  ;;  %v3238_v49 = vshll.u32 %v3198_v14, 8 }
 0x4cd   :  { %v3233_v33 = vsel %vm3223_vm10, %v3230_v3, %v3232_v20  ;;  %v3237_v41 = vsel %vm3223_vm10, %v3234_v16, %v3236_v24  ;;  %v5303_v4 = vadd.s32 4294967169, %v3402_v45  ;;  %v3206_v57 = vshrl.u32 %v9762_v59, %v7937_v63 }
 0x4ce   :  { %v3147_v50 = vadd.s32 536870912, %v3146_v58  ;;  %v3321_v47 = vshrl.u32 %v9766_v8, %v7997_v44  ;;  %v8007_v15 = vmul.u32.u64.low %v3238_v49, %v3237_v41  ;;  %v8008_v42 = vmul.u32.u64.high %v3238_v49, %v3237_v41, %v8007_v15 }
 0x4cf   :  { %v8010_v34 = vmul.u32.u64.low %v3238_v49, %v3233_v33  ;;  %v8011_v29 = vmul.u32.u64.high %v3238_v49, %v3233_v33, %v8010_v34  ;;  %v3312_v56 = vshrl.u32 %v9763_v51, %v7997_v44  ;;  %v3315_v10 = vshrl.u32 %v9764_v19, %v7997_v44 }
 0x4d0   :  { %v3320_v48 = vshll.u32 %v9765_v11, %v3308_v43  ;;  %v8021_v22 = vshrl.u32 %v3306_v26, 5  ;;  %v3318_v55 = vshrl.u32 %v9765_v11, %v7997_v44  ;;  %v3324_v28 = vshrl.u32 %v9767_v31, %v7997_v44 }
 0x4d1   :  { %v3408_v35 = vadd.s32 1, %v5303_v4  ;;  %v8027_v37 = vshrl.u32 %v3147_v50, 30  ;;  %v3311_v63 = vshll.u32 %v9762_v59, %v3308_v43  ;;  %v3314_v32 = vshll.u32 %v9763_v51, %v3308_v43 }
 0x4d2   :  { %v3322_v7 = vor.u32 %v3321_v47, %v3320_v48  ;;  %v3227_v53 = vsel %vm3225_vm0, %v3215_v5, 2102212464  ;;  %v3317_v30 = vshll.u32 %v9764_v19, %v3308_v43  ;;  %v3323_v27 = vshll.u32 %v9766_v8, %v3308_v43 }
 0x4d3   :  { %9768 = vst [vmem:[#allocation12_spill] sm:$0xff] %v8027_v37  ;;  %v3226_v6 = vsel %vm3222_vm1, %v3206_v57, %v3209_v18  ;;  %v3301_v40 = vand.u32 8388607, %v9642_v38  ;;  %v8039_v46 = vor.u32 %v3312_v56, %v3311_v63  ;;  %v8041_v26 = vor.u32 %v3315_v10, %v3314_v32 }
 0x4d4   :  { %v3319_v25 = vor.u32 %v3318_v55, %v3317_v30  ;;  %v3325_v1 = vor.u32 %v3324_v28, %v3323_v27  ;;  %vm3329_vm11 = vcmp.lt.s32.totalorder %v8021_v22, 4  ;;  %vm3409_vm9 = vcmp.gt.s32.totalorder %v3408_v35, 0 }
 0x4d5   :  { %v3149_v5 = vshll.u32 %v8027_v37, 30  ;;  %v3228_v43 = vsel %vm3224_vm3, %v3212_v54, %v3227_v53  ;;  %v3335_v18 = vsel %vm3329_vm11, %v3322_v7, 920167782  ;;  %v3410_v0 = vsel %vm3409_vm9, %v3408_v35, 0 }
 0x4d6   :  { %v3248_v14 = vadd.s32 1, %v8011_v29  ;;  %v3412_v17 = vand.u32 31, %v3410_v0  ;;  %vm3247_vm13 = vc.u32 %v8008_v42, %v8010_v34  ;;  %v3302_v45 = vor.u32 8388608, %v3301_v40 }
 0x4d7   :  { %vm3326_vm5 = vcmp.lt.s32.totalorder %v8021_v22, 1  ;;  %vm3328_vm15 = vcmp.lt.s32.totalorder %v8021_v22, 3  ;;  %v3229_v3 = vsel %vm3223_vm10, %v3226_v6, %v3228_v43  ;;  %v3339_v16 = vsel %vm3329_vm11, %v3325_v1, 1326507024 }
 0x4d8   :  { %v3334_v54 = vsel %vm3326_vm5, %v8039_v46, %v8041_v26  ;;  %v3336_v20 = vsel %vm3328_vm15, %v3319_v25, %v3335_v18  ;;  %v8064_v24 = vsub.s32 %v3146_v58, %v3149_v5  ;;  %v9640_v33 = vand.u32 2147483647, %v7956_v9 }
 0x4d9   :  { %v3249_v41 = vsel %vm3247_vm13, %v3248_v14, %v8011_v29  ;;  %vm3327_vm14 = vcmp.lt.s32.totalorder %v8021_v22, 2  ;;  %v8069_v21 = vsub.s32 32, %v3412_v17  ;;  %v3245_v4 = vmul.u32 %v3238_v49, %v3229_v3  ;;  %v3075_v49 = vpop.f32.mrf.mxu0 }
 0x4da   :  { %v3337_v50 = vsel %vm3327_vm14, %v3334_v54, %v3336_v20  ;;  %v3338_v47 = vsel %vm3326_vm5, %v8041_v26, %v3319_v25  ;;  %v3340_v58 = vsel %vm3328_vm15, %v3322_v7, %v3339_v16  ;;  %v8078_v15 = vshll.u32 %v3302_v45, 8 }
 0x4db   :  { %v3152_v57 = vsub.s32 0, %v8064_v24  ;;  %v8081_v29 = vadd.s32 %v3249_v41, %v3245_v4  ;;  %v3405_v56 = vand.u32 8388607, %v9640_v33  ;;  %v3341_v10 = vsel %vm3327_vm14, %v3338_v47, %v3340_v58 }
 0x4dc   :  { %v8088_v48 = vmul.u32.u64.low %v8078_v15, %v3337_v50  ;;  %v8089_v55 = vmul.u32.u64.high %v8078_v15, %v3337_v50, %v8088_v48  ;;  %v3416_v28 = vshrl.u32 %v9763_v51, %v8069_v21  ;;  %v3419_v35 = vshrl.u32 %v9764_v19, %v8069_v21 }
 0x4dd   :  { %v3422_v63 = vshrl.u32 %v9765_v11, %v8069_v21  ;;  %v3424_v32 = vshll.u32 %v9765_v11, %v3412_v17  ;;  %v3425_v7 = vshrl.u32 %v9766_v8, %v8069_v21  ;;  %v8101_v53 = vshrl.u32 %v3410_v0, 5 }
 0x4de   :  { %v3415_v30 = vshll.u32 %v9762_v59, %v3412_v17  ;;  %v3428_v27 = vshrl.u32 %v9767_v31, %v8069_v21  ;;  %v8107_v6 = vadd.f32 %v3075_v49, %v7889_v12  ;;  %v3418_v40 = vshll.u32 %v9763_v51, %v3412_v17 }
 0x4df   :  { %v3421_v1 = vshll.u32 %v9764_v19, %v3412_v17  ;;  %v3426_v5 = vor.u32 %v3425_v7, %v3424_v32  ;;  %v3427_v43 = vshll.u32 %v9766_v8, %v3412_v17  ;;  %v5292_v18 = vmin.u32 %v3152_v57, %v8064_v24  ;;  %v3077_v7 = vpop.f32.mrf.mxu0 }
 0x4e0   :  { %v3251_v0 = vadd.s32 536870912, %v8081_v29  ;;  %v8115_v14 = vmul.u32.u64.low %v8078_v15, %v3341_v10  ;;  %v8116_v45 = vmul.u32.u64.high %v8078_v15, %v3341_v10, %v8115_v14  ;;  %v3417_v3 = vor.u32 %v3416_v28, %v3415_v30 }
 0x4e1   :  { %v3420_v54 = vor.u32 %v3419_v35, %v3418_v40  ;;  %v3423_v20 = vor.u32 %v3422_v63, %v3421_v1  ;;  %v3429_v16 = vor.u32 %v3428_v27, %v3427_v43  ;;  %vm3433_vm2 = vcmp.lt.s32.totalorder %v8101_v53, 4 }
 0x4e2   :  { %v3331_v41 = vsel %vm3329_vm11, %v3319_v25, 2102212464  ;;  %v3406_v4 = vor.u32 8388608, %v3405_v56  ;;  %v3439_v17 = vsel %vm3433_vm2, %v3426_v5, 920167782  ;;  %v3505_v50 = vand.u32 2139095040, %v8107_v6 }
 0x4e3   :  { %v3154_v47 = vclz %v5292_v18  ;;  %v3310_v58 = vshrl.u32 %v9762_v59, %v7997_v44  ;;  %vm3430_vm8 = vcmp.lt.s32.totalorder %v8101_v53, 1  ;;  %vm3432_vm4 = vcmp.lt.s32.totalorder %v8101_v53, 3 }
 0x4e4   :  { %v8128_v57 = vshrl.u32 %v3251_v0, 30  ;;  %v3438_v49 = vsel %vm3430_vm8, %v3417_v3, %v3420_v54  ;;  %v3440_v25 = vsel %vm3432_vm4, %v3423_v20, %v3439_v17  ;;  %v3443_v56 = vsel %vm3433_vm2, %v3429_v16, 1326507024 }
 0x4e5   :  { %v3330_v10 = vsel %vm3326_vm5, %v3310_v58, %v8039_v46  ;;  %v3332_v44 = vsel %vm3328_vm15, %v8041_v26, %v3331_v41  ;;  %v3442_v28 = vsel %vm3430_vm8, %v3420_v54, %v3423_v20  ;;  %v3444_v35 = vsel %vm3432_vm4, %v3426_v5, %v3443_v56 }
 0x4e6   :  { %9769 = vst [vmem:[#allocation11_spill] sm:$0xff] %v8128_v57  ;;  %v3352_v63 = vadd.s32 1, %v8089_v55  ;;  %vm3431_vm6 = vcmp.lt.s32.totalorder %v8101_v53, 2  ;;  %v3506_v32 = vshrl.u32 %v3505_v50, 23  ;;  %v5293_v30 = vadd.s32 4294967294, %v3154_v47 }
 0x4e7   :  { %vm3351_vm12 = vc.u32 %v8116_v45, %v8088_v48  ;;  %v3441_v46 = vsel %vm3431_vm6, %v3438_v49, %v3440_v25  ;;  %v3333_v26 = vsel %vm3327_vm14, %v3330_v10, %v3332_v44  ;;  %v3445_v27 = vsel %vm3431_vm6, %v3442_v28, %v3444_v35 }
 0x4e8   :  { %v8156_v40 = vshll.u32 %v3406_v4, 8  ;;  %v5307_v1 = vadd.s32 4294967169, %v3506_v32  ;;  %v3253_v5 = vshll.u32 %v8128_v57, 30  ;;  %v8160_v43 = vadd.f32 %v3077_v7, %v7889_v12 }
 0x4e9   :  { %v3353_v18 = vsel %vm3351_vm12, %v3352_v63, %v8089_v55  ;;  %vm5294_vm0 = vcmp.lt.s32.totalorder %v5293_v30, 0  ;;  %v3349_v16 = vmul.u32 %v8078_v15, %v3333_v26  ;;  %v3435_v17 = vsel %vm3433_vm2, %v3423_v20, 2102212464 }
 0x4ea   :  { %v8164_v0 = vmul.u32.u64.low %v8156_v40, %v3441_v46  ;;  %v8165_v14 = vmul.u32.u64.high %v8156_v40, %v3441_v46, %v8164_v0  ;;  %v3512_v22 = vadd.s32 1, %v5307_v1  ;;  %v8176_v12 = vsub.s32 %v8081_v29, %v3253_v5 }
 0x4eb   :  { %v8170_v41 = vmul.u32.u64.low %v8156_v40, %v3445_v27  ;;  %v8171_v4 = vmul.u32.u64.high %v8156_v40, %v3445_v27, %v8170_v41  ;;  %v8178_v55 = vadd.s32 %v3353_v18, %v3349_v16  ;;  %v3414_v50 = vshrl.u32 %v9762_v59, %v8069_v21 }
 0x4ec   :  { %vm3513_vm1 = vcmp.gt.s32.totalorder %v3512_v22, 0  ;;  %v3609_v47 = vand.u32 2139095040, %v8160_v43  ;;  %v8183_v58 = vsel %vm5294_vm0, 0, %v5293_v30  ;;  %v9643_v15 = vand.u32 2147483647, %v8107_v6 }
 0x4ed   :  { %v3514_v49 = vsel %vm3513_vm1, %v3512_v22, 0  ;;  %v3434_v25 = vsel %vm3430_vm8, %v3414_v50, %v3417_v3  ;;  %v3436_v20 = vsel %vm3432_vm4, %v3420_v54, %v3435_v17  ;;  %v3162_v56 = vsub.s32 4294967266, %v8183_v58 }
 0x4ee   :  { %v3516_v29 = vand.u32 31, %v3514_v49  ;;  %v3256_v10 = vsub.s32 0, %v8176_v12  ;;  %v3355_v21 = vadd.s32 536870912, %v8178_v55  ;;  %v3610_v44 = vshrl.u32 %v3609_v47, 23 }
 0x4ef   :  { %v3437_v28 = vsel %vm3431_vm6, %v3434_v25, %v3436_v20  ;;  %v3456_v35 = vadd.s32 1, %v8165_v14  ;;  %v3509_v63 = vand.u32 8388607, %v9643_v15  ;;  %vm3455_vm3 = vc.u32 %v8171_v4, %v8164_v0 }
 0x4f0   :  { %v3517_v3 = vsub.s32 32, %v3516_v29  ;;  %v3515_v54 = vshrl.u32 %v3514_v49, 5  ;;  %v3519_v32 = vshll.u32 %v9762_v59, %v3516_v29  ;;  %v3522_v7 = vshll.u32 %v9763_v51, %v3516_v29 }
 0x4f1   :  { %v3525_v53 = vshll.u32 %v9764_v19, %v3516_v29  ;;  %v3528_v27 = vshll.u32 %v9765_v11, %v3516_v29  ;;  %v3531_v5 = vshll.u32 %v9766_v8, %v3516_v29  ;;  %v5311_v18 = vadd.s32 4294967169, %v3610_v44 }
 0x4f2   :  { %v3520_v30 = vshrl.u32 %v9763_v51, %v3517_v3  ;;  %v3523_v46 = vshrl.u32 %v9764_v19, %v3517_v3  ;;  %v3526_v26 = vshrl.u32 %v9765_v11, %v3517_v3  ;;  %v3529_v1 = vshrl.u32 %v9766_v8, %v3517_v3 }
 0x4f3   :  { %v3532_v17 = vshrl.u32 %v9767_v31, %v3517_v3  ;;  %v8210_v50 = vshrl.u32 %v3355_v21, 30  ;;  %v3453_v47 = vmul.u32 %v8156_v40, %v3437_v28  ;;  %v3510_v49 = vor.u32 8388608, %v3509_v63 }
 0x4f4   :  { %v3521_v22 = vor.u32 %v3520_v30, %v3519_v32  ;;  %v3524_v16 = vor.u32 %v3523_v46, %v3522_v7  ;;  %v3527_v41 = vor.u32 %v3526_v26, %v3525_v53  ;;  %v3530_v25 = vor.u32 %v3529_v1, %v3528_v27 }
 0x4f5   :  { %v3457_v20 = vsel %vm3455_vm3, %v3456_v35, %v8165_v14  ;;  %v3533_v23 = vor.u32 %v3532_v17, %v3531_v5  ;;  %vm3534_vm10 = vcmp.lt.s32.totalorder %v3515_v54, 1  ;;  %v9641_v29 = vand.u32 2147483647, %v8160_v43 }
 0x4f6   :  { %vm3536_vm11 = vcmp.lt.s32.totalorder %v3515_v54, 3  ;;  %vm3537_vm9 = vcmp.lt.s32.totalorder %v3515_v54, 4  ;;  %v3542_v44 = vsel %vm3534_vm10, %v3521_v22, %v3524_v16  ;;  %v3616_v32 = vadd.s32 1, %v5311_v18 }
 0x4f7   :  { %v3539_v21 = vsel %vm3537_vm9, %v3527_v41, 2102212464  ;;  %v3543_v7 = vsel %vm3537_vm9, %v3530_v25, 920167782  ;;  %v3546_v40 = vsel %vm3534_vm10, %v3524_v16, %v3527_v41  ;;  %v3547_v28 = vsel %vm3537_vm9, %v3533_v23, 1326507024 }
 0x4f8   :  { %v8220_v63 = vadd.s32 %v3457_v20, %v3453_v47  ;;  %v3518_v30 = vshrl.u32 %v9762_v59, %v3517_v3  ;;  %vm3535_vm13 = vcmp.lt.s32.totalorder %v3515_v54, 2  ;;  %v3544_v14 = vsel %vm3536_vm11, %v3527_v41, %v3543_v7 }
 0x4f9   :  { %v5296_v35 = vmin.u32 %v3256_v10, %v8176_v12  ;;  %v3545_v46 = vsel %vm3535_vm13, %v3542_v44, %v3544_v14  ;;  %v3548_v53 = vsel %vm3536_vm11, %v3530_v25, %v3547_v28  ;;  %v3550_v26 = vshll.u32 %v3510_v49, 8 }
 0x4fa   :  { %v3538_v27 = vsel %vm3534_vm10, %v3518_v30, %v3521_v22  ;;  %v3540_v1 = vsel %vm3536_vm11, %v3524_v16, %v3539_v21  ;;  %v3549_v23 = vsel %vm3535_vm13, %v3546_v40, %v3548_v53  ;;  %vm3617_vm5 = vcmp.gt.s32.totalorder %v3616_v32, 0 }
 0x4fb   :  { %v3357_v5 = vshll.u32 %v8210_v50, 30  ;;  %v8231_v3 = vmul.u32.u64.low %v3550_v26, %v3549_v23  ;;  %v8232_v18 = vmul.u32.u64.high %v3550_v26, %v3549_v23, %v8231_v3  ;;  %v3618_v41 = vsel %vm3617_vm5, %v3616_v32, 0 }
 0x4fc   :  { %v3459_v10 = vadd.s32 536870912, %v8220_v63  ;;  %v8235_v17 = vmul.u32.u64.low %v3550_v26, %v3545_v46  ;;  %v8236_v47 = vmul.u32.u64.high %v3550_v26, %v3545_v46, %v8235_v17  ;;  %v3613_v22 = vand.u32 8388607, %v9641_v29 }
 0x4fd   :  { %v3541_v16 = vsel %vm3535_vm13, %v3538_v27, %v3540_v1  ;;  %v3620_v49 = vand.u32 31, %v3618_v41  ;;  %v8244_v25 = vadd.s32 %v7939_v62, %v7944_v61  ;;  %v8247_v44 = vadd.s32 127, %v3162_v56  ;;  %v3081_v27 = vpop.f32.mrf.mxu0 }
 0x4fe   :  { %v3258_v32 = vclz %v5296_v35  ;;  %v8250_v21 = vsub.s32 %v8178_v55, %v3357_v5  ;;  %vm3559_vm15 = vc.u32 %v8232_v18, %v8235_v17  ;;  %v8254_v40 = vshrl.u32 %v3459_v10, 30 }
 0x4ff   :  { %v3621_v7 = vsub.s32 32, %v3620_v49  ;;  %v3557_v54 = vmul.u32 %v3550_v26, %v3541_v16  ;;  %v3560_v28 = vadd.s32 1, %v8236_v47  ;;  %v3614_v30 = vor.u32 8388608, %v3613_v22 }
 0x500   :  { %v3619_v62 = vshrl.u32 %v3618_v41, 5  ;;  %v3623_v61 = vshll.u32 %v9762_v59, %v3620_v49  ;;  %v3626_v35 = vshll.u32 %v9763_v51, %v3620_v49  ;;  %v3629_v46 = vshll.u32 %v9764_v19, %v3620_v49 }
 0x501   :  { %v3624_v56 = vshrl.u32 %v9763_v51, %v3621_v7  ;;  %v3627_v14 = vshrl.u32 %v9764_v19, %v3621_v7  ;;  %v3561_v55 = vsel %vm3559_vm15, %v3560_v28, %v8236_v47  ;;  %v3630_v53 = vshrl.u32 %v9765_v11, %v3621_v7 }
 0x502   :  { %v5297_v26 = vadd.s32 4294967294, %v3258_v32  ;;  %v3360_v1 = vsub.s32 0, %v8250_v21  ;;  %v3562_v23 = vadd.s32 %v3561_v55, %v3557_v54  ;;  %v3632_v10 = vshll.u32 %v9765_v11, %v3620_v49  ;;  %v3083_v55 = vpop.f32.mrf.mxu0 }
 0x503   :  { %v3625_v5 = vor.u32 %v3624_v56, %v3623_v61  ;;  %v3628_v3 = vor.u32 %v3627_v14, %v3626_v35  ;;  %v3631_v41 = vor.u32 %v3630_v53, %v3629_v46  ;;  %v3633_v22 = vshrl.u32 %v9766_v8, %v3621_v7 }
 0x504   :  { %v3563_v16 = vadd.s32 536870912, %v3562_v23  ;;  %v3635_v47 = vshll.u32 %v9766_v8, %v3620_v49  ;;  %v3636_v28 = vshrl.u32 %v9767_v31, %v3621_v7  ;;  %v8270_v33 = vadd.f32 %v3081_v27, %v7897_v39 }
 0x505   :  { %v3461_v32 = vshll.u32 %v8254_v40, 30  ;;  %v3634_v29 = vor.u32 %v3633_v22, %v3632_v10  ;;  %vm3638_vm14 = vcmp.lt.s32.totalorder %v3619_v62, 1  ;;  %v3654_v54 = vshll.u32 %v3614_v30, 8 }
 0x506   :  { %v8273_v61 = vshrl.u32 %v3563_v16, 30  ;;  %v3622_v56 = vshrl.u32 %v9762_v59, %v3621_v7  ;;  %v3637_v14 = vor.u32 %v3636_v28, %v3635_v47  ;;  %vm3641_vm2 = vcmp.lt.s32.totalorder %v3619_v62, 4 }
 0x507   :  { %vm3640_vm8 = vcmp.lt.s32.totalorder %v3619_v62, 3  ;;  %v3643_v35 = vsel %vm3641_vm2, %v3631_v41, 2102212464  ;;  %v3646_v49 = vsel %vm3638_vm14, %v3625_v5, %v3628_v3  ;;  %v3647_v46 = vsel %vm3641_vm2, %v3634_v29, 920167782 }
 0x508   :  { %v3565_v53 = vshll.u32 %v8273_v61, 30  ;;  %vm3639_vm4 = vcmp.lt.s32.totalorder %v3619_v62, 2  ;;  %v3648_v27 = vsel %vm3640_vm8, %v3631_v41, %v3647_v46  ;;  %v3650_v38 = vsel %vm3638_vm14, %v3628_v3, %v3631_v41 }
 0x509   :  { %v3642_v15 = vsel %vm3638_vm14, %v3622_v56, %v3625_v5  ;;  %v3649_v10 = vsel %vm3639_vm4, %v3646_v49, %v3648_v27  ;;  %v3651_v30 = vsel %vm3641_vm2, %v3637_v14, 1326507024  ;;  %v8279_v22 = vadd.f32 %v3083_v55, %v7897_v39 }
 0x50a   :  { %v3644_v7 = vsel %vm3640_vm8, %v3628_v3, %v3643_v35  ;;  %v3652_v16 = vsel %vm3640_vm8, %v3634_v29, %v3651_v30  ;;  %v8281_v47 = vmul.u32.u64.low %v3654_v54, %v3649_v10  ;;  %v8282_v28 = vmul.u32.u64.high %v3654_v54, %v3649_v10, %v8281_v47 }
 0x50b   :  { %v8286_v52 = vsub.s32 %v8220_v63, %v3461_v32  ;;  %v8288_v20 = vsub.s32 %v3562_v23, %v3565_v53  ;;  %v3653_v41 = vsel %vm3639_vm4, %v3650_v38, %v3652_v16  ;;  %v3713_v5 = vand.u32 2139095040, %v8270_v33 }
 0x50c   :  { %v8292_v56 = vmul.u32.u64.low %v3654_v54, %v3653_v41  ;;  %v8293_v14 = vmul.u32.u64.high %v3654_v54, %v3653_v41, %v8292_v56  ;;  %v9770_v39 = vsub.s32 32, %v8183_v58  ;;  %v3645_v3 = vsel %vm3639_vm4, %v3642_v15, %v3644_v7 }
 0x50d   :  { %v3714_v55 = vshrl.u32 %v3713_v5, 23  ;;  %v3817_v35 = vand.u32 2139095040, %v8279_v22  ;;  %v3159_v63 = vshll.u32 %v8064_v24, %v8183_v58  ;;  %v3164_v23 = vshll.u32 %v8247_v44, 23 }
 0x50e   :  { %v3160_v29 = vshrl.u32 %v8244_v25, %v9770_v39  ;;  %v5300_v38 = vmin.u32 %v3360_v1, %v8250_v21  ;;  %v3664_v32 = vadd.s32 1, %v8282_v28  ;;  %vm5298_vm6 = vcmp.lt.s32.totalorder %v5297_v26, 0 }
 0x50f   :  { %v3464_v49 = vsub.s32 0, %v8286_v52  ;;  %v3568_v46 = vsub.s32 0, %v8288_v20  ;;  %v5315_v25 = vadd.s32 4294967169, %v3714_v55  ;;  %v3661_v62 = vmul.u32 %v3654_v54, %v3645_v3 }
 0x510   :  { %vm3663_vm12 = vc.u32 %v8293_v14, %v8281_v47  ;;  %v3818_v15 = vshrl.u32 %v3817_v35, 23  ;;  %v8309_v53 = vor.u32 %v3160_v29, %v3159_v63  ;;  %v8312_v44 = vor.u32 4788187, %v3164_v23 }
 0x511   :  { %v3665_v24 = vsel %vm3663_vm12, %v3664_v32, %v8282_v28  ;;  %v3720_v58 = vadd.s32 1, %v5315_v25  ;;  %v8314_v1 = vsel %vm5298_vm6, 0, %v5297_v26  ;;  %v3362_v27 = vclz %v5300_v38 }
 0x512   :  { %v3666_v10 = vadd.s32 %v3665_v24, %v3661_v62  ;;  %v5304_v30 = vmin.u32 %v3464_v49, %v8286_v52  ;;  %v5308_v7 = vmin.u32 %v3568_v46, %v8288_v20  ;;  %v9645_v54 = vand.u32 2147483647, %v8270_v33 }
 0x513   :  { %vm3721_vm0 = vcmp.gt.s32.totalorder %v3720_v58, 0  ;;  %v5319_v5 = vadd.s32 4294967169, %v3818_v15  ;;  %v8322_v28 = vadd.s32 %v8010_v34, %v8008_v42  ;;  %v8326_v3 = vadd.s32 4294967294, %v3362_v27 }
 0x514   :  { %v3667_v16 = vadd.s32 536870912, %v3666_v10  ;;  %v3722_v41 = vsel %vm3721_vm0, %v3720_v58, 0  ;;  %v3466_v35 = vclz %v5304_v30  ;;  %v3570_v63 = vclz %v5308_v7 }
 0x515   :  { %v3724_v26 = vand.u32 31, %v3722_v41  ;;  %v3717_v23 = vand.u32 8388607, %v9645_v54  ;;  %v3824_v49 = vadd.s32 1, %v5319_v5  ;;  %v3723_v58 = vshrl.u32 %v3722_v41, 5 }
 0x516   :  { %v8328_v55 = vshrl.u32 %v3667_v16, 30  ;;  %v5305_v7 = vadd.s32 4294967294, %v3466_v35  ;;  %v9651_v13 = vand.u32 2147483647, %v8279_v22  ;;  %v5309_v37 = vadd.s32 4294967294, %v3570_v63 }
 0x517   :  { %v3725_v38 = vsub.s32 32, %v3724_v26  ;;  %v3727_v42 = vshll.u32 %v9762_v59, %v3724_v26  ;;  %v3730_v34 = vshll.u32 %v9763_v51, %v3724_v26  ;;  %v3733_v62 = vshll.u32 %v9764_v19, %v3724_v26 }
 0x518   :  { %v3669_v32 = vshll.u32 %v8328_v55, 30  ;;  %v3736_v27 = vshll.u32 %v9765_v11, %v3724_v26  ;;  %v3718_v56 = vor.u32 8388608, %v3717_v23  ;;  %v3739_v57 = vshll.u32 %v9766_v8, %v3724_v26 }
 0x519   :  { %v3728_v46 = vshrl.u32 %v9763_v51, %v3725_v38  ;;  %v3731_v25 = vshrl.u32 %v9764_v19, %v3725_v38  ;;  %v3734_v15 = vshrl.u32 %v9765_v11, %v3725_v38  ;;  %v3737_v30 = vshrl.u32 %v9766_v8, %v3725_v38 }
 0x51a   :  { %v8339_v24 = vsub.s32 %v3666_v10, %v3669_v32  ;;  %v3740_v10 = vshrl.u32 %v9767_v31, %v3725_v38  ;;  %vm3825_vm1 = vcmp.gt.s32.totalorder %v3824_v49, 0  ;;  %vm3742_vm3 = vcmp.lt.s32.totalorder %v3723_v58, 1 }
 0x51b   :  { %v3729_v16 = vor.u32 %v3728_v46, %v3727_v42  ;;  %v3732_v54 = vor.u32 %v3731_v25, %v3730_v34  ;;  %v3735_v29 = vor.u32 %v3734_v15, %v3733_v62  ;;  %v3738_v39 = vor.u32 %v3737_v30, %v3736_v27 }
 0x51c   :  { %v3672_v5 = vsub.s32 0, %v8339_v24  ;;  %vm3744_vm10 = vcmp.lt.s32.totalorder %v3723_v58, 3  ;;  %vm3745_vm11 = vcmp.lt.s32.totalorder %v3723_v58, 4  ;;  %v3741_v35 = vor.u32 %v3740_v10, %v3739_v57 }
 0x51d   :  { %v3747_v32 = vsel %vm3745_vm11, %v3735_v29, 2102212464  ;;  %v3750_v42 = vsel %vm3742_vm3, %v3729_v16, %v3732_v54  ;;  %v3751_v34 = vsel %vm3745_vm11, %v3738_v39, 920167782  ;;  %v3726_v46 = vshrl.u32 %v9762_v59, %v3725_v38 }
 0x51e   :  { %v5312_v41 = vmin.u32 %v3672_v5, %v8339_v24  ;;  %vm3743_vm9 = vcmp.lt.s32.totalorder %v3723_v58, 2  ;;  %v3752_v63 = vsel %vm3744_vm10, %v3735_v29, %v3751_v34  ;;  %v3754_v25 = vsel %vm3742_vm3, %v3732_v54, %v3735_v29 }
 0x51f   :  { %v3753_v26 = vsel %vm3743_vm9, %v3750_v42, %v3752_v63  ;;  %v3755_v62 = vsel %vm3745_vm11, %v3741_v35, 1326507024  ;;  %v3758_v15 = vshll.u32 %v3718_v56, 8  ;;  %vm5310_vm13 = vcmp.lt.s32.totalorder %v5309_v37, 0 }
 0x520   :  { %v3674_v23 = vclz %v5312_v41  ;;  %v3746_v27 = vsel %vm3742_vm3, %v3726_v46, %v3729_v16  ;;  %v3748_v57 = vsel %vm3744_vm10, %v3732_v54, %v3747_v32  ;;  %v3756_v30 = vsel %vm3744_vm10, %v3738_v39, %v3755_v62 }
 0x521   :  { %v3757_v5 = vsel %vm3743_vm9, %v3754_v25, %v3756_v30  ;;  %v8357_v10 = vmul.u32.u64.low %v3758_v15, %v3753_v26  ;;  %v8358_v38 = vmul.u32.u64.high %v3758_v15, %v3753_v26, %v8357_v10  ;;  %v3826_v41 = vsel %vm3825_vm1, %v3824_v49, 0 }
 0x522   :  { %vm5302_vm5 = vcmp.lt.s32.totalorder %v8326_v3, 0  ;;  %v5313_v29 = vadd.s32 4294967294, %v3674_v23  ;;  %v8363_v35 = vmul.u32.u64.low %v3758_v15, %v3757_v5  ;;  %v8364_v56 = vmul.u32.u64.high %v3758_v15, %v3757_v5, %v8363_v35 }
 0x523   :  { %vm5306_vm15 = vcmp.lt.s32.totalorder %v5305_v7, 0  ;;  %v3749_v16 = vsel %vm3743_vm9, %v3746_v27, %v3748_v57  ;;  %v3821_v54 = vand.u32 8388607, %v9651_v13  ;;  %v3828_v39 = vand.u32 31, %v3826_v41 }
 0x524   :  { %v9771_v32 = vand.u32 2147483647, %v8312_v44  ;;  %v9772_v42 = vcvt.s32.f32 %v8309_v53  ;;  %v8378_v23 = vadd.s32 %v8088_v48, %v8116_v45  ;;  %v8381_v46 = vsel %vm5310_vm13, 0, %v5309_v37 }
 0x525   :  { %v9773_v58 = vsub.s32 4294967266, %v8314_v1  ;;  %v8388_v26 = vsel %vm5302_vm5, 0, %v8326_v3  ;;  %v3768_v53 = vadd.s32 1, %v8358_v38  ;;  %v3829_v44 = vsub.s32 32, %v3828_v39 }
 0x526   :  { %v8373_v34 = vmul.f32 %v9772_v42, %v9771_v32  ;;  %v8391_v25 = vsel %vm5306_vm15, 0, %v5305_v7  ;;  %vm5314_vm14 = vcmp.lt.s32.totalorder %v5313_v29, 0  ;;  %v3765_v62 = vmul.u32 %v3758_v15, %v3749_v16 }
 0x527   :  { %v8385_v63 = vadd.s32 127, %v9773_v58  ;;  %vm3767_vm2 = vc.u32 %v8364_v56, %v8357_v10  ;;  %v3578_v37 = vsub.s32 4294967266, %v8381_v46  ;;  %v3822_v45 = vor.u32 8388608, %v3821_v54 }
 0x528   :  { %v3769_v48 = vsel %vm3767_vm2, %v3768_v53, %v8358_v38  ;;  %v3832_v27 = vshrl.u32 %v9763_v51, %v3829_v44  ;;  %v3831_v3 = vshll.u32 %v9762_v59, %v3828_v39  ;;  %v3834_v30 = vshll.u32 %v9763_v51, %v3828_v39 }
 0x529   :  { %v3770_v57 = vadd.s32 %v3769_v48, %v3765_v62  ;;  %v3835_v7 = vshrl.u32 %v9764_v19, %v3829_v44  ;;  %v8401_v5 = vsel %vm5314_vm14, 0, %v5313_v29  ;;  %v3827_v15 = vshrl.u32 %v3826_v41, 5 }
 0x52a   :  { %v3837_v35 = vshll.u32 %v9764_v19, %v3828_v39  ;;  %v3838_v16 = vshrl.u32 %v9765_v11, %v3829_v44  ;;  %v3833_v42 = vor.u32 %v3832_v27, %v3831_v3  ;;  %v3840_v54 = vshll.u32 %v9765_v11, %v3828_v39 }
 0x52b   :  { %v3771_v32 = vadd.s32 536870912, %v3770_v57  ;;  %v3836_v38 = vor.u32 %v3835_v7, %v3834_v30  ;;  %v3841_v53 = vshrl.u32 %v9766_v8, %v3829_v44  ;;  %v3843_v62 = vshll.u32 %v9766_v8, %v3828_v39 }
 0x52c   :  { %v3839_v58 = vor.u32 %v3838_v16, %v3837_v35  ;;  %v3844_v48 = vshrl.u32 %v9767_v31, %v3829_v44  ;;  %v3474_v29 = vsub.s32 4294967266, %v8391_v25  ;;  %v3558_v41 = vadd.s32 %v8235_v17, %v8232_v18 }
 0x52d   :  { %v8412_v13 = vshrl.u32 %v3771_v32, 30  ;;  %v3862_v49 = vshll.u32 %v3822_v45, 8  ;;  %v3579_v19 = vadd.s32 127, %v3578_v37  ;;  %v3682_v27 = vsub.s32 4294967266, %v8401_v5 }
 0x52e   :  { %v3842_v3 = vor.u32 %v3841_v53, %v3840_v54  ;;  %v3845_v30 = vor.u32 %v3844_v48, %v3843_v62  ;;  %v3830_v35 = vshrl.u32 %v9762_v59, %v3829_v44  ;;  %vm3846_vm8 = vcmp.lt.s32.totalorder %v3827_v15, 1 }
 0x52f   :  { %v3773_v7 = vshll.u32 %v8412_v13, 30  ;;  %vm3849_vm4 = vcmp.lt.s32.totalorder %v3827_v15, 4  ;;  %vm3848_vm6 = vcmp.lt.s32.totalorder %v3827_v15, 3  ;;  %v3854_v16 = vsel %vm3846_vm8, %v3833_v42, %v3836_v38 }
 0x530   :  { %v3851_v39 = vsel %vm3849_vm4, %v3839_v58, 2102212464  ;;  %v3855_v31 = vsel %vm3849_vm4, %v3842_v3, 920167782  ;;  %vm3847_vm12 = vcmp.lt.s32.totalorder %v3827_v15, 2  ;;  %v3858_v17 = vsel %vm3846_vm8, %v3836_v38, %v3839_v58 }
 0x531   :  { %v8417_v8 = vsub.s32 %v3770_v57, %v3773_v7  ;;  %v3856_v18 = vsel %vm3848_vm6, %v3839_v58, %v3855_v31  ;;  %v3574_v37 = vsub.s32 32, %v8381_v46  ;;  %v3580_v45 = vshll.u32 %v3579_v19, 23 }
 0x532   :  { %v3857_v32 = vsel %vm3847_vm12, %v3854_v16, %v3856_v18  ;;  %v3859_v54 = vsel %vm3849_vm4, %v3845_v30, 1326507024  ;;  %v3850_v44 = vsel %vm3846_vm8, %v3830_v35, %v3833_v42  ;;  %v3852_v62 = vsel %vm3848_vm6, %v3836_v38, %v3851_v39 }
 0x533   :  { %v3776_v53 = vsub.s32 0, %v8417_v8  ;;  %v3860_v48 = vsel %vm3848_vm6, %v3842_v3, %v3859_v54  ;;  %v3683_v11 = vadd.s32 127, %v3682_v27  ;;  %v3370_v31 = vsub.s32 4294967266, %v8388_v26 }
 0x534   :  { %v3861_v51 = vsel %vm3847_vm12, %v3858_v17, %v3860_v48  ;;  %v8423_v59 = vmul.u32.u64.low %v3862_v49, %v3857_v32  ;;  %v8424_v57 = vmul.u32.u64.high %v3862_v49, %v3857_v32, %v8423_v59  ;;  %v3268_v30 = vshll.u32 %v8385_v63, 23 }
 0x535   :  { %v5316_v58 = vmin.u32 %v3776_v53, %v8417_v8  ;;  %v8429_v19 = vmul.u32.u64.low %v3862_v49, %v3861_v51  ;;  %v8430_v7 = vmul.u32.u64.high %v3862_v49, %v3861_v51, %v8429_v19  ;;  %v3576_v16 = vshrl.u32 %v3558_v41, %v3574_v37 }
 0x536   :  { %v3678_v42 = vsub.s32 32, %v8401_v5  ;;  %v3853_v38 = vsel %vm3847_vm12, %v3850_v44, %v3852_v62  ;;  %v3454_v27 = vadd.s32 %v8164_v0, %v8171_v4  ;;  %v3475_v3 = vadd.s32 127, %v3474_v29 }
 0x537   :  { %v3662_v35 = vadd.s32 %v8281_v47, %v8293_v14  ;;  %v3778_v39 = vclz %v5316_v58  ;;  %v3575_v18 = vshll.u32 %v8288_v20, %v8381_v46  ;;  %v3581_v51 = vor.u32 4788187, %v3580_v45 }
 0x538   :  { %v3684_v17 = vshll.u32 %v3683_v11, 23  ;;  %v3872_v32 = vadd.s32 1, %v8424_v57  ;;  %v3371_v41 = vadd.s32 127, %v3370_v31  ;;  %v3869_v54 = vmul.u32 %v3862_v49, %v3853_v38 }
 0x539   :  { %v5317_v37 = vadd.s32 4294967294, %v3778_v39  ;;  %vm3871_vm0 = vc.u32 %v8430_v7, %v8423_v59  ;;  %v3470_v0 = vsub.s32 32, %v8391_v25  ;;  %v3577_v4 = vor.u32 %v3576_v16, %v3575_v18 }
 0x53a   :  { %v3680_v15 = vshrl.u32 %v3662_v35, %v3678_v42  ;;  %v3873_v47 = vsel %vm3871_vm0, %v3872_v32, %v8424_v57  ;;  %v3366_v14 = vsub.s32 32, %v8388_v26  ;;  %v3476_v29 = vshll.u32 %v3475_v3, 23 }
 0x53b   :  { %vm5318_vm1 = vcmp.lt.s32.totalorder %v5317_v37, 0  ;;  %v3874_v20 = vadd.s32 %v3873_v47, %v3869_v54  ;;  %v3582_v11 = vand.u32 2147483647, %v3581_v51  ;;  %v3679_v46 = vshll.u32 %v8339_v24, %v8401_v5 }
 0x53c   :  { %v3685_v45 = vor.u32 4788187, %v3684_v17  ;;  %v3781_v49 = vsel %vm5318_vm1, 0, %v5317_v37  ;;  %vm3088_vm3 = vcmp.lt.s32.totalorder %v7891_v2, 0  ;;  %v3372_v53 = vshll.u32 %v3371_v41, 23 }
 0x53d   :  { %v3782_v44 = vsub.s32 32, %v3781_v49  ;;  %v3786_v62 = vsub.s32 4294967266, %v3781_v49  ;;  %v3875_v48 = vadd.s32 536870912, %v3874_v20  ;;  %v3472_v31 = vshrl.u32 %v3454_v27, %v3470_v0 }
 0x53e   :  { %v3584_v58 = vcvt.s32.f32 %v3577_v4  ;;  %v3681_v57 = vor.u32 %v3680_v15, %v3679_v46  ;;  %v3766_v19 = vadd.s32 %v8357_v10, %v8364_v56  ;;  %v3368_v16 = vshrl.u32 %v8378_v23, %v3366_v14 }
 0x53f   :  { %v3471_v42 = vshll.u32 %v8286_v52, %v8391_v25  ;;  %v3787_v24 = vadd.s32 127, %v3786_v62  ;;  %v8455_v5 = vshrl.u32 %v3875_v48, 30  ;;  %v3477_v38 = vor.u32 4788187, %v3476_v29 }
 0x540   :  { %v3585_v3 = vmul.f32 %v3584_v58, %v3582_v11  ;;  %v3686_v35 = vand.u32 2147483647, %v3685_v45  ;;  %v3784_v39 = vshrl.u32 %v3766_v19, %v3782_v44  ;;  %v3367_v27 = vshll.u32 %v8250_v21, %v8388_v26 }
 0x541   :  { %v3373_v18 = vor.u32 4788187, %v3372_v53  ;;  %v3788_v51 = vshll.u32 %v3787_v24, 23  ;;  %v3877_v17 = vshll.u32 %v8455_v5, 30  ;;  %v3170_v10 = vxor.u32 2147483648, %v8373_v34 }
 0x542   :  { %v3473_v56 = vor.u32 %v3472_v31, %v3471_v42  ;;  %v3688_v23 = vcvt.s32.f32 %v3681_v57  ;;  %v3783_v52 = vshll.u32 %v8417_v8, %v3781_v49  ;;  %v9774_v25 = vsub.s32 32, %v8314_v1 }
 0x543   :  { %v3369_v41 = vor.u32 %v3368_v16, %v3367_v27  ;;  %v3789_v37 = vor.u32 4788187, %v3788_v51  ;;  %v8465_v54 = vsub.s32 %v3874_v20, %v3877_v17  ;;  %v3478_v0 = vand.u32 2147483647, %v3477_v38 }
 0x544   :  { %v3264_v32 = vshrl.u32 %v8322_v28, %v9774_v25  ;;  %v3586_v21 = vxor.u32 2147483648, %v3585_v3  ;;  %v3689_v26 = vmul.f32 %v3688_v23, %v3686_v35  ;;  %v3785_v4 = vor.u32 %v3784_v39, %v3783_v52 }
 0x545   :  { %v3263_v15 = vshll.u32 %v8176_v12, %v8314_v1  ;;  %v3269_v47 = vor.u32 4788187, %v3268_v30  ;;  %v3374_v14 = vand.u32 2147483647, %v3373_v18  ;;  %v3880_v8 = vsub.s32 0, %v8465_v54 }
 0x546   :  { %v9775_v29 = vand.u32 2147483647, %v7891_v2  ;;  %v3171_v20 = vsel %vm3088_vm3, %v3170_v10, %v8373_v34  ;;  %v3480_v11 = vcvt.s32.f32 %v3473_v56  ;;  %v3790_v46 = vand.u32 2147483647, %v3789_v37 }
 0x547   :  { %v3265_v45 = vor.u32 %v3264_v32, %v3263_v15  ;;  %v3376_v12 = vcvt.s32.f32 %v3369_v41  ;;  %vm3504_vm11 = vcmp.lt.s32.totalorder %v8107_v6, 0  ;;  %v5320_v1 = vmin.u32 %v3880_v8, %v8465_v54 }
 0x548   :  { %vm8474_vm10 = vcmp.le.f32.partialorder %v9775_v29, 0.7853982  ;;  %v3481_v63 = vmul.f32 %v3480_v11, %v3478_v0  ;;  %v3587_v30 = vsel %vm3504_vm11, %v3586_v21, %v3585_v3  ;;  %v3690_v49 = vxor.u32 2147483648, %v3689_v26 }
 0x549   :  { %v3792_v53 = vcvt.s32.f32 %v3785_v4  ;;  %v3174_v44 = vsel %vm8474_vm10, %v7891_v2, %v3171_v20  ;;  %v3270_v62 = vand.u32 2147483647, %v3269_v47  ;;  %v3377_v34 = vmul.f32 %v3376_v12, %v3374_v14 }
 0x54a   :  { %v3882_v48 = vclz %v5320_v1  ;;  %vm3296_vm9 = vcmp.lt.s32.totalorder %v7902_v60, 0  ;;  %v9778_v31 = vand.u32 2147483647, %v8107_v6  ;;  %v3272_v19 = vcvt.s32.f32 %v3265_v45 }
 0x54b   :  { %v3793_v57 = vmul.f32 %v3792_v53, %v3790_v46  ;;  %vm3608_vm5 = vcmp.lt.s32.totalorder %v8160_v43, 0  ;;  %5616 = vcosq.f32 %v3174_v44  ;;  %vm3400_vm15 = vcmp.lt.s32.totalorder %v7956_v9, 0 }
 0x54c   :  { %vm8491_vm13 = vcmp.le.f32.partialorder %v9778_v31, 0.7853982  ;;  %v5321_v42 = vadd.s32 4294967294, %v3882_v48  ;;  %v3482_v24 = vxor.u32 2147483648, %v3481_v63  ;;  %v3691_v38 = vsel %vm3608_vm5, %v3690_v49, %v3689_v26 }
 0x54d   :  { %v3590_v16 = vsel %vm8491_vm13, %v8107_v6, %v3587_v30  ;;  %vm3192_vm14 = vcmp.lt.s32.totalorder %v7894_v36, 0  ;;  %v3273_v3 = vmul.f32 %v3272_v19, %v3270_v62  ;;  %v9781_v35 = vand.u32 2147483647, %v7902_v60 }
 0x54e   :  { %v3378_v27 = vxor.u32 2147483648, %v3377_v34  ;;  %vm3712_vm8 = vcmp.lt.s32.totalorder %v8270_v33, 0  ;;  %vm5322_vm4 = vcmp.lt.s32.totalorder %v5321_v42, 0  ;;  %5618 = vcosq.f32 %v3590_v16 }
 0x54f   :  { %vm8505_vm2 = vcmp.le.f32.partialorder %v9781_v35, 0.7853982  ;;  %v3794_v18 = vxor.u32 2147483648, %v3793_v57  ;;  %v3885_v51 = vsel %vm5322_vm4, 0, %v5321_v42  ;;  %v9784_v17 = vand.u32 2147483647, %v8160_v43 }
 0x550   :  { %v3870_v56 = vadd.s32 %v8423_v59, %v8430_v7  ;;  %v3886_v23 = vsub.s32 32, %v3885_v51  ;;  %v3890_v52 = vsub.s32 4294967266, %v3885_v51  ;;  %v3483_v32 = vsel %vm3400_vm15, %v3482_v24, %v3481_v63 }
 0x551   :  { %vm8512_vm6 = vcmp.le.f32.partialorder %v9784_v17, 0.7853982  ;;  %5620 = vsinq.f32 %v3590_v16  ;;  %v3796_v41 = vsub.s32 4, %v8412_v13  ;;  %v3588_v37 = vsub.s32 4, %v8273_v61 }
 0x552   :  { %v3694_v25 = vsel %vm8512_vm6, %v8160_v43, %v3691_v38  ;;  %v3887_v0 = vshll.u32 %v8465_v54, %v3885_v51  ;;  %v3888_v21 = vshrl.u32 %v3870_v56, %v3886_v23  ;;  %v3891_v26 = vadd.s32 127, %v3890_v52 }
 0x553   :  { %v3692_v59 = vsub.s32 4, %v8328_v55  ;;  %v3274_v7 = vxor.u32 2147483648, %v3273_v3  ;;  %v3379_v4 = vsel %vm3296_vm9, %v3378_v27, %v3377_v34  ;;  %v3795_v15 = vsel %vm3712_vm8, %v3794_v18, %v3793_v57 }
 0x554   :  { %5622 = vcosq.f32 %v3694_v25  ;;  %v3889_v47 = vor.u32 %v3888_v21, %v3887_v0  ;;  %v3892_v14 = vshll.u32 %v3891_v26, 23  ;;  %v9787_v8 = vand.u32 2147483647, %v7956_v9  ;;  %v9800_v0 = vld [vmem:[#allocation12_spill] sm:$0xff] }
 0x555   :  { %5624 = vsinq.f32 %v3694_v25  ;;  %v9790_v54 = vand.u32 2147483647, %v8270_v33  ;;  %v3797_v11 = vsel %vm3712_vm8, %v3796_v41, %v8412_v13  ;;  %v3693_v1 = vsel %vm3608_vm5, %v3692_v59, %v8328_v55  ;;  %v9799_v25 = vld [vmem:[#allocation11_spill] sm:$0xff] }
 0x556   :  { %vm8533_vm12 = vcmp.le.f32.partialorder %v9787_v8, 0.7853982  ;;  %5626 = vsinq.f32 %v3174_v44  ;;  %v3893_v12 = vor.u32 4788187, %v3892_v14  ;;  %v3589_v63 = vsel %vm3504_vm11, %v3588_v37, %v8273_v61 }
 0x557   :  { %vm8539_vm0 = vcmp.le.f32.partialorder %v9790_v54, 0.7853982  ;;  %v3486_v46 = vsel %vm8533_vm12, %v7956_v9, %v3483_v32  ;;  %v3275_v13 = vsel %vm3192_vm14, %v3274_v7, %v3273_v3  ;;  %v3382_v30 = vsel %vm8505_vm2, %v7902_v60, %v3379_v4 }
 0x558   :  { %v3798_v45 = vsel %vm8539_vm0, %v8270_v33, %v3795_v15  ;;  %vm3816_vm1 = vcmp.lt.s32.totalorder %v8279_v22, 0  ;;  %v3900_v49 = vsub.s32 4, %v8455_v5  ;;  %v3894_v53 = vand.u32 2147483647, %v3893_v12  ;;  %v8572_v48 = vpop.eup %5616 }
 0x559   :  { %v3896_v44 = vcvt.s32.f32 %v3889_v47  ;;  %v3799_v55 = vsel %vm8539_vm0, 0, %v3797_v11  ;;  %5628 = vcosq.f32 %v3486_v46  ;;  %v3695_v61 = vsel %vm8512_vm6, 0, %v3693_v1 }
 0x55a   :  { %5630 = vcosq.f32 %v3798_v45  ;;  %v3591_v62 = vsel %vm8491_vm13, 0, %v3589_v63  ;;  %v3484_v34 = vsub.s32 4, %v8254_v40  ;;  %v3380_v57 = vsub.s32 4, %v8210_v50 }
 0x55b   :  { %5632 = vsinq.f32 %v3798_v45  ;;  %v3897_v31 = vmul.f32 %v3896_v44, %v3894_v53  ;;  %v9793_v19 = vand.u32 2147483647, %v7894_v36  ;;  %v3901_v58 = vsel %vm3816_vm1, %v3900_v49, %v8455_v5  ;;  %v5619_v24 = vpop.eup %5618 }
 0x55c   :  { %5634 = vsinq.f32 %v3382_v30  ;;  %v9796_v3 = vand.u32 2147483647, %v8279_v22  ;;  %v3803_v27 = vadd.s32 3, %v3799_v55  ;;  %v3699_v18 = vadd.s32 3, %v3695_v61 }
 0x55d   :  { %vm8577_vm11 = vcmp.le.f32.partialorder %v9793_v19, 0.7853982  ;;  %5636 = vcosq.f32 %v3382_v30  ;;  %v3898_v38 = vxor.u32 2147483648, %v3897_v31  ;;  %v3595_v51 = vadd.s32 3, %v3591_v62 }
 0x55e   :  { %v3278_v42 = vsel %vm8577_vm11, %v7894_v36, %v3275_v13  ;;  %vm8589_vm13 = vcmp.le.f32.partialorder %v9796_v3, 0.7853982  ;;  %v3485_v5 = vsel %vm3400_vm15, %v3484_v34, %v8254_v40  ;;  %5638 = vsinq.f32 %v3486_v46  ;;  %v5621_v17 = vpop.eup %5620 }
 0x55f   :  { %v3899_v10 = vsel %vm3816_vm1, %v3898_v38, %v3897_v31  ;;  %v3903_v56 = vsel %vm8589_vm13, 0, %v3901_v58  ;;  %v3381_v23 = vsel %vm3296_vm9, %v3380_v57, %v8210_v50  ;;  %5640 = vcosq.f32 %v3278_v42 }
 0x560   :  { %v3902_v52 = vsel %vm8589_vm13, %v8279_v22, %v3899_v10  ;;  %v3276_v32 = vsub.s32 4, %v9799_v25  ;;  %5642 = vsinq.f32 %v3278_v42  ;;  %v8607_v41 = vand.u32 3, %v3803_v27 }
 0x561   :  { %v5623_v40 = vpop.eup %5622  ;;  %5644 = vcosq.f32 %v3902_v52  ;;  %v3487_v37 = vsel %vm8533_vm12, 0, %v3485_v5  ;;  %v3172_v21 = vsub.s32 4, %v9800_v0  ;;  %v3907_v50 = vadd.s32 3, %v3903_v56 }
 0x562   :  { %v5625_v26 = vpop.eup %5624  ;;  %5646 = vsinq.f32 %v3902_v52  ;;  %v3596_v59 = vand.u32 3, %v3595_v51  ;;  %v3383_v7 = vsel %vm8505_vm2, 0, %v3381_v23  ;;  %v3700_v15 = vand.u32 3, %v3699_v18 }
 0x563   :  { %v8614_v4 = vpop.eup %5626  ;;  %v3599_v47 = vxor.u32 2147483648, %v5621_v17  ;;  %v3602_v14 = vxor.u32 2147483648, %v5619_v24  ;;  %v3491_v8 = vadd.s32 3, %v3487_v37  ;;  %v3277_v29 = vsel %vm3192_vm14, %v3276_v32, %v9799_v25 }
 0x564   :  { %v3703_v54 = vxor.u32 2147483648, %v5625_v26  ;;  %v3706_v20 = vxor.u32 2147483648, %v5623_v40  ;;  %v3387_v11 = vadd.s32 3, %v3383_v7  ;;  %v3173_v46 = vsel %vm3088_vm3, %v3172_v21, %v9800_v0 }
 0x565   :  { %v8624_v39 = vand.u32 3, %v3907_v50  ;;  %vm3806_vm9 = vcmp.eq.s32.totalorder %v8607_v41, 0  ;;  %vm3809_vm5 = vcmp.eq.s32.totalorder %v8607_v41, 2  ;;  %vm3598_vm15 = vcmp.eq.s32.totalorder %v3596_v59, 0 }
 0x566   :  { %v8622_v45 = vpop.eup %5628  ;;  %vm3601_vm2 = vcmp.eq.s32.totalorder %v3596_v59, 2  ;;  %vm3701_vm8 = vcmp.lt.s32.totalorder %v3700_v15, 2  ;;  %v3600_v1 = vsel %vm3598_vm15, %v5619_v24, %v3599_v47  ;;  %v3279_v13 = vsel %vm8577_vm11, 0, %v3277_v29 }
 0x567   :  { %v5631_v12 = vpop.eup %5630  ;;  %v3603_v63 = vsel %vm3601_vm2, %v3602_v14, %v5621_v17  ;;  %vm3702_vm14 = vcmp.eq.s32.totalorder %v3700_v15, 0  ;;  %vm3705_vm3 = vcmp.eq.s32.totalorder %v3700_v15, 2  ;;  %v8630_v49 = vand.u32 3, %v3491_v8 }
 0x568   :  { %v5633_v30 = vpop.eup %5632  ;;  %v3175_v53 = vsel %vm8474_vm10, 0, %v3173_v46  ;;  %vm3805_vm4 = vcmp.lt.s32.totalorder %v8607_v41, 2  ;;  %v3704_v55 = vsel %vm3702_vm14, %v5623_v40, %v3703_v54  ;;  %v3707_v61 = vsel %vm3705_vm3, %v3706_v20, %v5625_v26 }
 0x569   :  { %v5635_v44 = vpop.eup %5634  ;;  %vm3597_vm6 = vcmp.lt.s32.totalorder %v3596_v59, 2  ;;  %v8635_v62 = vand.u32 3, %v3387_v11  ;;  %vm3909_vm12 = vcmp.lt.s32.totalorder %v8624_v39, 2  ;;  %v3498_v57 = vxor.u32 2147483648, %v8622_v45 }
 0x56a   :  { %v5637_v34 = vpop.eup %5636  ;;  %v3604_v31 = vsel %vm3597_vm6, %v3600_v1, %v3603_v63  ;;  %v3283_v19 = vadd.s32 3, %v3279_v13  ;;  %vm3906_vm0 = vweird.f32 %v8279_v22  ;;  %vm3910_vm10 = vcmp.eq.s32.totalorder %v8624_v39, 0  ;;  %v5696_v1 = vld [vmem:[#allocation5 + $0x60] sm:$0xff]  ;;  %v5697_v63 = vld [vmem:[#allocation5 + $0x68] sm:$0xff] }
 0x56b   :  { %v5639_v16 = vpop.eup %5638  ;;  %v3807_v28 = vxor.u32 2147483648, %v5633_v30  ;;  %v3810_v58 = vxor.u32 2147483648, %v5631_v12  ;;  %v3179_v42 = vadd.s32 3, %v3175_v53  ;;  %vm3913_vm1 = vcmp.eq.s32.totalorder %v8624_v39, 2 }
 0x56c   :  { %v5641_v24 = vpop.eup %5640  ;;  %vm3802_vm11 = vweird.f32 %v8270_v33  ;;  %v3708_v38 = vsel %vm3701_vm8, %v3704_v55, %v3707_v61  ;;  %vm3493_vm13 = vcmp.lt.s32.totalorder %v8630_v49, 2  ;;  %v3391_v3 = vxor.u32 2147483648, %v5635_v44 }
 0x56d   :  { %v5643_v35 = vpop.eup %5642  ;;  %vm3698_vm15 = vweird.f32 %v8160_v43  ;;  %vm3494_vm2 = vcmp.eq.s32.totalorder %v8630_v49, 0  ;;  %vm3497_vm14 = vcmp.eq.s32.totalorder %v8630_v49, 2  ;;  %vm3389_vm3 = vcmp.lt.s32.totalorder %v8635_v62, 2 }
 0x56e   :  { %v3394_v27 = vxor.u32 2147483648, %v5637_v34  ;;  %v5645_v18 = vpop.eup %5644  ;;  %v3495_v51 = vxor.u32 2147483648, %v5639_v16  ;;  %v3499_v5 = vsel %vm3497_vm14, %v3498_v57, %v5639_v16  ;;  %vm3390_vm6 = vcmp.eq.s32.totalorder %v8635_v62, 0 }
 0x56f   :  { %v3284_v17 = vand.u32 3, %v3283_v19  ;;  %v5647_v10 = vpop.eup %5646  ;;  %v3914_v56 = vxor.u32 2147483648, %v5645_v18  ;;  %v3808_v23 = vsel %vm3806_vm9, %v5631_v12, %v3807_v28  ;;  %v3811_v52 = vsel %vm3809_vm5, %v3810_v58, %v5633_v30 }
 0x570   :  { %v3180_v25 = vand.u32 3, %v3179_v42  ;;  %v3911_v32 = vxor.u32 2147483648, %v5647_v10  ;;  %v3392_v40 = vsel %vm3390_vm6, %v5637_v34, %v3391_v3  ;;  %v3287_v37 = vxor.u32 2147483648, %v5643_v35 }
 0x571   :  { %v3290_v0 = vxor.u32 2147483648, %v5641_v24  ;;  %v3915_v21 = vsel %vm3913_vm1, %v3914_v56, %v5647_v10  ;;  %vm3393_vm8 = vcmp.eq.s32.totalorder %v8635_v62, 2  ;;  %v3183_v26 = vxor.u32 2147483648, %v8614_v4 }
 0x572   :  { %v3186_v50 = vxor.u32 2147483648, %v8572_v48  ;;  %v3912_v59 = vsel %vm3910_vm10, %v5645_v18, %v3911_v32  ;;  %v3812_v7 = vsel %vm3805_vm4, %v3808_v23, %v3811_v52  ;;  %v3496_v15 = vsel %vm3494_vm2, %v8622_v45, %v3495_v51 }
 0x573   :  { %v3395_v47 = vsel %vm3393_vm8, %v3394_v27, %v5635_v44  ;;  %v3916_v14 = vsel %vm3909_vm12, %v3912_v59, %v3915_v21  ;;  %vm3286_vm9 = vcmp.eq.s32.totalorder %v3284_v17, 0  ;;  %vm3289_vm5 = vcmp.eq.s32.totalorder %v3284_v17, 2 }
 0x574   :  { %vm3182_vm1 = vcmp.eq.s32.totalorder %v3180_v25, 0  ;;  %v3917_v8 = vsel %vm3906_vm0, nan, %v3916_v14  ;;  %v3288_v29 = vsel %vm3286_vm9, %v5641_v24, %v3287_v37  ;;  %v3291_v54 = vsel %vm3289_vm5, %v3290_v0, %v5643_v35 }
 0x575   :  { %vm3185_vm10 = vcmp.eq.s32.totalorder %v3180_v25, 2  ;;  %3974 = vmatprep.subr.mxu1 %v3917_v8  ;;  %v3813_v41 = vsel %vm3802_vm11, nan, %v3812_v7  ;;  %v3500_v20 = vsel %vm3493_vm13, %v3496_v15, %v3499_v5  ;;  %v3184_v11 = vsel %vm3182_vm1, %v8572_v48, %v3183_v26 }
 0x576   :  { %v3187_v46 = vsel %vm3185_vm10, %v3186_v50, %v8614_v4  ;;  %3975 = vmatpush1.msra.mxu1 %v3813_v41  ;;  %v3709_v45 = vsel %vm3698_vm15, nan, %v3708_v38  ;;  %vm3594_vm4 = vweird.f32 %v8107_v6  ;;  %v3396_v22 = vsel %vm3389_vm3, %v3392_v40, %v3395_v47 }
 0x577   :  { %vm3285_vm12 = vcmp.lt.s32.totalorder %v3284_v17, 2  ;;  %3976 = vmatprep.subr.mxu1 %v3709_v45  ;;  %v3605_v33 = vsel %vm3594_vm4, nan, %v3604_v31  ;;  %vm3490_vm0 = vweird.f32 %v7956_v9  ;;  %vm3181_vm11 = vcmp.lt.s32.totalorder %v3180_v25, 2  ;;  %v8700_v31 = vpop.permute.xlu0 %3939 }
 0x578   :  { %v3292_v39 = vsel %vm3285_vm12, %v3288_v29, %v3291_v54  ;;  %3977 = vmatpush1.msra.mxu1 %v3605_v33  ;;  %v3501_v48 = vsel %vm3490_vm0, nan, %v3500_v20  ;;  %vm3386_vm13 = vweird.f32 %v7902_v60  ;;  %v3188_v4 = vsel %vm3181_vm11, %v3184_v11, %v3187_v46  ;;  %v5698_v60 = vld [vmem:[#allocation5 + $0x70] sm:$0xff] }
 0x579   :  { %3978 = vmatprep.subr.mxu1 %v3501_v48  ;;  %v3397_v43 = vsel %vm3386_vm13, nan, %v3396_v22  ;;  %vm3282_vm15 = vweird.f32 %v7894_v36  ;;  %vm3178_vm2 = vweird.f32 %v7891_v2  ;;  %v9801_v9 = vmov 0.0   ;;  %v5699_v36 = vld [vmem:[#allocation5 + $0x78] sm:$0xff]  ;;  %v8692_v2 = vpop.permute.xlu1 %3934 }
 0x57a   :  { %3979 = vmatpush1.msra.mxu1 %v3397_v43  ;;  %v3293_v6 = vsel %vm3282_vm15, nan, %v3292_v39  ;;  %v3189_v12 = vsel %vm3178_vm2, nan, %v3188_v4  ;;  %v9802_v5 = vmov 683565275   ;;  %v9803_v10 = vmov 2475754826  }
 0x57b   :  { %3980 = vmatprep.subr.mxu1 %v3293_v6  ;;  %v3930_v3 = vpop.permute.xlu0 %3929  ;;  %v9804_v52 = vmov 2131351028   ;;  %v9805_v40 = vmov 2102212464   ;;  %v9806_v21 = vmov 920167782  }
 0x57c   :  { %3981 = vmatpush1.msra.mxu1 %v3189_v12  ;;  %v9807_v59 = vmov 1326507024  }
 0x57d   :  { %5323 = vmatmul.mubr.msk.f32.vlgmr.msra.gmra.mxu1 %vm2034_vm7, %v5696_v1  ;;  %v3925_v13 = vpop.permute.xlu1 %3924 }
 0x57e   :  { %4020 = vmatprep.mubr.f32.mxu1 %v9801_v9 }
 0x581   :  { %5324 = vmatmul.mubr.msk.f32.gmra.mxu1 %vm2034_vm7, %v5697_v63 }
 0x582   :  { %4026 = vmatprep.mubr.f32.mxu1 %v9801_v9 }
 0x585   :  { %5325 = vmatmul.mubr.msk.f32.gmra.mxu1 %vm2034_vm7, %v5698_v60 }
 0x586   :  { %4032 = vmatprep.mubr.f32.mxu1 %v9801_v9 }
 0x589   :  { %5326 = vmatmul.mubr.msk.f32.gmra.mxu1 %vm2034_vm7, %v5699_v36 }
 0x63d   :  { %v4016_v30 = vpop.f32.mrf.mxu1 }
 0x63e   :  { %v8694_v49 = vadd.f32 %v4016_v30, %v3925_v13 }
 0x63f   :  { %v4018_v53 = vpop.f32.mrf.mxu1 }
 0x640   :  { %v4042_v44 = vand.u32 2139095040, %v8694_v49  ;;  %v8697_v55 = vadd.f32 %v4018_v53, %v3925_v13  ;;  %v9663_v28 = vand.u32 2147483647, %v8694_v49 }
 0x641   :  { %v4022_v24 = vpop.f32.mrf.mxu1 }
 0x642   :  { %v4043_v61 = vshrl.u32 %v4042_v44, 23  ;;  %v4146_v62 = vand.u32 2139095040, %v8697_v55  ;;  %v4046_v35 = vand.u32 8388607, %v9663_v28  ;;  %v8705_v18 = vadd.f32 %v4022_v24, %v3930_v3 }
 0x643   :  { %v4024_v13 = vpop.f32.mrf.mxu1  ;;  %v9658_v30 = vand.u32 2147483647, %v8697_v55 }
 0x644   :  { %v5327_v34 = vadd.s32 4294967169, %v4043_v61  ;;  %v4147_v57 = vshrl.u32 %v4146_v62, 23  ;;  %v4047_v29 = vor.u32 8388608, %v4046_v35  ;;  %v4250_v11 = vand.u32 2139095040, %v8705_v18 }
 0x646   :  { %v4049_v19 = vadd.s32 1, %v5327_v34  ;;  %v5331_v16 = vadd.s32 4294967169, %v4147_v57  ;;  %v4087_v6 = vshll.u32 %v4047_v29, 8  ;;  %v4251_v12 = vshrl.u32 %v4250_v11, 23 }
 0x648   :  { %vm4050_vm14 = vcmp.gt.s32.totalorder %v4049_v19, 0  ;;  %v4153_v42 = vadd.s32 1, %v5331_v16  ;;  %v5335_v53 = vadd.s32 4294967169, %v4251_v12 }
 0x649   :  { %v4051_v58 = vsel %vm4050_vm14, %v4049_v19, 0  ;;  %v8759_v19 = vadd.f32 %v4024_v13, %v3930_v3 }
 0x64a   :  { %v4053_v38 = vand.u32 31, %v4051_v58  ;;  %v8707_v51 = vshrl.u32 %v4051_v58, 5  ;;  %vm4154_vm3 = vcmp.gt.s32.totalorder %v4153_v42, 0 }
 0x64b   :  { %v4155_v8 = vsel %vm4154_vm3, %v4153_v42, 0 }
 0x64c   :  { %v4054_v27 = vsub.s32 32, %v4053_v38  ;;  %v4056_v17 = vshll.u32 %v9802_v5, %v4053_v38  ;;  %v4059_v56 = vshll.u32 %v9803_v10, %v4053_v38  ;;  %v4062_v32 = vshll.u32 %v9804_v52, %v4053_v38 }
 0x64d   :  { %v4065_v0 = vshll.u32 %v9805_v40, %v4053_v38  ;;  %v4068_v50 = vshll.u32 %v9806_v21, %v4053_v38  ;;  %vm4071_vm6 = vcmp.lt.s32.totalorder %v8707_v51, 1  ;;  %vm4073_vm8 = vcmp.lt.s32.totalorder %v8707_v51, 3 }
 0x64e   :  { %v4057_v23 = vshrl.u32 %v9803_v10, %v4054_v27  ;;  %v4060_v25 = vshrl.u32 %v9804_v52, %v4054_v27  ;;  %v4063_v37 = vshrl.u32 %v9805_v40, %v4054_v27  ;;  %v4066_v26 = vshrl.u32 %v9806_v21, %v4054_v27 }
 0x64f   :  { %v4069_v7 = vshrl.u32 %v9807_v59, %v4054_v27  ;;  %vm4074_vm9 = vcmp.lt.s32.totalorder %v8707_v51, 4  ;;  %v4157_v33 = vand.u32 31, %v4155_v8  ;;  %vm4072_vm5 = vcmp.lt.s32.totalorder %v8707_v51, 2 }
 0x650   :  { %v4058_v15 = vor.u32 %v4057_v23, %v4056_v17  ;;  %v4061_v47 = vor.u32 %v4060_v25, %v4059_v56  ;;  %v4064_v14 = vor.u32 %v4063_v37, %v4062_v32  ;;  %v4067_v54 = vor.u32 %v4066_v26, %v4065_v0 }
 0x651   :  { %v4070_v41 = vor.u32 %v4069_v7, %v4068_v50  ;;  %v8740_v1 = vsub.s32 32, %v4157_v33  ;;  %v4055_v44 = vshrl.u32 %v9802_v5, %v4054_v27  ;;  %v8757_v57 = vshrl.u32 %v4155_v8, 5 }
 0x652   :  { %v4079_v20 = vsel %vm4071_vm6, %v4058_v15, %v4061_v47  ;;  %v4080_v46 = vsel %vm4074_vm9, %v4067_v54, 920167782  ;;  %v4083_v45 = vsel %vm4071_vm6, %v4061_v47, %v4064_v14  ;;  %v4076_v61 = vsel %vm4074_vm9, %v4064_v14, 2102212464 }
 0x653   :  { %v4084_v22 = vsel %vm4074_vm9, %v4070_v41, 1326507024  ;;  %v4081_v39 = vsel %vm4073_vm8, %v4064_v14, %v4080_v46  ;;  %v4170_v62 = vshrl.u32 %v9806_v21, %v8740_v1  ;;  %v4173_v34 = vshrl.u32 %v9807_v59, %v8740_v1 }
 0x654   :  { %v4085_v48 = vsel %vm4073_vm8, %v4067_v54, %v4084_v22  ;;  %v4082_v4 = vsel %vm4072_vm5, %v4079_v20, %v4081_v39  ;;  %v4075_v16 = vsel %vm4071_vm6, %v4055_v44, %v4058_v15  ;;  %v4161_v58 = vshrl.u32 %v9803_v10, %v8740_v1 }
 0x655   :  { %v4086_v43 = vsel %vm4072_vm5, %v4083_v45, %v4085_v48  ;;  %v8742_v9 = vmul.u32.u64.low %v4087_v6, %v4082_v4  ;;  %v8743_v63 = vmul.u32.u64.high %v4087_v6, %v4082_v4, %v8742_v9  ;;  %v4169_v42 = vshll.u32 %v9805_v40, %v4157_v33 }
 0x656   :  { %v8746_v60 = vmul.u32.u64.low %v4087_v6, %v4086_v43  ;;  %v8747_v36 = vmul.u32.u64.high %v4087_v6, %v4086_v43, %v8746_v60  ;;  %v4172_v24 = vshll.u32 %v9806_v21, %v4157_v33  ;;  %v4077_v38 = vsel %vm4073_vm8, %v4061_v47, %v4076_v61 }
 0x657   :  { %v4164_v35 = vshrl.u32 %v9804_v52, %v8740_v1  ;;  %v4167_v3 = vshrl.u32 %v9805_v40, %v8740_v1  ;;  %v4257_v27 = vadd.s32 1, %v5335_v53  ;;  %v4150_v17 = vand.u32 8388607, %v9658_v30 }
 0x658   :  { %v4160_v56 = vshll.u32 %v9802_v5, %v4157_v33  ;;  %v4171_v23 = vor.u32 %v4170_v62, %v4169_v42  ;;  %v4174_v25 = vor.u32 %v4173_v34, %v4172_v24  ;;  %v4097_v32 = vadd.s32 1, %v8743_v63 }
 0x659   :  { %v4163_v37 = vshll.u32 %v9803_v10, %v4157_v33  ;;  %v4166_v0 = vshll.u32 %v9804_v52, %v4157_v33  ;;  %v4354_v26 = vand.u32 2139095040, %v8759_v19  ;;  %v4078_v50 = vsel %vm4072_vm5, %v4075_v16, %v4077_v38 }
 0x65a   :  { %vm4096_vm1 = vc.u32 %v8747_v36, %v8742_v9  ;;  %v4162_v7 = vor.u32 %v4161_v58, %v4160_v56  ;;  %vm4258_vm10 = vcmp.gt.s32.totalorder %v4257_v27, 0  ;;  %vm4178_vm4 = vcmp.lt.s32.totalorder %v8757_v57, 4 }
 0x65b   :  { %v4165_v15 = vor.u32 %v4164_v35, %v4163_v37  ;;  %v4168_v47 = vor.u32 %v4167_v3, %v4166_v0  ;;  %v4259_v14 = vsel %vm4258_vm10, %v4257_v27, 0  ;;  %v4184_v8 = vsel %vm4178_vm4, %v4171_v23, 920167782 }
 0x65c   :  { %v4188_v29 = vsel %vm4178_vm4, %v4174_v25, 1326507024  ;;  %v4261_v54 = vand.u32 31, %v4259_v14  ;;  %v4098_v51 = vsel %vm4096_vm1, %v4097_v32, %v8743_v63  ;;  %v4151_v41 = vor.u32 8388608, %v4150_v17 }
 0x65d   :  { %v4094_v20 = vmul.u32 %v4087_v6, %v4078_v50  ;;  %vm4175_vm12 = vcmp.lt.s32.totalorder %v8757_v57, 1  ;;  %vm4177_vm0 = vcmp.lt.s32.totalorder %v8757_v57, 3  ;;  %v4355_v11 = vshrl.u32 %v4354_v26, 23 }
 0x65e   :  { %v4183_v46 = vsel %vm4175_vm12, %v4162_v7, %v4165_v15  ;;  %v4185_v45 = vsel %vm4177_vm0, %v4168_v47, %v4184_v8  ;;  %v4187_v22 = vsel %vm4175_vm12, %v4165_v15, %v4168_v47  ;;  %v4189_v33 = vsel %vm4177_vm0, %v4171_v23, %v4188_v29 }
 0x65f   :  { %v4099_v39 = vadd.s32 %v4098_v51, %v4094_v20  ;;  %v8800_v48 = vsub.s32 32, %v4261_v54  ;;  %vm4176_vm11 = vcmp.lt.s32.totalorder %v8757_v57, 2  ;;  %v4191_v6 = vshll.u32 %v4151_v41, 8 }
 0x660   :  { %v4186_v4 = vsel %vm4176_vm11, %v4183_v46, %v4185_v45  ;;  %v4190_v43 = vsel %vm4176_vm11, %v4187_v22, %v4189_v33  ;;  %v5339_v12 = vadd.s32 4294967169, %v4355_v11  ;;  %v9661_v60 = vand.u32 2147483647, %v8705_v18 }
 0x661   :  { %v4100_v63 = vadd.s32 536870912, %v4099_v39  ;;  %v4274_v13 = vshrl.u32 %v9806_v21, %v8800_v48  ;;  %v8810_v53 = vmul.u32.u64.low %v4191_v6, %v4190_v43  ;;  %v8811_v44 = vmul.u32.u64.high %v4191_v6, %v4190_v43, %v8810_v53 }
 0x662   :  { %v8813_v61 = vmul.u32.u64.low %v4191_v6, %v4186_v4  ;;  %v8814_v62 = vmul.u32.u64.high %v4191_v6, %v4186_v4, %v8813_v61  ;;  %v4159_v34 = vshrl.u32 %v9802_v5, %v8740_v1  ;;  %v4265_v16 = vshrl.u32 %v9803_v10, %v8800_v48 }
 0x663   :  { %v4268_v58 = vshrl.u32 %v9804_v52, %v8800_v48  ;;  %v4273_v42 = vshll.u32 %v9805_v40, %v4261_v54  ;;  %v8824_v24 = vshrl.u32 %v4259_v14, 5  ;;  %v4271_v38 = vshrl.u32 %v9805_v40, %v8800_v48 }
 0x664   :  { %v4277_v35 = vshrl.u32 %v9807_v59, %v8800_v48  ;;  %v4361_v3 = vadd.s32 1, %v5339_v12  ;;  %v8830_v27 = vshrl.u32 %v4100_v63, 30  ;;  %v4264_v1 = vshll.u32 %v9802_v5, %v4261_v54 }
 0x665   :  { %v4267_v17 = vshll.u32 %v9803_v10, %v4261_v54  ;;  %v4275_v56 = vor.u32 %v4274_v13, %v4273_v42  ;;  %v4180_v23 = vsel %vm4178_vm4, %v4168_v47, 2102212464  ;;  %v4270_v25 = vshll.u32 %v9804_v52, %v4261_v54 }
 0x666   :  { %9808 = vst [vmem:[#allocation13_spill] sm:$0xff] %v8830_v27  ;;  %v4276_v32 = vshll.u32 %v9806_v21, %v4261_v54  ;;  %v4179_v37 = vsel %vm4175_vm12, %v4159_v34, %v4162_v7  ;;  %v4254_v0 = vand.u32 8388607, %v9661_v60  ;;  %v8842_v26 = vor.u32 %v4265_v16, %v4264_v1 }
 0x667   :  { %v8844_v50 = vor.u32 %v4268_v58, %v4267_v17  ;;  %v4272_v14 = vor.u32 %v4271_v38, %v4270_v25  ;;  %vm4282_vm13 = vcmp.lt.s32.totalorder %v8824_v24, 4  ;;  %vm4362_vm15 = vcmp.gt.s32.totalorder %v4361_v3, 0 }
 0x668   :  { %v4278_v8 = vor.u32 %v4277_v35, %v4276_v32  ;;  %v4102_v47 = vshll.u32 %v8830_v27, 30  ;;  %v4181_v29 = vsel %vm4177_vm0, %v4165_v15, %v4180_v23  ;;  %v4288_v7 = vsel %vm4282_vm13, %v4275_v56, 920167782 }
 0x669   :  { %v4363_v54 = vsel %vm4362_vm15, %v4361_v3, 0  ;;  %v4201_v51 = vadd.s32 1, %v8814_v62  ;;  %vm4200_vm2 = vc.u32 %v8811_v44, %v8813_v61  ;;  %v4255_v20 = vor.u32 8388608, %v4254_v0 }
 0x66a   :  { %v4365_v41 = vand.u32 31, %v4363_v54  ;;  %vm4279_vm14 = vcmp.lt.s32.totalorder %v8824_v24, 1  ;;  %vm4281_vm3 = vcmp.lt.s32.totalorder %v8824_v24, 3  ;;  %v4182_v11 = vsel %vm4176_vm11, %v4179_v37, %v4181_v29 }
 0x66b   :  { %v4287_v15 = vsel %vm4279_vm14, %v8842_v26, %v8844_v50  ;;  %v4289_v46 = vsel %vm4281_vm3, %v4272_v14, %v4288_v7  ;;  %v4292_v45 = vsel %vm4282_vm13, %v4278_v8, 1326507024  ;;  %v8867_v22 = vsub.s32 %v4099_v39, %v4102_v47 }
 0x66c   :  { %v9659_v33 = vand.u32 2147483647, %v8759_v19  ;;  %v4202_v4 = vsel %vm4200_vm2, %v4201_v51, %v8814_v62  ;;  %vm4280_vm6 = vcmp.lt.s32.totalorder %v8824_v24, 2  ;;  %v8872_v57 = vsub.s32 32, %v4365_v41 }
 0x66d   :  { %v4198_v43 = vmul.u32 %v4191_v6, %v4182_v11  ;;  %v4290_v12 = vsel %vm4280_vm6, %v4287_v15, %v4289_v46  ;;  %v4291_v63 = vsel %vm4279_vm14, %v8844_v50, %v4272_v14  ;;  %v4293_v39 = vsel %vm4281_vm3, %v4275_v56, %v4292_v45  ;;  %v4028_v6 = vpop.f32.mrf.mxu1 }
 0x66e   :  { %v8881_v13 = vshll.u32 %v4255_v20, 8  ;;  %v4105_v53 = vsub.s32 0, %v8867_v22  ;;  %v4358_v34 = vand.u32 8388607, %v9659_v33  ;;  %v4294_v16 = vsel %vm4280_vm6, %v4291_v63, %v4293_v39 }
 0x66f   :  { %v8884_v62 = vadd.s32 %v4202_v4, %v4198_v43  ;;  %v4369_v38 = vshrl.u32 %v9803_v10, %v8872_v57  ;;  %v4372_v35 = vshrl.u32 %v9804_v52, %v8872_v57  ;;  %v4375_v3 = vshrl.u32 %v9805_v40, %v8872_v57 }
 0x670   :  { %v8891_v58 = vmul.u32.u64.low %v8881_v13, %v4290_v12  ;;  %v8892_v42 = vmul.u32.u64.high %v8881_v13, %v4290_v12, %v8891_v58  ;;  %v4377_v1 = vshll.u32 %v9805_v40, %v4365_v41  ;;  %v4378_v17 = vshrl.u32 %v9806_v21, %v8872_v57 }
 0x671   :  { %v8904_v56 = vshrl.u32 %v4363_v54, 5  ;;  %v4368_v23 = vshll.u32 %v9802_v5, %v4365_v41  ;;  %v4381_v25 = vshrl.u32 %v9807_v59, %v8872_v57  ;;  %v8910_v32 = vadd.f32 %v4028_v6, %v8692_v2 }
 0x672   :  { %v4371_v37 = vshll.u32 %v9803_v10, %v4365_v41  ;;  %v4374_v0 = vshll.u32 %v9804_v52, %v4365_v41  ;;  %v4379_v8 = vor.u32 %v4378_v17, %v4377_v1  ;;  %v4380_v47 = vshll.u32 %v9806_v21, %v4365_v41  ;;  %v4030_v1 = vpop.f32.mrf.mxu1 }
 0x673   :  { %v5328_v29 = vmin.u32 %v4105_v53, %v8867_v22  ;;  %v4204_v7 = vadd.s32 536870912, %v8884_v62  ;;  %v8918_v54 = vmul.u32.u64.low %v8881_v13, %v4294_v16  ;;  %v8919_v51 = vmul.u32.u64.high %v8881_v13, %v4294_v16, %v8918_v54 }
 0x674   :  { %v4370_v20 = vor.u32 %v4369_v38, %v4368_v23  ;;  %v4373_v11 = vor.u32 %v4372_v35, %v4371_v37  ;;  %v4376_v15 = vor.u32 %v4375_v3, %v4374_v0  ;;  %v4382_v46 = vor.u32 %v4381_v25, %v4380_v47 }
 0x675   :  { %vm4386_vm8 = vcmp.lt.s32.totalorder %v8904_v56, 4  ;;  %v4284_v45 = vsel %vm4282_vm13, %v4272_v14, 2102212464  ;;  %v4359_v4 = vor.u32 8388608, %v4358_v34  ;;  %v4458_v43 = vand.u32 2139095040, %v8910_v32 }
 0x676   :  { %v4392_v41 = vsel %vm4386_vm8, %v4379_v8, 920167782  ;;  %v4107_v12 = vclz %v5328_v29  ;;  %v4263_v63 = vshrl.u32 %v9802_v5, %v8800_v48  ;;  %vm4383_vm9 = vcmp.lt.s32.totalorder %v8904_v56, 1 }
 0x677   :  { %vm4385_vm5 = vcmp.lt.s32.totalorder %v8904_v56, 3  ;;  %v8931_v39 = vshrl.u32 %v4204_v7, 30  ;;  %v4391_v53 = vsel %vm4383_vm9, %v4370_v20, %v4373_v11  ;;  %v4396_v34 = vsel %vm4386_vm8, %v4382_v46, 1326507024 }
 0x678   :  { %v4393_v14 = vsel %vm4385_vm5, %v4376_v15, %v4392_v41  ;;  %v4283_v6 = vsel %vm4279_vm14, %v4263_v63, %v8842_v26  ;;  %v4285_v48 = vsel %vm4281_vm3, %v8844_v50, %v4284_v45  ;;  %v4395_v16 = vsel %vm4383_vm9, %v4373_v11, %v4376_v15 }
 0x679   :  { %9809 = vst [vmem:[#allocation14_spill] sm:$0xff] %v8931_v39  ;;  %v4397_v38 = vsel %vm4385_vm5, %v4379_v8, %v4396_v34  ;;  %v4305_v35 = vadd.s32 1, %v8892_v42  ;;  %vm4384_vm1 = vcmp.lt.s32.totalorder %v8904_v56, 2  ;;  %v4459_v3 = vshrl.u32 %v4458_v43, 23 }
 0x67a   :  { %v5329_v17 = vadd.s32 4294967294, %v4107_v12  ;;  %vm4304_vm10 = vc.u32 %v8919_v51, %v8891_v58  ;;  %v4394_v26 = vsel %vm4384_vm1, %v4391_v53, %v4393_v14  ;;  %v4286_v50 = vsel %vm4280_vm6, %v4283_v6, %v4285_v48 }
 0x67b   :  { %v4398_v23 = vsel %vm4384_vm1, %v4395_v16, %v4397_v38  ;;  %v8959_v25 = vshll.u32 %v4359_v4, 8  ;;  %v5343_v37 = vadd.s32 4294967169, %v4459_v3  ;;  %v4206_v0 = vshll.u32 %v8931_v39, 30 }
 0x67c   :  { %v8963_v8 = vadd.f32 %v4030_v1, %v8692_v2  ;;  %v4306_v47 = vsel %vm4304_vm10, %v4305_v35, %v8892_v42  ;;  %vm5330_vm4 = vcmp.lt.s32.totalorder %v5329_v17, 0  ;;  %v4302_v54 = vmul.u32 %v8881_v13, %v4286_v50 }
 0x67d   :  { %v8967_v29 = vmul.u32.u64.low %v8959_v25, %v4394_v26  ;;  %v8968_v7 = vmul.u32.u64.high %v8959_v25, %v4394_v26, %v8967_v29  ;;  %v4465_v24 = vadd.s32 1, %v5343_v37  ;;  %v4388_v4 = vsel %vm4386_vm8, %v4376_v15, 2102212464 }
 0x67e   :  { %v8973_v46 = vmul.u32.u64.low %v8959_v25, %v4398_v23  ;;  %v8974_v45 = vmul.u32.u64.high %v8959_v25, %v4398_v23, %v8973_v46  ;;  %v8979_v2 = vsub.s32 %v8884_v62, %v4206_v0  ;;  %v8981_v42 = vadd.s32 %v4306_v47, %v4302_v54 }
 0x67f   :  { %vm4466_vm12 = vcmp.gt.s32.totalorder %v4465_v24, 0  ;;  %v4367_v41 = vshrl.u32 %v9802_v5, %v8872_v57  ;;  %v4562_v43 = vand.u32 2139095040, %v8963_v8  ;;  %v8986_v12 = vsel %vm5330_vm4, 0, %v5329_v17 }
 0x680   :  { %v9662_v13 = vand.u32 2147483647, %v8910_v32  ;;  %v4467_v63 = vsel %vm4466_vm12, %v4465_v24, 0  ;;  %v4389_v15 = vsel %vm4385_vm5, %v4373_v11, %v4388_v4  ;;  %v4115_v14 = vsub.s32 4294967266, %v8986_v12 }
 0x681   :  { %v4387_v53 = vsel %vm4383_vm9, %v4367_v41, %v4370_v20  ;;  %v4469_v62 = vand.u32 31, %v4467_v63  ;;  %v4209_v34 = vsub.s32 0, %v8979_v2  ;;  %v4308_v57 = vadd.s32 536870912, %v8981_v42 }
 0x682   :  { %v4563_v6 = vshrl.u32 %v4562_v43, 23  ;;  %v4390_v48 = vsel %vm4384_vm1, %v4387_v53, %v4389_v15  ;;  %v4409_v16 = vadd.s32 1, %v8968_v7  ;;  %v4462_v38 = vand.u32 8388607, %v9662_v13 }
 0x683   :  { %v4470_v20 = vsub.s32 32, %v4469_v62  ;;  %vm4408_vm0 = vc.u32 %v8974_v45, %v8967_v29  ;;  %v4468_v11 = vshrl.u32 %v4467_v63, 5  ;;  %v4472_v35 = vshll.u32 %v9802_v5, %v4469_v62 }
 0x684   :  { %v4475_v3 = vshll.u32 %v9803_v10, %v4469_v62  ;;  %v4478_v56 = vshll.u32 %v9804_v52, %v4469_v62  ;;  %v4481_v50 = vshll.u32 %v9805_v40, %v4469_v62  ;;  %v4484_v37 = vshll.u32 %v9806_v21, %v4469_v62 }
 0x685   :  { %v4473_v1 = vshrl.u32 %v9803_v10, %v4470_v20  ;;  %v4476_v17 = vshrl.u32 %v9804_v52, %v4470_v20  ;;  %v4479_v26 = vshrl.u32 %v9805_v40, %v4470_v20  ;;  %v4482_v23 = vshrl.u32 %v9806_v21, %v4470_v20 }
 0x686   :  { %v5347_v0 = vadd.s32 4294967169, %v4563_v6  ;;  %v4485_v46 = vshrl.u32 %v9807_v59, %v4470_v20  ;;  %v9013_v4 = vshrl.u32 %v4308_v57, 30  ;;  %v4406_v41 = vmul.u32 %v8959_v25, %v4390_v48 }
 0x687   :  { %v4474_v47 = vor.u32 %v4473_v1, %v4472_v35  ;;  %v4477_v24 = vor.u32 %v4476_v17, %v4475_v3  ;;  %v4480_v54 = vor.u32 %v4479_v26, %v4478_v56  ;;  %v4463_v43 = vor.u32 8388608, %v4462_v38 }
 0x688   :  { %v4483_v63 = vor.u32 %v4482_v23, %v4481_v50  ;;  %v4410_v53 = vsel %vm4408_vm0, %v4409_v16, %v8968_v7  ;;  %v4486_v15 = vor.u32 %v4485_v46, %v4484_v37  ;;  %vm4487_vm11 = vcmp.lt.s32.totalorder %v4468_v11, 1 }
 0x689   :  { %v9660_v62 = vand.u32 2147483647, %v8963_v8  ;;  %vm4489_vm13 = vcmp.lt.s32.totalorder %v4468_v11, 3  ;;  %vm4490_vm15 = vcmp.lt.s32.totalorder %v4468_v11, 4  ;;  %v4495_v6 = vsel %vm4487_vm11, %v4474_v47, %v4477_v24 }
 0x68a   :  { %v4569_v35 = vadd.s32 1, %v5347_v0  ;;  %v4492_v57 = vsel %vm4490_vm15, %v4480_v54, 2102212464  ;;  %v4496_v3 = vsel %vm4490_vm15, %v4483_v63, 920167782  ;;  %v4499_v25 = vsel %vm4487_vm11, %v4477_v24, %v4480_v54 }
 0x68b   :  { %v4500_v48 = vsel %vm4490_vm15, %v4486_v15, 1326507024  ;;  %v9023_v38 = vadd.s32 %v4410_v53, %v4406_v41  ;;  %v4471_v1 = vshrl.u32 %v9802_v5, %v4470_v20  ;;  %vm4488_vm2 = vcmp.lt.s32.totalorder %v4468_v11, 2 }
 0x68c   :  { %v4497_v7 = vsel %vm4489_vm13, %v4480_v54, %v4496_v3  ;;  %v5332_v16 = vmin.u32 %v4209_v34, %v8979_v2  ;;  %v4501_v56 = vsel %vm4489_vm13, %v4483_v63, %v4500_v48  ;;  %v4503_v26 = vshll.u32 %v4463_v43, 8 }
 0x68d   :  { %v4498_v17 = vsel %vm4488_vm2, %v4495_v6, %v4497_v7  ;;  %v4491_v50 = vsel %vm4487_vm11, %v4471_v1, %v4474_v47  ;;  %v4493_v23 = vsel %vm4489_vm13, %v4477_v24, %v4492_v57  ;;  %v4502_v37 = vsel %vm4488_vm2, %v4499_v25, %v4501_v56 }
 0x68e   :  { %vm4570_vm14 = vcmp.gt.s32.totalorder %v4569_v35, 0  ;;  %v4310_v0 = vshll.u32 %v9013_v4, 30  ;;  %v9034_v20 = vmul.u32.u64.low %v4503_v26, %v4502_v37  ;;  %v9035_v46 = vmul.u32.u64.high %v4503_v26, %v4502_v37, %v9034_v20 }
 0x68f   :  { %v4571_v54 = vsel %vm4570_vm14, %v4569_v35, 0  ;;  %v4412_v34 = vadd.s32 536870912, %v9023_v38  ;;  %v9038_v41 = vmul.u32.u64.low %v4503_v26, %v4498_v17  ;;  %v9039_v53 = vmul.u32.u64.high %v4503_v26, %v4498_v17, %v9038_v41 }
 0x690   :  { %v4566_v47 = vand.u32 8388607, %v9660_v62  ;;  %v4494_v24 = vsel %vm4488_vm2, %v4491_v50, %v4493_v23  ;;  %v4573_v43 = vand.u32 31, %v4571_v54  ;;  %v9047_v63 = vadd.s32 %v8742_v9, %v8747_v36  ;;  %v4034_v50 = vpop.f32.mrf.mxu1 }
 0x691   :  { %v4111_v15 = vsub.s32 32, %v8986_v12  ;;  %v9050_v6 = vadd.s32 127, %v4115_v14  ;;  %v4211_v35 = vclz %v5332_v16  ;;  %v9053_v57 = vsub.s32 %v8981_v42, %v4310_v0 }
 0x692   :  { %vm4512_vm3 = vc.u32 %v9035_v46, %v9038_v41  ;;  %v4574_v3 = vsub.s32 32, %v4573_v43  ;;  %v9057_v25 = vshrl.u32 %v4412_v34, 30  ;;  %v4510_v11 = vmul.u32 %v4503_v26, %v4494_v24 }
 0x693   :  { %v4513_v48 = vadd.s32 1, %v9039_v53  ;;  %v4567_v1 = vor.u32 8388608, %v4566_v47  ;;  %v4572_v9 = vshrl.u32 %v4571_v54, 5  ;;  %v4576_v36 = vshll.u32 %v9802_v5, %v4573_v43 }
 0x694   :  { %v4577_v14 = vshrl.u32 %v9803_v10, %v4574_v3  ;;  %v4580_v7 = vshrl.u32 %v9804_v52, %v4574_v3  ;;  %v4579_v16 = vshll.u32 %v9803_v10, %v4573_v43  ;;  %v4582_v17 = vshll.u32 %v9804_v52, %v4573_v43 }
 0x695   :  { %v4514_v42 = vsel %vm4512_vm3, %v4513_v48, %v9039_v53  ;;  %v4583_v56 = vshrl.u32 %v9805_v40, %v4574_v3  ;;  %v5333_v26 = vadd.s32 4294967294, %v4211_v35  ;;  %v4313_v23 = vsub.s32 0, %v9053_v57 }
 0x696   :  { %v4515_v37 = vadd.s32 %v4514_v42, %v4510_v11  ;;  %v4578_v0 = vor.u32 %v4577_v14, %v4576_v36  ;;  %v4581_v20 = vor.u32 %v4580_v7, %v4579_v16  ;;  %v4585_v34 = vshll.u32 %v9805_v40, %v4573_v43  ;;  %v4036_v42 = vpop.f32.mrf.mxu1 }
 0x697   :  { %v4584_v54 = vor.u32 %v4583_v56, %v4582_v17  ;;  %v4586_v47 = vshrl.u32 %v9806_v21, %v4574_v3  ;;  %v4588_v53 = vshll.u32 %v9806_v21, %v4573_v43  ;;  %v4589_v48 = vshrl.u32 %v9807_v59, %v4574_v3 }
 0x698   :  { %v4516_v24 = vadd.s32 536870912, %v4515_v37  ;;  %v9073_v30 = vadd.f32 %v4034_v50, %v8700_v31  ;;  %v4414_v35 = vshll.u32 %v9057_v25, 30  ;;  %vm4591_vm6 = vcmp.lt.s32.totalorder %v4572_v9, 1 }
 0x699   :  { %v4587_v33 = vor.u32 %v4586_v47, %v4585_v34  ;;  %v4607_v11 = vshll.u32 %v4567_v1, 8  ;;  %v4575_v14 = vshrl.u32 %v9802_v5, %v4574_v3  ;;  %v4590_v7 = vor.u32 %v4589_v48, %v4588_v53 }
 0x69a   :  { %v9076_v36 = vshrl.u32 %v4516_v24, 30  ;;  %vm4594_vm8 = vcmp.lt.s32.totalorder %v4572_v9, 4  ;;  %vm4593_vm9 = vcmp.lt.s32.totalorder %v4572_v9, 3  ;;  %v4599_v43 = vsel %vm4591_vm6, %v4578_v0, %v4581_v20 }
 0x69b   :  { %v4596_v16 = vsel %vm4594_vm8, %v4584_v54, 2102212464  ;;  %v4600_v17 = vsel %vm4594_vm8, %v4587_v33, 920167782  ;;  %vm4592_vm5 = vcmp.lt.s32.totalorder %v4572_v9, 2  ;;  %v4603_v62 = vsel %vm4591_vm6, %v4581_v20, %v4584_v54 }
 0x69c   :  { %v4518_v56 = vshll.u32 %v9076_v36, 30  ;;  %v4601_v50 = vsel %vm4593_vm9, %v4584_v54, %v4600_v17  ;;  %v4595_v60 = vsel %vm4591_vm6, %v4575_v14, %v4578_v0  ;;  %v4604_v1 = vsel %vm4594_vm8, %v4590_v7, 1326507024 }
 0x69d   :  { %v4602_v34 = vsel %vm4592_vm5, %v4599_v43, %v4601_v50  ;;  %v9082_v47 = vadd.f32 %v4036_v42, %v8700_v31  ;;  %v4597_v3 = vsel %vm4593_vm9, %v4581_v20, %v4596_v16  ;;  %v4605_v24 = vsel %vm4593_vm9, %v4587_v33, %v4604_v1 }
 0x69e   :  { %v9084_v53 = vmul.u32.u64.low %v4607_v11, %v4602_v34  ;;  %v9085_v48 = vmul.u32.u64.high %v4607_v11, %v4602_v34, %v9084_v53  ;;  %v9089_v13 = vsub.s32 %v9023_v38, %v4414_v35  ;;  %v9091_v28 = vsub.s32 %v4515_v37, %v4518_v56 }
 0x69f   :  { %v4606_v54 = vsel %vm4592_vm5, %v4603_v62, %v4605_v24  ;;  %v4666_v0 = vand.u32 2139095040, %v9073_v30  ;;  %v4113_v31 = vshrl.u32 %v9047_v63, %v4111_v15  ;;  %v4598_v33 = vsel %vm4592_vm5, %v4595_v60, %v4597_v3 }
 0x6a0   :  { %v9095_v14 = vmul.u32.u64.low %v4607_v11, %v4606_v54  ;;  %v9096_v7 = vmul.u32.u64.high %v4607_v11, %v4606_v54, %v9095_v14  ;;  %v4770_v42 = vand.u32 2139095040, %v9082_v47  ;;  %v4112_v38 = vshll.u32 %v8867_v22, %v8986_v12 }
 0x6a1   :  { %v4667_v20 = vshrl.u32 %v4666_v0, 23  ;;  %v4117_v37 = vshll.u32 %v9050_v6, 23  ;;  %v5336_v62 = vmin.u32 %v4313_v23, %v9053_v57  ;;  %v4617_v35 = vadd.s32 1, %v9085_v48 }
 0x6a2   :  { %vm5334_vm1 = vcmp.lt.s32.totalorder %v5333_v26, 0  ;;  %v4417_v16 = vsub.s32 0, %v9089_v13  ;;  %v4521_v43 = vsub.s32 0, %v9091_v28  ;;  %v4614_v15 = vmul.u32 %v4607_v11, %v4598_v33 }
 0x6a3   :  { %v5351_v63 = vadd.s32 4294967169, %v4667_v20  ;;  %vm4616_vm10 = vc.u32 %v9096_v7, %v9084_v53  ;;  %v4771_v60 = vshrl.u32 %v4770_v42, 23  ;;  %v9112_v9 = vor.u32 %v4113_v31, %v4112_v38 }
 0x6a4   :  { %v4618_v22 = vsel %vm4616_vm10, %v4617_v35, %v9085_v48  ;;  %v9115_v6 = vor.u32 4788187, %v4117_v37  ;;  %v9117_v23 = vsel %vm5334_vm1, 0, %v5333_v26  ;;  %v4315_v17 = vclz %v5336_v62 }
 0x6a5   :  { %v4673_v12 = vadd.s32 1, %v5351_v63  ;;  %v4619_v56 = vadd.s32 %v4618_v22, %v4614_v15  ;;  %v5340_v50 = vmin.u32 %v4417_v16, %v9089_v13  ;;  %v5344_v34 = vmin.u32 %v4521_v43, %v9091_v28 }
 0x6a6   :  { %v9664_v11 = vand.u32 2147483647, %v9073_v30  ;;  %v5355_v24 = vadd.s32 4294967169, %v4771_v60  ;;  %v9125_v48 = vadd.s32 %v8813_v61, %v8811_v44  ;;  %v9129_v31 = vadd.s32 4294967294, %v4315_v17 }
 0x6a7   :  { %vm4674_vm4 = vcmp.gt.s32.totalorder %v4673_v12, 0  ;;  %v4620_v1 = vadd.s32 536870912, %v4619_v56  ;;  %v4419_v20 = vclz %v5340_v50  ;;  %v4523_v42 = vclz %v5344_v34 }
 0x6a8   :  { %v4675_v3 = vsel %vm4674_vm4, %v4673_v12, 0  ;;  %v4670_v38 = vand.u32 8388607, %v9664_v11  ;;  %v4777_v35 = vadd.s32 1, %v5355_v24  ;;  %v9669_v0 = vand.u32 2147483647, %v9082_v47 }
 0x6a9   :  { %v4677_v26 = vand.u32 31, %v4675_v3  ;;  %v9131_v33 = vshrl.u32 %v4620_v1, 30  ;;  %v4676_v22 = vshrl.u32 %v4675_v3, 5  ;;  %v5341_v50 = vadd.s32 4294967294, %v4419_v20 }
 0x6aa   :  { %v4671_v14 = vor.u32 8388608, %v4670_v38  ;;  %v5345_v27 = vadd.s32 4294967294, %v4523_v42  ;;  %vm4778_vm12 = vcmp.gt.s32.totalorder %v4777_v35, 0  ;;  %vm5338_vm14 = vcmp.lt.s32.totalorder %v9129_v31, 0 }
 0x6ab   :  { %v4678_v37 = vsub.s32 32, %v4677_v26  ;;  %v4622_v62 = vshll.u32 %v9131_v33, 30  ;;  %v4680_v44 = vshll.u32 %v9802_v5, %v4677_v26  ;;  %v4683_v61 = vshll.u32 %v9803_v10, %v4677_v26 }
 0x6ac   :  { %v4686_v63 = vshll.u32 %v9804_v52, %v4677_v26  ;;  %v4689_v12 = vshll.u32 %v9805_v40, %v4677_v26  ;;  %v4692_v39 = vshll.u32 %v9806_v21, %v4677_v26  ;;  %vm4695_vm0 = vcmp.lt.s32.totalorder %v4676_v22, 1 }
 0x6ad   :  { %v4681_v16 = vshrl.u32 %v9803_v10, %v4678_v37  ;;  %v4684_v43 = vshrl.u32 %v9804_v52, %v4678_v37  ;;  %v4687_v15 = vshrl.u32 %v9805_v40, %v4678_v37  ;;  %v9142_v60 = vsub.s32 %v4619_v56, %v4622_v62 }
 0x6ae   :  { %v4690_v17 = vshrl.u32 %v9806_v21, %v4678_v37  ;;  %v4693_v56 = vshrl.u32 %v9807_v59, %v4678_v37  ;;  %vm4697_vm11 = vcmp.lt.s32.totalorder %v4676_v22, 3  ;;  %vm4698_vm13 = vcmp.lt.s32.totalorder %v4676_v22, 4 }
 0x6af   :  { %v4682_v34 = vor.u32 %v4681_v16, %v4680_v44  ;;  %v4685_v1 = vor.u32 %v4684_v43, %v4683_v61  ;;  %v4688_v11 = vor.u32 %v4687_v15, %v4686_v63  ;;  %v4625_v24 = vsub.s32 0, %v9142_v60 }
 0x6b0   :  { %v4691_v54 = vor.u32 %v4690_v17, %v4689_v12  ;;  %v4694_v20 = vor.u32 %v4693_v56, %v4692_v39  ;;  %v4679_v16 = vshrl.u32 %v9802_v5, %v4678_v37  ;;  %vm4696_vm15 = vcmp.lt.s32.totalorder %v4676_v22, 2 }
 0x6b1   :  { %v5348_v3 = vmin.u32 %v4625_v24, %v9142_v60  ;;  %v4700_v62 = vsel %vm4698_vm13, %v4688_v11, 2102212464  ;;  %v4703_v44 = vsel %vm4695_vm0, %v4682_v34, %v4685_v1  ;;  %v4707_v43 = vsel %vm4695_vm0, %v4685_v1, %v4688_v11 }
 0x6b2   :  { %v4704_v61 = vsel %vm4698_vm13, %v4691_v54, 920167782  ;;  %v4708_v63 = vsel %vm4698_vm13, %v4694_v20, 1326507024  ;;  %v4711_v15 = vshll.u32 %v4671_v14, 8  ;;  %vm5346_vm2 = vcmp.lt.s32.totalorder %v5345_v27, 0 }
 0x6b3   :  { %v4627_v38 = vclz %v5348_v3  ;;  %v4705_v42 = vsel %vm4697_vm11, %v4688_v11, %v4704_v61  ;;  %v4699_v12 = vsel %vm4695_vm0, %v4679_v16, %v4682_v34  ;;  %v4701_v39 = vsel %vm4697_vm11, %v4685_v1, %v4700_v62 }
 0x6b4   :  { %v4706_v26 = vsel %vm4696_vm15, %v4703_v44, %v4705_v42  ;;  %v4709_v17 = vsel %vm4697_vm11, %v4691_v54, %v4708_v63  ;;  %v4779_v3 = vsel %vm4778_vm12, %v4777_v35, 0  ;;  %vm5342_vm3 = vcmp.lt.s32.totalorder %v5341_v50, 0 }
 0x6b5   :  { %v4710_v24 = vsel %vm4696_vm15, %v4707_v43, %v4709_v17  ;;  %v9160_v56 = vmul.u32.u64.low %v4711_v15, %v4706_v26  ;;  %v9161_v37 = vmul.u32.u64.high %v4711_v15, %v4706_v26, %v9160_v56  ;;  %v5349_v11 = vadd.s32 4294967294, %v4627_v38 }
 0x6b6   :  { %v9166_v20 = vmul.u32.u64.low %v4711_v15, %v4710_v24  ;;  %v9167_v14 = vmul.u32.u64.high %v4711_v15, %v4710_v24, %v9166_v20  ;;  %v4702_v34 = vsel %vm4696_vm15, %v4699_v12, %v4701_v39  ;;  %v4774_v54 = vand.u32 8388607, %v9669_v0 }
 0x6b7   :  { %v4781_v1 = vand.u32 31, %v4779_v3  ;;  %v9810_v62 = vand.u32 2147483647, %v9115_v6  ;;  %v9811_v44 = vcvt.s32.f32 %v9112_v9  ;;  %v9181_v38 = vadd.s32 %v8891_v58, %v8919_v51 }
 0x6b8   :  { %v9184_v16 = vsel %vm5346_vm2, 0, %v5345_v27  ;;  %v9812_v22 = vsub.s32 4294967266, %v9117_v23  ;;  %v9191_v26 = vsel %vm5338_vm14, 0, %v9129_v31  ;;  %v4721_v9 = vadd.s32 1, %v9161_v37 }
 0x6b9   :  { %v9176_v61 = vmul.f32 %v9811_v44, %v9810_v62  ;;  %v4782_v6 = vsub.s32 32, %v4781_v1  ;;  %v9194_v43 = vsel %vm5342_vm3, 0, %v5341_v50  ;;  %vm5350_vm6 = vcmp.lt.s32.totalorder %v5349_v11, 0 }
 0x6ba   :  { %v9188_v42 = vadd.s32 127, %v9812_v22  ;;  %v4718_v63 = vmul.u32 %v4711_v15, %v4702_v34  ;;  %vm4720_vm8 = vc.u32 %v9167_v14, %v9160_v56  ;;  %v4531_v27 = vsub.s32 4294967266, %v9184_v16 }
 0x6bb   :  { %v4722_v58 = vsel %vm4720_vm8, %v4721_v9, %v9161_v37  ;;  %v4775_v51 = vor.u32 8388608, %v4774_v54  ;;  %v4785_v12 = vshrl.u32 %v9803_v10, %v4782_v6  ;;  %v4784_v31 = vshll.u32 %v9802_v5, %v4781_v1 }
 0x6bc   :  { %v4723_v39 = vadd.s32 %v4722_v58, %v4718_v63  ;;  %v4787_v17 = vshll.u32 %v9803_v10, %v4781_v1  ;;  %v4788_v50 = vshrl.u32 %v9804_v52, %v4782_v6  ;;  %v9204_v24 = vsel %vm5350_vm6, 0, %v5349_v11 }
 0x6bd   :  { %v4780_v15 = vshrl.u32 %v4779_v3, 5  ;;  %v4790_v20 = vshll.u32 %v9804_v52, %v4781_v1  ;;  %v4791_v34 = vshrl.u32 %v9805_v40, %v4782_v6  ;;  %v4786_v44 = vor.u32 %v4785_v12, %v4784_v31 }
 0x6be   :  { %v4724_v62 = vadd.s32 536870912, %v4723_v39  ;;  %v4789_v37 = vor.u32 %v4788_v50, %v4787_v17  ;;  %v4793_v54 = vshll.u32 %v9805_v40, %v4781_v1  ;;  %v4794_v9 = vshrl.u32 %v9806_v21, %v4782_v6 }
 0x6bf   :  { %v4792_v22 = vor.u32 %v4791_v34, %v4790_v20  ;;  %v4796_v63 = vshll.u32 %v9806_v21, %v4781_v1  ;;  %v4797_v58 = vshrl.u32 %v9807_v59, %v4782_v6  ;;  %v4427_v11 = vsub.s32 4294967266, %v9194_v43 }
 0x6c0   :  { %v4511_v3 = vadd.s32 %v9038_v41, %v9035_v46  ;;  %v9215_v0 = vshrl.u32 %v4724_v62, 30  ;;  %v4815_v35 = vshll.u32 %v4775_v51, 8  ;;  %v4532_v52 = vadd.s32 127, %v4531_v27 }
 0x6c1   :  { %v4635_v12 = vsub.s32 4294967266, %v9204_v24  ;;  %v4795_v31 = vor.u32 %v4794_v9, %v4793_v54  ;;  %v4798_v17 = vor.u32 %v4797_v58, %v4796_v63  ;;  %v4783_v20 = vshrl.u32 %v9802_v5, %v4782_v6 }
 0x6c2   :  { %v4726_v50 = vshll.u32 %v9215_v0, 30  ;;  %vm4799_vm9 = vcmp.lt.s32.totalorder %v4780_v15, 1  ;;  %vm4802_vm5 = vcmp.lt.s32.totalorder %v4780_v15, 4  ;;  %vm4801_vm1 = vcmp.lt.s32.totalorder %v4780_v15, 3 }
 0x6c3   :  { %v4804_v1 = vsel %vm4802_vm5, %v4792_v22, 2102212464  ;;  %v4807_v34 = vsel %vm4799_vm9, %v4786_v44, %v4789_v37  ;;  %v4808_v59 = vsel %vm4802_vm5, %v4795_v31, 920167782  ;;  %vm4800_vm10 = vcmp.lt.s32.totalorder %v4780_v15, 2 }
 0x6c4   :  { %v9220_v21 = vsub.s32 %v4723_v39, %v4726_v50  ;;  %v4809_v46 = vsel %vm4801_vm1, %v4792_v22, %v4808_v59  ;;  %v4811_v41 = vsel %vm4799_vm9, %v4789_v37, %v4792_v22  ;;  %v4527_v27 = vsub.s32 32, %v9184_v16 }
 0x6c5   :  { %v4533_v51 = vshll.u32 %v4532_v52, 23  ;;  %v4810_v62 = vsel %vm4800_vm10, %v4807_v34, %v4809_v46  ;;  %v4812_v54 = vsel %vm4802_vm5, %v4798_v17, 1326507024  ;;  %v4803_v6 = vsel %vm4799_vm9, %v4783_v20, %v4786_v44 }
 0x6c6   :  { %v4729_v9 = vsub.s32 0, %v9220_v21  ;;  %v4805_v63 = vsel %vm4801_vm1, %v4789_v37, %v4804_v1  ;;  %v4813_v58 = vsel %vm4801_vm1, %v4795_v31, %v4812_v54  ;;  %v4636_v40 = vadd.s32 127, %v4635_v12 }
 0x6c7   :  { %v4814_v10 = vsel %vm4800_vm10, %v4811_v41, %v4813_v58  ;;  %v9226_v5 = vmul.u32.u64.low %v4815_v35, %v4810_v62  ;;  %v9227_v39 = vmul.u32.u64.high %v4815_v35, %v4810_v62, %v9226_v5  ;;  %v4323_v59 = vsub.s32 4294967266, %v9191_v26 }
 0x6c8   :  { %v5352_v22 = vmin.u32 %v4729_v9, %v9220_v21  ;;  %v9232_v52 = vmul.u32.u64.low %v4815_v35, %v4814_v10  ;;  %v9233_v50 = vmul.u32.u64.high %v4815_v35, %v4814_v10, %v9232_v52  ;;  %v4221_v17 = vshll.u32 %v9188_v42, 23 }
 0x6c9   :  { %v4529_v34 = vshrl.u32 %v4511_v3, %v4527_v27  ;;  %v4631_v44 = vsub.s32 32, %v9204_v24  ;;  %v4806_v37 = vsel %vm4800_vm10, %v4803_v6, %v4805_v63  ;;  %v4407_v12 = vadd.s32 %v8967_v29, %v8974_v45 }
 0x6ca   :  { %v4428_v31 = vadd.s32 127, %v4427_v11  ;;  %v4615_v20 = vadd.s32 %v9084_v53, %v9096_v7  ;;  %v4731_v1 = vclz %v5352_v22  ;;  %v4528_v46 = vshll.u32 %v9091_v28, %v9184_v16 }
 0x6cb   :  { %v4534_v10 = vor.u32 4788187, %v4533_v51  ;;  %v4637_v41 = vshll.u32 %v4636_v40, 23  ;;  %v4825_v62 = vadd.s32 1, %v9227_v39  ;;  %v4324_v3 = vadd.s32 127, %v4323_v59 }
 0x6cc   :  { %v5353_v27 = vadd.s32 4294967294, %v4731_v1  ;;  %v4822_v54 = vmul.u32 %v4815_v35, %v4806_v37  ;;  %vm4824_vm4 = vc.u32 %v9233_v50, %v9226_v5  ;;  %v4423_v29 = vsub.s32 32, %v9194_v43 }
 0x6cd   :  { %v4530_v45 = vor.u32 %v4529_v34, %v4528_v46  ;;  %v4633_v15 = vshrl.u32 %v4615_v20, %v4631_v44  ;;  %v4826_v53 = vsel %vm4824_vm4, %v4825_v62, %v9227_v39  ;;  %v4319_v7 = vsub.s32 32, %v9191_v26 }
 0x6ce   :  { %v4429_v11 = vshll.u32 %v4428_v31, 23  ;;  %vm5354_vm12 = vcmp.lt.s32.totalorder %v5353_v27, 0  ;;  %v4827_v28 = vadd.s32 %v4826_v53, %v4822_v54  ;;  %v4535_v40 = vand.u32 2147483647, %v4534_v10 }
 0x6cf   :  { %v4632_v16 = vshll.u32 %v9142_v60, %v9204_v24  ;;  %v4638_v51 = vor.u32 4788187, %v4637_v41  ;;  %v4734_v35 = vsel %vm5354_vm12, 0, %v5353_v27  ;;  %vm4041_vm0 = vcmp.lt.s32.totalorder %v8694_v49, 0 }
 0x6d0   :  { %v4325_v9 = vshll.u32 %v4324_v3, 23  ;;  %v4735_v6 = vsub.s32 32, %v4734_v35  ;;  %v4739_v63 = vsub.s32 4294967266, %v4734_v35  ;;  %v4828_v58 = vadd.s32 536870912, %v4827_v28 }
 0x6d1   :  { %v4425_v59 = vshrl.u32 %v4407_v12, %v4423_v29  ;;  %v4537_v22 = vcvt.s32.f32 %v4530_v45  ;;  %v4634_v39 = vor.u32 %v4633_v15, %v4632_v16  ;;  %v4719_v52 = vadd.s32 %v9160_v56, %v9167_v14 }
 0x6d2   :  { %v4321_v34 = vshrl.u32 %v9181_v38, %v4319_v7  ;;  %v4424_v44 = vshll.u32 %v9089_v13, %v9194_v43  ;;  %v4740_v60 = vadd.s32 127, %v4739_v63  ;;  %v9258_v24 = vshrl.u32 %v4828_v58, 30 }
 0x6d3   :  { %v4430_v37 = vor.u32 4788187, %v4429_v11  ;;  %v4538_v31 = vmul.f32 %v4537_v22, %v4535_v40  ;;  %v4639_v20 = vand.u32 2147483647, %v4638_v51  ;;  %v4737_v1 = vshrl.u32 %v4719_v52, %v4735_v6 }
 0x6d4   :  { %v4320_v12 = vshll.u32 %v9053_v57, %v9191_v26  ;;  %v4326_v46 = vor.u32 4788187, %v4325_v9  ;;  %v4741_v10 = vshll.u32 %v4740_v60, 23  ;;  %v4830_v41 = vshll.u32 %v9258_v24, 30 }
 0x6d5   :  { %v4123_v56 = vxor.u32 2147483648, %v9176_v61  ;;  %v4426_v14 = vor.u32 %v4425_v59, %v4424_v44  ;;  %v4641_v38 = vcvt.s32.f32 %v4634_v39  ;;  %v4736_v13 = vshll.u32 %v9220_v21, %v4734_v35 }
 0x6d6   :  { %v9813_v43 = vsub.s32 32, %v9117_v23  ;;  %v4322_v3 = vor.u32 %v4321_v34, %v4320_v12  ;;  %v4742_v27 = vor.u32 4788187, %v4741_v10  ;;  %v9268_v54 = vsub.s32 %v4827_v28, %v4830_v41 }
 0x6d7   :  { %v4431_v29 = vand.u32 2147483647, %v4430_v37  ;;  %v4539_v57 = vxor.u32 2147483648, %v4538_v31  ;;  %v4642_v26 = vmul.f32 %v4641_v38, %v4639_v20  ;;  %v4738_v45 = vor.u32 %v4737_v1, %v4736_v13 }
 0x6d8   :  { %v4217_v62 = vshrl.u32 %v9125_v48, %v9813_v43  ;;  %v4216_v15 = vshll.u32 %v8979_v2, %v9117_v23  ;;  %v4222_v53 = vor.u32 4788187, %v4221_v17  ;;  %v4327_v7 = vand.u32 2147483647, %v4326_v46 }
 0x6d9   :  { %v4833_v21 = vsub.s32 0, %v9268_v54  ;;  %v9814_v11 = vand.u32 2147483647, %v8694_v49  ;;  %v4124_v28 = vsel %vm4041_vm0, %v4123_v56, %v9176_v61  ;;  %v4433_v40 = vcvt.s32.f32 %v4426_v14 }
 0x6da   :  { %v4743_v16 = vand.u32 2147483647, %v4742_v27  ;;  %v4218_v51 = vor.u32 %v4217_v62, %v4216_v15  ;;  %v4329_v2 = vcvt.s32.f32 %v4322_v3  ;;  %vm4457_vm13 = vcmp.lt.s32.totalorder %v8910_v32, 0 }
 0x6db   :  { %vm9277_vm11 = vcmp.le.f32.partialorder %v9814_v11, 0.7853982  ;;  %v5356_v23 = vmin.u32 %v4833_v21, %v9268_v54  ;;  %v4434_v42 = vmul.f32 %v4433_v40, %v4431_v29  ;;  %v4540_v17 = vsel %vm4457_vm13, %v4539_v57, %v4538_v31 }
 0x6dc   :  { %v4643_v35 = vxor.u32 2147483648, %v4642_v26  ;;  %v4745_v9 = vcvt.s32.f32 %v4738_v45  ;;  %v4127_v6 = vsel %vm9277_vm11, %v8694_v49, %v4124_v28  ;;  %v4223_v63 = vand.u32 2147483647, %v4222_v53 }
 0x6dd   :  { %v4330_v61 = vmul.f32 %v4329_v2, %v4327_v7  ;;  %v4835_v58 = vclz %v5356_v23  ;;  %vm4249_vm15 = vcmp.lt.s32.totalorder %v8705_v18, 0  ;;  %v9817_v59 = vand.u32 2147483647, %v8910_v32 }
 0x6de   :  { %v4746_v39 = vmul.f32 %v4745_v9, %v4743_v16  ;;  %v4225_v52 = vcvt.s32.f32 %v4218_v51  ;;  %vm4561_vm14 = vcmp.lt.s32.totalorder %v8963_v8, 0  ;;  %5648 = vcosq.f32 %v4127_v6 }
 0x6df   :  { %vm9294_vm2 = vcmp.le.f32.partialorder %v9817_v59, 0.7853982  ;;  %v5357_v44 = vadd.s32 4294967294, %v4835_v58  ;;  %vm4353_vm3 = vcmp.lt.s32.totalorder %v8759_v19, 0  ;;  %v4435_v60 = vxor.u32 2147483648, %v4434_v42 }
 0x6e0   :  { %v4543_v34 = vsel %vm9294_vm2, %v8910_v32, %v4540_v17  ;;  %v4644_v37 = vsel %vm4561_vm14, %v4643_v35, %v4642_v26  ;;  %vm4145_vm6 = vcmp.lt.s32.totalorder %v8697_v55, 0  ;;  %v4226_v31 = vmul.f32 %v4225_v52, %v4223_v63 }
 0x6e1   :  { %v9820_v20 = vand.u32 2147483647, %v8705_v18  ;;  %v4331_v12 = vxor.u32 2147483648, %v4330_v61  ;;  %vm4665_vm9 = vcmp.lt.s32.totalorder %v9073_v30, 0  ;;  %vm5358_vm5 = vcmp.lt.s32.totalorder %v5357_v44, 0 }
 0x6e2   :  { %5650 = vcosq.f32 %v4543_v34  ;;  %v4747_v46 = vxor.u32 2147483648, %v4746_v39  ;;  %v4838_v10 = vsel %vm5358_vm5, 0, %v5357_v44  ;;  %v9823_v41 = vand.u32 2147483647, %v8963_v8 }
 0x6e3   :  { %vm9308_vm8 = vcmp.le.f32.partialorder %v9820_v20, 0.7853982  ;;  %v4823_v14 = vadd.s32 %v9226_v5, %v9233_v50  ;;  %v4839_v38 = vsub.s32 32, %v4838_v10  ;;  %v4843_v13 = vsub.s32 4294967266, %v4838_v10 }
 0x6e4   :  { %vm9315_vm1 = vcmp.le.f32.partialorder %v9823_v41, 0.7853982  ;;  %v4436_v62 = vsel %vm4353_vm3, %v4435_v60, %v4434_v42  ;;  %5652 = vsinq.f32 %v4543_v34  ;;  %v4749_v3 = vsub.s32 4, %v9215_v0 }
 0x6e5   :  { %v4647_v43 = vsel %vm9315_vm1, %v8963_v8, %v4644_v37  ;;  %v4541_v27 = vsub.s32 4, %v9076_v36  ;;  %v4840_v29 = vshll.u32 %v9268_v54, %v4838_v10  ;;  %v4841_v57 = vshrl.u32 %v4823_v14, %v4839_v38 }
 0x6e6   :  { %v4844_v26 = vadd.s32 127, %v4843_v13  ;;  %v4645_v5 = vsub.s32 4, %v9131_v33  ;;  %v4227_v50 = vxor.u32 2147483648, %v4226_v31  ;;  %v4332_v45 = vsel %vm4249_vm15, %v4331_v12, %v4330_v61 }
 0x6e7   :  { %v4748_v15 = vsel %vm4665_vm9, %v4747_v46, %v4746_v39  ;;  %5654 = vcosq.f32 %v4647_v43  ;;  %v4842_v53 = vor.u32 %v4841_v57, %v4840_v29  ;;  %v9826_v21 = vand.u32 2147483647, %v8759_v19  ;;  %v9839_v29 = vld [vmem:[#allocation13_spill] sm:$0xff] }
 0x6e8   :  { %v4845_v7 = vshll.u32 %v4844_v26, 23  ;;  %5656 = vsinq.f32 %v4647_v43  ;;  %v9829_v54 = vand.u32 2147483647, %v9073_v30  ;;  %v4750_v40 = vsel %vm4665_vm9, %v4749_v3, %v9215_v0  ;;  %v9838_v43 = vld [vmem:[#allocation14_spill] sm:$0xff] }
 0x6e9   :  { %vm9336_vm10 = vcmp.le.f32.partialorder %v9826_v21, 0.7853982  ;;  %5658 = vsinq.f32 %v4127_v6  ;;  %v4646_v23 = vsel %vm4561_vm14, %v4645_v5, %v9131_v33  ;;  %v4542_v42 = vsel %vm4457_vm13, %v4541_v27, %v9076_v36 }
 0x6ea   :  { %vm9342_vm4 = vcmp.le.f32.partialorder %v9829_v54, 0.7853982  ;;  %v4439_v16 = vsel %vm9336_vm10, %v8759_v19, %v4436_v62  ;;  %v4846_v2 = vor.u32 4788187, %v4845_v7  ;;  %v4228_v0 = vsel %vm4145_vm6, %v4227_v50, %v4226_v31 }
 0x6eb   :  { %v4751_v51 = vsel %vm9342_vm4, %v9073_v30, %v4748_v15  ;;  %v4335_v17 = vsel %vm9308_vm8, %v8705_v18, %v4332_v45  ;;  %vm4769_vm12 = vcmp.lt.s32.totalorder %v9082_v47, 0  ;;  %v4853_v35 = vsub.s32 4, %v9258_v24  ;;  %v9375_v58 = vpop.eup %5648 }
 0x6ec   :  { %v4847_v9 = vand.u32 2147483647, %v4846_v2  ;;  %v4849_v6 = vcvt.s32.f32 %v4842_v53  ;;  %v4752_v33 = vsel %vm9342_vm4, 0, %v4750_v40  ;;  %5660 = vcosq.f32 %v4439_v16 }
 0x6ed   :  { %5662 = vcosq.f32 %v4751_v51  ;;  %v4648_v36 = vsel %vm9315_vm1, 0, %v4646_v23  ;;  %v4544_v63 = vsel %vm9294_vm2, 0, %v4542_v42  ;;  %v4437_v61 = vsub.s32 4, %v9057_v25 }
 0x6ee   :  { %5664 = vsinq.f32 %v4751_v51  ;;  %v4850_v59 = vmul.f32 %v4849_v6, %v4847_v9  ;;  %v4333_v39 = vsub.s32 4, %v9013_v4  ;;  %v9832_v52 = vand.u32 2147483647, %v8697_v55 }
 0x6ef   :  { %5666 = vsinq.f32 %v4335_v17  ;;  %v4854_v22 = vsel %vm4769_vm12, %v4853_v35, %v9258_v24  ;;  %v5651_v60 = vpop.eup %5650  ;;  %v9835_v31 = vand.u32 2147483647, %v9082_v47  ;;  %v4756_v12 = vadd.s32 3, %v4752_v33 }
 0x6f0   :  { %vm9380_vm13 = vcmp.le.f32.partialorder %v9832_v52, 0.7853982  ;;  %5668 = vcosq.f32 %v4335_v17  ;;  %v4851_v37 = vxor.u32 2147483648, %v4850_v59  ;;  %v4652_v46 = vadd.s32 3, %v4648_v36 }
 0x6f1   :  { %v4231_v44 = vsel %vm9380_vm13, %v8697_v55, %v4228_v0  ;;  %vm9392_vm2 = vcmp.le.f32.partialorder %v9835_v31, 0.7853982  ;;  %v4548_v10 = vadd.s32 3, %v4544_v63  ;;  %v4438_v24 = vsel %vm4353_vm3, %v4437_v61, %v9057_v25  ;;  %v5653_v41 = vpop.eup %5652 }
 0x6f2   :  { %5670 = vsinq.f32 %v4439_v16  ;;  %v4852_v56 = vsel %vm4769_vm12, %v4851_v37, %v4850_v59  ;;  %v4856_v14 = vsel %vm9392_vm2, 0, %v4854_v22  ;;  %v4334_v38 = vsel %vm4249_vm15, %v4333_v39, %v9013_v4 }
 0x6f3   :  { %5672 = vcosq.f32 %v4231_v44  ;;  %v4855_v13 = vsel %vm9392_vm2, %v9082_v47, %v4852_v56  ;;  %v4229_v62 = vsub.s32 4, %v9838_v43  ;;  %v9410_v3 = vand.u32 3, %v4756_v12 }
 0x6f4   :  { %5674 = vsinq.f32 %v4231_v44  ;;  %v5655_v25 = vpop.eup %5654  ;;  %v4440_v27 = vsel %vm9336_vm10, 0, %v4438_v24  ;;  %v4125_v57 = vsub.s32 4, %v9839_v29  ;;  %v4860_v4 = vadd.s32 3, %v4856_v14 }
 0x6f5   :  { %5676 = vcosq.f32 %v4855_v13  ;;  %v5657_v26 = vpop.eup %5656  ;;  %v4549_v5 = vand.u32 3, %v4548_v10  ;;  %v4336_v50 = vsel %vm9308_vm8, 0, %v4334_v38  ;;  %v4653_v15 = vand.u32 3, %v4652_v46 }
 0x6f6   :  { %5678 = vsinq.f32 %v4855_v13  ;;  %v9417_v45 = vpop.eup %5658  ;;  %v4552_v53 = vxor.u32 2147483648, %v5653_v41  ;;  %v4555_v7 = vxor.u32 2147483648, %v5651_v60  ;;  %v4444_v21 = vadd.s32 3, %v4440_v27 }
 0x6f7   :  { %v4230_v11 = vsel %vm4145_vm6, %v4229_v62, %v9838_v43  ;;  %v4656_v54 = vxor.u32 2147483648, %v5657_v26  ;;  %v4659_v28 = vxor.u32 2147483648, %v5655_v25  ;;  %v4340_v40 = vadd.s32 3, %v4336_v50 }
 0x6f8   :  { %v4126_v16 = vsel %vm4041_vm0, %v4125_v57, %v9839_v29  ;;  %v9427_v1 = vand.u32 3, %v4860_v4  ;;  %vm4759_vm15 = vcmp.eq.s32.totalorder %v9410_v3, 0  ;;  %vm4762_vm14 = vcmp.eq.s32.totalorder %v9410_v3, 2 }
 0x6f9   :  { %v9425_v51 = vpop.eup %5660  ;;  %vm4551_vm3 = vcmp.eq.s32.totalorder %v4549_v5, 0  ;;  %vm4554_vm8 = vcmp.eq.s32.totalorder %v4549_v5, 2  ;;  %vm4654_vm9 = vcmp.lt.s32.totalorder %v4653_v15, 2  ;;  %v4232_v0 = vsel %vm9380_vm13, 0, %v4230_v11 }
 0x6fa   :  { %v5663_v2 = vpop.eup %5662  ;;  %v4553_v23 = vsel %vm4551_vm3, %v5651_v60, %v4552_v53  ;;  %v4556_v42 = vsel %vm4554_vm8, %v4555_v7, %v5653_v41  ;;  %vm4655_vm6 = vcmp.eq.s32.totalorder %v4653_v15, 0  ;;  %vm4658_vm0 = vcmp.eq.s32.totalorder %v4653_v15, 2 }
 0x6fb   :  { %v5665_v17 = vpop.eup %5664  ;;  %v9433_v35 = vand.u32 3, %v4444_v21  ;;  %v4128_v9 = vsel %vm9277_vm11, 0, %v4126_v16  ;;  %vm4758_vm5 = vcmp.lt.s32.totalorder %v9410_v3, 2  ;;  %v4657_v33 = vsel %vm4655_vm6, %v5655_v25, %v4656_v54 }
 0x6fc   :  { %v5667_v6 = vpop.eup %5666  ;;  %v4660_v36 = vsel %vm4658_vm0, %v4659_v28, %v5657_v26  ;;  %vm4550_vm1 = vcmp.lt.s32.totalorder %v4549_v5, 2  ;;  %v9438_v63 = vand.u32 3, %v4340_v40  ;;  %vm4862_vm10 = vcmp.lt.s32.totalorder %v9427_v1, 2 }
 0x6fd   :  { %v5669_v61 = vpop.eup %5668  ;;  %v4557_v59 = vsel %vm4550_vm1, %v4553_v23, %v4556_v42  ;;  %v4451_v39 = vxor.u32 2147483648, %v9425_v51  ;;  %v4236_v52 = vadd.s32 3, %v4232_v0  ;;  %vm4859_vm4 = vweird.f32 %v9082_v47  ;;  %v5700_v23 = vld [vmem:[#allocation5 + $0x80] sm:$0x7] }
 0x6fe   :  { %vm4863_vm11 = vcmp.eq.s32.totalorder %v9427_v1, 0  ;;  %v4760_v48 = vxor.u32 2147483648, %v5665_v17  ;;  %v4763_v22 = vxor.u32 2147483648, %v5663_v2  ;;  %v4132_v44 = vadd.s32 3, %v4128_v9 }
 0x6ff   :  { %v5671_v34 = vpop.eup %5670  ;;  %vm4866_vm12 = vcmp.eq.s32.totalorder %v9427_v1, 2  ;;  %vm4755_vm13 = vweird.f32 %v9073_v30  ;;  %v4661_v37 = vsel %vm4654_vm9, %v4657_v33, %v4660_v36  ;;  %vm4446_vm2 = vcmp.lt.s32.totalorder %v9433_v35, 2 }
 0x700   :  { %v5673_v60 = vpop.eup %5672  ;;  %v4344_v31 = vxor.u32 2147483648, %v5667_v6  ;;  %vm4651_vm3 = vweird.f32 %v8963_v8  ;;  %vm4447_vm8 = vcmp.eq.s32.totalorder %v9433_v35, 0  ;;  %vm4450_vm6 = vcmp.eq.s32.totalorder %v9433_v35, 2 }
 0x701   :  { %v5675_v20 = vpop.eup %5674  ;;  %vm4342_vm0 = vcmp.lt.s32.totalorder %v9438_v63, 2  ;;  %v4347_v12 = vxor.u32 2147483648, %v5669_v61  ;;  %v4448_v10 = vxor.u32 2147483648, %v5671_v34  ;;  %v4452_v24 = vsel %vm4450_vm6, %v4451_v39, %v5671_v34 }
 0x702   :  { %v5677_v46 = vpop.eup %5676  ;;  %vm4343_vm1 = vcmp.eq.s32.totalorder %v9438_v63, 0  ;;  %v4237_v41 = vand.u32 3, %v4236_v52  ;;  %v4761_v38 = vsel %vm4759_vm15, %v5663_v2, %v4760_v48  ;;  %v4764_v13 = vsel %vm4762_vm14, %v4763_v22, %v5665_v17 }
 0x703   :  { %v5679_v56 = vpop.eup %5678  ;;  %v4867_v14 = vxor.u32 2147483648, %v5677_v46  ;;  %v4133_v43 = vand.u32 3, %v4132_v44  ;;  %v4345_v25 = vsel %vm4343_vm1, %v5669_v61, %v4344_v31  ;;  %v4240_v27 = vxor.u32 2147483648, %v5675_v20 }
 0x704   :  { %v4864_v62 = vxor.u32 2147483648, %v5679_v56  ;;  %v4243_v29 = vxor.u32 2147483648, %v5673_v60  ;;  %vm4346_vm9 = vcmp.eq.s32.totalorder %v9438_v63, 2  ;;  %v4136_v26 = vxor.u32 2147483648, %v9417_v45 }
 0x705   :  { %v4868_v57 = vsel %vm4866_vm12, %v4867_v14, %v5679_v56  ;;  %v4139_v4 = vxor.u32 2147483648, %v9375_v58  ;;  %v4765_v50 = vsel %vm4758_vm5, %v4761_v38, %v4764_v13  ;;  %v4449_v15 = vsel %vm4447_vm8, %v9425_v51, %v4448_v10 }
 0x706   :  { %v4865_v5 = vsel %vm4863_vm11, %v5677_v46, %v4864_v62  ;;  %v4348_v53 = vsel %vm4346_vm9, %v4347_v12, %v5667_v6  ;;  %vm4239_vm15 = vcmp.eq.s32.totalorder %v4237_v41, 0  ;;  %vm4242_vm14 = vcmp.eq.s32.totalorder %v4237_v41, 2 }
 0x707   :  { %v4869_v7 = vsel %vm4862_vm10, %v4865_v5, %v4868_v57  ;;  %vm4135_vm12 = vcmp.eq.s32.totalorder %v4133_v43, 0  ;;  %v4241_v11 = vsel %vm4239_vm15, %v5673_v60, %v4240_v27  ;;  %v4244_v54 = vsel %vm4242_vm14, %v4243_v29, %v5675_v20 }
 0x708   :  { %v4870_v21 = vsel %vm4859_vm4, nan, %v4869_v7  ;;  %vm4138_vm11 = vcmp.eq.s32.totalorder %v4133_v43, 2  ;;  %v4766_v3 = vsel %vm4755_vm13, nan, %v4765_v50  ;;  %v4453_v28 = vsel %vm4446_vm2, %v4449_v15, %v4452_v24 }
 0x709   :  { %4903 = vmatprep.subr.mxu0 %v4870_v21  ;;  %v4137_v40 = vsel %vm4135_vm12, %v9375_v58, %v4136_v26  ;;  %v4140_v16 = vsel %vm4138_vm11, %v4139_v4, %v9417_v45  ;;  %v4662_v51 = vsel %vm4651_vm3, nan, %v4661_v37  ;;  %vm4547_vm5 = vweird.f32 %v8910_v32 }
 0x70a   :  { %4904 = vmatpush1.msra.mxu0 %v4766_v3  ;;  %v4349_v47 = vsel %vm4342_vm0, %v4345_v25, %v4348_v53  ;;  %vm4238_vm10 = vcmp.lt.s32.totalorder %v4237_v41, 2  ;;  %v4558_v30 = vsel %vm4547_vm5, nan, %v4557_v59  ;;  %vm4443_vm4 = vweird.f32 %v8759_v19  ;;  %v4875_v19 = vpop.permute.xlu0 %4874 }
 0x70b   :  { %4905 = vmatprep.subr.mxu0 %v4662_v51  ;;  %v4245_v1 = vsel %vm4238_vm10, %v4241_v11, %v4244_v54  ;;  %vm4134_vm13 = vcmp.lt.s32.totalorder %v4133_v43, 2  ;;  %v4454_v58 = vsel %vm4443_vm4, nan, %v4453_v28  ;;  %vm4339_vm2 = vweird.f32 %v8705_v18 }
 0x70c   :  { %4906 = vmatpush1.msra.mxu0 %v4558_v30  ;;  %v4141_v45 = vsel %vm4134_vm13, %v4137_v40, %v4140_v16  ;;  %v4350_v8 = vsel %vm4339_vm2, nan, %v4349_v47  ;;  %vm4235_vm3 = vweird.f32 %v8697_v55  ;;  %vm4131_vm8 = vweird.f32 %v8694_v49 }
 0x70d   :  { %4907 = vmatprep.subr.mxu0 %v4454_v58  ;;  %v4246_v32 = vsel %vm4235_vm3, nan, %v4245_v1  ;;  %v4142_v2 = vsel %vm4131_vm8, nan, %v4141_v45  ;;  %v9840_v31 = vmov 683565275   ;;  %v9841_v46 = vmov 2475754826  }
 0x70e   :  { %4908 = vmatpush1.msra.mxu0 %v4350_v8  ;;  %v9842_v24 = vmov 2131351028   ;;  %v9843_v56 = vmov 2102212464   ;;  %v9844_v38 = vmov 920167782  }
 0x70f   :  { %4909 = vmatprep.subr.mxu0 %v4246_v32  ;;  %v9845_v57 = vmov 1326507024  }
 0x710   :  { %4910 = vmatpush1.msra.mxu0 %v4142_v2 }
 0x711   :  { %5359 = vmatmul.mubr.msk.f32.vlgmr.msra.gmra.mxu0 %vm2034_vm7, %v5700_v23 }
 0x7d1   :  { %v4945_v42 = vpop.f32.mrf.mxu0 }
 0x7d2   :  { %v9489_v0 = vadd.f32 %v4945_v42, %v4875_v19 }
 0x7d3   :  { %v4947_v18 = vpop.f32.mrf.mxu0 }
 0x7d4   :  { %v4950_v17 = vand.u32 2147483647, %v9489_v0  ;;  %v4953_v35 = vand.u32 2139095040, %v9489_v0  ;;  %v9493_v55 = vadd.f32 %v4947_v18, %v4875_v19  ;;  %vm4952_vm3 = vcmp.lt.s32.totalorder %v9489_v0, 0 }
 0x7d6   :  { %v4954_v9 = vshrl.u32 %v4953_v35, 23  ;;  %v4957_v49 = vand.u32 8388607, %v4950_v17  ;;  %v5057_v6 = vand.u32 2139095040, %v9493_v55  ;;  %v5054_v36 = vand.u32 2147483647, %v9493_v55 }
 0x7d7   :  { %vm9564_vm8 = vcmp.le.f32.partialorder %v4950_v17, 0.7853982 }
 0x7d8   :  { %v5360_v33 = vadd.s32 4294967169, %v4954_v9  ;;  %v5058_v63 = vshrl.u32 %v5057_v6, 23  ;;  %v4958_v59 = vor.u32 8388608, %v4957_v49  ;;  %v5061_v52 = vand.u32 8388607, %v5054_v36 }
 0x7da   :  { %v4960_v61 = vadd.s32 1, %v5360_v33  ;;  %v5364_v39 = vadd.s32 4294967169, %v5058_v63  ;;  %v9501_v60 = vshll.u32 %v4958_v59, 8  ;;  %v5062_v12 = vor.u32 8388608, %v5061_v52 }
 0x7dc   :  { %vm4961_vm7 = vcmp.gt.s32.totalorder %v4960_v61, 0  ;;  %v5064_v48 = vadd.s32 1, %v5364_v39  ;;  %v5102_v58 = vshll.u32 %v5062_v12, 8 }
 0x7dd   :  { %v4962_v34 = vsel %vm4961_vm7, %v4960_v61, 0  ;;  %vm5056_vm7 = vcmp.lt.s32.totalorder %v9493_v55, 0 }
 0x7de   :  { %v4963_v22 = vshrl.u32 %v4962_v34, 5  ;;  %v4964_v44 = vand.u32 31, %v4962_v34  ;;  %vm5065_vm6 = vcmp.gt.s32.totalorder %v5064_v48, 0 }
 0x7df   :  { %v5066_v15 = vsel %vm5065_vm6, %v5064_v48, 0  ;;  %vm5055_vm6 = vcmp.le.f32.partialorder %v5054_v36, 0.7853982 }
 0x7e0   :  { %v4965_v37 = vsub.s32 32, %v4964_v44  ;;  %v4967_v20 = vshll.u32 %v9840_v31, %v4964_v44  ;;  %v4970_v10 = vshll.u32 %v9841_v46, %v4964_v44  ;;  %v4973_v41 = vshll.u32 %v9842_v24, %v4964_v44 }
 0x7e1   :  { %v4976_v14 = vshll.u32 %v9843_v56, %v4964_v44  ;;  %v4979_v13 = vshll.u32 %v9844_v38, %v4964_v44  ;;  %vm4982_vm0 = vcmp.lt.s32.totalorder %v4963_v22, 1  ;;  %vm4984_vm1 = vcmp.lt.s32.totalorder %v4963_v22, 3 }
 0x7e2   :  { %v4968_v43 = vshrl.u32 %v9841_v46, %v4965_v37  ;;  %v4971_v62 = vshrl.u32 %v9842_v24, %v4965_v37  ;;  %v4974_v25 = vshrl.u32 %v9843_v56, %v4965_v37  ;;  %v4966_v27 = vshrl.u32 %v9840_v31, %v4965_v37 }
 0x7e3   :  { %v4977_v29 = vshrl.u32 %v9844_v38, %v4965_v37  ;;  %v4980_v26 = vshrl.u32 %v9845_v57, %v4965_v37  ;;  %vm4985_vm9 = vcmp.lt.s32.totalorder %v4963_v22, 4  ;;  %v5068_v21 = vand.u32 31, %v5066_v15 }
 0x7e4   :  { %v4969_v4 = vor.u32 %v4968_v43, %v4967_v20  ;;  %v4972_v5 = vor.u32 %v4971_v62, %v4970_v10  ;;  %v4975_v50 = vor.u32 %v4974_v25, %v4973_v41  ;;  %vm4983_vm15 = vcmp.lt.s32.totalorder %v4963_v22, 2 }
 0x7e5   :  { %v4978_v53 = vor.u32 %v4977_v29, %v4976_v14  ;;  %v4981_v7 = vor.u32 %v4980_v26, %v4979_v13  ;;  %v5069_v47 = vsub.s32 32, %v5068_v21  ;;  %v5067_v2 = vshrl.u32 %v5066_v15, 5 }
 0x7e6   :  { %v4986_v11 = vsel %vm4982_vm0, %v4966_v27, %v4969_v4  ;;  %v4987_v54 = vsel %vm4985_vm9, %v4975_v50, 2102212464  ;;  %v4990_v3 = vsel %vm4982_vm0, %v4969_v4, %v4972_v5  ;;  %v4994_v28 = vsel %vm4982_vm0, %v4972_v5, %v4975_v50 }
 0x7e7   :  { %v4988_v40 = vsel %vm4984_vm1, %v4972_v5, %v4987_v54  ;;  %v4991_v16 = vsel %vm4985_vm9, %v4978_v53, 920167782  ;;  %v4995_v51 = vsel %vm4985_vm9, %v4981_v7, 1326507024  ;;  %v5071_v35 = vshll.u32 %v9840_v31, %v5068_v21 }
 0x7e8   :  { %v4992_v30 = vsel %vm4984_vm1, %v4975_v50, %v4991_v16  ;;  %v4996_v1 = vsel %vm4984_vm1, %v4978_v53, %v4995_v51  ;;  %v4989_v45 = vsel %vm4983_vm15, %v4986_v11, %v4988_v40  ;;  %v5072_v9 = vshrl.u32 %v9841_v46, %v5069_v47 }
 0x7e9   :  { %v4993_v8 = vsel %vm4983_vm15, %v4990_v3, %v4992_v30  ;;  %v4997_v32 = vsel %vm4983_vm15, %v4994_v28, %v4996_v1  ;;  %v5074_v49 = vshll.u32 %v9841_v46, %v5068_v21  ;;  %v5075_v6 = vshrl.u32 %v9842_v24, %v5069_v47 }
 0x7ea   :  { %v9522_v23 = vmul.u32.u64.low %v9501_v60, %v4997_v32  ;;  %v9523_v19 = vmul.u32.u64.high %v9501_v60, %v4997_v32, %v9522_v23  ;;  %v9526_v42 = vmul.u32.u64.low %v9501_v60, %v4993_v8  ;;  %v9527_v18 = vmul.u32.u64.high %v9501_v60, %v4993_v8, %v9526_v42 }
 0x7eb   :  { %v5077_v33 = vshll.u32 %v9842_v24, %v5068_v21  ;;  %v5078_v63 = vshrl.u32 %v9843_v56, %v5069_v47  ;;  %v5080_v61 = vshll.u32 %v9843_v56, %v5068_v21  ;;  %v5081_v59 = vshrl.u32 %v9844_v38, %v5069_v47 }
 0x7ec   :  { %v5073_v39 = vor.u32 %v5072_v9, %v5071_v35  ;;  %v5076_v52 = vor.u32 %v5075_v6, %v5074_v49  ;;  %v5083_v34 = vshll.u32 %v9844_v38, %v5068_v21  ;;  %v5084_v48 = vshrl.u32 %v9845_v57, %v5069_v47 }
 0x7ed   :  { %v5005_v22 = vmul.u32 %v9501_v60, %v4989_v45  ;;  %vm5007_vm14 = vc.u32 %v9523_v19, %v9526_v42  ;;  %v5008_v44 = vadd.s32 1, %v9527_v18  ;;  %v5079_v37 = vor.u32 %v5078_v63, %v5077_v33 }
 0x7ee   :  { %v5070_v20 = vshrl.u32 %v9840_v31, %v5069_v47  ;;  %v5082_v12 = vor.u32 %v5081_v59, %v5080_v61  ;;  %v5085_v46 = vor.u32 %v5084_v48, %v5083_v34  ;;  %vm5086_vm12 = vcmp.lt.s32.totalorder %v5067_v2, 1 }
 0x7ef   :  { %v5009_v10 = vsel %vm5007_vm14, %v5008_v44, %v9527_v18  ;;  %vm5088_vm11 = vcmp.lt.s32.totalorder %v5067_v2, 3  ;;  %vm5089_vm5 = vcmp.lt.s32.totalorder %v5067_v2, 4  ;;  %v5094_v24 = vsel %vm5086_vm12, %v5073_v39, %v5076_v52 }
 0x7f0   :  { %v5010_v41 = vadd.s32 %v5009_v10, %v5005_v22  ;;  %v5091_v56 = vsel %vm5089_vm5, %v5079_v37, 2102212464  ;;  %v5095_v14 = vsel %vm5089_vm5, %v5082_v12, 920167782  ;;  %v5098_v60 = vsel %vm5086_vm12, %v5076_v52, %v5079_v37 }
 0x7f1   :  { %vm5087_vm10 = vcmp.lt.s32.totalorder %v5067_v2, 2  ;;  %v5090_v38 = vsel %vm5086_vm12, %v5070_v20, %v5073_v39  ;;  %v5096_v13 = vsel %vm5088_vm11, %v5079_v37, %v5095_v14  ;;  %v5099_v43 = vsel %vm5089_vm5, %v5085_v46, 1326507024 }
 0x7f2   :  { %v5011_v62 = vadd.s32 536870912, %v5010_v41  ;;  %v5092_v25 = vsel %vm5088_vm11, %v5076_v52, %v5091_v56  ;;  %v5097_v27 = vsel %vm5087_vm10, %v5094_v24, %v5096_v13  ;;  %v5100_v31 = vsel %vm5088_vm11, %v5082_v12, %v5099_v43 }
 0x7f3   :  { %v5101_v29 = vsel %vm5087_vm10, %v5098_v60, %v5100_v31  ;;  %v9546_v57 = vmul.u32.u64.low %v5102_v58, %v5097_v27  ;;  %v9547_v26 = vmul.u32.u64.high %v5102_v58, %v5097_v27, %v9546_v57  ;;  %v5093_v15 = vsel %vm5087_vm10, %v5090_v38, %v5092_v25 }
 0x7f4   :  { %v9549_v4 = vshrl.u32 %v5011_v62, 30  ;;  %v9551_v5 = vmul.u32.u64.low %v5102_v58, %v5101_v29  ;;  %v9552_v50 = vmul.u32.u64.high %v5102_v58, %v5101_v29, %v9551_v5  ;;  %v5109_v11 = vmul.u32 %v5102_v58, %v5093_v15 }
 0x7f5   :  { %v5112_v7 = vadd.s32 1, %v9547_v26  ;;  %v5006_v32 = vadd.s32 %v9526_v42, %v9523_v19  ;;  %vm5042_vm11 = vweird.f32 %v9489_v0  ;;  %vm5146_vm5 = vweird.f32 %v9493_v55 }
 0x7f6   :  { %v5013_v53 = vshll.u32 %v9549_v4, 30  ;;  %vm5111_vm4 = vc.u32 %v9552_v50, %v9546_v57  ;;  %v5110_v22 = vadd.s32 %v9546_v57, %v9552_v50  ;;  %v5036_v17 = vsub.s32 4, %v9549_v4 }
 0x7f7   :  { %v5113_v54 = vsel %vm5111_vm4, %v5112_v7, %v9547_v26 }
 0x7f8   :  { %v5014_v21 = vsub.s32 %v5010_v41, %v5013_v53  ;;  %v5114_v28 = vadd.s32 %v5113_v54, %v5109_v11  ;;  %v5037_v27 = vsel %vm4952_vm3, %v5036_v17, %v9549_v4 }
 0x7f9   :  { %v5039_v29 = vsel %vm9564_vm8, 0, %v5037_v27 }
 0x7fa   :  { %v5016_v3 = vsub.s32 0, %v5014_v21  ;;  %v5115_v16 = vadd.s32 536870912, %v5114_v28  ;;  %v5043_v26 = vadd.s32 3, %v5039_v29 }
 0x7fc   :  { %v5361_v40 = vmin.u32 %v5016_v3, %v5014_v21  ;;  %v5116_v47 = vshrl.u32 %v5115_v16, 30  ;;  %v5044_v7 = vand.u32 3, %v5043_v26 }
 0x7fe   :  { %v5018_v51 = vclz %v5361_v40  ;;  %v5117_v1 = vshll.u32 %v5116_v47, 30  ;;  %v5140_v62 = vsub.s32 4, %v5116_v47  ;;  %vm5046_vm0 = vcmp.eq.s32.totalorder %v5044_v7, 0 }
 0x7ff   :  { %vm5049_vm1 = vcmp.eq.s32.totalorder %v5044_v7, 2  ;;  %vm5045_vm9 = vcmp.lt.s32.totalorder %v5044_v7, 2 }
 0x800   :  { %v5362_v30 = vadd.s32 4294967294, %v5018_v51  ;;  %v5118_v45 = vsub.s32 %v5114_v28, %v5117_v1  ;;  %v5141_v57 = vsel %vm5056_vm7, %v5140_v62, %v5116_v47 }
 0x801   :  { %v5143_v5 = vsel %vm5055_vm6, 0, %v5141_v57 }
 0x802   :  { %vm5363_vm13 = vcmp.lt.s32.totalorder %v5362_v30, 0  ;;  %v5120_v23 = vsub.s32 0, %v5118_v45  ;;  %v5147_v53 = vadd.s32 3, %v5143_v5 }
 0x803   :  { %v5021_v8 = vsel %vm5363_vm13, 0, %v5362_v30 }
 0x804   :  { %v5022_v2 = vsub.s32 32, %v5021_v8  ;;  %v5026_v58 = vsub.s32 4294967266, %v5021_v8  ;;  %v5023_v18 = vshll.u32 %v5014_v21, %v5021_v8  ;;  %v5365_v49 = vmin.u32 %v5120_v23, %v5118_v45 }
 0x805   :  { %v5148_v11 = vand.u32 3, %v5147_v53 }
 0x806   :  { %v5024_v35 = vshrl.u32 %v5006_v32, %v5022_v2  ;;  %v5027_v9 = vadd.s32 127, %v5026_v58  ;;  %v5122_v63 = vclz %v5365_v49 }
 0x807   :  { %vm5153_vm15 = vcmp.eq.s32.totalorder %v5148_v11, 2  ;;  %vm5150_vm14 = vcmp.eq.s32.totalorder %v5148_v11, 0  ;;  %vm5149_vm12 = vcmp.lt.s32.totalorder %v5148_v11, 2 }
 0x808   :  { %v5025_v6 = vor.u32 %v5024_v35, %v5023_v18  ;;  %v5028_v33 = vshll.u32 %v5027_v9, 23  ;;  %v5366_v59 = vadd.s32 4294967294, %v5122_v63 }
 0x80a   :  { %v5029_v61 = vor.u32 4788187, %v5028_v33  ;;  %v5032_v52 = vcvt.s32.f32 %v5025_v6  ;;  %vm5367_vm2 = vcmp.lt.s32.totalorder %v5366_v59, 0 }
 0x80b   :  { %v5125_v34 = vsel %vm5367_vm2, 0, %v5366_v59 }
 0x80c   :  { %v5030_v39 = vand.u32 2147483647, %v5029_v61  ;;  %v5126_v19 = vsub.s32 32, %v5125_v34  ;;  %v5130_v42 = vsub.s32 4294967266, %v5125_v34  ;;  %v5127_v37 = vshll.u32 %v5118_v45, %v5125_v34 }
 0x80e   :  { %v5033_v48 = vmul.f32 %v5032_v52, %v5030_v39  ;;  %v5128_v20 = vshrl.u32 %v5110_v22, %v5126_v19  ;;  %v5131_v12 = vadd.s32 127, %v5130_v42 }
 0x810   :  { %v5034_v44 = vxor.u32 2147483648, %v5033_v48  ;;  %v5129_v24 = vor.u32 %v5128_v20, %v5127_v37  ;;  %v5132_v41 = vshll.u32 %v5131_v12, 23 }
 0x812   :  { %v5035_v10 = vsel %vm4952_vm3, %v5034_v44, %v5033_v48  ;;  %v5133_v14 = vor.u32 4788187, %v5132_v41  ;;  %v5136_v38 = vcvt.s32.f32 %v5129_v24 }
 0x813   :  { %v5038_v56 = vsel %vm9564_vm8, %v9489_v0, %v5035_v10 }
 0x814   :  { %5680 = vcosq.f32 %v5038_v56  ;;  %v5134_v60 = vand.u32 2147483647, %v5133_v14 }
 0x815   :  { %5682 = vsinq.f32 %v5038_v56 }
 0x816   :  { %v5137_v13 = vmul.f32 %v5136_v38, %v5134_v60 }
 0x818   :  { %v5138_v43 = vxor.u32 2147483648, %v5137_v13 }
 0x81a   :  { %v5139_v25 = vsel %vm5056_vm7, %v5138_v43, %v5137_v13 }
 0x81b   :  { %v5142_v31 = vsel %vm5055_vm6, %v9493_v55, %v5139_v25 }
 0x81c   :  { %5684 = vcosq.f32 %v5142_v31 }
 0x81d   :  { %5686 = vsinq.f32 %v5142_v31 }
 0x821   :  { %v5681_v50 = vpop.eup %5680 }
 0x822   :  { %v5683_v15 = vpop.eup %5682  ;;  %v5050_v21 = vxor.u32 2147483648, %v5681_v50 }
 0x823   :  { %v5047_v36 = vxor.u32 2147483648, %v5683_v15 }
 0x824   :  { %v5051_v3 = vsel %vm5049_vm1, %v5050_v21, %v5683_v15 }
 0x825   :  { %v5048_v54 = vsel %vm5046_vm0, %v5681_v50, %v5047_v36 }
 0x826   :  { %v5052_v51 = vsel %vm5045_vm9, %v5048_v54, %v5051_v3 }
 0x827   :  { %v5053_v45 = vsel %vm5042_vm11, nan, %v5052_v51 }
 0x829   :  { %v5685_v4 = vpop.eup %5684 }
 0x82a   :  { %v5687_v28 = vpop.eup %5686  ;;  %v5154_v40 = vxor.u32 2147483648, %v5685_v4 }
 0x82b   :  { %v5151_v16 = vxor.u32 2147483648, %v5687_v28 }
 0x82c   :  { %v5155_v47 = vsel %vm5153_vm15, %v5154_v40, %v5687_v28 }
 0x82d   :  { %v5152_v30 = vsel %vm5150_vm14, %v5685_v4, %v5151_v16 }
 0x82e   :  { %v5156_v1 = vsel %vm5149_vm12, %v5152_v30, %v5155_v47 }
 0x82f   :  { %v5157_v8 = vsel %vm5146_vm5, nan, %v5156_v1 }
 0x830   :  { %v5160_v32 = vcombine.low %v5053_v45, %v5157_v8 }
 0x832   :  { %5162 = vst [vmem:[#allocation7] sm:$0x77] %v5160_v32 }
 0x833   :  { %5752 = shalt.err (!%p5749_p0)
}
 0x834   :  { %5172 = dma.vmem_to_hbm [thread:$0]  %s5170_s1, 128, %s9590_s2, [#allocation4]  }
 0x835   :  { %5765 = dma.done.wait [#allocation4], 128  }
 0x836   :  { %5766 = vsyncadd [#allocation4], 4294967168 }
 0x837   :  { %5176 = vsyncpa [#allocation3], 1 }
 0x838   :  { %5177 = vsyncpa [#allocation6], 1 }
 0x839   :  { %5178 = vsyncpa [#allocation4], 1 }

</bundles_post_ra>
